<compile_context>
chip_gen: v5e
topology: v5e:2x2
jax: 0.10.0
libtpu: 0.0.40
codegen_flags: <defaults>
</compile_context>

<pallas_src>
import functools

import jax
import jax.numpy as jnp
from jax.experimental import pallas as pl
from jax.experimental.pallas import tpu as pltpu

# ---- module hyper-params (from the PyTorch source) ----
N_EMBD = 128
BLOCK_SIZE = 64
N_HEAD = 4
HEAD_SIZE = N_EMBD // N_HEAD
LN_EPS = 1e-5


def _layer_norm(v, gamma, beta):
    mu = jnp.mean(v, axis=-1, keepdims=True)
    var = jnp.mean((v - mu) ** 2, axis=-1, keepdims=True)
    return (v - mu) * jax.lax.rsqrt(var + LN_EPS) * gamma + beta


def block_kernel(x_ref,
                 wq_ref, wk_ref, wv_ref,   # (H, C, D) bf16, scale folded into wq
                 wo_ref,                   # (H, D, C) bf16
                 w1_ref, b1_ref, w2_ref,   # MLP: (C,4C) bf16, (1,4C) f32, (4C,C) bf16
                 vec_ref,                  # (6, C) f32: g1, be1, g2, be2, bo, b2
                 o_ref):
    BT, T, C = x_ref.shape
    H, D = N_HEAD, HEAD_SIZE
    N = BT * T

    x = x_ref[...].reshape(N, C)                       # (N, C) f32 (major-dim reshape)

    vecs = vec_ref[...]                                # (6, C) f32
    g1, be1 = vecs[0:1], vecs[1:2]
    g2, be2 = vecs[2:3], vecs[3:4]
    bo, b2 = vecs[4:5], vecs[5:6]

    # ---------------- self-attention branch ----------------
    h1 = _layer_norm(x, g1, be1)                       # f32
    hb = jnp.broadcast_to(h1.astype(jnp.bfloat16), (H, N, C))

    # Single batched (over heads) projections; 1/sqrt(C) already folded into wq.
    q = jnp.einsum('hnc,hcd->hnd', hb, wq_ref[...], preferred_element_type=jnp.float32)
    k = jnp.einsum('hnc,hcd->hnd', hb, wk_ref[...], preferred_element_type=jnp.float32)
    v = jnp.einsum('hnc,hcd->hnd', hb, wv_ref[...], preferred_element_type=jnp.float32)

    def split_batch(a):   # (H, BT*T, D) -> (H*BT, T, D): major-dim reshapes only
        return a.reshape(H, BT, T, D).reshape(H * BT, T, D).astype(jnp.bfloat16)

    qb, kb, vb = split_batch(q), split_batch(k), split_batch(v)

    # Batched QK^T over all (head, batch) pairs at once.
    s = jnp.einsum('bqd,bkd->bqk', qb, kb, preferred_element_type=jnp.float32)
    rows = jax.lax.broadcasted_iota(jnp.int32, (T, T), 0)
    cols = jax.lax.broadcasted_iota(jnp.int32, (T, T), 1)
    s = jnp.where((rows >= cols)[None], s, -jnp.inf)
    s = s - jnp.max(s, axis=-1, keepdims=True)
    p = jnp.exp(s)
    p = p * pl.reciprocal(jnp.sum(p, axis=-1, keepdims=True), approx=True)
    # TODO(synk): attention-weight dropout skipped (eval / inference mode).

    att = jnp.einsum('bqk,bkd->bqd', p.astype(jnp.bfloat16), vb,
                     preferred_element_type=jnp.float32)          # (H*BT, T, D)
    att = att.reshape(H, BT, T, D).reshape(H, N, D).astype(jnp.bfloat16)

    # Output projection: sum_h att_h @ wo_h  (== concat(heads) @ W_proj).
    proj = jnp.einsum('hnd,hdc->hnc', att, wo_ref[...],
                      preferred_element_type=jnp.float32)         # (H, N, C)
    sa = jnp.sum(proj, axis=0) + bo                               # (N, C)
    # TODO(synk): post-projection dropout skipped (eval / inference mode).

    x1 = x + sa

    # ---------------- feed-forward branch ----------------
    h2 = _layer_norm(x1, g2, be2).astype(jnp.bfloat16)
    f = jnp.dot(h2, w1_ref[...], preferred_element_type=jnp.float32) + b1_ref[...]
    f = jnp.maximum(f, 0.0).astype(jnp.bfloat16)
    f = jnp.dot(f, w2_ref[...], preferred_element_type=jnp.float32) + b2
    # TODO(synk): FFN output dropout skipped (eval / inference mode).

    o_ref[...] = (x1 + f).reshape(BT, T, C)


def _full_spec(shape):
    nd = len(shape)
    return pl.BlockSpec(shape, lambda i, _nd=nd: (0,) * _nd)


def _default_b_tile(batch):
    """One grid step per TensorCore: fuse the whole batch on 1-TC chips
    (v5e / v6e), split across the 2 TCs of v7x."""
    try:
        kind = jax.devices()[0].device_kind.lower()
    except Exception:
        kind = ""
    n_tc = 2 if ("v7" in kind or "7x" in kind) else 1
    bt = max(1, batch // n_tc)
    while batch % bt:
        bt -= 1
    return bt


@functools.partial(jax.jit, static_argnames=("b_tile",))
def transformer_block(x, params, *, b_tile=1):
    B, T, C = x.shape
    assert C == N_EMBD and T <= BLOCK_SIZE and B % b_tile == 0
    H, D = N_HEAD, HEAD_SIZE

    # NOTE: reference scales by n_embd ** -0.5 (not head_size ** -0.5).
    scale = jnp.float32(C) ** -0.5

    # Head-major weight layouts + bf16 casts, prepared outside the kernel.
    wq = jnp.transpose((params["wq"] * scale).reshape(C, H, D), (1, 0, 2)).astype(jnp.bfloat16)
    wk = jnp.transpose(params["wk"].reshape(C, H, D), (1, 0, 2)).astype(jnp.bfloat16)
    wv = jnp.transpose(params["wv"].reshape(C, H, D), (1, 0, 2)).astype(jnp.bfloat16)
    wo = params["wo"].reshape(H, D, C).astype(jnp.bfloat16)
    w1 = params["w1"].astype(jnp.bfloat16)
    w2 = params["w2"].astype(jnp.bfloat16)
    b1 = params["b1"].astype(jnp.float32)
    vecs = jnp.concatenate([params["g1"], params["be1"],
                            params["g2"], params["be2"],
                            params["bo"], params["b2"]], axis=0).astype(jnp.float32)

    in_specs = [
        pl.BlockSpec((b_tile, T, C), lambda i: (i, 0, 0)),   # x: b_tile batch slab
        _full_spec(wq.shape), _full_spec(wk.shape), _full_spec(wv.shape),
        _full_spec(wo.shape),
        _full_spec(w1.shape), _full_spec(b1.shape), _full_spec(w2.shape),
        _full_spec(vecs.shape),
    ]

    return pl.pallas_call(
        block_kernel,
        out_shape=jax.ShapeDtypeStruct((B, T, C), jnp.float32),
        grid_spec=pltpu.PrefetchScalarGridSpec(
            num_scalar_prefetch=0,
            grid=(B // b_tile,),
            in_specs=in_specs,
            out_specs=pl.BlockSpec((b_tile, T, C), lambda i: (i, 0, 0)),
        ),
        compiler_params=pltpu.CompilerParams(
            dimension_semantics=("parallel",),
        ),
    )(x, wq, wk, wv, wo, w1, b1, w2, vecs)


def make_params(key):
    ks = jax.random.split(key, 8)

    def lin(k, fan_in, fan_out):
        bound = 1.0 / jnp.sqrt(fan_in)
        return jax.random.uniform(k, (fan_in, fan_out), jnp.float32, -bound, bound)

    return dict(
        wq=lin(ks[0], N_EMBD, N_EMBD),
        wk=lin(ks[1], N_EMBD, N_EMBD),
        wv=lin(ks[2], N_EMBD, N_EMBD),
        wo=lin(ks[3], N_EMBD, N_EMBD),
        bo=jax.random.uniform(ks[4], (1, N_EMBD), jnp.float32, -0.05, 0.05),
        w1=lin(ks[5], N_EMBD, 4 * N_EMBD),
        b1=jax.random.uniform(ks[6], (1, 4 * N_EMBD), jnp.float32, -0.05, 0.05),
        w2=lin(ks[7], 4 * N_EMBD, N_EMBD),
        b2=jnp.zeros((1, N_EMBD), jnp.float32),
        g1=jnp.ones((1, N_EMBD), jnp.float32),
        be1=jnp.zeros((1, N_EMBD), jnp.float32),
        g2=jnp.ones((1, N_EMBD), jnp.float32),
        be2=jnp.zeros((1, N_EMBD), jnp.float32),
    )


def reference_block(x, p):
    """Pure-JAX f32 reference of the PyTorch forward pass."""
    def ln(v, g, b):
        mu = jnp.mean(v, -1, keepdims=True)
        var = jnp.mean((v - mu) ** 2, -1, keepdims=True)
        return (v - mu) / jnp.sqrt(var + LN_EPS) * g + b

    B, T, C = x.shape
    h = ln(x, p["g1"][0], p["be1"][0])
    q = h @ p["wq"]
    k = h @ p["wk"]
    v = h @ p["wv"]
    mask = jnp.tril(jnp.ones((T, T), bool))
    outs = []
    for hh in range(N_HEAD):
        sl = slice(hh * HEAD_SIZE, (hh + 1) * HEAD_SIZE)
        wei = (q[..., sl] @ jnp.swapaxes(k[..., sl], -1, -2)) * (C ** -0.5)
        wei = jnp.where(mask, wei, -jnp.inf)
        wei = jax.nn.softmax(wei, axis=-1)
        outs.append(wei @ v[..., sl])
    att = jnp.concatenate(outs, -1) @ p["wo"] + p["bo"][0]
    x1 = x + att
    h2 = ln(x1, p["g2"][0], p["be2"][0])
    f = jnp.maximum(h2 @ p["w1"] + p["b1"][0], 0.0) @ p["w2"] + p["b2"][0]
    return x1 + f


if __name__ == "__main__":
    key = jax.random.PRNGKey(0)
    kx, kp = jax.random.split(key)
    B, T = 2, BLOCK_SIZE                       # (2, 64, 128)
    x = jax.random.normal(kx, (B, T, N_EMBD), jnp.float32)
    params = make_params(kp)

    b_tile = _default_b_tile(B)
    out = transformer_block(x, params, b_tile=b_tile)
    out = jax.block_until_ready(out)

    ref = reference_block(x, params)
    assert out.shape == (B, T, N_EMBD)
    max_err = jnp.max(jnp.abs(out - ref))
    # bf16 MXU operands (f32 accumulate) -> relaxed tolerance vs f32 reference.
    assert jnp.allclose(out, ref, atol=5e-2, rtol=5e-2), \
        f"mismatch vs reference (max abs err {max_err})"

    print("KERNEL_OK")
</pallas_src>

<mosaic_0001>
module attributes {stable_mosaic.version = 11 : i64} {
  func.func @block_kernel(%arg0: i32, %arg1: memref<2x64x128xf32, #tpu.memory_space<vmem>>, %arg2: memref<4x128x32xbf16, #tpu.memory_space<vmem>>, %arg3: memref<4x128x32xbf16, #tpu.memory_space<vmem>>, %arg4: memref<4x128x32xbf16, #tpu.memory_space<vmem>>, %arg5: memref<4x32x128xbf16, #tpu.memory_space<vmem>>, %arg6: memref<128x512xbf16, #tpu.memory_space<vmem>>, %arg7: memref<1x512xf32, #tpu.memory_space<vmem>>, %arg8: memref<512x128xbf16, #tpu.memory_space<vmem>>, %arg9: memref<6x128xf32, #tpu.memory_space<vmem>>, %arg10: memref<2x64x128xf32, #tpu.memory_space<vmem>>) attributes {dimension_semantics = [#tpu.dimension_semantics<parallel>], iteration_bounds = array<i64: 1>, scalar_prefetch = 0 : i64, scratch_operands = 0 : i64, tpu.core_type = #tpu.core_type<tc>, window_params = [{transform_indices = @transform_0, window_bounds = array<i64: 2, 64, 128>}, {pipeline_mode = #tpu.pipeline_mode<synchronous>, transform_indices = @transform_1, window_bounds = array<i64: 4, 128, 32>}, {pipeline_mode = #tpu.pipeline_mode<synchronous>, transform_indices = @transform_2, window_bounds = array<i64: 4, 128, 32>}, {pipeline_mode = #tpu.pipeline_mode<synchronous>, transform_indices = @transform_3, window_bounds = array<i64: 4, 128, 32>}, {pipeline_mode = #tpu.pipeline_mode<synchronous>, transform_indices = @transform_4, window_bounds = array<i64: 4, 32, 128>}, {pipeline_mode = #tpu.pipeline_mode<synchronous>, transform_indices = @transform_5, window_bounds = array<i64: 128, 512>}, {pipeline_mode = #tpu.pipeline_mode<synchronous>, transform_indices = @transform_6, window_bounds = array<i64: 1, 512>}, {pipeline_mode = #tpu.pipeline_mode<synchronous>, transform_indices = @transform_7, window_bounds = array<i64: 512, 128>}, {pipeline_mode = #tpu.pipeline_mode<synchronous>, transform_indices = @transform_8, window_bounds = array<i64: 6, 128>}, {transform_indices = @transform_9, window_bounds = array<i64: 2, 64, 128>}]} {
    %c0 = arith.constant 0 : index
    %c0_0 = arith.constant 0 : index
    %c0_1 = arith.constant 0 : index
    %0 = vector.load %arg1[%c0, %c0_0, %c0_1] : memref<2x64x128xf32, #tpu.memory_space<vmem>>, vector<2x64x128xf32>
    %1 = vector.shape_cast %0 : vector<2x64x128xf32> to vector<128x128xf32>
    %c0_2 = arith.constant 0 : index
    %c0_3 = arith.constant 0 : index
    %2 = vector.load %arg9[%c0_2, %c0_3] : memref<6x128xf32, #tpu.memory_space<vmem>>, vector<6x128xf32>
    %3 = vector.extract_strided_slice %2 {offsets = [0, 0], sizes = [1, 128], strides = [1, 1]} : vector<6x128xf32> to vector<1x128xf32>
    %4 = vector.extract_strided_slice %2 {offsets = [1, 0], sizes = [1, 128], strides = [1, 1]} : vector<6x128xf32> to vector<1x128xf32>
    %5 = vector.extract_strided_slice %2 {offsets = [2, 0], sizes = [1, 128], strides = [1, 1]} : vector<6x128xf32> to vector<1x128xf32>
    %6 = vector.extract_strided_slice %2 {offsets = [3, 0], sizes = [1, 128], strides = [1, 1]} : vector<6x128xf32> to vector<1x128xf32>
    %7 = vector.extract_strided_slice %2 {offsets = [4, 0], sizes = [1, 128], strides = [1, 1]} : vector<6x128xf32> to vector<1x128xf32>
    %8 = vector.extract_strided_slice %2 {offsets = [5, 0], sizes = [1, 128], strides = [1, 1]} : vector<6x128xf32> to vector<1x128xf32>
    %cst = arith.constant dense<0.000000e+00> : vector<128xf32>
    %9 = vector.multi_reduction <add>, %1, %cst [1] : vector<128x128xf32> to vector<128xf32>
    %10 = vector.shape_cast %9 : vector<128xf32> to vector<128x1xf32>
    %cst_4 = arith.constant 1.280000e+02 : f32
    %11 = vector.broadcast %cst_4 : f32 to vector<128x1xf32>
    %12 = arith.divf %10, %11 : vector<128x1xf32>
    %13 = vector.broadcast %12 : vector<128x1xf32> to vector<128x128xf32>
    %14 = arith.subf %1, %13 : vector<128x128xf32>
    %15 = arith.mulf %14, %14 : vector<128x128xf32>
    %cst_5 = arith.constant dense<0.000000e+00> : vector<128xf32>
    %16 = vector.multi_reduction <add>, %15, %cst_5 [1] : vector<128x128xf32> to vector<128xf32>
    %17 = vector.shape_cast %16 : vector<128xf32> to vector<128x1xf32>
    %cst_6 = arith.constant 1.280000e+02 : f32
    %18 = vector.broadcast %cst_6 : f32 to vector<128x1xf32>
    %19 = arith.divf %17, %18 : vector<128x1xf32>
    %20 = vector.broadcast %12 : vector<128x1xf32> to vector<128x128xf32>
    %21 = arith.subf %1, %20 : vector<128x128xf32>
    %cst_7 = arith.constant 9.99999974E-6 : f32
    %22 = vector.broadcast %cst_7 : f32 to vector<128x1xf32>
    %23 = arith.addf %19, %22 : vector<128x1xf32>
    %24 = math.rsqrt %23 : vector<128x1xf32>
    %25 = vector.broadcast %24 : vector<128x1xf32> to vector<128x128xf32>
    %26 = arith.mulf %21, %25 : vector<128x128xf32>
    %27 = vector.broadcast %3 : vector<1x128xf32> to vector<128x128xf32>
    %28 = arith.mulf %26, %27 : vector<128x128xf32>
    %29 = vector.broadcast %4 : vector<1x128xf32> to vector<128x128xf32>
    %30 = arith.addf %28, %29 : vector<128x128xf32>
    %31 = arith.truncf %30 : vector<128x128xf32> to vector<128x128xbf16>
    %32 = vector.shape_cast %31 : vector<128x128xbf16> to vector<1x128x128xbf16>
    %33 = vector.broadcast %32 : vector<1x128x128xbf16> to vector<4x128x128xbf16>
    %c0_8 = arith.constant 0 : index
    %c0_9 = arith.constant 0 : index
    %c0_10 = arith.constant 0 : index
    %34 = vector.load %arg2[%c0_8, %c0_9, %c0_10] : memref<4x128x32xbf16, #tpu.memory_space<vmem>>, vector<4x128x32xbf16>
    "tpu.trace_start"() <{level = 10 : i32, message = "hnc,hcd->hnd"}> : () -> ()
    %cst_11 = arith.constant dense<0.000000e+00> : vector<4x128x32xf32>
    %35 = tpu.matmul %33, %34, %cst_11 {dimension_numbers = #tpu.dot_dimension_numbers<[2], [1], [1], [2], [0, 0, 0, 1, 1, 2], [0], [0]>} : vector<4x128x128xbf16>, vector<4x128x32xbf16>, vector<4x128x32xf32> -> vector<4x128x32xf32>
    "tpu.trace_stop"() : () -> ()
    %c0_12 = arith.constant 0 : index
    %c0_13 = arith.constant 0 : index
    %c0_14 = arith.constant 0 : index
    %36 = vector.load %arg3[%c0_12, %c0_13, %c0_14] : memref<4x128x32xbf16, #tpu.memory_space<vmem>>, vector<4x128x32xbf16>
    "tpu.trace_start"() <{level = 10 : i32, message = "hnc,hcd->hnd"}> : () -> ()
    %cst_15 = arith.constant dense<0.000000e+00> : vector<4x128x32xf32>
    %37 = tpu.matmul %33, %36, %cst_15 {dimension_numbers = #tpu.dot_dimension_numbers<[2], [1], [1], [2], [0, 0, 0, 1, 1, 2], [0], [0]>} : vector<4x128x128xbf16>, vector<4x128x32xbf16>, vector<4x128x32xf32> -> vector<4x128x32xf32>
    "tpu.trace_stop"() : () -> ()
    %c0_16 = arith.constant 0 : index
    %c0_17 = arith.constant 0 : index
    %c0_18 = arith.constant 0 : index
    %38 = vector.load %arg4[%c0_16, %c0_17, %c0_18] : memref<4x128x32xbf16, #tpu.memory_space<vmem>>, vector<4x128x32xbf16>
    "tpu.trace_start"() <{level = 10 : i32, message = "hnc,hcd->hnd"}> : () -> ()
    %cst_19 = arith.constant dense<0.000000e+00> : vector<4x128x32xf32>
    %39 = tpu.matmul %33, %38, %cst_19 {dimension_numbers = #tpu.dot_dimension_numbers<[2], [1], [1], [2], [0, 0, 0, 1, 1, 2], [0], [0]>} : vector<4x128x128xbf16>, vector<4x128x32xbf16>, vector<4x128x32xf32> -> vector<4x128x32xf32>
    "tpu.trace_stop"() : () -> ()
    %40 = vector.shape_cast %35 : vector<4x128x32xf32> to vector<4x2x64x32xf32>
    %41 = vector.shape_cast %40 : vector<4x2x64x32xf32> to vector<8x64x32xf32>
    %42 = arith.truncf %41 : vector<8x64x32xf32> to vector<8x64x32xbf16>
    %43 = vector.shape_cast %37 : vector<4x128x32xf32> to vector<4x2x64x32xf32>
    %44 = vector.shape_cast %43 : vector<4x2x64x32xf32> to vector<8x64x32xf32>
    %45 = arith.truncf %44 : vector<8x64x32xf32> to vector<8x64x32xbf16>
    %46 = vector.shape_cast %39 : vector<4x128x32xf32> to vector<4x2x64x32xf32>
    %47 = vector.shape_cast %46 : vector<4x2x64x32xf32> to vector<8x64x32xf32>
    %48 = arith.truncf %47 : vector<8x64x32xf32> to vector<8x64x32xbf16>
    "tpu.trace_start"() <{level = 10 : i32, message = "bqd,bkd->bqk"}> : () -> ()
    %cst_20 = arith.constant dense<0.000000e+00> : vector<8x64x64xf32>
    %49 = tpu.matmul %42, %45, %cst_20 {dimension_numbers = #tpu.dot_dimension_numbers<[2], [2], [1], [1], [0, 0, 0, 1, 1, 1], [0], [0]>} : vector<8x64x32xbf16>, vector<8x64x32xbf16>, vector<8x64x64xf32> -> vector<8x64x64xf32>
    "tpu.trace_stop"() : () -> ()
    %50 = tpu.iota {dimensions = array<i32: 0>} : vector<64x64xi32>
    %51 = tpu.iota {dimensions = array<i32: 1>} : vector<64x64xi32>
    %52 = arith.cmpi sge, %50, %51 : vector<64x64xi32>
    %53 = vector.shape_cast %52 : vector<64x64xi1> to vector<1x64x64xi1>
    %cst_21 = arith.constant 0xFF800000 : f32
    %54 = vector.shape_cast %53 : vector<1x64x64xi1> to vector<1x64x64xi1>
    %55 = vector.broadcast %54 : vector<1x64x64xi1> to vector<8x64x64xi1>
    %56 = vector.broadcast %cst_21 : f32 to vector<8x64x64xf32>
    %57 = arith.select %55, %49, %56 : vector<8x64x64xi1>, vector<8x64x64xf32>
    %cst_22 = arith.constant dense<0xFF800000> : vector<8x64xf32>
    %58 = vector.multi_reduction <maximumf>, %57, %cst_22 [2] : vector<8x64x64xf32> to vector<8x64xf32>
    %59 = vector.shape_cast %58 : vector<8x64xf32> to vector<8x64x1xf32>
    %60 = vector.broadcast %59 : vector<8x64x1xf32> to vector<8x64x64xf32>
    %61 = arith.subf %57, %60 : vector<8x64x64xf32>
    %62 = math.exp %61 : vector<8x64x64xf32>
    %cst_23 = arith.constant dense<0.000000e+00> : vector<8x64xf32>
    %63 = vector.multi_reduction <add>, %62, %cst_23 [2] : vector<8x64x64xf32> to vector<8x64xf32>
    %64 = vector.shape_cast %63 : vector<8x64xf32> to vector<8x64x1xf32>
    %65 = tpu.reciprocal %64 {approx = true} : vector<8x64x1xf32> -> vector<8x64x1xf32>
    %66 = vector.broadcast %65 : vector<8x64x1xf32> to vector<8x64x64xf32>
    %67 = arith.mulf %62, %66 : vector<8x64x64xf32>
    %68 = arith.truncf %67 : vector<8x64x64xf32> to vector<8x64x64xbf16>
    "tpu.trace_start"() <{level = 10 : i32, message = "bqk,bkd->bqd"}> : () -> ()
    %cst_24 = arith.constant dense<0.000000e+00> : vector<8x64x32xf32>
    %69 = tpu.matmul %68, %48, %cst_24 {dimension_numbers = #tpu.dot_dimension_numbers<[2], [1], [1], [2], [0, 0, 0, 1, 1, 2], [0], [0]>} : vector<8x64x64xbf16>, vector<8x64x32xbf16>, vector<8x64x32xf32> -> vector<8x64x32xf32>
    "tpu.trace_stop"() : () -> ()
    %70 = vector.shape_cast %69 : vector<8x64x32xf32> to vector<4x2x64x32xf32>
    %71 = vector.shape_cast %70 : vector<4x2x64x32xf32> to vector<4x128x32xf32>
    %72 = arith.truncf %71 : vector<4x128x32xf32> to vector<4x128x32xbf16>
    %c0_25 = arith.constant 0 : index
    %c0_26 = arith.constant 0 : index
    %c0_27 = arith.constant 0 : index
    %73 = vector.load %arg5[%c0_25, %c0_26, %c0_27] : memref<4x32x128xbf16, #tpu.memory_space<vmem>>, vector<4x32x128xbf16>
    "tpu.trace_start"() <{level = 10 : i32, message = "hnd,hdc->hnc"}> : () -> ()
    %cst_28 = arith.constant dense<0.000000e+00> : vector<4x128x128xf32>
    %74 = tpu.matmul %72, %73, %cst_28 {dimension_numbers = #tpu.dot_dimension_numbers<[2], [1], [1], [2], [0, 0, 0, 1, 1, 2], [0], [0]>} : vector<4x128x32xbf16>, vector<4x32x128xbf16>, vector<4x128x128xf32> -> vector<4x128x128xf32>
    "tpu.trace_stop"() : () -> ()
    %cst_29 = arith.constant dense<0.000000e+00> : vector<128x128xf32>
    %75 = vector.multi_reduction <add>, %74, %cst_29 [0] : vector<4x128x128xf32> to vector<128x128xf32>
    %76 = vector.broadcast %7 : vector<1x128xf32> to vector<128x128xf32>
    %77 = arith.addf %75, %76 : vector<128x128xf32>
    %78 = arith.addf %1, %77 : vector<128x128xf32>
    %cst_30 = arith.constant dense<0.000000e+00> : vector<128xf32>
    %79 = vector.multi_reduction <add>, %78, %cst_30 [1] : vector<128x128xf32> to vector<128xf32>
    %80 = vector.shape_cast %79 : vector<128xf32> to vector<128x1xf32>
    %cst_31 = arith.constant 1.280000e+02 : f32
    %81 = vector.broadcast %cst_31 : f32 to vector<128x1xf32>
    %82 = arith.divf %80, %81 : vector<128x1xf32>
    %83 = vector.broadcast %82 : vector<128x1xf32> to vector<128x128xf32>
    %84 = arith.subf %78, %83 : vector<128x128xf32>
    %85 = arith.mulf %84, %84 : vector<128x128xf32>
    %cst_32 = arith.constant dense<0.000000e+00> : vector<128xf32>
    %86 = vector.multi_reduction <add>, %85, %cst_32 [1] : vector<128x128xf32> to vector<128xf32>
    %87 = vector.shape_cast %86 : vector<128xf32> to vector<128x1xf32>
    %cst_33 = arith.constant 1.280000e+02 : f32
    %88 = vector.broadcast %cst_33 : f32 to vector<128x1xf32>
    %89 = arith.divf %87, %88 : vector<128x1xf32>
    %90 = vector.broadcast %82 : vector<128x1xf32> to vector<128x128xf32>
    %91 = arith.subf %78, %90 : vector<128x128xf32>
    %cst_34 = arith.constant 9.99999974E-6 : f32
    %92 = vector.broadcast %cst_34 : f32 to vector<128x1xf32>
    %93 = arith.addf %89, %92 : vector<128x1xf32>
    %94 = math.rsqrt %93 : vector<128x1xf32>
    %95 = vector.broadcast %94 : vector<128x1xf32> to vector<128x128xf32>
    %96 = arith.mulf %91, %95 : vector<128x128xf32>
    %97 = vector.broadcast %5 : vector<1x128xf32> to vector<128x128xf32>
    %98 = arith.mulf %96, %97 : vector<128x128xf32>
    %99 = vector.broadcast %6 : vector<1x128xf32> to vector<128x128xf32>
    %100 = arith.addf %98, %99 : vector<128x128xf32>
    %101 = arith.truncf %100 : vector<128x128xf32> to vector<128x128xbf16>
    %c0_35 = arith.constant 0 : index
    %c0_36 = arith.constant 0 : index
    %102 = vector.load %arg6[%c0_35, %c0_36] : memref<128x512xbf16, #tpu.memory_space<vmem>>, vector<128x512xbf16>
    %cst_37 = arith.constant dense<0.000000e+00> : vector<128x512xf32>
    %103 = tpu.matmul %101, %102, %cst_37 {dimension_numbers = #tpu.dot_dimension_numbers<[1], [0], [0], [1], [0, 0, 1, 1], [], []>} : vector<128x128xbf16>, vector<128x512xbf16>, vector<128x512xf32> -> vector<128x512xf32>
    %c0_38 = arith.constant 0 : index
    %c0_39 = arith.constant 0 : index
    %104 = vector.load %arg7[%c0_38, %c0_39] : memref<1x512xf32, #tpu.memory_space<vmem>>, vector<1x512xf32>
    %105 = vector.broadcast %104 : vector<1x512xf32> to vector<128x512xf32>
    %106 = arith.addf %103, %105 : vector<128x512xf32>
    %cst_40 = arith.constant 0.000000e+00 : f32
    %107 = vector.broadcast %cst_40 : f32 to vector<128x512xf32>
    %108 = arith.maximumf %106, %107 : vector<128x512xf32>
    %109 = arith.truncf %108 : vector<128x512xf32> to vector<128x512xbf16>
    %c0_41 = arith.constant 0 : index
    %c0_42 = arith.constant 0 : index
    %110 = vector.load %arg8[%c0_41, %c0_42] : memref<512x128xbf16, #tpu.memory_space<vmem>>, vector<512x128xbf16>
    %cst_43 = arith.constant dense<0.000000e+00> : vector<128x128xf32>
    %111 = tpu.matmul %109, %110, %cst_43 {dimension_numbers = #tpu.dot_dimension_numbers<[1], [0], [0], [1], [0, 0, 1, 1], [], []>} : vector<128x512xbf16>, vector<512x128xbf16>, vector<128x128xf32> -> vector<128x128xf32>
    %112 = vector.broadcast %8 : vector<1x128xf32> to vector<128x128xf32>
    %113 = arith.addf %111, %112 : vector<128x128xf32>
    %114 = arith.addf %78, %113 : vector<128x128xf32>
    %115 = vector.shape_cast %114 : vector<128x128xf32> to vector<2x64x128xf32>
    %c0_44 = arith.constant 0 : index
    %c0_45 = arith.constant 0 : index
    %c0_46 = arith.constant 0 : index
    %116 = vector.load %arg10[%c0_44, %c0_45, %c0_46] : memref<2x64x128xf32, #tpu.memory_space<vmem>>, vector<2x64x128xf32>
    tpu.vector_store %arg10[%c0_44, %c0_45, %c0_46], %115 {strides = array<i32>} : memref<2x64x128xf32, #tpu.memory_space<vmem>>, vector<2x64x128xf32>,
    return
  }
  func.func @transform_0(%arg0: i32) -> (i32, i32, i32) {
    %c0_i32 = arith.constant 0 : i32
    %c0_i32_0 = arith.constant 0 : i32
    %c0_i32_1 = arith.constant 0 : i32
    return %arg0, %c0_i32, %c0_i32_0 : i32, i32, i32
  }
  func.func @transform_1(%arg0: i32) -> (i32, i32, i32) {
    %c0_i32 = arith.constant 0 : i32
    %c0_i32_0 = arith.constant 0 : i32
    %c0_i32_1 = arith.constant 0 : i32
    %c0_i32_2 = arith.constant 0 : i32
    return %c0_i32, %c0_i32_0, %c0_i32_1 : i32, i32, i32
  }
  func.func @transform_2(%arg0: i32) -> (i32, i32, i32) {
    %c0_i32 = arith.constant 0 : i32
    %c0_i32_0 = arith.constant 0 : i32
    %c0_i32_1 = arith.constant 0 : i32
    %c0_i32_2 = arith.constant 0 : i32
    return %c0_i32, %c0_i32_0, %c0_i32_1 : i32, i32, i32
  }
  func.func @transform_3(%arg0: i32) -> (i32, i32, i32) {
    %c0_i32 = arith.constant 0 : i32
    %c0_i32_0 = arith.constant 0 : i32
    %c0_i32_1 = arith.constant 0 : i32
    %c0_i32_2 = arith.constant 0 : i32
    return %c0_i32, %c0_i32_0, %c0_i32_1 : i32, i32, i32
  }
  func.func @transform_4(%arg0: i32) -> (i32, i32, i32) {
    %c0_i32 = arith.constant 0 : i32
    %c0_i32_0 = arith.constant 0 : i32
    %c0_i32_1 = arith.constant 0 : i32
    %c0_i32_2 = arith.constant 0 : i32
    return %c0_i32, %c0_i32_0, %c0_i32_1 : i32, i32, i32
  }
  func.func @transform_5(%arg0: i32) -> (i32, i32) {
    %c0_i32 = arith.constant 0 : i32
    %c0_i32_0 = arith.constant 0 : i32
    %c0_i32_1 = arith.constant 0 : i32
    return %c0_i32, %c0_i32_0 : i32, i32
  }
  func.func @transform_6(%arg0: i32) -> (i32, i32) {
    %c0_i32 = arith.constant 0 : i32
    %c0_i32_0 = arith.constant 0 : i32
    %c0_i32_1 = arith.constant 0 : i32
    return %c0_i32, %c0_i32_0 : i32, i32
  }
  func.func @transform_7(%arg0: i32) -> (i32, i32) {
    %c0_i32 = arith.constant 0 : i32
    %c0_i32_0 = arith.constant 0 : i32
    %c0_i32_1 = arith.constant 0 : i32
    return %c0_i32, %c0_i32_0 : i32, i32
  }
  func.func @transform_8(%arg0: i32) -> (i32, i32) {
    %c0_i32 = arith.constant 0 : i32
    %c0_i32_0 = arith.constant 0 : i32
    %c0_i32_1 = arith.constant 0 : i32
    return %c0_i32, %c0_i32_0 : i32, i32
  }
  func.func @transform_9(%arg0: i32) -> (i32, i32, i32) {
    %c0_i32 = arith.constant 0 : i32
    %c0_i32_0 = arith.constant 0 : i32
    %c0_i32_1 = arith.constant 0 : i32
    return %arg0, %c0_i32, %c0_i32_0 : i32, i32, i32
  }
}

</mosaic_0001>

<bundles_post_ra>
// kernel: transformer_block.1
= control target key start
LH: loop header
LB: loop body
LE: loop exit
PB: predicated region body
PF: predicated region fallthrough
CT: control target
= control target key end

     0   :  { %s10937_s0 = inlined_call_operand.vmem [shape: f32[2,64,128], index: 0, kind: input, shape index: {}]   ;;  %s10938_s1 = inlined_call_operand.vmem [shape: bf16[4,128,32], index: 1, kind: input, shape index: {}]   ;;  %s10939_s2 = inlined_call_operand.vmem [shape: bf16[4,128,32], index: 2, kind: input, shape index: {}]   ;;  %s10940_s3 = inlined_call_operand.vmem [shape: bf16[4,128,32], index: 3, kind: input, shape index: {}]   ;;  %s10941_s4 = inlined_call_operand.vmem [shape: bf16[4,32,128], index: 4, kind: input, shape index: {}]   ;;  %s10942_s5 = inlined_call_operand.vmem [shape: bf16[128,512], index: 5, kind: input, shape index: {}]   ;;  %s10943_s6 = inlined_call_operand.vmem [shape: f32[1,512], index: 6, kind: input, shape index: {}]   ;;  %s10944_s7 = inlined_call_operand.vmem [shape: bf16[512,128], index: 7, kind: input, shape index: {}]   ;;  %s10945_s8 = inlined_call_operand.vmem [shape: f32[6,128], index: 8, kind: input, shape index: {}]   ;;  %s10946_s9 = inlined_call_operand.hbm [shape: f32[2,64,128], index: 9, kind: output, shape index: {}]  }
   0x1   :  { %v36_v0 = vld [vmem:[%s10937_s0 + $0x10] sm:$0xff]  ;;  %v34_v1 = vld [vmem:[%s10937_s0] sm:$0xff] }
   0x2   :  { %55 = vadd.xlane.f32.xlu1 %v36_v0  ;;  %51 = vadd.xlane.f32.xlu0 %v34_v1  ;;  %v38_v2 = vld [vmem:[%s10937_s0 + $0x20] sm:$0xff] }
   0x3   :  { %59 = vadd.xlane.f32.xlu2 %v38_v2 }
   0x4   :  { %14 = vsyncpa [#allocation3], 0  ;;  %v37_v3 = vld [vmem:[%s10937_s0 + $0x18] sm:$0xff]  ;;  %v35_v4 = vld [vmem:[%s10937_s0 + $0x8] sm:$0xff]  ;;  %v7643_v7 = vmov 128.0   ;;  %s7645_s29 = smov 128  }
   0x5   :  { %v39_v5 = vld [vmem:[%s10937_s0 + $0x28] sm:$0xff]  ;;  %v40_v6 = vld [vmem:[%s10937_s0 + $0x30] sm:$0xff]  ;;  %7277 = vrcp.f32 %v7643_v7  ;;  %v7736_v28 = vld [vmem:[%s10937_s0 + $0x38] sm:$0xff]  ;;  %s7646_s30 = smov 8  }
   0x6   :  { %v7753_v36 = vld [vmem:[%s10937_s0 + $0x40] sm:$0xff]  ;;  %v7766_v42 = vld [vmem:[%s10937_s0 + $0x58] sm:$0xff]  ;;  %v7771_v43 = vld [vmem:[%s10937_s0 + $0x48] sm:$0xff] }
   0x7   :  { %v7782_v46 = vld [vmem:[%s10937_s0 + $0x60] sm:$0xff]  ;;  %v7787_v47 = vld [vmem:[%s10937_s0 + $0x50] sm:$0xff]  ;;  %v7794_v48 = vld [vmem:[%s10937_s0 + $0x68] sm:$0xff] }
   0x8   :  { %v7800_v49 = vld [vmem:[%s10937_s0 + $0x70] sm:$0xff]  ;;  %v7112_v50 = vld [vmem:[%s10938_s1 + $0x38] sm:$0xff]  ;;  %v7110_v58 = vld [vmem:[%s10938_s1 + $0x28] sm:$0xff] }
   0x9   :  { %v7120_v51 = vld [vmem:[%s10938_s1 + $0x78] sm:$0xff]  ;;  %588 = vmatpush.bf16.msra.mxu0 %v7112_v50  ;;  %v7111_v54 = vld [vmem:[%s10938_s1 + $0x30] sm:$0xff]  ;;  %v7118_v59 = vld [vmem:[%s10938_s1 + $0x68] sm:$0xff] }
   0xa   :  { %57 = vadd.xlane.f32.xlu1 %v37_v3  ;;  %53 = vadd.xlane.f32.xlu0 %v35_v4  ;;  %v7128_v52 = vld [vmem:[%s10938_s1 + $0xb8] sm:$0xff]  ;;  %v7119_v55 = vld [vmem:[%s10938_s1 + $0x70] sm:$0xff]  ;;  %v7126_v60 = vld [vmem:[%s10938_s1 + $0xa8] sm:$0xff] }
   0xb   :  { %61 = vadd.xlane.f32.xlu2 %v39_v5  ;;  %v7278_v8 = vpop.eup %7277  ;;  %v7136_v53 = vld [vmem:[%s10938_s1 + $0xf8] sm:$0xff]  ;;  %685 = vmatpush.bf16.msra.mxu1 %v7120_v51  ;;  %v7127_v56 = vld [vmem:[%s10938_s1 + $0xb0] sm:$0xff]  ;;  %v7134_v61 = vld [vmem:[%s10938_s1 + $0xe8] sm:$0xff] }
   0xc   :  { %v84_v9 = vmul.f32 128.0, %v7278_v8  ;;  %vm88_vm0 = vweird.f32 %v7278_v8  ;;  %782 = vmatpush.bf16.msra.mxu2 %v7128_v52  ;;  %879 = vmatpush.bf16.msra.mxu3 %v7136_v53  ;;  %v7135_v57 = vld [vmem:[%s10938_s1 + $0xf0] sm:$0xff]  ;;  %v7109_v62 = vld [vmem:[%s10938_s1 + $0x20] sm:$0xff] }
   0xd   :  { %589 = vmatpush.bf16.msra.mxu0 %v7111_v54  ;;  %v7117_v63 = vld [vmem:[%s10938_s1 + $0x60] sm:$0xff] }
   0xe   :  { %v85_v10 = vsub.f32 1.0, %v84_v9  ;;  %v7115_v9 = vld [vmem:[%s10938_s1 + $0x50] sm:$0xff] }
   0xf   :  { %686 = vmatpush.bf16.msra.mxu1 %v7119_v55 }
  0x10   :  { %v86_v11 = vmul.f32 %v7278_v8, %v85_v10  ;;  %783 = vmatpush.bf16.msra.mxu2 %v7127_v56  ;;  %880 = vmatpush.bf16.msra.mxu3 %v7135_v57  ;;  %v7123_v10 = vld [vmem:[%s10938_s1 + $0x90] sm:$0xff] }
  0x11   :  { %590 = vmatpush.bf16.msra.mxu0 %v7110_v58 }
  0x12   :  { %v87_v12 = vadd.f32 %v7278_v8, %v86_v11  ;;  %v7131_v11 = vld [vmem:[%s10938_s1 + $0xd0] sm:$0xff] }
  0x13   :  { %63 = vadd.xlane.f32.xlu2 %v40_v6  ;;  %687 = vmatpush.bf16.msra.mxu1 %v7118_v59 }
  0x14   :  { %v7718_v13 = vsel %vm88_vm0, %v7278_v8, %v87_v12  ;;  %784 = vmatpush.bf16.msra.mxu2 %v7126_v60  ;;  %881 = vmatpush.bf16.msra.mxu3 %v7134_v61  ;;  %v7107_v8 = vld [vmem:[%s10938_s1 + $0x10] sm:$0xff]  ;;  %v50_v60 = vld [vmem:[%s10945_s8] sm:$0x3f] }
  0x15   :  { %10985 = vst [vmem:[#allocation5_spill] sm:$0xff] %v7718_v13  ;;  %591 = vmatpush.bf16.msra.mxu0 %v7109_v62 }
  0x17   :  { %688 = vmatpush.bf16.msra.mxu1 %v7117_v63 }
  0x75   :  { %v56_v14 = vpop.xlane.xlu1 %55  ;;  %v52_v15 = vpop.xlane.xlu0 %51 }
  0x76   :  { %v90_v16 = vmul.f32 %v7718_v13, %v52_v15  ;;  %v60_v18 = vpop.xlane.xlu2 %59  ;;  %v92_v27 = vmul.f32 %v7718_v13, %v56_v14  ;;  %v7106_v14 = vld [vmem:[%s10938_s1 + $0x8] sm:$0xff] }
  0x77   :  { %v94_v26 = vmul.f32 %v7718_v13, %v60_v18  ;;  %v7114_v15 = vld [vmem:[%s10938_s1 + $0x48] sm:$0xff] }
  0x78   :  { %v7721_v17 = vsub.f32 %v34_v1, %v90_v16  ;;  %v7745_v33 = vsub.f32 %v36_v0, %v92_v27  ;;  %v7125_v0 = vld [vmem:[%s10938_s1 + $0xa0] sm:$0xff]  ;;  %v7122_v16 = vld [vmem:[%s10938_s1 + $0x88] sm:$0xff] }
  0x79   :  { %v7743_v32 = vsub.f32 %v38_v2, %v94_v26  ;;  %v7133_v1 = vld [vmem:[%s10938_s1 + $0xe0] sm:$0xff]  ;;  %785 = vmatpush.bf16.msra.mxu2 %v7125_v0  ;;  %v7108_v2 = vld [vmem:[%s10938_s1 + $0x18] sm:$0xff]  ;;  %v7130_v18 = vld [vmem:[%s10938_s1 + $0xc8] sm:$0xff] }
  0x7a   :  { %v122_v19 = vmul.f32 %v7721_v17, %v7721_v17  ;;  %v124_v37 = vmul.f32 %v7745_v33, %v7745_v33  ;;  %882 = vmatpush.bf16.msra.mxu3 %v7133_v1  ;;  %592 = vmatpush.bf16.msra.mxu0 %v7108_v2  ;;  %v7105_v26 = vld [vmem:[%s10938_s1] sm:$0xff] }
  0x7b   :  { %v126_v34 = vmul.f32 %v7743_v32, %v7743_v32  ;;  %v7113_v27 = vld [vmem:[%s10938_s1 + $0x40] sm:$0xff] }
  0x7c   :  { %138 = vadd.xlane.f32.xlu0 %v122_v19 }
  0x7d   :  { %v58_v20 = vpop.xlane.xlu1 %57  ;;  %v54_v21 = vpop.xlane.xlu0 %53 }
  0x7e   :  { %v93_v22 = vmul.f32 %v7718_v13, %v58_v20  ;;  %v91_v23 = vmul.f32 %v7718_v13, %v54_v21  ;;  %v62_v31 = vpop.xlane.xlu2 %61  ;;  %593 = vmatpush.bf16.msra.mxu0 %v7107_v8 }
  0x7f   :  { %v95_v35 = vmul.f32 %v7718_v13, %v62_v31  ;;  %v7129_v31 = vld [vmem:[%s10938_s1 + $0xc0] sm:$0xff] }
  0x80   :  { %v7727_v24 = vsub.f32 %v37_v3, %v93_v22  ;;  %v7729_v25 = vsub.f32 %v35_v4, %v91_v23  ;;  %v7116_v3 = vld [vmem:[%s10938_s1 + $0x58] sm:$0xff] }
  0x81   :  { %v7758_v38 = vsub.f32 %v39_v5, %v95_v35  ;;  %v7124_v4 = vld [vmem:[%s10938_s1 + $0x98] sm:$0xff]  ;;  %689 = vmatpush.bf16.msra.mxu1 %v7116_v3 }
  0x82   :  { %v125_v29 = vmul.f32 %v7727_v24, %v7727_v24  ;;  %v123_v30 = vmul.f32 %v7729_v25, %v7729_v25  ;;  %v7132_v5 = vld [vmem:[%s10938_s1 + $0xd8] sm:$0xff]  ;;  %786 = vmatpush.bf16.msra.mxu2 %v7124_v4  ;;  %594 = vmatpush.bf16.msra.mxu0 %v7106_v14 }
  0x83   :  { %v127_v40 = vmul.f32 %v7758_v38, %v7758_v38  ;;  %883 = vmatpush.bf16.msra.mxu3 %v7132_v5 }
  0x84   :  { %144 = vadd.xlane.f32.xlu2 %v125_v29  ;;  %65 = vadd.xlane.f32.xlu0 %v7736_v28  ;;  %v7121_v29 = vld [vmem:[%s10938_s1 + $0x80] sm:$0xff] }
  0x85   :  { %140 = vadd.xlane.f32.xlu1 %v123_v30  ;;  %690 = vmatpush.bf16.msra.mxu1 %v7115_v9 }
  0x86   :  { %v64_v39 = vpop.xlane.xlu2 %63  ;;  %787 = vmatpush.bf16.msra.mxu2 %v7123_v10  ;;  %595 = vmatpush.bf16.msra.mxu0 %v7105_v26 }
  0x87   :  { %v96_v41 = vmul.f32 %v7718_v13, %v64_v39  ;;  %884 = vmatpush.bf16.msra.mxu3 %v7131_v11 }
  0x89   :  { %v7774_v44 = vsub.f32 %v40_v6, %v96_v41  ;;  %691 = vmatpush.bf16.msra.mxu1 %v7114_v15  ;;  %v7939_v15 = vperm.slane %v50_v60, 1 }
  0x8a   :  { %788 = vmatpush.bf16.msra.mxu2 %v7122_v16 }
  0x8b   :  { %v128_v45 = vmul.f32 %v7774_v44, %v7774_v44  ;;  %885 = vmatpush.bf16.msra.mxu3 %v7130_v18 }
  0x8c   :  { %146 = vadd.xlane.f32.xlu2 %v126_v34  ;;  %67 = vadd.xlane.f32.xlu0 %v7753_v36 }
  0x8d   :  { %142 = vadd.xlane.f32.xlu1 %v124_v37  ;;  %692 = vmatpush.bf16.msra.mxu1 %v7113_v27 }
  0x8e   :  { %789 = vmatpush.bf16.msra.mxu2 %v7121_v29 }
  0x8f   :  { %886 = vmatpush.bf16.msra.mxu3 %v7129_v31 }
  0x94   :  { %73 = vadd.xlane.f32.xlu2 %v7766_v42  ;;  %148 = vadd.xlane.f32.xlu0 %v127_v40 }
  0x95   :  { %69 = vadd.xlane.f32.xlu1 %v7771_v43 }
  0x9c   :  { %75 = vadd.xlane.f32.xlu2 %v7782_v46  ;;  %150 = vadd.xlane.f32.xlu0 %v128_v45 }
  0x9d   :  { %71 = vadd.xlane.f32.xlu1 %v7787_v47 }
  0xa4   :  { %77 = vadd.xlane.f32.xlu0 %v7794_v48 }
  0xac   :  { %79 = vadd.xlane.f32.xlu0 %v7800_v49 }
  0xef   :  { %v139_v6 = vpop.xlane.xlu0 %138 }
  0xf0   :  { %v170_v7 = vmul.f32 %v139_v6, %v7718_v13 }
  0xf2   :  { %v186_v12 = vadd.f32 1e-05, %v170_v7 }
  0xf4   :  { %7279 = vrsqrt.f32 %v186_v12  ;;  %vm208_vm2 = vweird.f32 %v186_v12 }
  0xf7   :  { %v145_v19 = vpop.xlane.xlu2 %144  ;;  %v66_v20 = vpop.xlane.xlu0 %65 }
  0xf8   :  { %v173_v21 = vmul.f32 %v145_v19, %v7718_v13  ;;  %v141_v22 = vpop.xlane.xlu1 %140  ;;  %v97_v23 = vmul.f32 %v7718_v13, %v66_v20 }
  0xf9   :  { %v171_v30 = vmul.f32 %v141_v22, %v7718_v13 }
  0xfa   :  { %v7280_v34 = vpop.eup %7279  ;;  %v7903_v35 = vadd.f32 1e-05, %v173_v21  ;;  %v7906_v37 = vsub.f32 %v7736_v28, %v97_v23 }
  0xfb   :  { %v203_v39 = vmul.f32 %v7280_v34, %v186_v12  ;;  %v187_v40 = vadd.f32 1e-05, %v171_v30  ;;  %vm209_vm1 = vweird.f32 %v7280_v34  ;;  %v7960_v30 = vld [vmem:[%s10937_s0 + $0x78] sm:$0xff] }
  0xfc   :  { %7281 = vrsqrt.f32 %v7903_v35  ;;  %v129_v41 = vmul.f32 %v7906_v37, %v7906_v37  ;;  %vm210_vm3 = vmor %vm208_vm2, %vm209_vm1  ;;  %vm238_vm7 = vweird.f32 %v7903_v35 }
  0xfd   :  { %v204_v45 = vmul.f32 %v7280_v34, %v203_v39  ;;  %7283 = vrsqrt.f32 %v187_v40  ;;  %vm218_vm4 = vweird.f32 %v187_v40 }
  0xfe   :  { %152 = vadd.xlane.f32.xlu1 %v129_v41 }
  0xff   :  { %v205_v50 = vmul.f32 0.5, %v204_v45  ;;  %v147_v51 = vpop.xlane.xlu2 %146  ;;  %v68_v52 = vpop.xlane.xlu0 %67 }
 0x100   :  { %v174_v28 = vmul.f32 %v147_v51, %v7718_v13  ;;  %v143_v53 = vpop.xlane.xlu1 %142  ;;  %v98_v54 = vmul.f32 %v7718_v13, %v68_v52 }
 0x101   :  { %v206_v55 = vsub.f32 1.5, %v205_v50  ;;  %v172_v56 = vmul.f32 %v143_v53, %v7718_v13 }
 0x102   :  { %v7914_v57 = vpop.eup %7281  ;;  %v7917_v58 = vsub.f32 %v7753_v36, %v98_v54  ;;  %v7924_v63 = vadd.f32 1e-05, %v174_v28  ;;  %v7930_v36 = vperm.slane %v50_v60, 0 }
 0x103   :  { %v7284_v59 = vpop.eup %7283  ;;  %v207_v61 = vmul.f32 %v7280_v34, %v206_v55  ;;  %v233_v62 = vmul.f32 %v7914_v57, %v7903_v35  ;;  %v7926_v0 = vadd.f32 1e-05, %v172_v56  ;;  %vm239_vm8 = vweird.f32 %v7914_v57 }
 0x104   :  { %v213_v1 = vmul.f32 %v7284_v59, %v187_v40  ;;  %v130_v6 = vmul.f32 %v7917_v58, %v7917_v58  ;;  %vm219_vm5 = vweird.f32 %v7284_v59  ;;  %vm7972_vm10 = vmor %vm238_vm7, %vm239_vm8  ;;  %vm248_vm15 = vweird.f32 %v7924_v63 }
 0x105   :  { %v211_v2 = vsel %vm210_vm3, %v7280_v34, %v207_v61  ;;  %v234_v3 = vmul.f32 %v7914_v57, %v233_v62  ;;  %7285 = vrsqrt.f32 %v7926_v0  ;;  %vm220_vm6 = vmor %vm218_vm4, %vm219_vm5  ;;  %vm228_vm9 = vweird.f32 %v7926_v0 }
 0x106   :  { %v362_v4 = vmul.f32 %v211_v2, %v7721_v17  ;;  %v214_v5 = vmul.f32 %v7284_v59, %v213_v1  ;;  %7287 = vrsqrt.f32 %v7924_v63  ;;  %154 = vadd.xlane.f32.xlu1 %v130_v6 }
 0x107   :  { %v235_v7 = vmul.f32 0.5, %v234_v3  ;;  %v74_v8 = vpop.xlane.xlu2 %73  ;;  %v149_v9 = vpop.xlane.xlu0 %148 }
 0x108   :  { %v215_v10 = vmul.f32 0.5, %v214_v5  ;;  %v101_v11 = vmul.f32 %v7718_v13, %v74_v8  ;;  %v70_v12 = vpop.xlane.xlu1 %69  ;;  %v175_v14 = vmul.f32 %v149_v9, %v7718_v13  ;;  %v379_v16 = vmul.f32 %v7930_v36, %v362_v4 }
 0x109   :  { %v99_v17 = vmul.f32 %v7718_v13, %v70_v12  ;;  %v236_v21 = vsub.f32 1.5, %v235_v7 }
 0x10a   :  { %v216_v18 = vsub.f32 1.5, %v215_v10  ;;  %v7942_v19 = vadd.f32 1e-05, %v175_v14  ;;  %v7946_v22 = vsub.f32 %v7766_v42, %v101_v11  ;;  %v396_v42 = vadd.f32 %v7939_v15, %v379_v16 }
 0x10b   :  { %v7286_v20 = vpop.eup %7285  ;;  %v7949_v23 = vsub.f32 %v7771_v43, %v99_v17  ;;  %v237_v34 = vmul.f32 %v7914_v57, %v236_v21 }
 0x10c   :  { %v217_v26 = vmul.f32 %v7284_v59, %v216_v18  ;;  %v223_v27 = vmul.f32 %v7286_v20, %v7926_v0  ;;  %v7952_v29 = vpop.eup %7287  ;;  %7289 = vrsqrt.f32 %v7942_v19  ;;  %v133_v35 = vmul.f32 %v7946_v22, %v7946_v22 }
 0x10d   :  { %v131_v40 = vmul.f32 %v7949_v23, %v7949_v23  ;;  %v243_v51 = vmul.f32 %v7952_v29, %v7924_v63  ;;  %vm229_vm11 = vweird.f32 %v7286_v20  ;;  %v412_v55 = vpack.c.bf16 %v396_v42, %v396_v42 }
 0x10e   :  { %v221_v43 = vsel %vm220_vm6, %v7284_v59, %v217_v26  ;;  %v224_v31 = vmul.f32 %v7286_v20, %v223_v27  ;;  %81 = vadd.xlane.f32.xlu1 %v7960_v30  ;;  %160 = vadd.xlane.f32.xlu0 %v133_v35  ;;  %v241_v60 = vsel %vm7972_vm10, %v7914_v57, %v237_v34  ;;  %vm230_vm12 = vmor %vm228_vm9, %vm229_vm11  ;;  %vm258_vm13 = vweird.f32 %v7942_v19 }
 0x10f   :  { %v363_v39 = vmul.f32 %v221_v43, %v7729_v25  ;;  %v76_v41 = vpop.xlane.xlu2 %75  ;;  %v7970_v45 = vpop.xlane.xlu0 %150  ;;  %156 = vadd.xlane.f32.xlu2 %v131_v40  ;;  %v244_v2 = vmul.f32 %v7952_v29, %v243_v51  ;;  %v508_v6 = vunpack.c.l.b16 %v412_v55  ;;  %v365_v57 = vmul.f32 %v241_v60, %v7727_v24 }
 0x110   :  { %v225_v52 = vmul.f32 0.5, %v224_v31  ;;  %v102_v25 = vmul.f32 %v7718_v13, %v76_v41  ;;  %v72_v28 = vpop.xlane.xlu1 %71  ;;  %vm249_vm0 = vweird.f32 %v7952_v29 }
 0x111   :  { %v380_v53 = vmul.f32 %v7930_v36, %v363_v39  ;;  %v100_v54 = vmul.f32 %v7718_v13, %v72_v28  ;;  %v245_v11 = vmul.f32 0.5, %v244_v2  ;;  %v382_v18 = vmul.f32 %v7930_v36, %v365_v57  ;;  %vm250_vm2 = vmor %vm248_vm15, %vm249_vm0 }
 0x112   :  { %v226_v56 = vsub.f32 1.5, %v225_v52  ;;  %v7290_v59 = vpop.eup %7289  ;;  %v7992_v1 = vsub.f32 %v7782_v46, %v102_v25 }
 0x113   :  { %v397_v61 = vadd.f32 %v7939_v15, %v380_v53  ;;  %v7989_v62 = vsub.f32 %v7787_v47, %v100_v54  ;;  %v253_v4 = vmul.f32 %v7290_v59, %v7942_v19  ;;  %vm259_vm14 = vweird.f32 %v7290_v59 }
 0x114   :  { %v227_v3 = vmul.f32 %v7286_v20, %v226_v56  ;;  %v134_v46 = vmul.f32 %v7992_v1, %v7992_v1  ;;  %v399_v27 = vadd.f32 %v7939_v15, %v382_v18  ;;  %vm260_vm1 = vmor %vm258_vm13, %vm259_vm14 }
 0x115   :  { %v413_v5 = vpack.c.bf16 %v397_v61, %v397_v61  ;;  %v254_v8 = vmul.f32 %v7290_v59, %v253_v4  ;;  %v132_v47 = vmul.f32 %v7989_v62, %v7989_v62 }
 0x116   :  { %v231_v7 = vsel %vm230_vm12, %v7286_v20, %v227_v3  ;;  %162 = vadd.xlane.f32.xlu1 %v134_v46  ;;  %v246_v20 = vsub.f32 1.5, %v245_v11  ;;  %v415_v35 = vpack.c.bf16 %v399_v27, %v399_v27 }
 0x117   :  { %v509_v9 = vunpack.c.l.b16 %v413_v5  ;;  %v364_v0 = vmul.f32 %v231_v7, %v7745_v33  ;;  %v78_v10 = vpop.xlane.xlu0 %77  ;;  %v255_v12 = vmul.f32 0.5, %v254_v8  ;;  %158 = vadd.xlane.f32.xlu2 %v132_v47 }
 0x118   :  { %v103_v14 = vmul.f32 %v7718_v13, %v78_v10  ;;  %v247_v19 = vmul.f32 %v7952_v29, %v246_v20  ;;  %v511_v51 = vunpack.c.l.b16 %v415_v35 }
 0x119   :  { %v8003_v17 = vpack.c.b16 %v509_v9, %v508_v6  ;;  %v381_v24 = vmul.f32 %v7930_v36, %v364_v0  ;;  %v256_v16 = vsub.f32 1.5, %v255_v12 }
 0x11a   :  { %v8007_v33 = vsub.f32 %v7794_v48, %v103_v14  ;;  %v251_v63 = vsel %vm250_vm2, %v7952_v29, %v247_v19 }
 0x11b   :  { %596 = vmatmul.bf16.vlgmr.msra.gmra.mxu0 %v8003_v17  ;;  %693 = vmatmul.bf16.vlgmr.msra.gmra.mxu1 %v8003_v17  ;;  %v398_v21 = vadd.f32 %v7939_v15, %v381_v24  ;;  %v257_v26 = vmul.f32 %v7290_v59, %v256_v16  ;;  %v366_v52 = vmul.f32 %v251_v63, %v7743_v32 }
 0x11c   :  { %790 = vmatmul.bf16.vlgmr.msra.gmra.mxu2 %v8003_v17  ;;  %887 = vmatmul.bf16.vlgmr.msra.gmra.mxu3 %v8003_v17  ;;  %v135_v48 = vmul.f32 %v8007_v33, %v8007_v33 }
 0x11d   :  { %v414_v31 = vpack.c.bf16 %v398_v21, %v398_v21  ;;  %v261_v34 = vsel %vm260_vm1, %v7290_v59, %v257_v26  ;;  %v176_v59 = vmul.f32 %v7970_v45, %v7718_v13 }
 0x11e   :  { %v367_v50 = vmul.f32 %v261_v34, %v7758_v38 }
 0x11f   :  { %v80_v42 = vpop.xlane.xlu0 %79  ;;  %164 = vadd.xlane.f32.xlu2 %v135_v48  ;;  %v510_v41 = vunpack.c.l.b16 %v414_v31  ;;  %v192_v60 = vadd.f32 1e-05, %v176_v59 }
 0x120   :  { %v104_v43 = vmul.f32 %v7718_v13, %v80_v42  ;;  %v384_v28 = vmul.f32 %v7930_v36, %v367_v50 }
 0x121   :  { %v8031_v25 = vpack.c.b16 %v511_v51, %v510_v41  ;;  %7291 = vrsqrt.f32 %v192_v60  ;;  %vm268_vm3 = vweird.f32 %v192_v60 }
 0x122   :  { %v8024_v39 = vsub.f32 %v7800_v49, %v104_v43  ;;  %v383_v49 = vmul.f32 %v7930_v36, %v366_v52  ;;  %v401_v38 = vadd.f32 %v7939_v15, %v384_v28 }
 0x124   :  { %v136_v40 = vmul.f32 %v8024_v39, %v8024_v39  ;;  %v400_v29 = vadd.f32 %v7939_v15, %v383_v49  ;;  %v417_v53 = vpack.c.bf16 %v401_v38, %v401_v38 }
 0x126   :  { %166 = vadd.xlane.f32.xlu0 %v136_v40  ;;  %v416_v32 = vpack.c.bf16 %v400_v29, %v400_v29  ;;  %v513_v54 = vunpack.c.l.b16 %v417_v53 }
 0x127   :  { %v7292_v61 = vpop.eup %7291 }
 0x128   :  { %v512_v55 = vunpack.c.l.b16 %v416_v32  ;;  %v263_v2 = vmul.f32 %v7292_v61, %v192_v60  ;;  %vm269_vm4 = vweird.f32 %v7292_v61 }
 0x129   :  { %vm270_vm5 = vmor %vm268_vm3, %vm269_vm4 }
 0x12a   :  { %v8041_v56 = vpack.c.b16 %v513_v54, %v512_v55  ;;  %v264_v3 = vmul.f32 %v7292_v61, %v263_v2 }
 0x12b   :  { %601 = vmatmul.bf16.gmra.mxu0 %v8031_v25  ;;  %698 = vmatmul.bf16.gmra.mxu1 %v8031_v25 }
 0x12c   :  { %795 = vmatmul.bf16.gmra.mxu2 %v8031_v25  ;;  %892 = vmatmul.bf16.gmra.mxu3 %v8031_v25  ;;  %v265_v4 = vmul.f32 0.5, %v264_v3 }
 0x12e   :  { %v266_v7 = vsub.f32 1.5, %v265_v4 }
 0x130   :  { %v267_v8 = vmul.f32 %v7292_v61, %v266_v7 }
 0x132   :  { %v271_v47 = vsel %vm270_vm5, %v7292_v61, %v267_v8 }
 0x133   :  { %v368_v12 = vmul.f32 %v271_v47, %v7774_v44 }
 0x135   :  { %v385_v18 = vmul.f32 %v7930_v36, %v368_v12 }
 0x137   :  { %v402_v35 = vadd.f32 %v7939_v15, %v385_v18 }
 0x139   :  { %v418_v52 = vpack.c.bf16 %v402_v35, %v402_v35 }
 0x13b   :  { %606 = vmatmul.bf16.gmra.mxu0 %v8041_v56  ;;  %703 = vmatmul.bf16.gmra.mxu1 %v8041_v56  ;;  %v514_v2 = vunpack.c.l.b16 %v418_v52 }
 0x13c   :  { %800 = vmatmul.bf16.gmra.mxu2 %v8041_v56  ;;  %897 = vmatmul.bf16.gmra.mxu3 %v8041_v56 }
 0x171   :  { %v153_v5 = vpop.xlane.xlu1 %152 }
 0x172   :  { %v177_v6 = vmul.f32 %v153_v5, %v7718_v13 }
 0x174   :  { %v193_v57 = vadd.f32 1e-05, %v177_v6 }
 0x176   :  { %7293 = vrsqrt.f32 %v193_v57  ;;  %vm278_vm7 = vweird.f32 %v193_v57 }
 0x179   :  { %v155_v9 = vpop.xlane.xlu1 %154 }
 0x17a   :  { %v178_v45 = vmul.f32 %v155_v9, %v7718_v13 }
 0x17c   :  { %v7294_v0 = vpop.eup %7293  ;;  %v194_v10 = vadd.f32 1e-05, %v178_v45 }
 0x17d   :  { %v273_v46 = vmul.f32 %v7294_v0, %v193_v57  ;;  %vm279_vm6 = vweird.f32 %v7294_v0 }
 0x17e   :  { %7295 = vrsqrt.f32 %v194_v10  ;;  %vm280_vm8 = vmor %vm278_vm7, %vm279_vm6  ;;  %vm288_vm10 = vweird.f32 %v194_v10 }
 0x17f   :  { %v274_v11 = vmul.f32 %v7294_v0, %v273_v46 }
 0x181   :  { %v275_v14 = vmul.f32 0.5, %v274_v11  ;;  %v82_v16 = vpop.xlane.xlu1 %81  ;;  %v161_v48 = vpop.xlane.xlu0 %160 }
 0x182   :  { %v157_v20 = vpop.xlane.xlu2 %156  ;;  %v105_v21 = vmul.f32 %v7718_v13, %v82_v16  ;;  %v181_v42 = vmul.f32 %v161_v48, %v7718_v13 }
 0x183   :  { %v276_v24 = vsub.f32 1.5, %v275_v14  ;;  %v179_v27 = vmul.f32 %v157_v20, %v7718_v13 }
 0x184   :  { %v7296_v19 = vpop.eup %7295  ;;  %v8057_v44 = vsub.f32 %v7960_v30, %v105_v21  ;;  %v8061_v40 = vadd.f32 1e-05, %v181_v42 }
 0x185   :  { %v277_v26 = vmul.f32 %v7294_v0, %v276_v24  ;;  %v283_v31 = vmul.f32 %v7296_v19, %v194_v10  ;;  %v195_v34 = vadd.f32 1e-05, %v179_v27  ;;  %vm289_vm9 = vweird.f32 %v7296_v19 }
 0x186   :  { %v137_v41 = vmul.f32 %v8057_v44, %v8057_v44  ;;  %vm290_vm11 = vmor %vm288_vm10, %vm289_vm9  ;;  %vm318_vm15 = vweird.f32 %v8061_v40 }
 0x187   :  { %v281_v43 = vsel %vm280_vm8, %v7294_v0, %v277_v26  ;;  %v284_v50 = vmul.f32 %v7296_v19, %v283_v31  ;;  %7297 = vrsqrt.f32 %v195_v34  ;;  %vm298_vm12 = vweird.f32 %v195_v34 }
 0x188   :  { %v369_v63 = vmul.f32 %v281_v43, %v7906_v37  ;;  %7299 = vrsqrt.f32 %v8061_v40  ;;  %168 = vadd.xlane.f32.xlu1 %v137_v41 }
 0x189   :  { %v285_v30 = vmul.f32 0.5, %v284_v50  ;;  %v163_v38 = vpop.xlane.xlu1 %162 }
 0x18a   :  { %v386_v51 = vmul.f32 %v7930_v36, %v369_v63  ;;  %v159_v49 = vpop.xlane.xlu2 %158  ;;  %v182_v53 = vmul.f32 %v163_v38, %v7718_v13 }
 0x18b   :  { %v286_v29 = vsub.f32 1.5, %v285_v30  ;;  %v180_v37 = vmul.f32 %v159_v49, %v7718_v13 }
 0x18c   :  { %v403_v28 = vadd.f32 %v7939_v15, %v386_v51  ;;  %v8070_v60 = vadd.f32 1e-05, %v182_v53 }
 0x18d   :  { %v7298_v54 = vpop.eup %7297  ;;  %v287_v55 = vmul.f32 %v7296_v19, %v286_v29  ;;  %v196_v59 = vadd.f32 1e-05, %v180_v37 }
 0x18e   :  { %v419_v32 = vpack.c.bf16 %v403_v28, %v403_v28  ;;  %v7300_v61 = vpop.eup %7299  ;;  %v293_v4 = vmul.f32 %v7298_v54, %v195_v34  ;;  %vm299_vm13 = vweird.f32 %v7298_v54  ;;  %vm328_vm7 = vweird.f32 %v8070_v60 }
 0x18f   :  { %v291_v5 = vsel %vm290_vm11, %v7296_v19, %v287_v55  ;;  %v313_v6 = vmul.f32 %v7300_v61, %v8061_v40  ;;  %7301 = vrsqrt.f32 %v196_v59  ;;  %vm300_vm14 = vmor %vm298_vm12, %vm299_vm13  ;;  %vm319_vm0 = vweird.f32 %v7300_v61 }
 0x190   :  { %v515_v3 = vunpack.c.l.b16 %v419_v32  ;;  %v294_v7 = vmul.f32 %v7298_v54, %v293_v4  ;;  %v370_v8 = vmul.f32 %v291_v5, %v7917_v58  ;;  %7303 = vrsqrt.f32 %v8070_v60  ;;  %vm320_vm3 = vmor %vm318_vm15, %vm319_vm0 }
 0x191   :  { %v314_v9 = vmul.f32 %v7300_v61, %v313_v6  ;;  %vm308_vm1 = vweird.f32 %v196_v59 }
 0x192   :  { %v8073_v57 = vpack.c.b16 %v515_v3, %v514_v2  ;;  %v295_v0 = vmul.f32 0.5, %v294_v7  ;;  %v165_v45 = vpop.xlane.xlu2 %164  ;;  %v387_v11 = vmul.f32 %v7930_v36, %v370_v8 }
 0x193   :  { %v315_v47 = vmul.f32 0.5, %v314_v9  ;;  %v183_v46 = vmul.f32 %v165_v45, %v7718_v13 }
 0x194   :  { %611 = vmatmul.bf16.gmra.mxu0 %v8073_v57  ;;  %708 = vmatmul.bf16.gmra.mxu1 %v8073_v57  ;;  %v296_v10 = vsub.f32 1.5, %v295_v0  ;;  %v404_v48 = vadd.f32 %v7939_v15, %v387_v11 }
 0x195   :  { %805 = vmatmul.bf16.gmra.mxu2 %v8073_v57  ;;  %902 = vmatmul.bf16.gmra.mxu3 %v8073_v57  ;;  %v7302_v58 = vpop.eup %7301  ;;  %v199_v12 = vadd.f32 1e-05, %v183_v46  ;;  %v316_v24 = vsub.f32 1.5, %v315_v47 }
 0x196   :  { %v297_v14 = vmul.f32 %v7298_v54, %v296_v10  ;;  %v303_v16 = vmul.f32 %v7302_v58, %v196_v59  ;;  %v7304_v18 = vpop.eup %7303  ;;  %vm309_vm2 = vweird.f32 %v7302_v58  ;;  %v420_v35 = vpack.c.bf16 %v404_v48, %v404_v48  ;;  %v7152_v48 = vld [vmem:[%s10939_s2 + $0x78] sm:$0xff] }
 0x197   :  { %7305 = vrsqrt.f32 %v199_v12  ;;  %v317_v27 = vmul.f32 %v7300_v61, %v316_v24  ;;  %v323_v19 = vmul.f32 %v7304_v18, %v8070_v60  ;;  %vm310_vm4 = vmor %vm308_vm1, %vm309_vm2  ;;  %vm338_vm5 = vweird.f32 %v199_v12  ;;  %1137 = vmatpush.bf16.msrb.mxu1 %v7152_v48 }
 0x198   :  { %v301_v20 = vsel %vm300_vm14, %v7298_v54, %v297_v14  ;;  %v304_v21 = vmul.f32 %v7302_v58, %v303_v16  ;;  %v516_v28 = vunpack.c.l.b16 %v420_v35  ;;  %vm329_vm8 = vweird.f32 %v7304_v18  ;;  %v7167_v35 = vld [vmem:[%s10939_s2 + $0xf0] sm:$0xff]  ;;  %v8237_v48 = vpop.f32.mrf.mxu1 }
 0x199   :  { %v371_v26 = vmul.f32 %v301_v20, %v7949_v23  ;;  %v321_v40 = vsel %vm320_vm3, %v7300_v61, %v317_v27  ;;  %v324_v50 = vmul.f32 %v7304_v18, %v323_v19  ;;  %vm330_vm10 = vmor %vm328_vm7, %vm329_vm8  ;;  %v167_v24 = vpop.xlane.xlu0 %166  ;;  %v7143_v19 = vld [vmem:[%s10939_s2 + $0x30] sm:$0xff]  ;;  %vm2064_vm1 = vcmask 261120  }
 0x19a   :  { %v305_v42 = vmul.f32 0.5, %v304_v21  ;;  %v373_v38 = vmul.f32 %v321_v40, %v7946_v22  ;;  %v184_v16 = vmul.f32 %v167_v24, %v7718_v13  ;;  %v7144_v21 = vld [vmem:[%s10939_s2 + $0x38] sm:$0xff]  ;;  %v7150_v40 = vld [vmem:[%s10939_s2 + $0x68] sm:$0xff]  ;;  %v7161_v24 = vld [vmem:[%s10939_s2 + $0xc0] sm:$0xff]  ;;  %vm2868_vm3 = vcmask 523264  }
 0x19b   :  { %v388_v43 = vmul.f32 %v7930_v36, %v371_v26  ;;  %v325_v37 = vmul.f32 0.5, %v324_v50  ;;  %v7160_v26 = vld [vmem:[%s10939_s2 + $0xb8] sm:$0xff]  ;;  %1040 = vmatpush.bf16.msrb.mxu0 %v7144_v21  ;;  %v8235_v21 = vpop.f32.mrf.mxu0 }
 0x19c   :  { %v306_v31 = vsub.f32 1.5, %v305_v42  ;;  %v390_v59 = vmul.f32 %v7930_v36, %v373_v38  ;;  %v7168_v42 = vld [vmem:[%s10939_s2 + $0xf8] sm:$0xff]  ;;  %1234 = vmatpush.bf16.msrb.mxu2 %v7160_v26  ;;  %v7165_v38 = vld [vmem:[%s10939_s2 + $0xe0] sm:$0xff] }
 0x19d   :  { %v7306_v34 = vpop.eup %7305  ;;  %v405_v63 = vadd.f32 %v7939_v15, %v388_v43  ;;  %v326_v61 = vsub.f32 1.5, %v325_v37  ;;  %1331 = vmatpush.bf16.msrb.mxu3 %v7168_v42  ;;  %v7151_v43 = vld [vmem:[%s10939_s2 + $0x70] sm:$0xff] }
 0x19e   :  { %v307_v41 = vmul.f32 %v7302_v58, %v306_v31  ;;  %v333_v51 = vmul.f32 %v7306_v34, %v199_v12  ;;  %vm339_vm6 = vweird.f32 %v7306_v34  ;;  %v407_v2 = vadd.f32 %v7939_v15, %v390_v59  ;;  %v7159_v31 = vld [vmem:[%s10939_s2 + $0xb0] sm:$0xff]  ;;  %1138 = vmatpush.bf16.msrb.mxu1 %v7151_v43 }
 0x19f   :  { %v421_v23 = vpack.c.bf16 %v405_v63, %v405_v63  ;;  %vm340_vm9 = vmor %vm338_vm5, %vm339_vm6  ;;  %v327_v3 = vmul.f32 %v7304_v18, %v326_v61  ;;  %1041 = vmatpush.bf16.msrb.mxu0 %v7143_v19  ;;  %v7142_v63 = vld [vmem:[%s10939_s2 + $0x28] sm:$0xff]  ;;  %v7164_v61 = vld [vmem:[%s10939_s2 + $0xd8] sm:$0xff] }
 0x1a0   :  { %v311_v30 = vsel %vm310_vm4, %v7302_v58, %v307_v41  ;;  %v334_v52 = vmul.f32 %v7306_v34, %v333_v51  ;;  %v423_v6 = vpack.c.bf16 %v407_v2, %v407_v2  ;;  %1235 = vmatpush.bf16.msrb.mxu2 %v7159_v31  ;;  %v7158_v41 = vld [vmem:[%s10939_s2 + $0xa8] sm:$0xff]  ;;  %v7147_v2 = vld [vmem:[%s10939_s2 + $0x50] sm:$0xff]  ;;  %v8241_v31 = vpop.f32.mrf.mxu2 }
 0x1a1   :  { %v517_v49 = vunpack.c.l.b16 %v421_v23  ;;  %v372_v29 = vmul.f32 %v311_v30, %v7989_v62  ;;  %v331_v7 = vsel %vm330_vm10, %v7304_v18, %v327_v3  ;;  %v200_v18 = vadd.f32 1e-05, %v184_v16  ;;  %1332 = vmatpush.bf16.msrb.mxu3 %v7167_v35  ;;  %v7166_v23 = vld [vmem:[%s10939_s2 + $0xe8] sm:$0xff]  ;;  %v7155_v3 = vld [vmem:[%s10939_s2 + $0x90] sm:$0xff]  ;;  %10990 = vst [vmem:[#allocation6_spill] sm:$0xff] %v8241_v31 }
 0x1a2   :  { %v335_v53 = vmul.f32 0.5, %v334_v52  ;;  %v519_v0 = vunpack.c.l.b16 %v423_v6  ;;  %v374_v45 = vmul.f32 %v331_v7, %v7992_v1  ;;  %1139 = vmatpush.bf16.msrb.mxu1 %v7150_v40  ;;  %v7141_v52 = vld [vmem:[%s10939_s2 + $0x20] sm:$0xff] }
 0x1a3   :  { %v8091_v32 = vpack.c.b16 %v517_v49, %v516_v28  ;;  %v389_v54 = vmul.f32 %v7930_v36, %v372_v29  ;;  %7307 = vrsqrt.f32 %v200_v18  ;;  %1042 = vmatpush.bf16.msrb.mxu0 %v7142_v63  ;;  %v7149_v28 = vld [vmem:[%s10939_s2 + $0x60] sm:$0xff]  ;;  %vm348_vm11 = vweird.f32 %v200_v18  ;;  %v8247_v40 = vpop.f32.mrf.mxu0 }
 0x1a4   :  { %v336_v55 = vsub.f32 1.5, %v335_v53  ;;  %v391_v46 = vmul.f32 %v7930_v36, %v374_v45  ;;  %1236 = vmatpush.bf16.msrb.mxu2 %v7158_v41  ;;  %v7157_v49 = vld [vmem:[%s10939_s2 + $0xa0] sm:$0xff]  ;;  %v7140_v53 = vld [vmem:[%s10939_s2 + $0x18] sm:$0xff]  ;;  %v7146_v45 = vld [vmem:[%s10939_s2 + $0x48] sm:$0xff] }
 0x1a5   :  { %616 = vmatmul.bf16.gmra.mxu0 %v8091_v32  ;;  %713 = vmatmul.bf16.gmra.mxu1 %v8091_v32  ;;  %v406_v22 = vadd.f32 %v7939_v15, %v389_v54  ;;  %v7148_v54 = vld [vmem:[%s10939_s2 + $0x58] sm:$0xff] }
 0x1a6   :  { %810 = vmatmul.bf16.gmra.mxu2 %v8091_v32  ;;  %907 = vmatmul.bf16.gmra.mxu3 %v8091_v32  ;;  %v337_v62 = vmul.f32 %v7306_v34, %v336_v55  ;;  %v7156_v55 = vld [vmem:[%s10939_s2 + $0x98] sm:$0xff] }
 0x1a7   :  { %v422_v4 = vpack.c.bf16 %v406_v22, %v406_v22  ;;  %1333 = vmatpush.bf16.msrb.mxu3 %v7166_v23  ;;  %1043 = vmatpush.bf16.msrb.mxu0 %v7141_v52 }
 0x1a8   :  { %v341_v5 = vsel %vm340_vm9, %v7306_v34, %v337_v62  ;;  %1140 = vmatpush.bf16.msrb.mxu1 %v7149_v28  ;;  %1237 = vmatpush.bf16.msrb.mxu2 %v7157_v49  ;;  %v7139_v62 = vld [vmem:[%s10939_s2 + $0x10] sm:$0xff] }
 0x1a9   :  { %v518_v8 = vunpack.c.l.b16 %v422_v4  ;;  %v375_v9 = vmul.f32 %v341_v5, %v8007_v33  ;;  %v408_v33 = vadd.f32 %v7939_v15, %v391_v46  ;;  %v8121_v20 = vpop.eup %7307  ;;  %v7163_v5 = vld [vmem:[%s10939_s2 + $0xd0] sm:$0xff] }
 0x1aa   :  { %v343_v27 = vmul.f32 %v8121_v20, %v200_v18  ;;  %vm349_vm12 = vweird.f32 %v8121_v20 }
 0x1ab   :  { %v8104_v47 = vpack.c.b16 %v519_v0, %v518_v8  ;;  %v392_v60 = vmul.f32 %v7930_v36, %v375_v9  ;;  %v424_v1 = vpack.c.bf16 %v408_v33, %v408_v33  ;;  %1334 = vmatpush.bf16.msrb.mxu3 %v7165_v38  ;;  %vm8188_vm13 = vmor %vm348_vm11, %vm349_vm12  ;;  %1044 = vmatpush.bf16.msrb.mxu0 %v7140_v53  ;;  %v7138_v0 = vld [vmem:[%s10939_s2 + $0x8] sm:$0xff]  ;;  %v8259_v41 = vpop.f32.mrf.mxu0 }
 0x1ac   :  { %v344_v34 = vmul.f32 %v8121_v20, %v343_v27  ;;  %1141 = vmatpush.bf16.msrb.mxu1 %v7148_v54  ;;  %1238 = vmatpush.bf16.msrb.mxu2 %v7156_v55 }
 0x1ad   :  { %v409_v10 = vadd.f32 %v7939_v15, %v392_v60  ;;  %v520_v12 = vunpack.c.l.b16 %v424_v1  ;;  %v7154_v60 = vld [vmem:[%s10939_s2 + $0x88] sm:$0xff]  ;;  %v7145_v1 = vld [vmem:[%s10939_s2 + $0x40] sm:$0xff] }
 0x1ae   :  { %v345_v50 = vmul.f32 0.5, %v344_v34  ;;  %v8243_v34 = vpop.f32.mrf.mxu3 }
 0x1af   :  { %v425_v58 = vpack.c.bf16 %v409_v10, %v409_v10  ;;  %1335 = vmatpush.bf16.msrb.mxu3 %v7164_v61  ;;  %1045 = vmatpush.bf16.msrb.mxu0 %v7139_v62  ;;  %v7162_v10 = vld [vmem:[%s10939_s2 + $0xc8] sm:$0xff]  ;;  %10991 = vst [vmem:[#allocation7_spill] sm:$0xff] %v8243_v34 }
 0x1b0   :  { %v346_v37 = vsub.f32 1.5, %v345_v50  ;;  %1142 = vmatpush.bf16.msrb.mxu1 %v7147_v2  ;;  %1239 = vmatpush.bf16.msrb.mxu2 %v7155_v3 }
 0x1b1   :  { %v521_v11 = vunpack.c.l.b16 %v425_v58  ;;  %v7137_v58 = vld [vmem:[%s10939_s2] sm:$0xff] }
 0x1b2   :  { %v347_v59 = vmul.f32 %v8121_v20, %v346_v37 }
 0x1b3   :  { %v8114_v14 = vpack.c.b16 %v521_v11, %v520_v12  ;;  %1336 = vmatpush.bf16.msrb.mxu3 %v7163_v5  ;;  %1046 = vmatpush.bf16.msrb.mxu0 %v7138_v0  ;;  %v7153_v11 = vld [vmem:[%s10939_s2 + $0x80] sm:$0xff] }
 0x1b4   :  { %v351_v6 = vsel %vm8188_vm13, %v8121_v20, %v347_v59  ;;  %1143 = vmatpush.bf16.msrb.mxu1 %v7146_v45  ;;  %1240 = vmatpush.bf16.msrb.mxu2 %v7154_v60 }
 0x1b5   :  { %621 = vmatmul.bf16.gmra.mxu0 %v8104_v47  ;;  %718 = vmatmul.bf16.gmra.mxu1 %v8104_v47  ;;  %v376_v9 = vmul.f32 %v351_v6, %v8024_v39 }
 0x1b6   :  { %815 = vmatmul.bf16.gmra.mxu2 %v8104_v47  ;;  %912 = vmatmul.bf16.gmra.mxu3 %v8104_v47 }
 0x1b7   :  { %1337 = vmatpush.bf16.msrb.mxu3 %v7162_v10  ;;  %v393_v33 = vmul.f32 %v7930_v36, %v376_v9  ;;  %1047 = vmatpush.bf16.msrb.mxu0 %v7137_v58  ;;  %v7176_v10 = vld [vmem:[%s10940_s3 + $0x38] sm:$0xff] }
 0x1b8   :  { %1144 = vmatpush.bf16.msrb.mxu1 %v7145_v1  ;;  %1241 = vmatpush.bf16.msrb.mxu2 %v7153_v11  ;;  %v7200_v58 = vld [vmem:[%s10940_s3 + $0xf8] sm:$0xff]  ;;  %v7175_v1 = vld [vmem:[%s10940_s3 + $0x30] sm:$0xff] }
 0x1b9   :  { %v410_v18 = vadd.f32 %v7939_v15, %v393_v33  ;;  %v7192_v33 = vld [vmem:[%s10940_s3 + $0xb8] sm:$0xff]  ;;  %v7183_v11 = vld [vmem:[%s10940_s3 + $0x70] sm:$0xff] }
 0x1bb   :  { %1338 = vmatpush.bf16.msrb.mxu3 %v7161_v24  ;;  %v426_v27 = vpack.c.bf16 %v410_v18, %v410_v18  ;;  %1492 = vmatpush.bf16.msra.mxu0 %v7176_v10  ;;  %v7199_v18 = vld [vmem:[%s10940_s3 + $0xf0] sm:$0xff] }
 0x1bc   :  { %1686 = vmatpush.bf16.msra.mxu2 %v7192_v33  ;;  %v7181_v33 = vld [vmem:[%s10940_s3 + $0x60] sm:$0xff] }
 0x1bd   :  { %v522_v43 = vunpack.c.l.b16 %v426_v27  ;;  %v7174_v27 = vld [vmem:[%s10940_s3 + $0x28] sm:$0xff] }
 0x1bf   :  { %1783 = vmatpush.bf16.msra.mxu3 %v7200_v58  ;;  %1493 = vmatpush.bf16.msra.mxu0 %v7175_v1  ;;  %v7189_v58 = vld [vmem:[%s10940_s3 + $0xa0] sm:$0xff] }
 0x1c3   :  { %1784 = vmatpush.bf16.msra.mxu3 %v7199_v18  ;;  %1494 = vmatpush.bf16.msra.mxu0 %v7174_v27  ;;  %v7172_v18 = vld [vmem:[%s10940_s3 + $0x18] sm:$0xff] }
 0x1c4   :  { %v7180_v27 = vld [vmem:[%s10940_s3 + $0x58] sm:$0xff] }
 0x1c5   :  { %626 = vmatmul.bf16.gmra.mxu0 %v8114_v14  ;;  %723 = vmatmul.bf16.gmra.mxu1 %v8114_v14 }
 0x1c6   :  { %820 = vmatmul.bf16.gmra.mxu2 %v8114_v14  ;;  %917 = vmatmul.bf16.gmra.mxu3 %v8114_v14 }
 0x1fb   :  { %v169_v51 = vpop.xlane.xlu1 %168 }
 0x1fc   :  { %v185_v30 = vmul.f32 %v169_v51, %v7718_v13 }
 0x1fe   :  { %v201_v29 = vadd.f32 1e-05, %v185_v30  ;;  %v8271_v30 = vpop.f32.mrf.mxu0 }
 0x200   :  { %7309 = vrsqrt.f32 %v201_v29  ;;  %vm358_vm15 = vweird.f32 %v201_v29 }
 0x206   :  { %v7310_v4 = vpop.eup %7309  ;;  %v8279_v38 = vpop.f32.mrf.mxu0 }
 0x207   :  { %v353_v7 = vmul.f32 %v7310_v4, %v201_v29  ;;  %vm359_vm14 = vweird.f32 %v7310_v4  ;;  %10998 = vst [vmem:[#allocation14_spill] sm:$0xff] %v8279_v38 }
 0x208   :  { %vm360_vm0 = vmor %vm358_vm15, %vm359_vm14 }
 0x209   :  { %v354_v8 = vmul.f32 %v7310_v4, %v353_v7 }
 0x20b   :  { %v355_v46 = vmul.f32 0.5, %v354_v8 }
 0x20d   :  { %v356_v39 = vsub.f32 1.5, %v355_v46 }
 0x20e   :  { %v8291_v54 = vpop.f32.mrf.mxu0 }
 0x20f   :  { %v357_v12 = vmul.f32 %v7310_v4, %v356_v39  ;;  %v7184_v39 = vld [vmem:[%s10940_s3 + $0x78] sm:$0xff] }
 0x210   :  { %1589 = vmatpush.bf16.msra.mxu1 %v7184_v39  ;;  %v7173_v39 = vld [vmem:[%s10940_s3 + $0x20] sm:$0xff] }
 0x211   :  { %v361_v16 = vsel %vm360_vm0, %v7310_v4, %v357_v12  ;;  %1495 = vmatpush.bf16.msra.mxu0 %v7173_v39 }
 0x212   :  { %v377_v20 = vmul.f32 %v361_v16, %v8057_v44  ;;  %v8249_v44 = vpop.f32.mrf.mxu1  ;;  %v7191_v16 = vld [vmem:[%s10940_s3 + $0xb0] sm:$0xff] }
 0x213   :  { %1687 = vmatpush.bf16.msra.mxu2 %v7191_v16  ;;  %v7197_v16 = vld [vmem:[%s10940_s3 + $0xe0] sm:$0xff] }
 0x214   :  { %v394_v26 = vmul.f32 %v7930_v36, %v377_v20  ;;  %v8255_v36 = vpop.f32.mrf.mxu2  ;;  %1590 = vmatpush.bf16.msra.mxu1 %v7183_v11 }
 0x215   :  { %10992 = vst [vmem:[#allocation8_spill] sm:$0xff] %v8255_v36  ;;  %1496 = vmatpush.bf16.msra.mxu0 %v7172_v18  ;;  %v7195_v18 = vld [vmem:[%s10940_s3 + $0xd0] sm:$0xff] }
 0x216   :  { %v411_v42 = vadd.f32 %v7939_v15, %v394_v26  ;;  %v8257_v15 = vpop.f32.mrf.mxu3  ;;  %v8299_v22 = vpop.f32.mrf.mxu0 }
 0x217   :  { %10993 = vst [vmem:[#allocation9_spill] sm:$0xff] %v8257_v15 }
 0x218   :  { %v427_v19 = vpack.c.bf16 %v411_v42, %v411_v42  ;;  %11005 = vst [vmem:[#allocation21_spill] sm:$0xff] %v8299_v22  ;;  %v7182_v42 = vld [vmem:[%s10940_s3 + $0x68] sm:$0xff] }
 0x219   :  { %1591 = vmatpush.bf16.msra.mxu1 %v7182_v42  ;;  %v7188_v42 = vld [vmem:[%s10940_s3 + $0x98] sm:$0xff] }
 0x21a   :  { %v523_v35 = vunpack.c.l.b16 %v427_v19  ;;  %v8261_v50 = vpop.f32.mrf.mxu1  ;;  %v7190_v19 = vld [vmem:[%s10940_s3 + $0xa8] sm:$0xff] }
 0x21b   :  { %1688 = vmatpush.bf16.msra.mxu2 %v7190_v19  ;;  %v7196_v19 = vld [vmem:[%s10940_s3 + $0xd8] sm:$0xff] }
 0x21c   :  { %v8245_v63 = vpack.c.b16 %v523_v35, %v522_v43  ;;  %v8263_v51 = vpop.f32.mrf.mxu2  ;;  %v7198_v43 = vld [vmem:[%s10940_s3 + $0xe8] sm:$0xff] }
 0x21d   :  { %10994 = vst [vmem:[#allocation10_spill] sm:$0xff] %v8263_v51  ;;  %1785 = vmatpush.bf16.msra.mxu3 %v7198_v43  ;;  %1592 = vmatpush.bf16.msra.mxu1 %v7181_v33  ;;  %v7171_v33 = vld [vmem:[%s10940_s3 + $0x10] sm:$0xff] }
 0x21e   :  { %631 = vmatmul.bf16.gmra.mxu0 %v8245_v63  ;;  %728 = vmatmul.bf16.gmra.mxu1 %v8245_v63  ;;  %v8265_v23 = vpop.f32.mrf.mxu3  ;;  %v8311_v4 = vpop.f32.mrf.mxu0 }
 0x21f   :  { %825 = vmatmul.bf16.gmra.mxu2 %v8245_v63  ;;  %922 = vmatmul.bf16.gmra.mxu3 %v8245_v63  ;;  %10995 = vst [vmem:[#allocation11_spill] sm:$0xff] %v8265_v23 }
 0x220   :  { %11009 = vst [vmem:[#allocation25_spill] sm:$0xff] %v8311_v4  ;;  %1689 = vmatpush.bf16.msra.mxu2 %v7189_v58  ;;  %v7179_v58 = vld [vmem:[%s10940_s3 + $0x50] sm:$0xff]  ;;  %1497 = vmatpush.bf16.msra.mxu0 %v7171_v33  ;;  %v7194_v33 = vld [vmem:[%s10940_s3 + $0xc8] sm:$0xff] }
 0x221   :  { %1786 = vmatpush.bf16.msra.mxu3 %v7197_v16  ;;  %1593 = vmatpush.bf16.msra.mxu1 %v7180_v27  ;;  %v7187_v16 = vld [vmem:[%s10940_s3 + $0x90] sm:$0xff]  ;;  %v7170_v27 = vld [vmem:[%s10940_s3 + $0x8] sm:$0xff] }
 0x222   :  { %v8273_v52 = vpop.f32.mrf.mxu1 }
 0x224   :  { %v8275_v28 = vpop.f32.mrf.mxu2  ;;  %1690 = vmatpush.bf16.msra.mxu2 %v7188_v42  ;;  %v7178_v42 = vld [vmem:[%s10940_s3 + $0x48] sm:$0xff]  ;;  %1498 = vmatpush.bf16.msra.mxu0 %v7170_v27 }
 0x225   :  { %10996 = vst [vmem:[#allocation12_spill] sm:$0xff] %v8275_v28  ;;  %1787 = vmatpush.bf16.msra.mxu3 %v7196_v19  ;;  %1594 = vmatpush.bf16.msra.mxu1 %v7179_v58  ;;  %v7169_v58 = vld [vmem:[%s10940_s3] sm:$0xff] }
 0x226   :  { %v8277_v49 = vpop.f32.mrf.mxu3  ;;  %v8323_v8 = vpop.f32.mrf.mxu0 }
 0x227   :  { %10997 = vst [vmem:[#allocation13_spill] sm:$0xff] %v8277_v49 }
 0x228   :  { %1691 = vmatpush.bf16.msra.mxu2 %v7187_v16  ;;  %v7177_v16 = vld [vmem:[%s10940_s3 + $0x40] sm:$0xff]  ;;  %1499 = vmatpush.bf16.msra.mxu0 %v7169_v58 }
 0x229   :  { %1788 = vmatpush.bf16.msra.mxu3 %v7195_v18  ;;  %1595 = vmatpush.bf16.msra.mxu1 %v7178_v42  ;;  %v7185_v18 = vld [vmem:[%s10940_s3 + $0x80] sm:$0xff] }
 0x22a   :  { %v8281_v29 = vpop.f32.mrf.mxu1 }
 0x22b   :  { %10999 = vst [vmem:[#allocation15_spill] sm:$0xff] %v8281_v29 }
 0x22c   :  { %v8287_v37 = vpop.f32.mrf.mxu2 }
 0x22d   :  { %11000 = vst [vmem:[#allocation16_spill] sm:$0xff] %v8287_v37  ;;  %1789 = vmatpush.bf16.msra.mxu3 %v7194_v33  ;;  %1596 = vmatpush.bf16.msra.mxu1 %v7177_v16 }
 0x22e   :  { %1048 = vmatmul.bf16.vlgmr.msrb.gmra.mxu0 %v8003_v17  ;;  %1145 = vmatmul.bf16.vlgmr.msrb.gmra.mxu1 %v8003_v17  ;;  %v8289_v53 = vpop.f32.mrf.mxu3  ;;  %v8331_v60 = vpop.f32.mrf.mxu0 }
 0x22f   :  { %1242 = vmatmul.bf16.vlgmr.msrb.gmra.mxu2 %v8003_v17  ;;  %1339 = vmatmul.bf16.vlgmr.msrb.gmra.mxu3 %v8003_v17  ;;  %11001 = vst [vmem:[#allocation17_spill] sm:$0xff] %v8289_v53 }
 0x232   :  { %v8293_v55 = vpop.f32.mrf.mxu1 }
 0x233   :  { %11002 = vst [vmem:[#allocation18_spill] sm:$0xff] %v8293_v55 }
 0x234   :  { %v8295_v59 = vpop.f32.mrf.mxu2 }
 0x235   :  { %11003 = vst [vmem:[#allocation19_spill] sm:$0xff] %v8295_v59 }
 0x236   :  { %v8297_v61 = vpop.f32.mrf.mxu3  ;;  %v8367_v20 = vpop.f32.mrf.mxu0 }
 0x237   :  { %11004 = vst [vmem:[#allocation20_spill] sm:$0xff] %v8297_v61 }
 0x238   :  { %11017 = vst [vmem:[#allocation33_spill] sm:$0xff] %v8367_v20 }
 0x23a   :  { %v8301_v62 = vpop.f32.mrf.mxu1 }
 0x23b   :  { %11006 = vst [vmem:[#allocation22_spill] sm:$0xff] %v8301_v62 }
 0x23c   :  { %v8307_v2 = vpop.f32.mrf.mxu2 }
 0x23d   :  { %11007 = vst [vmem:[#allocation23_spill] sm:$0xff] %v8307_v2 }
 0x23e   :  { %1053 = vmatmul.bf16.gmra.mxu0 %v8031_v25  ;;  %1150 = vmatmul.bf16.gmra.mxu1 %v8031_v25  ;;  %v8309_v3 = vpop.f32.mrf.mxu3  ;;  %v8398_v1 = vpop.f32.mrf.mxu0 }
 0x23f   :  { %1247 = vmatmul.bf16.gmra.mxu2 %v8031_v25  ;;  %1344 = vmatmul.bf16.gmra.mxu3 %v8031_v25  ;;  %11008 = vst [vmem:[#allocation24_spill] sm:$0xff] %v8309_v3  ;;  %v7186_v3 = vld [vmem:[%s10940_s3 + $0x88] sm:$0xff] }
 0x240   :  { %11021 = vst [vmem:[#allocation37_spill] sm:$0xff] %v8398_v1  ;;  %1692 = vmatpush.bf16.msra.mxu2 %v7186_v3  ;;  %v7193_v3 = vld [vmem:[%s10940_s3 + $0xc0] sm:$0xff] }
 0x241   :  { %1790 = vmatpush.bf16.msra.mxu3 %v7193_v3 }
 0x242   :  { %v8313_v5 = vpop.f32.mrf.mxu1 }
 0x243   :  { %11010 = vst [vmem:[#allocation26_spill] sm:$0xff] %v8313_v5 }
 0x244   :  { %v8315_v6 = vpop.f32.mrf.mxu2  ;;  %1693 = vmatpush.bf16.msra.mxu2 %v7185_v18 }
 0x245   :  { %11011 = vst [vmem:[#allocation27_spill] sm:$0xff] %v8315_v6 }
 0x246   :  { %v8317_v7 = vpop.f32.mrf.mxu3  ;;  %v8441_v19 = vpop.f32.mrf.mxu0 }
 0x247   :  { %11012 = vst [vmem:[#allocation28_spill] sm:$0xff] %v8317_v7 }
 0x248   :  { %11025 = vst [vmem:[#allocation41_spill] sm:$0xff] %v8441_v19 }
 0x24a   :  { %v8325_v9 = vpop.f32.mrf.mxu1 }
 0x24c   :  { %v8327_v0 = vpop.f32.mrf.mxu2 }
 0x24d   :  { %11013 = vst [vmem:[#allocation29_spill] sm:$0xff] %v8327_v0 }
 0x24e   :  { %1058 = vmatmul.bf16.gmra.mxu0 %v8041_v56  ;;  %1155 = vmatmul.bf16.gmra.mxu1 %v8041_v56  ;;  %v8329_v45 = vpop.f32.mrf.mxu3  ;;  %v8471_v33 = vpop.f32.mrf.mxu0 }
 0x24f   :  { %1252 = vmatmul.bf16.gmra.mxu2 %v8041_v56  ;;  %1349 = vmatmul.bf16.gmra.mxu3 %v8041_v56  ;;  %11014 = vst [vmem:[#allocation30_spill] sm:$0xff] %v8329_v45 }
 0x250   :  { %11029 = vst [vmem:[#allocation45_spill] sm:$0xff] %v8471_v33 }
 0x252   :  { %v8333_v46 = vpop.f32.mrf.mxu1 }
 0x254   :  { %v8357_v12 = vpop.f32.mrf.mxu2 }
 0x255   :  { %11015 = vst [vmem:[#allocation31_spill] sm:$0xff] %v8357_v12 }
 0x256   :  { %v8359_v24 = vpop.f32.mrf.mxu3 }
 0x257   :  { %11016 = vst [vmem:[#allocation32_spill] sm:$0xff] %v8359_v24 }
 0x25a   :  { %v8369_v26 = vpop.f32.mrf.mxu1 }
 0x25b   :  { %11018 = vst [vmem:[#allocation34_spill] sm:$0xff] %v8369_v26 }
 0x25c   :  { %v8383_v35 = vpop.f32.mrf.mxu2 }
 0x25d   :  { %11019 = vst [vmem:[#allocation35_spill] sm:$0xff] %v8383_v35 }
 0x25e   :  { %1063 = vmatmul.bf16.gmra.mxu0 %v8073_v57  ;;  %1160 = vmatmul.bf16.gmra.mxu1 %v8073_v57  ;;  %v8385_v10 = vpop.f32.mrf.mxu3 }
 0x25f   :  { %1257 = vmatmul.bf16.gmra.mxu2 %v8073_v57  ;;  %1354 = vmatmul.bf16.gmra.mxu3 %v8073_v57  ;;  %11020 = vst [vmem:[#allocation36_spill] sm:$0xff] %v8385_v10 }
 0x262   :  { %v8400_v11 = vpop.f32.mrf.mxu1 }
 0x263   :  { %11022 = vst [vmem:[#allocation38_spill] sm:$0xff] %v8400_v11 }
 0x264   :  { %v8419_v43 = vpop.f32.mrf.mxu2 }
 0x265   :  { %11023 = vst [vmem:[#allocation39_spill] sm:$0xff] %v8419_v43 }
 0x266   :  { %v8421_v39 = vpop.f32.mrf.mxu3 }
 0x267   :  { %11024 = vst [vmem:[#allocation40_spill] sm:$0xff] %v8421_v39 }
 0x26a   :  { %v8443_v13 = vpop.f32.mrf.mxu1 }
 0x26b   :  { %11026 = vst [vmem:[#allocation42_spill] sm:$0xff] %v8443_v13 }
 0x26c   :  { %v8467_v27 = vpop.f32.mrf.mxu2 }
 0x26d   :  { %11027 = vst [vmem:[#allocation43_spill] sm:$0xff] %v8467_v27 }
 0x26e   :  { %1068 = vmatmul.bf16.gmra.mxu0 %v8091_v32  ;;  %1165 = vmatmul.bf16.gmra.mxu1 %v8091_v32  ;;  %v8469_v42 = vpop.f32.mrf.mxu3 }
 0x26f   :  { %1262 = vmatmul.bf16.gmra.mxu2 %v8091_v32  ;;  %1359 = vmatmul.bf16.gmra.mxu3 %v8091_v32  ;;  %11028 = vst [vmem:[#allocation44_spill] sm:$0xff] %v8469_v42 }
 0x272   :  { %v8473_v2 = vpop.f32.mrf.mxu1 }
 0x273   :  { %11030 = vst [vmem:[#allocation46_spill] sm:$0xff] %v8473_v2 }
 0x274   :  { %v8475_v7 = vpop.f32.mrf.mxu2 }
 0x275   :  { %11031 = vst [vmem:[#allocation47_spill] sm:$0xff] %v8475_v7 }
 0x276   :  { %v8477_v6 = vpop.f32.mrf.mxu3 }
 0x277   :  { %11032 = vst [vmem:[#allocation48_spill] sm:$0xff] %v8477_v6 }
 0x27e   :  { %1073 = vmatmul.bf16.gmra.mxu0 %v8104_v47  ;;  %1170 = vmatmul.bf16.gmra.mxu1 %v8104_v47 }
 0x27f   :  { %1267 = vmatmul.bf16.gmra.mxu2 %v8104_v47  ;;  %1364 = vmatmul.bf16.gmra.mxu3 %v8104_v47 }
 0x28e   :  { %1078 = vmatmul.bf16.gmra.mxu0 %v8114_v14  ;;  %1175 = vmatmul.bf16.gmra.mxu1 %v8114_v14 }
 0x28f   :  { %1272 = vmatmul.bf16.gmra.mxu2 %v8114_v14  ;;  %1369 = vmatmul.bf16.gmra.mxu3 %v8114_v14 }
 0x29b   :  { %v632_v10 = vpop.f32.mrf.mxu0  ;;  %v729_v35 = vpop.f32.mrf.mxu1 }
 0x29c   :  { %v1846_v58 = vpack.c.bf16 %v632_v10, %v632_v10  ;;  %v1862_v16 = vpack.c.bf16 %v729_v35, %v729_v35 }
 0x29e   :  { %1083 = vmatmul.bf16.gmra.mxu0 %v8245_v63  ;;  %1180 = vmatmul.bf16.gmra.mxu1 %v8245_v63  ;;  %v8483_v43 = vunpack.c.l.b16 %v1846_v58  ;;  %v8485_v6 = vunpack.c.l.b16 %v1862_v16 }
 0x29f   :  { %1277 = vmatmul.bf16.gmra.mxu2 %v8245_v63  ;;  %1374 = vmatmul.bf16.gmra.mxu3 %v8245_v63 }
 0x2a0   :  { %11033 = vst [vmem:[#allocation49_spill] sm:$0xff] %v8483_v43 }
 0x2a1   :  { %11034 = vst [vmem:[#allocation50_spill] sm:$0xff] %v8485_v6 }
 0x2a2   :  { %v826_v18 = vpop.f32.mrf.mxu2  ;;  %v923_v3 = vpop.f32.mrf.mxu3 }
 0x2a3   :  { %v634_v42 = vpop.f32.mrf.mxu0  ;;  %v731_v27 = vpop.f32.mrf.mxu1  ;;  %v1878_v10 = vpack.c.bf16 %v826_v18, %v826_v18  ;;  %v1894_v59 = vpack.c.bf16 %v923_v3, %v923_v3 }
 0x2a4   :  { %v1847_v39 = vpack.c.bf16 %v634_v42, %v634_v42  ;;  %v1863_v7 = vpack.c.bf16 %v731_v27, %v731_v27 }
 0x2a5   :  { %v8495_v16 = vunpack.c.l.b16 %v1878_v10 }
 0x2a6   :  { %v8487_v53 = vunpack.c.l.b16 %v1847_v39  ;;  %v8489_v37 = vunpack.c.l.b16 %v1863_v7  ;;  %v8497_v39 = vunpack.c.l.b16 %v1894_v59 }
 0x2a7   :  { %11037 = vst [vmem:[#allocation53_spill] sm:$0xff] %v8495_v16 }
 0x2a8   :  { %11035 = vst [vmem:[#allocation51_spill] sm:$0xff] %v8487_v53 }
 0x2a9   :  { %11036 = vst [vmem:[#allocation52_spill] sm:$0xff] %v8489_v37 }
 0x2aa   :  { %v828_v45 = vpop.f32.mrf.mxu2  ;;  %v925_v0 = vpop.f32.mrf.mxu3  ;;  %11038 = vst [vmem:[#allocation54_spill] sm:$0xff] %v8497_v39 }
 0x2ab   :  { %v1879_v42 = vpack.c.bf16 %v828_v45, %v828_v45  ;;  %v1895_v27 = vpack.c.bf16 %v925_v0, %v925_v0  ;;  %v1049_v58 = vpop.f32.mrf.mxu0  ;;  %v1146_v24 = vpop.f32.mrf.mxu1 }
 0x2ac   :  { %v1896_v59 = vpack.c.bf16 %v1049_v58, %v1049_v58  ;;  %v1912_v45 = vpack.c.bf16 %v1146_v24, %v1146_v24 }
 0x2ad   :  { %v8499_v7 = vunpack.c.l.b16 %v1879_v42  ;;  %v8501_v12 = vunpack.c.l.b16 %v1895_v27 }
 0x2ae   :  { %1500 = vmatmul.bf16.vlgmr.msra.gmra.mxu0 %v8003_v17  ;;  %1597 = vmatmul.bf16.vlgmr.msra.gmra.mxu1 %v8003_v17  ;;  %v8511_v6 = vunpack.c.l.b16 %v1896_v59  ;;  %v8513_v37 = vunpack.c.l.b16 %v1912_v45 }
 0x2af   :  { %11039 = vst [vmem:[#allocation55_spill] sm:$0xff] %v8499_v7  ;;  %1694 = vmatmul.bf16.vlgmr.msra.gmra.mxu2 %v8003_v17  ;;  %1791 = vmatmul.bf16.vlgmr.msra.gmra.mxu3 %v8003_v17 }
 0x2b0   :  { %11040 = vst [vmem:[#allocation56_spill] sm:$0xff] %v8501_v12 }
 0x2b2   :  { %v1243_v3 = vpop.f32.mrf.mxu2  ;;  %v1340_v10 = vpop.f32.mrf.mxu3 }
 0x2b3   :  { %v1051_v42 = vpop.f32.mrf.mxu0  ;;  %v1148_v27 = vpop.f32.mrf.mxu1  ;;  %v1928_v24 = vpack.c.bf16 %v1243_v3, %v1243_v3  ;;  %v1944_v58 = vpack.c.bf16 %v1340_v10, %v1340_v10 }
 0x2b4   :  { %v1897_v35 = vpack.c.bf16 %v1051_v42, %v1051_v42  ;;  %v1913_v61 = vpack.c.bf16 %v1148_v27, %v1148_v27 }
 0x2b6   :  { %v8515_v18 = vunpack.c.l.b16 %v1897_v35  ;;  %v8517_v16 = vunpack.c.l.b16 %v1913_v61  ;;  %v8527_v35 = vunpack.c.l.b16 %v1928_v24  ;;  %v8529_v61 = vunpack.c.l.b16 %v1944_v58 }
 0x2ba   :  { %v1245_v39 = vpop.f32.mrf.mxu2  ;;  %v1342_v12 = vpop.f32.mrf.mxu3 }
 0x2bb   :  { %v1929_v42 = vpack.c.bf16 %v1245_v39, %v1245_v39  ;;  %v1945_v27 = vpack.c.bf16 %v1342_v12, %v1342_v12  ;;  %v8523_v59 = vpop.f32.mrf.mxu0  ;;  %v8525_v45 = vpop.f32.mrf.mxu1 }
 0x2bd   :  { %v8531_v7 = vunpack.c.l.b16 %v1929_v42  ;;  %v8533_v0 = vunpack.c.l.b16 %v1945_v27 }
 0x2be   :  { %1505 = vmatmul.bf16.gmra.mxu0 %v8031_v25  ;;  %1602 = vmatmul.bf16.gmra.mxu1 %v8031_v25 }
 0x2bf   :  { %1699 = vmatmul.bf16.gmra.mxu2 %v8031_v25  ;;  %1796 = vmatmul.bf16.gmra.mxu3 %v8031_v25 }
 0x2c2   :  { %v1248_v3 = vpop.f32.mrf.mxu2  ;;  %v8543_v10 = vpop.f32.mrf.mxu3 }
 0x2c3   :  { %v8545_v24 = vpop.f32.mrf.mxu0  ;;  %v8547_v58 = vpop.f32.mrf.mxu1  ;;  %v1930_v42 = vpack.c.bf16 %v1248_v3, %v1248_v3 }
 0x2c5   :  { %v8551_v23 = vunpack.c.l.b16 %v1930_v42 }
 0x2ca   :  { %v1250_v27 = vpop.f32.mrf.mxu2  ;;  %v8549_v17 = vpop.f32.mrf.mxu3 }
 0x2cb   :  { %v1931_v43 = vpack.c.bf16 %v1250_v27, %v1250_v27  ;;  %v1059_v53 = vpop.f32.mrf.mxu0  ;;  %v1156_v25 = vpop.f32.mrf.mxu1 }
 0x2cc   :  { %v1900_v20 = vpack.c.bf16 %v1059_v53, %v1059_v53  ;;  %v1916_v11 = vpack.c.bf16 %v1156_v25, %v1156_v25  ;;  %v1899_v53 = vpack.c.bf16 %v8545_v24, %v8545_v24 }
 0x2cd   :  { %v8553_v12 = vunpack.c.l.b16 %v1931_v43 }
 0x2ce   :  { %1510 = vmatmul.bf16.gmra.mxu0 %v8041_v56  ;;  %1607 = vmatmul.bf16.gmra.mxu1 %v8041_v56 }
 0x2cf   :  { %1704 = vmatmul.bf16.gmra.mxu2 %v8041_v56  ;;  %1801 = vmatmul.bf16.gmra.mxu3 %v8041_v56 }
 0x2d2   :  { %v8561_v39 = vpop.f32.mrf.mxu2  ;;  %v8563_v27 = vpop.f32.mrf.mxu3 }
 0x2d3   :  { %v1061_v49 = vpop.f32.mrf.mxu0  ;;  %v1158_v42 = vpop.f32.mrf.mxu1 }
 0x2d4   :  { %v1901_v33 = vpack.c.bf16 %v1061_v49, %v1061_v49  ;;  %v1917_v62 = vpack.c.bf16 %v1158_v42, %v1158_v42 }
 0x2da   :  { %v8565_v28 = vpop.f32.mrf.mxu2  ;;  %v8567_v43 = vpop.f32.mrf.mxu3 }
 0x2db   :  { %v1064_v51 = vpop.f32.mrf.mxu0  ;;  %v1161_v34 = vpop.f32.mrf.mxu1 }
 0x2dc   :  { %v1902_v56 = vpack.c.bf16 %v1064_v51, %v1064_v51  ;;  %v1918_v3 = vpack.c.bf16 %v1161_v34, %v1161_v34  ;;  %v2057_v34 = vunpack.c.l.b16 %v1901_v33  ;;  %v2244_v51 = vunpack.c.l.b16 %v1917_v62 }
 0x2de   :  { %1515 = vmatmul.bf16.gmra.mxu0 %v8073_v57  ;;  %1612 = vmatmul.bf16.gmra.mxu1 %v8073_v57  ;;  %v2058_v22 = vunpack.c.l.b16 %v1902_v56  ;;  %v2245_v5 = vunpack.c.l.b16 %v1918_v3 }
 0x2df   :  { %1709 = vmatmul.bf16.gmra.mxu2 %v8073_v57  ;;  %1806 = vmatmul.bf16.gmra.mxu3 %v8073_v57 }
 0x2e2   :  { %v8573_v15 = vpop.f32.mrf.mxu2  ;;  %v8575_v36 = vpop.f32.mrf.mxu3 }
 0x2e3   :  { %v1066_v31 = vpop.f32.mrf.mxu0  ;;  %v1163_v13 = vpop.f32.mrf.mxu1 }
 0x2e4   :  { %v1903_v19 = vpack.c.bf16 %v1066_v31, %v1066_v31  ;;  %v1919_v2 = vpack.c.bf16 %v1163_v13, %v1163_v13 }
 0x2e6   :  { %v2059_v4 = vunpack.c.l.b16 %v1903_v19  ;;  %v2246_v26 = vunpack.c.l.b16 %v1919_v2  ;;  %v2056_v19 = vunpack.c.l.b16 %v1900_v20  ;;  %v2243_v2 = vunpack.c.l.b16 %v1916_v11 }
 0x2e7   :  { %v2055_v20 = vunpack.c.l.b16 %v1899_v53 }
 0x2e8   :  { %v2063_v1 = vpack.c.b16 %v2059_v4, %v2058_v22  ;;  %v2250_v57 = vpack.c.b16 %v2246_v26, %v2245_v5  ;;  %v1915_v22 = vpack.c.bf16 %v8547_v58, %v8547_v58  ;;  %v2062_v62 = vpack.c.b16 %v2057_v34, %v2056_v19 }
 0x2e9   :  { %v2249_v4 = vpack.c.b16 %v2244_v51, %v2243_v2  ;;  %v1914_v5 = vpack.c.bf16 %v8525_v45, %v8525_v45  ;;  %v1934_v19 = vpack.c.bf16 %v8573_v15, %v8573_v15  ;;  %v1950_v2 = vpack.c.bf16 %v8575_v36, %v8575_v36 }
 0x2ea   :  { %v1260_v29 = vpop.f32.mrf.mxu2  ;;  %v1357_v38 = vpop.f32.mrf.mxu3  ;;  %v2087_v55 = vsel %vm2064_vm1, %v2063_v1, 0  ;;  %v2273_v31 = vsel %vm2064_vm1, %v2250_v57, 0  ;;  %v2242_v26 = vunpack.c.l.b16 %v1915_v22  ;;  %v2084_v24 = vsel %vm2064_vm1, %v2062_v62, 0 }
 0x2eb   :  { %v1069_v13 = vpop.f32.mrf.mxu0  ;;  %v8579_v49 = vpop.f32.mrf.mxu1  ;;  %2093 = vmatpush.bf16.xpose.msrb.mxu0 %v2087_v55  ;;  %2279 = vmatpush.bf16.xpose.msrb.mxu2 %v2273_v31  ;;  %v1898_v55 = vpack.c.bf16 %v8523_v59, %v8523_v59  ;;  %v2270_v58 = vsel %vm2064_vm1, %v2249_v4, 0  ;;  %v2241_v59 = vunpack.c.l.b16 %v1914_v5  ;;  %v1935_v51 = vpack.c.bf16 %v1260_v29, %v1260_v29 }
 0x2ec   :  { %v1904_v1 = vpack.c.bf16 %v1069_v13, %v1069_v13  ;;  %v1951_v31 = vpack.c.bf16 %v1357_v38, %v1357_v38  ;;  %v2431_v15 = vunpack.c.l.b16 %v1934_v19 }
 0x2ed   :  { %v2248_v34 = vpack.c.b16 %v2242_v26, %v2241_v59  ;;  %v2432_v5 = vunpack.c.l.b16 %v1935_v51 }
 0x2ee   :  { %1520 = vmatmul.bf16.gmra.mxu0 %v8091_v32  ;;  %1617 = vmatmul.bf16.gmra.mxu1 %v8091_v32  ;;  %v8599_v56 = vunpack.c.l.b16 %v1904_v1  ;;  %v2618_v29 = vunpack.c.l.b16 %v1951_v31  ;;  %v2617_v1 = vunpack.c.l.b16 %v1950_v2 }
 0x2ef   :  { %1714 = vmatmul.bf16.gmra.mxu2 %v8091_v32  ;;  %1811 = vmatmul.bf16.gmra.mxu3 %v8091_v32  ;;  %v2054_v32 = vunpack.c.l.b16 %v1898_v55  ;;  %v2267_v55 = vsel %vm2064_vm1, %v2248_v34, 0  ;;  %v11041_v34 = vpack.c.b16 %v8515_v18, %v8511_v6 }
 0x2f1   :  { %v2061_v57 = vpack.c.b16 %v2055_v20, %v2054_v32  ;;  %v2622_v32 = vpack.c.b16 %v2618_v29, %v2617_v1  ;;  %v2078_v51 = vsel %vm2064_vm1, %v11041_v34, 0 }
 0x2f2   :  { %v1263_v11 = vpop.f32.mrf.mxu2  ;;  %v8593_v33 = vpop.f32.mrf.mxu3 }
 0x2f3   :  { %v1071_v25 = vpop.f32.mrf.mxu0  ;;  %v8597_v3 = vpop.f32.mrf.mxu1  ;;  %2094 = vmatpush.bf16.xpose.msrb.mxu0 %v2084_v24  ;;  %2280 = vmatpush.bf16.xpose.msrb.mxu2 %v2270_v58  ;;  %v1936_v53 = vpack.c.bf16 %v1263_v11, %v1263_v11  ;;  %v2081_v4 = vsel %vm2064_vm1, %v2061_v57, 0  ;;  %v1933_v24 = vpack.c.bf16 %v8565_v28, %v8565_v28  ;;  %v1949_v58 = vpack.c.bf16 %v8567_v43, %v8567_v43 }
 0x2f4   :  { %v1905_v42 = vpack.c.bf16 %v1071_v25, %v1071_v25  ;;  %v2436_v25 = vpack.c.b16 %v2432_v5, %v2431_v15  ;;  %v1948_v28 = vpack.c.bf16 %v8563_v27, %v8563_v27 }
 0x2f5   :  { %v8617_v36 = vunpack.c.l.b16 %v1936_v53  ;;  %v2430_v19 = vunpack.c.l.b16 %v1933_v24  ;;  %v2616_v2 = vunpack.c.l.b16 %v1949_v58 }
 0x2f6   :  { %v8601_v45 = vunpack.c.l.b16 %v1905_v42  ;;  %v1932_v42 = vpack.c.bf16 %v8561_v39, %v8561_v39  ;;  %v2459_v27 = vsel %vm2064_vm1, %v2436_v25, 0  ;;  %v2615_v18 = vunpack.c.l.b16 %v1948_v28 }
 0x2f8   :  { %v2154_v13 = vpack.c.b16 %v8601_v45, %v8599_v56  ;;  %v2429_v6 = vunpack.c.l.b16 %v1932_v42 }
 0x2fa   :  { %v1265_v22 = vpop.f32.mrf.mxu2  ;;  %v8609_v62 = vpop.f32.mrf.mxu3 }
 0x2fb   :  { %v1937_v38 = vpack.c.bf16 %v1265_v22, %v1265_v22  ;;  %v8613_v20 = vpop.f32.mrf.mxu0  ;;  %v8615_v26 = vpop.f32.mrf.mxu1  ;;  %2095 = vmatpush.bf16.xpose.msrb.mxu0 %v2081_v4  ;;  %2281 = vmatpush.bf16.xpose.msrb.mxu2 %v2267_v55  ;;  %v2645_v22 = vsel %vm2064_vm1, %v2622_v32, 0  ;;  %v2621_v4 = vpack.c.b16 %v2616_v2, %v2615_v18  ;;  %v1946_v55 = vpack.c.bf16 %v8543_v10, %v8543_v10 }
 0x2fd   :  { %v8619_v11 = vunpack.c.l.b16 %v1937_v38  ;;  %v2642_v32 = vsel %vm2064_vm1, %v2621_v4, 0 }
 0x2fe   :  { %1525 = vmatmul.bf16.gmra.mxu0 %v8104_v47  ;;  %1622 = vmatmul.bf16.gmra.mxu1 %v8104_v47 }
 0x2ff   :  { %1719 = vmatmul.bf16.gmra.mxu2 %v8104_v47  ;;  %1816 = vmatmul.bf16.gmra.mxu3 %v8104_v47  ;;  %v2526_v59 = vpack.c.b16 %v8619_v11, %v8617_v36  ;;  %v11042_v47 = vpack.c.b16 %v8517_v16, %v8513_v37  ;;  %v1947_v37 = vpack.c.bf16 %v8549_v17, %v8549_v17  ;;  %v2613_v17 = vunpack.c.l.b16 %v1946_v55  ;;  %v11060_v11 = vld [vmem:[#allocation42_spill] sm:$0xff] }
 0x300   :  { %v2435_v16 = vpack.c.b16 %v2430_v19, %v2429_v6  ;;  %v11043_v19 = vpack.c.b16 %v8553_v12, %v8551_v23  ;;  %v11045_v23 = vpack.c.b16 %v8533_v0, %v8529_v61  ;;  %v1833_v0 = vpack.c.bf16 %v8247_v40, %v8247_v40 }
 0x301   :  { %v2264_v31 = vsel %vm2064_vm1, %v11042_v47, 0  ;;  %v2614_v15 = vunpack.c.l.b16 %v1947_v37  ;;  %v11044_v37 = vpack.c.b16 %v8531_v7, %v8527_v35 }
 0x302   :  { %v1268_v43 = vpop.f32.mrf.mxu2  ;;  %v8635_v57 = vpop.f32.mrf.mxu3  ;;  %v2456_v25 = vsel %vm2064_vm1, %v2435_v16, 0  ;;  %v2453_v2 = vsel %vm2064_vm1, %v11043_v19, 0  ;;  %v2636_v12 = vsel %vm2064_vm1, %v11045_v23, 0  ;;  %v2033_v40 = vunpack.c.l.b16 %v1833_v0 }
 0x303   :  { %v8645_v53 = vpop.f32.mrf.mxu0  ;;  %v8647_v39 = vpop.f32.mrf.mxu1  ;;  %2096 = vmatpush.bf16.xpose.msrb.mxu0 %v2078_v51  ;;  %2282 = vmatpush.bf16.xpose.msrb.mxu2 %v2264_v31  ;;  %v1938_v5 = vpack.c.bf16 %v1268_v43, %v1268_v43  ;;  %v2620_v28 = vpack.c.b16 %v2614_v15, %v2613_v17  ;;  %v2450_v16 = vsel %vm2064_vm1, %v11044_v37, 0 }
 0x305   :  { %v8663_v42 = vunpack.c.l.b16 %v1938_v5 }
 0x30a   :  { %v1270_v29 = vpop.f32.mrf.mxu2  ;;  %v8655_v38 = vpop.f32.mrf.mxu3 }
 0x30b   :  { %2465 = vmatpush.bf16.xpose.msra.mxu0 %v2459_v27  ;;  %2651 = vmatpush.bf16.xpose.msra.mxu2 %v2645_v22  ;;  %v1939_v1 = vpack.c.bf16 %v1270_v29, %v1270_v29  ;;  %v8657_v24 = vpop.f32.mrf.mxu0  ;;  %v8659_v58 = vpop.f32.mrf.mxu1  ;;  %v2639_v27 = vsel %vm2064_vm1, %v2620_v28, 0 }
 0x30d   :  { %v8665_v10 = vunpack.c.l.b16 %v1939_v1  ;;  %v1832_v1 = vpack.c.bf16 %v8235_v21, %v8235_v21 }
 0x30e   :  { %1530 = vmatmul.bf16.gmra.mxu0 %v8114_v14  ;;  %1627 = vmatmul.bf16.gmra.mxu1 %v8114_v14 }
 0x30f   :  { %1724 = vmatmul.bf16.gmra.mxu2 %v8114_v14  ;;  %1821 = vmatmul.bf16.gmra.mxu3 %v8114_v14  ;;  %v2527_v43 = vpack.c.b16 %v8665_v10, %v8663_v42  ;;  %v11056_v10 = vld [vmem:[#allocation22_spill] sm:$0xff] }
 0x312   :  { %v8673_v34 = vpop.f32.mrf.mxu2  ;;  %v8675_v51 = vpop.f32.mrf.mxu3 }
 0x313   :  { %2466 = vmatpush.bf16.xpose.msra.mxu0 %v2456_v25  ;;  %2652 = vmatpush.bf16.xpose.msra.mxu2 %v2642_v32  ;;  %v1081_v47 = vpop.f32.mrf.mxu0  ;;  %v1178_v31 = vpop.f32.mrf.mxu1  ;;  %v1849_v25 = vpack.c.bf16 %v8249_v44, %v8249_v44 }
 0x314   :  { %v1925_v32 = vpack.c.bf16 %v1178_v31, %v1178_v31 }
 0x315   :  { %v2220_v44 = vunpack.c.l.b16 %v1849_v25 }
 0x316   :  { %v2337_v31 = vunpack.c.l.b16 %v1925_v32  ;;  %v1906_v32 = vpack.c.bf16 %v8613_v20, %v8613_v20  ;;  %v1835_v20 = vpack.c.bf16 %v8271_v30, %v8271_v30 }
 0x31a   :  { %v8682_v14 = vpop.f32.mrf.mxu2  ;;  %v8684_v22 = vpop.f32.mrf.mxu3 }
 0x31b   :  { %2467 = vmatpush.bf16.xpose.msra.mxu0 %v2453_v2  ;;  %2653 = vmatpush.bf16.xpose.msra.mxu2 %v2639_v27  ;;  %v1084_v6 = vpop.f32.mrf.mxu0  ;;  %v1181_v18 = vpop.f32.mrf.mxu1  ;;  %v1848_v27 = vpack.c.bf16 %v8237_v48, %v8237_v48 }
 0x31c   :  { %v1910_v4 = vpack.c.bf16 %v1084_v6, %v1084_v6  ;;  %v1926_v55 = vpack.c.bf16 %v1181_v18, %v1181_v18  ;;  %v1908_v6 = vpack.c.bf16 %v8657_v24, %v8657_v24  ;;  %v1924_v18 = vpack.c.bf16 %v8659_v58, %v8659_v58 }
 0x31d   :  { %v2219_v48 = vunpack.c.l.b16 %v1848_v27 }
 0x31e   :  { %1535 = vmatmul.bf16.gmra.mxu0 %v8245_v63  ;;  %1632 = vmatmul.bf16.gmra.mxu1 %v8245_v63  ;;  %v2152_v17 = vunpack.c.l.b16 %v1910_v4  ;;  %v2338_v28 = vunpack.c.l.b16 %v1926_v55  ;;  %v2150_v58 = vunpack.c.l.b16 %v1908_v6 }
 0x31f   :  { %1729 = vmatmul.bf16.gmra.mxu2 %v8245_v63  ;;  %1826 = vmatmul.bf16.gmra.mxu3 %v8245_v63  ;;  %v1909_v63 = vpack.c.bf16 %v1081_v47, %v1081_v47 }
 0x321   :  { %v2151_v47 = vunpack.c.l.b16 %v1909_v63 }
 0x322   :  { %v8698_v7 = vpop.f32.mrf.mxu2  ;;  %v8700_v35 = vpop.f32.mrf.mxu3 }
 0x323   :  { %2468 = vmatpush.bf16.xpose.msra.mxu0 %v2450_v16  ;;  %2654 = vmatpush.bf16.xpose.msra.mxu2 %v2636_v12  ;;  %v1086_v61 = vpop.f32.mrf.mxu0  ;;  %v1183_v5 = vpop.f32.mrf.mxu1  ;;  %v2032_v16 = vunpack.c.l.b16 %v1832_v1  ;;  %v1923_v1 = vpack.c.bf16 %v8647_v39, %v8647_v39  ;;  %v2156_v25 = vpack.c.b16 %v2151_v47, %v2150_v58  ;;  %v1942_v58 = vpack.c.bf16 %v8698_v7, %v8698_v7 }
 0x324   :  { %v1911_v29 = vpack.c.bf16 %v1086_v61, %v1086_v61  ;;  %v1927_v15 = vpack.c.bf16 %v1183_v5, %v1183_v5  ;;  %v2336_v5 = vunpack.c.l.b16 %v1924_v18  ;;  %v2148_v18 = vunpack.c.l.b16 %v1906_v32 }
 0x325   :  { %v2040_v24 = vpack.c.b16 %v2033_v40, %v2032_v16  ;;  %v1850_v16 = vpack.c.bf16 %v8261_v50, %v8261_v50 }
 0x326   :  { %v2153_v19 = vunpack.c.l.b16 %v1911_v29  ;;  %v2339_v2 = vunpack.c.l.b16 %v1927_v15  ;;  %v2227_v29 = vpack.c.b16 %v2220_v44, %v2219_v48  ;;  %v1907_v15 = vpack.c.bf16 %v8645_v53, %v8645_v53 }
 0x327   :  { %v2342_v63 = vpack.c.b16 %v2337_v31, %v2336_v5  ;;  %v2177_v53 = vsel %vm2064_vm1, %v2156_v25, 0  ;;  %v1921_v44 = vpack.c.bf16 %v8597_v3, %v8597_v3  ;;  %v2035_v48 = vunpack.c.l.b16 %v1835_v20 }
 0x328   :  { %v2157_v21 = vpack.c.b16 %v2153_v19, %v2152_v17  ;;  %v2343_v37 = vpack.c.b16 %v2339_v2, %v2338_v28  ;;  %v1922_v17 = vpack.c.bf16 %v8615_v26, %v8615_v26  ;;  %v2149_v28 = vunpack.c.l.b16 %v1907_v15 }
 0x329   :  { %v2335_v19 = vunpack.c.l.b16 %v1923_v1  ;;  %v2363_v39 = vsel %vm2064_vm1, %v2342_v63, 0  ;;  %v1851_v26 = vpack.c.bf16 %v8273_v52, %v8273_v52  ;;  %v1920_v52 = vpack.c.bf16 %v8579_v49, %v8579_v49 }
 0x32a   :  { %v1280_v23 = vpop.f32.mrf.mxu2  ;;  %v1377_v12 = vpop.f32.mrf.mxu3  ;;  %v2180_v4 = vsel %vm2064_vm1, %v2157_v21, 0  ;;  %v2366_v55 = vsel %vm2064_vm1, %v2343_v37, 0  ;;  %v2334_v21 = vunpack.c.l.b16 %v1922_v17  ;;  %v1834_v37 = vpack.c.bf16 %v8259_v41, %v8259_v41 }
 0x32b   :  { %v8716_v0 = vpop.f32.mrf.mxu0  ;;  %v8718_v61 = vpop.f32.mrf.mxu1  ;;  %2186 = vmatpush.bf16.xpose.msrb.mxu1 %v2180_v4  ;;  %2372 = vmatpush.bf16.xpose.msrb.mxu3 %v2366_v55  ;;  %v2155_v47 = vpack.c.b16 %v2149_v28, %v2148_v18  ;;  %v1943_v4 = vpack.c.bf16 %v1280_v23, %v1280_v23  ;;  %v1959_v55 = vpack.c.bf16 %v1377_v12, %v1377_v12  ;;  %v2222_v30 = vunpack.c.l.b16 %v1851_v26 }
 0x32c   :  { %v2341_v31 = vpack.c.b16 %v2335_v19, %v2334_v21  ;;  %v1958_v41 = vpack.c.bf16 %v8700_v35, %v8700_v35  ;;  %v2221_v5 = vunpack.c.l.b16 %v1850_v16  ;;  %v2332_v17 = vunpack.c.l.b16 %v1920_v52 }
 0x32d   :  { %v2174_v23 = vsel %vm2064_vm1, %v2155_v47, 0  ;;  %v2525_v1 = vunpack.c.l.b16 %v1943_v4  ;;  %v2711_v25 = vunpack.c.l.b16 %v1959_v55  ;;  %v2524_v28 = vunpack.c.l.b16 %v1942_v58 }
 0x32e   :  { %6721 = vmatmul.msk.bf16.vlgmr.msrb.gmra.mxu0 %vm2064_vm1, %v2040_v24  ;;  %v2034_v24 = vunpack.c.l.b16 %v1834_v37  ;;  %v2360_v12 = vsel %vm2064_vm1, %v2341_v31, 0  ;;  %v2228_v35 = vpack.c.b16 %v2222_v30, %v2221_v5  ;;  %v2710_v19 = vunpack.c.l.b16 %v1958_v41 }
 0x32f   :  { %6729 = vmatmul.msk.bf16.vlgmr.msrb.gmra.mxu2 %vm2064_vm1, %v2227_v29  ;;  %v2333_v29 = vunpack.c.l.b16 %v1921_v44  ;;  %v1957_v26 = vpack.c.bf16 %v8684_v22, %v8684_v22  ;;  %v2529_v18 = vpack.c.b16 %v2525_v1, %v2524_v28  ;;  %v1841_v16 = vpack.c.bf16 %v8331_v60, %v8331_v60 }
 0x330   :  { %v2041_v7 = vpack.c.b16 %v2035_v48, %v2034_v24  ;;  %v2715_v21 = vpack.c.b16 %v2711_v25, %v2710_v19  ;;  %v1857_v44 = vpack.c.bf16 %v8333_v46, %v8333_v46  ;;  %v1956_v47 = vpack.c.bf16 %v8675_v51, %v8675_v51 }
 0x331   :  { %v2340_v20 = vpack.c.b16 %v2333_v29, %v2332_v17  ;;  %v1840_v22 = vpack.c.bf16 %v8323_v8, %v8323_v8  ;;  %v1856_v31 = vpack.c.bf16 %v8325_v9, %v8325_v9  ;;  %v2171_v60 = vsel %vm2064_vm1, %v2154_v13, 0  ;;  %v11046_v13 = vld [vmem:[#allocation18_spill] sm:$0xff] }
 0x332   :  { %v1695_v2 = vpop.f32.mrf.mxu2  ;;  %v8730_v27 = vpop.f32.mrf.mxu3  ;;  %v2709_v48 = vunpack.c.l.b16 %v1957_v26  ;;  %v2552_v8 = vsel %vm2064_vm1, %v2529_v18, 0  ;;  %v2738_v9 = vsel %vm2064_vm1, %v2715_v21, 0  ;;  %v1837_v52 = vpack.c.bf16 %v8291_v54, %v8291_v54 }
 0x333   :  { %v8734_v40 = vpop.f32.mrf.mxu0  ;;  %v8736_v6 = vpop.f32.mrf.mxu1  ;;  %2187 = vmatpush.bf16.xpose.msrb.mxu1 %v2177_v53  ;;  %2373 = vmatpush.bf16.xpose.msrb.mxu3 %v2363_v39  ;;  %v1992_v50 = vpack.c.bf16 %v1695_v2, %v1695_v2  ;;  %v1941_v39 = vpack.c.bf16 %v8682_v14, %v8682_v14  ;;  %v1940_v14 = vpack.c.bf16 %v8673_v34, %v8673_v34  ;;  %v2357_v46 = vsel %vm2064_vm1, %v2340_v20, 0 }
 0x334   :  { %v2127_v56 = vunpack.c.l.b16 %v1841_v16  ;;  %v2313_v45 = vunpack.c.l.b16 %v1857_v44  ;;  %v1853_v24 = vpack.c.bf16 %v11046_v13, %v11046_v13  ;;  %v2708_v41 = vunpack.c.l.b16 %v1956_v47 }
 0x335   :  { %v8762_v2 = vunpack.c.l.b16 %v1992_v50  ;;  %v2523_v34 = vunpack.c.l.b16 %v1941_v39  ;;  %v2522_v58 = vunpack.c.l.b16 %v1940_v14  ;;  %v11047_v50 = vld [vmem:[#allocation14_spill] sm:$0xff]  ;;  %v2126_v29 = vunpack.c.l.b16 %v1840_v22 }
 0x336   :  { %v1836_v5 = vpack.c.bf16 %v11047_v50, %v11047_v50  ;;  %v1955_v54 = vpack.c.bf16 %v8655_v38, %v8655_v38  ;;  %v2714_v25 = vpack.c.b16 %v2709_v48, %v2708_v41  ;;  %v2224_v17 = vunpack.c.l.b16 %v1853_v24 }
 0x337   :  { %v2528_v1 = vpack.c.b16 %v2523_v34, %v2522_v58  ;;  %v1954_v28 = vpack.c.bf16 %v8635_v57, %v8635_v57  ;;  %v1953_v22 = vpack.c.bf16 %v8609_v62, %v8609_v62  ;;  %v11050_v34 = vld [vmem:[#allocation38_spill] sm:$0xff] }
 0x338   :  { %v2036_v19 = vunpack.c.l.b16 %v1836_v5  ;;  %v2707_v38 = vunpack.c.l.b16 %v1955_v54  ;;  %v2735_v44 = vsel %vm2064_vm1, %v2714_v25, 0  ;;  %v1859_v48 = vpack.c.bf16 %v11050_v34, %v11050_v34  ;;  %v11053_v5 = vld [vmem:[#allocation25_spill] sm:$0xff] }
 0x339   :  { %v2549_v16 = vsel %vm2064_vm1, %v2528_v1, 0  ;;  %v2706_v47 = vunpack.c.l.b16 %v1954_v28  ;;  %v2705_v24 = vunpack.c.l.b16 %v1953_v22  ;;  %v11055_v25 = vld [vmem:[#allocation21_spill] sm:$0xff]  ;;  %v2543_v22 = vsel %vm2064_vm1, %v2526_v59, 0 }
 0x33a   :  { %v1697_v3 = vpop.f32.mrf.mxu2  ;;  %v8754_v15 = vpop.f32.mrf.mxu3  ;;  %v11057_v34 = vld [vmem:[#allocation45_spill] sm:$0xff]  ;;  %v1860_v59 = vpack.c.bf16 %v11060_v11, %v11060_v11 }
 0x33b   :  { %v1993_v49 = vpack.c.bf16 %v1697_v3, %v1697_v3  ;;  %v8758_v63 = vpop.f32.mrf.mxu0  ;;  %v8760_v32 = vpop.f32.mrf.mxu1  ;;  %2188 = vmatpush.bf16.xpose.msrb.mxu1 %v2174_v23  ;;  %2374 = vmatpush.bf16.xpose.msrb.mxu3 %v2360_v12  ;;  %v2312_v3 = vunpack.c.l.b16 %v1856_v31  ;;  %v11048_v23 = vld [vmem:[#allocation15_spill] sm:$0xff]  ;;  %v2713_v31 = vpack.c.b16 %v2707_v38, %v2706_v47 }
 0x33c   :  { %v1852_v12 = vpack.c.bf16 %v11048_v23, %v11048_v23  ;;  %v2315_v23 = vunpack.c.l.b16 %v1859_v48  ;;  %v1845_v48 = vpack.c.bf16 %v11057_v34, %v11057_v34 }
 0x33d   :  { %v8764_v53 = vunpack.c.l.b16 %v1993_v49  ;;  %v2037_v49 = vunpack.c.l.b16 %v1837_v52  ;;  %v2732_v50 = vsel %vm2064_vm1, %v2713_v31, 0 }
 0x33e   :  { %6722 = vmatmul.msk.bf16.gmra.mxu0 %vm2064_vm1, %v2041_v7  ;;  %v2134_v7 = vpack.c.b16 %v2127_v56, %v2126_v29  ;;  %v2223_v26 = vunpack.c.l.b16 %v1852_v12  ;;  %v11052_v56 = vld [vmem:[#allocation34_spill] sm:$0xff]  ;;  %v1839_v29 = vpack.c.bf16 %v11053_v5, %v11053_v5 }
 0x33f   :  { %6730 = vmatmul.msk.bf16.gmra.mxu2 %vm2064_vm1, %v2228_v35  ;;  %v4013_v37 = vpack.c.b16 %v8764_v53, %v8762_v2  ;;  %v2320_v35 = vpack.c.b16 %v2313_v45, %v2312_v3  ;;  %v2042_v57 = vpack.c.b16 %v2037_v49, %v2036_v19  ;;  %v1858_v45 = vpack.c.bf16 %v11052_v56, %v11052_v56  ;;  %v11054_v12 = vld [vmem:[#allocation26_spill] sm:$0xff] }
 0x340   :  { %v2229_v14 = vpack.c.b16 %v2224_v17, %v2223_v26  ;;  %v1855_v54 = vpack.c.bf16 %v11054_v12, %v11054_v12  ;;  %v1838_v49 = vpack.c.bf16 %v11055_v25, %v11055_v25  ;;  %v2039_v17 = vunpack.c.l.b16 %v1839_v29  ;;  %v11062_v29 = vld [vmem:[#allocation8_spill] sm:$0xff] }
 0x341   :  { %v2314_v42 = vunpack.c.l.b16 %v1858_v45 }
 0x342   :  { %v8786_v4 = vpop.f32.mrf.mxu2  ;;  %v8788_v55 = vpop.f32.mrf.mxu3  ;;  %v2226_v26 = vunpack.c.l.b16 %v1855_v54  ;;  %v2038_v38 = vunpack.c.l.b16 %v1838_v49 }
 0x343   :  { %v8795_v51 = vpop.f32.mrf.mxu0  ;;  %v8797_v30 = vpop.f32.mrf.mxu1  ;;  %2189 = vmatpush.bf16.xpose.msrb.mxu1 %v2171_v60  ;;  %2375 = vmatpush.bf16.xpose.msrb.mxu3 %v2357_v46  ;;  %v11049_v60 = vld [vmem:[#allocation37_spill] sm:$0xff]  ;;  %v2321_v19 = vpack.c.b16 %v2315_v23, %v2314_v42  ;;  %v2131_v23 = vunpack.c.l.b16 %v1845_v48 }
 0x344   :  { %v1843_v46 = vpack.c.bf16 %v11049_v60, %v11049_v60  ;;  %v2043_v60 = vpack.c.b16 %v2039_v17, %v2038_v38 }
 0x346   :  { %v2129_v3 = vunpack.c.l.b16 %v1843_v46 }
 0x34a   :  { %v8813_v39 = vpop.f32.mrf.mxu2  ;;  %v8815_v20 = vpop.f32.mrf.mxu3  ;;  %6725 = vmatmul.msk.bf16.vlgmr.msrb.gmra.mxu1 %vm2064_vm1, %v2134_v7  ;;  %6733 = vmatmul.msk.bf16.vlgmr.msrb.gmra.mxu3 %vm2064_vm1, %v2320_v35 }
 0x34b   :  { %2558 = vmatpush.bf16.xpose.msra.mxu1 %v2552_v8  ;;  %2744 = vmatpush.bf16.xpose.msra.mxu3 %v2738_v9  ;;  %v8819_v18 = vpop.f32.mrf.mxu0  ;;  %v8821_v21 = vpop.f32.mrf.mxu1  ;;  %v1952_v8 = vpack.c.bf16 %v8593_v33, %v8593_v33  ;;  %v11051_v9 = vld [vmem:[#allocation33_spill] sm:$0xff]  ;;  %v2546_v33 = vsel %vm2064_vm1, %v2527_v43, 0  ;;  %v1854_v43 = vpack.c.bf16 %v11056_v10, %v11056_v10 }
 0x34c   :  { %v1842_v52 = vpack.c.bf16 %v11051_v9, %v11051_v9 }
 0x34d   :  { %v2704_v1 = vunpack.c.l.b16 %v1952_v8  ;;  %v11058_v8 = vld [vmem:[#allocation46_spill] sm:$0xff] }
 0x34e   :  { %6723 = vmatmul.msk.bf16.gmra.mxu0 %vm2064_vm1, %v2042_v57  ;;  %v2128_v7 = vunpack.c.l.b16 %v1842_v52  ;;  %v2225_v57 = vunpack.c.l.b16 %v1854_v43  ;;  %v1861_v9 = vpack.c.bf16 %v11058_v8, %v11058_v8  ;;  %v11059_v52 = vld [vmem:[#allocation41_spill] sm:$0xff]  ;;  %v2316_v43 = vunpack.c.l.b16 %v1860_v59 }
 0x34f   :  { %6731 = vmatmul.msk.bf16.gmra.mxu2 %vm2064_vm1, %v2229_v14  ;;  %v2712_v35 = vpack.c.b16 %v2705_v24, %v2704_v1  ;;  %v1844_v36 = vpack.c.bf16 %v11059_v52, %v11059_v52  ;;  %v11063_v1 = vld [vmem:[#allocation9_spill] sm:$0xff]  ;;  %v1979_v52 = vpack.c.bf16 %v8797_v30, %v8797_v30  ;;  %v1978_v30 = vpack.c.bf16 %v8760_v32, %v8760_v32 }
 0x350   :  { %v2135_v28 = vpack.c.b16 %v2129_v3, %v2128_v7  ;;  %v2230_v46 = vpack.c.b16 %v2226_v26, %v2225_v57  ;;  %v1865_v3 = vpack.c.bf16 %v11062_v29, %v11062_v29  ;;  %v1881_v25 = vpack.c.bf16 %v11063_v1, %v11063_v1  ;;  %v11064_v57 = vld [vmem:[#allocation7_spill] sm:$0xff] }
 0x351   :  { %v2729_v31 = vsel %vm2064_vm1, %v2712_v35, 0  ;;  %v2317_v49 = vunpack.c.l.b16 %v1861_v9  ;;  %v2130_v10 = vunpack.c.l.b16 %v1844_v36 }
 0x352   :  { %v8839_v13 = vpop.f32.mrf.mxu2  ;;  %v8841_v62 = vpop.f32.mrf.mxu3  ;;  %v2592_v48 = vunpack.c.l.b16 %v1881_v25 }
 0x353   :  { %2559 = vmatpush.bf16.xpose.msra.mxu1 %v2549_v16  ;;  %2745 = vmatpush.bf16.xpose.msra.mxu3 %v2735_v44  ;;  %v8843_v58 = vpop.f32.mrf.mxu0  ;;  %v8845_v41 = vpop.f32.mrf.mxu1 }
 0x354   :  { %v1965_v35 = vpack.c.bf16 %v8843_v58, %v8843_v58  ;;  %v1981_v17 = vpack.c.bf16 %v8845_v41, %v8845_v41  ;;  %v1963_v41 = vpack.c.bf16 %v8795_v51, %v8795_v51 }
 0x356   :  { %v3670_v8 = vunpack.c.l.b16 %v1965_v35  ;;  %v3840_v36 = vunpack.c.l.b16 %v1981_v17 }
 0x35a   :  { %v8860_v16 = vpop.f32.mrf.mxu2  ;;  %v8862_v44 = vpop.f32.mrf.mxu3  ;;  %6726 = vmatmul.msk.bf16.gmra.mxu1 %vm2064_vm1, %v2135_v28  ;;  %6734 = vmatmul.msk.bf16.gmra.mxu3 %vm2064_vm1, %v2321_v19 }
 0x35b   :  { %2560 = vmatpush.bf16.xpose.msra.mxu1 %v2546_v33  ;;  %2746 = vmatpush.bf16.xpose.msra.mxu3 %v2732_v50  ;;  %v1516_v14 = vpop.f32.mrf.mxu0  ;;  %v1613_v47 = vpop.f32.mrf.mxu1  ;;  %v11061_v50 = vld [vmem:[#allocation6_spill] sm:$0xff] }
 0x35c   :  { %v1966_v56 = vpack.c.bf16 %v1516_v14, %v1516_v14  ;;  %v1982_v45 = vpack.c.bf16 %v1613_v47, %v1613_v47  ;;  %v1864_v5 = vpack.c.bf16 %v11061_v50, %v11061_v50  ;;  %v1880_v14 = vpack.c.bf16 %v11064_v57, %v11064_v57 }
 0x35d   :  { %v2406_v47 = vunpack.c.l.b16 %v1865_v3  ;;  %v1961_v3 = vpack.c.bf16 %v8734_v40, %v8734_v40  ;;  %v1976_v40 = vpack.c.bf16 %v8718_v61, %v8718_v61 }
 0x35e   :  { %6724 = vmatmul.msk.bf16.gmra.mxu0 %vm2064_vm1, %v2043_v60  ;;  %v3671_v28 = vunpack.c.l.b16 %v1966_v56  ;;  %v3841_v19 = vunpack.c.l.b16 %v1982_v45  ;;  %v2322_v60 = vpack.c.b16 %v2317_v49, %v2316_v43  ;;  %v2405_v9 = vunpack.c.l.b16 %v1864_v5 }
 0x35f   :  { %6732 = vmatmul.msk.bf16.gmra.mxu2 %vm2064_vm1, %v2230_v46  ;;  %v1980_v46 = vpack.c.bf16 %v8821_v21, %v8821_v21  ;;  %v1962_v21 = vpack.c.bf16 %v8758_v63, %v8758_v63  ;;  %v1977_v63 = vpack.c.bf16 %v8736_v6, %v8736_v6  ;;  %v1960_v49 = vpack.c.bf16 %v8716_v0, %v8716_v0 }
 0x360   :  { %v2413_v50 = vpack.c.b16 %v2406_v47, %v2405_v9  ;;  %v1997_v0 = vpack.c.bf16 %v8860_v16, %v8860_v16  ;;  %v11066_v16 = vld [vmem:[#allocation12_spill] sm:$0xff]  ;;  %v1995_v9 = vpack.c.bf16 %v8813_v39, %v8813_v39 }
 0x361   :  { %v3839_v5 = vunpack.c.l.b16 %v1980_v46  ;;  %v3836_v17 = vunpack.c.l.b16 %v1977_v63  ;;  %v1996_v46 = vpack.c.bf16 %v8839_v13, %v8839_v13  ;;  %v2011_v13 = vpack.c.bf16 %v8815_v20, %v8815_v20  ;;  %v11069_v63 = vld [vmem:[#allocation51_spill] sm:$0xff] }
 0x362   :  { %v8881_v24 = vpop.f32.mrf.mxu2  ;;  %v8883_v33 = vpop.f32.mrf.mxu3 }
 0x363   :  { %2561 = vmatpush.bf16.xpose.msra.mxu1 %v2543_v22  ;;  %2747 = vmatpush.bf16.xpose.msra.mxu3 %v2729_v31  ;;  %v1518_v12 = vpop.f32.mrf.mxu0  ;;  %v1615_v54 = vpop.f32.mrf.mxu1  ;;  %v2136_v22 = vpack.c.b16 %v2131_v23, %v2130_v10  ;;  %v1964_v31 = vpack.c.bf16 %v8819_v18, %v8819_v18  ;;  %v2591_v18 = vunpack.c.l.b16 %v1880_v14  ;;  %v3668_v23 = vunpack.c.l.b16 %v1963_v41 }
 0x364   :  { %v1967_v7 = vpack.c.bf16 %v1518_v12, %v1518_v12  ;;  %v1983_v42 = vpack.c.bf16 %v1615_v54, %v1615_v54  ;;  %v3838_v54 = vunpack.c.l.b16 %v1979_v52  ;;  %v3845_v25 = vpack.c.b16 %v3840_v36, %v3839_v5 }
 0x365   :  { %v3669_v56 = vunpack.c.l.b16 %v1964_v31  ;;  %v2599_v29 = vpack.c.b16 %v2592_v48, %v2591_v18  ;;  %v1998_v6 = vpack.c.bf16 %v8881_v24, %v8881_v24  ;;  %v3666_v10 = vunpack.c.l.b16 %v1961_v3 }
 0x366   :  { %v3672_v26 = vunpack.c.l.b16 %v1967_v7  ;;  %v3842_v38 = vunpack.c.l.b16 %v1983_v42  ;;  %v3667_v7 = vunpack.c.l.b16 %v1962_v21  ;;  %v3837_v42 = vunpack.c.l.b16 %v1978_v30 }
 0x367   :  { %v3675_v12 = vpack.c.b16 %v3670_v8, %v3669_v56  ;;  %v2014_v43 = vpack.c.bf16 %v8883_v33, %v8883_v33  ;;  %v3665_v24 = vunpack.c.l.b16 %v1960_v49  ;;  %v2013_v14 = vpack.c.bf16 %v8862_v44, %v8862_v44 }
 0x368   :  { %v3676_v58 = vpack.c.b16 %v3672_v26, %v3671_v28  ;;  %v3846_v34 = vpack.c.b16 %v3842_v38, %v3841_v19  ;;  %v3674_v35 = vpack.c.b16 %v3668_v23, %v3667_v7  ;;  %v3844_v61 = vpack.c.b16 %v3838_v54, %v3837_v42  ;;  %v11065_v38 = vld [vmem:[#allocation10_spill] sm:$0xff]  ;;  %v11070_v54 = vld [vmem:[#allocation49_spill] sm:$0xff] }
 0x369   :  { %v1866_v57 = vpack.c.bf16 %v11065_v38, %v11065_v38  ;;  %v1867_v31 = vpack.c.bf16 %v11066_v16, %v11066_v16  ;;  %v2012_v44 = vpack.c.bf16 %v8841_v62, %v8841_v62  ;;  %v4181_v41 = vunpack.c.l.b16 %v2014_v43 }
 0x36a   :  { %v1712_v11 = vpop.f32.mrf.mxu2  ;;  %v1809_v59 = vpop.f32.mrf.mxu3  ;;  %6727 = vmatmul.msk.bf16.gmra.mxu1 %vm2064_vm1, %v2136_v22  ;;  %6735 = vmatmul.msk.bf16.gmra.mxu3 %vm2064_vm1, %v2322_v60  ;;  %v3835_v60 = vunpack.c.l.b16 %v1976_v40  ;;  %v3673_v8 = vpack.c.b16 %v3666_v10, %v3665_v24  ;;  %v4010_v52 = vunpack.c.l.b16 %v1997_v0  ;;  %v4180_v21 = vunpack.c.l.b16 %v2013_v14  ;;  %v11076_v14 = vld [vmem:[#allocation32_spill] sm:$0xff] }
 0x36b   :  { %3697 = vmatpush.bf16.msrb.mxu0 %v3676_v58  ;;  %3867 = vmatpush.bf16.msrb.mxu2 %v3846_v34  ;;  %v8909_v51 = vpop.f32.mrf.mxu0  ;;  %v8911_v45 = vpop.f32.mrf.mxu1  ;;  %v1999_v1 = vpack.c.bf16 %v1712_v11, %v1712_v11  ;;  %v2015_v32 = vpack.c.bf16 %v1809_v59, %v1809_v59  ;;  %v4011_v58 = vunpack.c.l.b16 %v1998_v6  ;;  %v11067_v34 = vld [vmem:[#allocation13_spill] sm:$0xff]  ;;  %v11068_v59 = vld [vmem:[#allocation11_spill] sm:$0xff]  ;;  %v1994_v62 = vpack.c.bf16 %v8786_v4, %v8786_v4  ;;  %v11072_v4 = vld [vmem:[#allocation52_spill] sm:$0xff] }
 0x36c   :  { %v1883_v48 = vpack.c.bf16 %v11067_v34, %v11067_v34  ;;  %v3843_v11 = vpack.c.b16 %v3836_v17, %v3835_v60  ;;  %v1882_v18 = vpack.c.bf16 %v11068_v59, %v11068_v59  ;;  %v4009_v30 = vunpack.c.l.b16 %v1996_v46  ;;  %v11078_v60 = vld [vmem:[#allocation30_spill] sm:$0xff] }
 0x36d   :  { %v4012_v28 = vunpack.c.l.b16 %v1999_v1  ;;  %v4182_v47 = vunpack.c.l.b16 %v2015_v32  ;;  %v2010_v5 = vpack.c.bf16 %v8788_v55, %v8788_v55  ;;  %v2407_v3 = vunpack.c.l.b16 %v1866_v57  ;;  %v11075_v57 = vld [vmem:[#allocation31_spill] sm:$0xff] }
 0x36e   :  { %6737 = vmatmul.msk.bf16.vlgmr.msra.gmra.mxu0 %vm2064_vm1, %v2413_v50  ;;  %v2408_v50 = vunpack.c.l.b16 %v1867_v31  ;;  %v2594_v39 = vunpack.c.l.b16 %v1883_v48  ;;  %v4008_v23 = vunpack.c.l.b16 %v1995_v9  ;;  %v11071_v1 = vpack.c.b16 %v11069_v63, %v11070_v54  ;;  %v11077_v31 = vld [vmem:[#allocation29_spill] sm:$0xff] }
 0x36f   :  { %6745 = vmatmul.msk.bf16.vlgmr.msra.gmra.mxu2 %vm2064_vm1, %v2599_v29  ;;  %3698 = vmatpush.bf16.msrb.mxu0 %v3675_v12  ;;  %v4016_v36 = vpack.c.b16 %v4012_v28, %v4011_v58  ;;  %v4186_v56 = vpack.c.b16 %v4182_v47, %v4181_v41  ;;  %v4179_v29 = vunpack.c.l.b16 %v2012_v44  ;;  %v4015_v7 = vpack.c.b16 %v4010_v52, %v4009_v30 }
 0x370   :  { %3868 = vmatpush.bf16.msrb.mxu2 %v3845_v25  ;;  %v11073_v25 = vld [vmem:[#allocation50_spill] sm:$0xff]  ;;  %v2593_v55 = vunpack.c.l.b16 %v1882_v18  ;;  %v2009_v32 = vpack.c.bf16 %v8754_v15, %v8754_v15  ;;  %v4178_v40 = vunpack.c.l.b16 %v2011_v13  ;;  %v2414_v43 = vpack.c.b16 %v2408_v50, %v2407_v3  ;;  %v11081_v18 = vld [vmem:[#allocation16_spill] sm:$0xff]  ;;  %v11082_v50 = vld [vmem:[#allocation17_spill] sm:$0xff] }
 0x371   :  { %v11074_v49 = vpack.c.b16 %v11072_v4, %v11073_v25  ;;  %v4185_v10 = vpack.c.b16 %v4180_v21, %v4179_v29  ;;  %v2008_v0 = vpack.c.bf16 %v8730_v27, %v8730_v27  ;;  %v4177_v28 = vunpack.c.l.b16 %v2010_v5  ;;  %v11083_v4 = vld [vmem:[#allocation39_spill] sm:$0xff] }
 0x372   :  { %v8931_v19 = vpop.f32.mrf.mxu2  ;;  %v8933_v26 = vpop.f32.mrf.mxu3  ;;  %v2600_v17 = vpack.c.b16 %v2594_v39, %v2593_v55  ;;  %v4176_v38 = vunpack.c.l.b16 %v2009_v32  ;;  %v1873_v24 = vpack.c.bf16 %v11075_v57, %v11075_v57  ;;  %v1889_v47 = vpack.c.bf16 %v11076_v14, %v11076_v14  ;;  %v11085_v55 = vld [vmem:[#allocation35_spill] sm:$0xff]  ;;  %v11088_v57 = vld [vmem:[#allocation28_spill] sm:$0xff] }
 0x373   :  { %3699 = vmatpush.bf16.msrb.mxu0 %v3674_v35  ;;  %v8939_v33 = vpop.f32.mrf.mxu0  ;;  %v8941_v22 = vpop.f32.mrf.mxu1  ;;  %v4007_v35 = vunpack.c.l.b16 %v1994_v62  ;;  %v4184_v15 = vpack.c.b16 %v4178_v40, %v4177_v28  ;;  %v4175_v16 = vunpack.c.l.b16 %v2008_v0  ;;  %v1872_v27 = vpack.c.bf16 %v11077_v31, %v11077_v31  ;;  %v11086_v40 = vld [vmem:[#allocation36_spill] sm:$0xff]  ;;  %v11087_v28 = vld [vmem:[#allocation27_spill] sm:$0xff] }
 0x374   :  { %3869 = vmatpush.bf16.msrb.mxu2 %v3844_v61  ;;  %v1888_v46 = vpack.c.bf16 %v11078_v60, %v11078_v60  ;;  %v2499_v52 = vunpack.c.l.b16 %v1873_v24  ;;  %v1868_v13 = vpack.c.bf16 %v11081_v18, %v11081_v18  ;;  %v1884_v62 = vpack.c.bf16 %v11082_v50, %v11082_v50  ;;  %v11089_v14 = vld [vmem:[#allocation23_spill] sm:$0xff] }
 0x375   :  { %v4014_v61 = vpack.c.b16 %v4008_v23, %v4007_v35  ;;  %v4183_v41 = vpack.c.b16 %v4176_v38, %v4175_v16  ;;  %v2498_v21 = vunpack.c.l.b16 %v1872_v27  ;;  %v1875_v25 = vpack.c.bf16 %v11083_v4, %v11083_v4  ;;  %v11090_v27 = vld [vmem:[#allocation24_spill] sm:$0xff]  ;;  %v11091_v50 = vld [vmem:[#allocation43_spill] sm:$0xff] }
 0x376   :  { %v2409_v3 = vunpack.c.l.b16 %v1868_v13  ;;  %v2595_v53 = vunpack.c.l.b16 %v1884_v62  ;;  %v1874_v32 = vpack.c.bf16 %v11085_v55, %v11085_v55  ;;  %v1887_v24 = vpack.c.bf16 %v11088_v57, %v11088_v57 }
 0x377   :  { %3700 = vmatpush.bf16.msrb.mxu0 %v3673_v8  ;;  %v11079_v8 = vld [vmem:[#allocation19_spill] sm:$0xff]  ;;  %v2506_v39 = vpack.c.b16 %v2499_v52, %v2498_v21  ;;  %v2501_v38 = vunpack.c.l.b16 %v1875_v25  ;;  %v1886_v60 = vpack.c.bf16 %v11090_v27, %v11090_v27  ;;  %v1876_v62 = vpack.c.bf16 %v11091_v50, %v11091_v50 }
 0x378   :  { %3870 = vmatpush.bf16.msrb.mxu2 %v3843_v11  ;;  %v1869_v9 = vpack.c.bf16 %v11079_v8, %v11079_v8  ;;  %v11080_v11 = vld [vmem:[#allocation20_spill] sm:$0xff]  ;;  %v2500_v16 = vunpack.c.l.b16 %v1874_v32 }
 0x379   :  { %v1885_v59 = vpack.c.bf16 %v11080_v11, %v11080_v11 }
 0x37a   :  { %v8961_v12 = vpop.f32.mrf.mxu2  ;;  %v8963_v20 = vpop.f32.mrf.mxu3  ;;  %6728 = vmatmul.msk.bf16.gmra.mxu1 %vm2064_vm1, %v11071_v1  ;;  %6736 = vmatmul.msk.bf16.gmra.mxu3 %vm2064_vm1, %v11074_v49  ;;  %v2410_v30 = vunpack.c.l.b16 %v1869_v9  ;;  %v11084_v49 = vld [vmem:[#allocation40_spill] sm:$0xff]  ;;  %v2598_v9 = vunpack.c.l.b16 %v1887_v24 }
 0x37b   :  { %4037 = vmatpush.bf16.msra.mxu0 %v4016_v36  ;;  %v8975_v42 = vpop.f32.mrf.mxu0  ;;  %v8977_v6 = vpop.f32.mrf.mxu1  ;;  %v2685_v36 = vunpack.c.l.b16 %v1889_v47  ;;  %v2596_v29 = vunpack.c.l.b16 %v1885_v59  ;;  %v1870_v47 = vpack.c.bf16 %v11089_v14, %v11089_v14  ;;  %v2597_v59 = vunpack.c.l.b16 %v1886_v60 }
 0x37c   :  { %4207 = vmatpush.bf16.msra.mxu2 %v4186_v56  ;;  %v2684_v56 = vunpack.c.l.b16 %v1888_v46  ;;  %v2415_v54 = vpack.c.b16 %v2410_v30, %v2409_v3  ;;  %v11092_v30 = vld [vmem:[#allocation47_spill] sm:$0xff]  ;;  %v11094_v3 = vld [vmem:[#allocation48_spill] sm:$0xff] }
 0x37d   :  { %v2601_v1 = vpack.c.b16 %v2596_v29, %v2595_v53  ;;  %v2411_v52 = vunpack.c.l.b16 %v1870_v47  ;;  %v1893_v53 = vpack.c.bf16 %v11094_v3, %v11094_v3 }
 0x37e   :  { %6738 = vmatmul.msk.bf16.gmra.mxu0 %vm2064_vm1, %v2414_v43  ;;  %v2692_v5 = vpack.c.b16 %v2685_v36, %v2684_v56  ;;  %v2602_v56 = vpack.c.b16 %v2598_v9, %v2597_v59 }
 0x37f   :  { %4038 = vmatpush.bf16.msra.mxu0 %v4015_v7  ;;  %6746 = vmatmul.msk.bf16.gmra.mxu2 %vm2064_vm1, %v2600_v17  ;;  %v1891_v7 = vpack.c.bf16 %v11084_v49, %v11084_v49 }
 0x380   :  { %4208 = vmatpush.bf16.msra.mxu2 %v4185_v10  ;;  %v1890_v10 = vpack.c.bf16 %v11086_v40, %v11086_v40 }
 0x382   :  { %v8991_v58 = vpop.f32.mrf.mxu2  ;;  %v8993_v34 = vpop.f32.mrf.mxu3  ;;  %v2686_v31 = vunpack.c.l.b16 %v1890_v10 }
 0x383   :  { %4039 = vmatpush.bf16.msra.mxu0 %v4014_v61  ;;  %v8995_v48 = vpop.f32.mrf.mxu0  ;;  %v8997_v44 = vpop.f32.mrf.mxu1  ;;  %v1871_v61 = vpack.c.bf16 %v11087_v28, %v11087_v28  ;;  %v2689_v28 = vunpack.c.l.b16 %v1893_v53 }
 0x384   :  { %4209 = vmatpush.bf16.msra.mxu2 %v4184_v15  ;;  %v2687_v15 = vunpack.c.l.b16 %v1891_v7  ;;  %v2502_v7 = vunpack.c.l.b16 %v1876_v62 }
 0x385   :  { %v2412_v46 = vunpack.c.l.b16 %v1871_v61 }
 0x386   :  { %v2693_v8 = vpack.c.b16 %v2687_v15, %v2686_v31 }
 0x387   :  { %4040 = vmatpush.bf16.msra.mxu0 %v4013_v37  ;;  %v2416_v21 = vpack.c.b16 %v2412_v46, %v2411_v52  ;;  %v1987_v52 = vpack.c.bf16 %v8997_v44, %v8997_v44  ;;  %v1986_v44 = vpack.c.bf16 %v8977_v6, %v8977_v6 }
 0x388   :  { %4210 = vmatpush.bf16.msra.mxu2 %v4183_v41  ;;  %v2507_v41 = vpack.c.b16 %v2501_v38, %v2500_v16 }
 0x38a   :  { %v9010_v23 = vpop.f32.mrf.mxu2  ;;  %v9012_v2 = vpop.f32.mrf.mxu3  ;;  %6741 = vmatmul.msk.bf16.vlgmr.msra.gmra.mxu1 %vm2064_vm1, %v2506_v39  ;;  %6749 = vmatmul.msk.bf16.vlgmr.msra.gmra.mxu3 %vm2064_vm1, %v2692_v5  ;;  %v1877_v39 = vpack.c.bf16 %v11092_v30, %v11092_v30  ;;  %v11093_v5 = vld [vmem:[#allocation44_spill] sm:$0xff]  ;;  %v1985_v30 = vpack.c.bf16 %v8941_v22, %v8941_v22  ;;  %v3922_v22 = vunpack.c.l.b16 %v1986_v44 }
 0x38b   :  { %v9016_v37 = vpop.f32.mrf.mxu0  ;;  %v9018_v63 = vpop.f32.mrf.mxu1  ;;  %v1892_v29 = vpack.c.bf16 %v11093_v5, %v11093_v5 }
 0x38c   :  { %v2503_v55 = vunpack.c.l.b16 %v1877_v39  ;;  %v1972_v46 = vpack.c.bf16 %v9016_v37, %v9016_v37  ;;  %v1969_v37 = vpack.c.bf16 %v8939_v33, %v8939_v33  ;;  %v1968_v33 = vpack.c.bf16 %v8909_v51, %v8909_v51 }
 0x38d   :  { %v2688_v10 = vunpack.c.l.b16 %v1892_v29  ;;  %v1984_v51 = vpack.c.bf16 %v8911_v45, %v8911_v45 }
 0x38e   :  { %6739 = vmatmul.msk.bf16.gmra.mxu0 %vm2064_vm1, %v2415_v54  ;;  %v2769_v54 = vlaneseq  ;;  %v2508_v60 = vpack.c.b16 %v2503_v55, %v2502_v7  ;;  %v3750_v7 = vunpack.c.l.b16 %v1968_v33  ;;  %v11103_v33 = vld [vmem:[#allocation54_spill] sm:$0xff] }
 0x38f   :  { %6747 = vmatmul.msk.bf16.gmra.mxu2 %vm2064_vm1, %v2601_v1 }
 0x390   :  { %v9062_v24 = vshrl.u32 %v2769_v54, 7  ;;  %v9064_v14 = vand.u32 127, %v2769_v54 }
 0x392   :  { %v9030_v43 = vpop.f32.mrf.mxu2  ;;  %v9032_v35 = vpop.f32.mrf.mxu3  ;;  %vm9076_vm2 = vcmp.ge.s32.totalorder %v9062_v24, %v9064_v14 }
 0x393   :  { %v1533_v17 = vpop.f32.mrf.mxu0  ;;  %v1630_v0 = vpop.f32.mrf.mxu1 }
 0x394   :  { %v1973_v15 = vpack.c.bf16 %v1533_v17, %v1533_v17  ;;  %v1989_v57 = vpack.c.bf16 %v1630_v0, %v1630_v0  ;;  %v1971_v17 = vpack.c.bf16 %v8995_v48, %v8995_v48  ;;  %v1970_v48 = vpack.c.bf16 %v8975_v42, %v8975_v42 }
 0x395   :  { %v3923_v42 = vunpack.c.l.b16 %v1987_v52 }
 0x396   :  { %v3755_v59 = vunpack.c.l.b16 %v1973_v15  ;;  %v3753_v39 = vunpack.c.l.b16 %v1971_v17 }
 0x39a   :  { %v9042_v36 = vpop.f32.mrf.mxu2  ;;  %v9044_v11 = vpop.f32.mrf.mxu3  ;;  %6742 = vmatmul.msk.bf16.gmra.mxu1 %vm2064_vm1, %v2507_v41  ;;  %6750 = vmatmul.msk.bf16.gmra.mxu3 %vm2064_vm1, %v2693_v8  ;;  %v1988_v41 = vpack.c.bf16 %v9018_v63, %v9018_v63  ;;  %v2694_v8 = vpack.c.b16 %v2689_v28, %v2688_v10  ;;  %v3929_v28 = vpack.c.b16 %v3923_v42, %v3922_v22 }
 0x39b   :  { %v1536_v18 = vpop.f32.mrf.mxu0  ;;  %v1633_v13 = vpop.f32.mrf.mxu1  ;;  %v2005_v45 = vpack.c.bf16 %v9042_v36, %v9042_v36  ;;  %v2020_v36 = vpack.c.bf16 %v9032_v35, %v9032_v35  ;;  %v2000_v42 = vpack.c.bf16 %v8931_v19, %v8931_v19 }
 0x39c   :  { %v1974_v1 = vpack.c.bf16 %v1536_v18, %v1536_v18  ;;  %v1990_v4 = vpack.c.bf16 %v1633_v13, %v1633_v13  ;;  %v3925_v18 = vunpack.c.l.b16 %v1989_v57 }
 0x39e   :  { %6740 = vmatmul.msk.bf16.gmra.mxu0 %vm2064_vm1, %v2416_v21  ;;  %v3756_v47 = vunpack.c.l.b16 %v1974_v1  ;;  %v3926_v16 = vunpack.c.l.b16 %v1990_v4  ;;  %v3754_v21 = vunpack.c.l.b16 %v1972_v46  ;;  %v3751_v1 = vunpack.c.l.b16 %v1969_v37 }
 0x39f   :  { %6748 = vmatmul.msk.bf16.gmra.mxu2 %vm2064_vm1, %v2602_v56  ;;  %v3924_v56 = vunpack.c.l.b16 %v1988_v41  ;;  %v3752_v4 = vunpack.c.l.b16 %v1970_v48  ;;  %v2003_v41 = vpack.c.bf16 %v9010_v23, %v9010_v23  ;;  %v2018_v23 = vpack.c.bf16 %v8993_v34, %v8993_v34 }
 0x3a0   :  { %v3760_v3 = vpack.c.b16 %v3755_v59, %v3754_v21  ;;  %v2002_v59 = vpack.c.bf16 %v8991_v58, %v8991_v58  ;;  %v2001_v37 = vpack.c.bf16 %v8961_v12, %v8961_v12  ;;  %v2772_v12 = vadd.s32 16, %v9062_v24 }
 0x3a1   :  { %v3930_v29 = vpack.c.b16 %v3925_v18, %v3924_v56  ;;  %v3759_v10 = vpack.c.b16 %v3753_v39, %v3752_v4  ;;  %v4264_v18 = vunpack.c.l.b16 %v2020_v36  ;;  %v4093_v48 = vunpack.c.l.b16 %v2003_v41  ;;  %v11099_v56 = vld [vmem:[#allocation55_spill] sm:$0xff] }
 0x3a2   :  { %v9058_v25 = vpop.f32.mrf.mxu2  ;;  %v9060_v49 = vpop.f32.mrf.mxu3  ;;  %v4091_v4 = vunpack.c.l.b16 %v2001_v37  ;;  %vm9162_vm5 = vcmp.ge.s32.totalorder %v2772_v12, %v9064_v14 }
 0x3a3   :  { %v1538_v32 = vpop.f32.mrf.mxu0  ;;  %v1635_v40 = vpop.f32.mrf.mxu1  ;;  %v2006_v55 = vpack.c.bf16 %v9058_v25, %v9058_v25  ;;  %v2004_v25 = vpack.c.bf16 %v9030_v43, %v9030_v43  ;;  %v2019_v43 = vpack.c.bf16 %v9012_v2, %v9012_v2 }
 0x3a4   :  { %v1975_v61 = vpack.c.bf16 %v1538_v32, %v1538_v32  ;;  %v1991_v38 = vpack.c.bf16 %v1635_v40, %v1635_v40  ;;  %v2022_v32 = vpack.c.bf16 %v9060_v49, %v9060_v49  ;;  %v3921_v40 = vunpack.c.l.b16 %v1985_v30 }
 0x3a5   :  { %v4094_v2 = vunpack.c.l.b16 %v2004_v25  ;;  %v4263_v21 = vunpack.c.l.b16 %v2019_v43 }
 0x3a6   :  { %v3757_v31 = vunpack.c.l.b16 %v1975_v61  ;;  %v3927_v27 = vunpack.c.l.b16 %v1991_v38  ;;  %v2771_v61 = vadd.s32 8, %v9062_v24  ;;  %v2021_v38 = vpack.c.bf16 %v9044_v11, %v9044_v11 }
 0x3a7   :  { %v4266_v11 = vunpack.c.l.b16 %v2022_v32 }
 0x3a8   :  { %v3761_v0 = vpack.c.b16 %v3757_v31, %v3756_v47  ;;  %v3931_v9 = vpack.c.b16 %v3927_v27, %v3926_v16  ;;  %v3920_v16 = vunpack.c.l.b16 %v1984_v51  ;;  %v3758_v27 = vpack.c.b16 %v3751_v1, %v3750_v7 }
 0x3a9   :  { %vm9124_vm4 = vcmp.ge.s32.totalorder %v2771_v61, %v9064_v14  ;;  %v4265_v35 = vunpack.c.l.b16 %v2021_v38  ;;  %v2773_v38 = vadd.s32 24, %v9062_v24 }
 0x3aa   :  { %v1732_v63 = vpop.f32.mrf.mxu2  ;;  %6743 = vmatmul.msk.bf16.gmra.mxu1 %vm2064_vm1, %v2508_v60  ;;  %6751 = vmatmul.msk.bf16.gmra.mxu3 %vm2064_vm1, %v2694_v8  ;;  %v1829_v50 = vpop.f32.mrf.mxu3  ;;  %v4096_v60 = vunpack.c.l.b16 %v2006_v55  ;;  %v3928_v8 = vpack.c.b16 %v3921_v40, %v3920_v16  ;;  %v4090_v55 = vunpack.c.l.b16 %v2000_v42 }
 0x3ab   :  { %3782 = vmatpush.bf16.msrb.mxu1 %v3761_v0  ;;  %3952 = vmatpush.bf16.msrb.mxu3 %v3931_v9  ;;  %v2098_v62 = vpop.f32.mrf.mxu0  ;;  %v2007_v53 = vpack.c.bf16 %v1732_v63, %v1732_v63  ;;  %v2023_v54 = vpack.c.bf16 %v1829_v50, %v1829_v50  ;;  %v4095_v0 = vunpack.c.l.b16 %v2005_v45  ;;  %v2017_v63 = vpack.c.bf16 %v8963_v20, %v8963_v20  ;;  %v11100_v50 = vld [vmem:[#allocation53_spill] sm:$0xff] }
 0x3ac   :  { %v9094_v5 = vsel %vm9076_vm2, %v2098_v62, -inf  ;;  %v11101_v34 = vpack.c.b16 %v11099_v56, %v11100_v50  ;;  %v11102_v62 = vld [vmem:[#allocation56_spill] sm:$0xff]  ;;  %v4270_v39 = vpack.c.b16 %v4265_v35, %v4264_v18  ;;  %vm9180_vm6 = vcmp.ge.s32.totalorder %v2773_v38, %v9064_v14 }
 0x3ad   :  { %v2869_v6 = vsel %vm2868_vm3, %v9094_v5, -inf  ;;  %v4097_v15 = vunpack.c.l.b16 %v2007_v53  ;;  %v4267_v57 = vunpack.c.l.b16 %v2023_v54  ;;  %v11104_v30 = vpack.c.b16 %v11102_v62, %v11103_v33 }
 0x3ae   :  { %2870 = vmax.xlane.f32.xlu1 %v2869_v6  ;;  %v4100_v20 = vpack.c.b16 %v4095_v0, %v4094_v2  ;;  %v4092_v53 = vunpack.c.l.b16 %v2002_v59  ;;  %v4262_v54 = vunpack.c.l.b16 %v2018_v23  ;;  %v4261_v19 = vunpack.c.l.b16 %v2017_v63 }
 0x3af   :  { %3953 = vmatpush.bf16.msrb.mxu3 %v3930_v29  ;;  %3783 = vmatpush.bf16.msrb.mxu1 %v3760_v3  ;;  %v4101_v9 = vpack.c.b16 %v4097_v15, %v4096_v60  ;;  %v4271_v52 = vpack.c.b16 %v4267_v57, %v4266_v11  ;;  %v2016_v29 = vpack.c.bf16 %v8933_v26, %v8933_v26  ;;  %v2774_v60 = vadd.s32 32, %v9062_v24 }
 0x3b0   :  { %v4099_v22 = vpack.c.b16 %v4093_v48, %v4092_v53  ;;  %v4269_v7 = vpack.c.b16 %v4263_v21, %v4262_v54  ;;  %v2775_v62 = vadd.s32 40, %v9062_v24  ;;  %v2776_v54 = vadd.s32 48, %v9062_v24 }
 0x3b1   :  { %v4260_v32 = vunpack.c.l.b16 %v2016_v29  ;;  %vm9204_vm7 = vcmp.ge.s32.totalorder %v2774_v60, %v9064_v14 }
 0x3b2   :  { %v2284_v47 = vpop.f32.mrf.mxu2  ;;  %vm9244_vm8 = vcmp.ge.s32.totalorder %v2775_v62, %v9064_v14  ;;  %vm9268_vm9 = vcmp.ge.s32.totalorder %v2776_v54, %v9064_v14 }
 0x3b3   :  { %v9113_v49 = vsel %vm9076_vm2, %v2284_v47, -inf  ;;  %3784 = vmatpush.bf16.msrb.mxu1 %v3759_v10  ;;  %3954 = vmatpush.bf16.msrb.mxu3 %v3929_v28  ;;  %v2100_v31 = vpop.f32.mrf.mxu0  ;;  %v4098_v28 = vpack.c.b16 %v4091_v4, %v4090_v55  ;;  %v4268_v61 = vpack.c.b16 %v4261_v19, %v4260_v32  ;;  %v2777_v32 = vadd.s32 56, %v9062_v24 }
 0x3b4   :  { %v2917_v46 = vsel %vm2868_vm3, %v9113_v49, -inf  ;;  %v9138_v44 = vsel %vm9124_vm4, %v2100_v31, -inf }
 0x3b5   :  { %2918 = vmax.xlane.f32.xlu2 %v2917_v46  ;;  %v2872_v1 = vsel %vm2868_vm3, %v9138_v44, -inf  ;;  %vm9280_vm10 = vcmp.ge.s32.totalorder %v2777_v32, %v9064_v14 }
 0x3b7   :  { %3785 = vmatpush.bf16.msrb.mxu1 %v3758_v27  ;;  %3955 = vmatpush.bf16.msrb.mxu3 %v3928_v8 }
 0x3ba   :  { %v2286_v58 = vpop.f32.mrf.mxu2  ;;  %6744 = vmatmul.msk.bf16.gmra.mxu1 %vm2064_vm1, %v11101_v34  ;;  %6752 = vmatmul.msk.bf16.gmra.mxu3 %vm2064_vm1, %v11104_v30 }
 0x3bb   :  { %4122 = vmatpush.bf16.msra.mxu1 %v4101_v9  ;;  %4292 = vmatpush.bf16.msra.mxu3 %v4271_v52  ;;  %v2103_v6 = vpop.f32.mrf.mxu0  ;;  %v9155_v3 = vsel %vm9124_vm4, %v2286_v58, -inf }
 0x3bc   :  { %v2920_v51 = vsel %vm2868_vm3, %v9155_v3, -inf  ;;  %v9168_v40 = vsel %vm9162_vm5, %v2103_v6, -inf }
 0x3bd   :  { %2921 = vmax.xlane.f32.xlu0 %v2920_v51  ;;  %2873 = vmax.xlane.f32.xlu2 %v2872_v1  ;;  %v2875_v47 = vsel %vm2868_vm3, %v9168_v40, -inf }
 0x3bf   :  { %4123 = vmatpush.bf16.msra.mxu1 %v4100_v20  ;;  %4293 = vmatpush.bf16.msra.mxu3 %v4270_v39 }
 0x3c2   :  { %v2289_v10 = vpop.f32.mrf.mxu2 }
 0x3c3   :  { %4124 = vmatpush.bf16.msra.mxu1 %v4099_v22  ;;  %4294 = vmatpush.bf16.msra.mxu3 %v4269_v7  ;;  %v9172_v45 = vsel %vm9162_vm5, %v2289_v10, -inf  ;;  %v2105_v15 = vpop.f32.mrf.mxu0 }
 0x3c4   :  { %v2923_v57 = vsel %vm2868_vm3, %v9172_v45, -inf  ;;  %v9190_v36 = vsel %vm9180_vm6, %v2105_v15, -inf }
 0x3c5   :  { %2924 = vmax.xlane.f32.xlu0 %v2923_v57  ;;  %2876 = vmax.xlane.f32.xlu2 %v2875_v47  ;;  %v2878_v43 = vsel %vm2868_vm3, %v9190_v36, -inf }
 0x3c7   :  { %4125 = vmatpush.bf16.msra.mxu1 %v4098_v28  ;;  %4295 = vmatpush.bf16.msra.mxu3 %v4268_v61  ;;  %v2191_v16 = vpop.f32.mrf.mxu1 }
 0x3c8   :  { %v9186_v31 = vsel %vm9076_vm2, %v2191_v16, -inf }
 0x3c9   :  { %v2893_v41 = vsel %vm2868_vm3, %v9186_v31, -inf }
 0x3ca   :  { %v2291_v27 = vpop.f32.mrf.mxu2 }
 0x3cb   :  { %v9195_v11 = vsel %vm9180_vm6, %v2291_v27, -inf  ;;  %v2108_v0 = vpop.f32.mrf.mxu0 }
 0x3cc   :  { %v2926_v46 = vsel %vm2868_vm3, %v9195_v11, -inf  ;;  %v9214_v59 = vsel %vm9204_vm7, %v2108_v0, -inf }
 0x3cd   :  { %2927 = vmax.xlane.f32.xlu1 %v2926_v46  ;;  %2894 = vmax.xlane.f32.xlu2 %v2893_v41  ;;  %v2377_v8 = vpop.f32.mrf.mxu3  ;;  %v2881_v18 = vsel %vm2868_vm3, %v9214_v59, -inf }
 0x3ce   :  { %2879 = vmax.xlane.f32.xlu0 %v2878_v43  ;;  %v9210_v52 = vsel %vm9076_vm2, %v2377_v8, -inf }
 0x3cf   :  { %v2193_v9 = vpop.f32.mrf.mxu1  ;;  %v2941_v2 = vsel %vm2868_vm3, %v9210_v52, -inf }
 0x3d0   :  { %v9232_v34 = vsel %vm9124_vm4, %v2193_v9, -inf }
 0x3d1   :  { %v2896_v12 = vsel %vm2868_vm3, %v9232_v34, -inf }
 0x3d2   :  { %v2294_v23 = vpop.f32.mrf.mxu2 }
 0x3d3   :  { %v2110_v58 = vpop.f32.mrf.mxu0  ;;  %v9228_v56 = vsel %vm9204_vm7, %v2294_v23, -inf }
 0x3d4   :  { %v2929_v30 = vsel %vm2868_vm3, %v9228_v56, -inf  ;;  %v9252_v6 = vsel %vm9244_vm8, %v2110_v58, -inf }
 0x3d5   :  { %2942 = vmax.xlane.f32.xlu1 %v2941_v2  ;;  %v2379_v37 = vpop.f32.mrf.mxu3  ;;  %v2884_v4 = vsel %vm2868_vm3, %v9252_v6, -inf }
 0x3d6   :  { %2882 = vmax.xlane.f32.xlu0 %v2881_v18  ;;  %v9222_v63 = vsel %vm9124_vm4, %v2379_v37, -inf }
 0x3d7   :  { %v2196_v48 = vpop.f32.mrf.mxu1  ;;  %v2944_v21 = vsel %vm2868_vm3, %v9222_v63, -inf }
 0x3d8   :  { %2945 = vmax.xlane.f32.xlu2 %v2944_v21  ;;  %v9237_v33 = vsel %vm9162_vm5, %v2196_v48, -inf }
 0x3d9   :  { %v2899_v29 = vsel %vm2868_vm3, %v9237_v33, -inf }
 0x3da   :  { %v2296_v50 = vpop.f32.mrf.mxu2 }
 0x3db   :  { %v2113_v53 = vpop.f32.mrf.mxu0  ;;  %v9263_v19 = vsel %vm9244_vm8, %v2296_v50, -inf }
 0x3dc   :  { %v2932_v28 = vsel %vm2868_vm3, %v9263_v19, -inf  ;;  %v9277_v61 = vsel %vm9268_vm9, %v2113_v53, -inf }
 0x3dd   :  { %2930 = vmax.xlane.f32.xlu1 %v2929_v30  ;;  %v2382_v20 = vpop.f32.mrf.mxu3  ;;  %v2887_v27 = vsel %vm2868_vm3, %v9277_v61, -inf }
 0x3de   :  { %2897 = vmax.xlane.f32.xlu0 %v2896_v12  ;;  %v9300_v41 = vsel %vm9162_vm5, %v2382_v20, -inf }
 0x3df   :  { %v2198_v42 = vpop.f32.mrf.mxu1  ;;  %v2947_v0 = vsel %vm2868_vm3, %v9300_v41, -inf }
 0x3e0   :  { %2900 = vmax.xlane.f32.xlu2 %v2899_v29  ;;  %v9257_v1 = vsel %vm9180_vm6, %v2198_v42, -inf }
 0x3e1   :  { %v2902_v22 = vsel %vm2868_vm3, %v9257_v1, -inf }
 0x3e2   :  { %v2299_v51 = vpop.f32.mrf.mxu2 }
 0x3e3   :  { %v9290_v24 = vsel %vm9268_vm9, %v2299_v51, -inf  ;;  %v2115_v47 = vpop.f32.mrf.mxu0 }
 0x3e4   :  { %v2935_v46 = vsel %vm2868_vm3, %v9290_v24, -inf  ;;  %v9310_v9 = vsel %vm9280_vm10, %v2115_v47, -inf }
 0x3e5   :  { %2885 = vmax.xlane.f32.xlu1 %v2884_v4  ;;  %v2384_v7 = vpop.f32.mrf.mxu3  ;;  %v2890_v48 = vsel %vm2868_vm3, %v9310_v9, -inf }
 0x3e6   :  { %2903 = vmax.xlane.f32.xlu0 %v2902_v22  ;;  %v9328_v30 = vsel %vm9180_vm6, %v2384_v7, -inf }
 0x3e7   :  { %v2201_v10 = vpop.f32.mrf.mxu1  ;;  %v2950_v29 = vsel %vm2868_vm3, %v9328_v30, -inf }
 0x3e8   :  { %2933 = vmax.xlane.f32.xlu2 %v2932_v28  ;;  %v9344_v4 = vsel %vm9204_vm7, %v2201_v10, -inf }
 0x3ea   :  { %v2301_v38 = vpop.f32.mrf.mxu2 }
 0x3eb   :  { %v9286_v57 = vsel %vm9280_vm10, %v2301_v38, -inf  ;;  %v2470_v18 = vpop.f32.mrf.mxu0  ;;  %v2905_v38 = vsel %vm2868_vm3, %v9344_v4, -inf }
 0x3ec   :  { %v2938_v16 = vsel %vm2868_vm3, %v9286_v57, -inf  ;;  %v9318_v21 = vsel %vm9076_vm2, %v2470_v18, -inf }
 0x3ed   :  { %2888 = vmax.xlane.f32.xlu1 %v2887_v27  ;;  %v2387_v14 = vpop.f32.mrf.mxu3  ;;  %v2965_v62 = vsel %vm2868_vm3, %v9318_v21, -inf }
 0x3ee   :  { %2939 = vmax.xlane.f32.xlu0 %v2938_v16  ;;  %v9336_v53 = vsel %vm9204_vm7, %v2387_v14, -inf }
 0x3ef   :  { %v2203_v60 = vpop.f32.mrf.mxu1  ;;  %v2953_v7 = vsel %vm2868_vm3, %v9336_v53, -inf }
 0x3f0   :  { %2936 = vmax.xlane.f32.xlu2 %v2935_v46  ;;  %v9304_v8 = vsel %vm9244_vm8, %v2203_v60, -inf }
 0x3f1   :  { %v2908_v23 = vsel %vm2868_vm3, %v9304_v8, -inf }
 0x3f2   :  { %v2656_v43 = vpop.f32.mrf.mxu2 }
 0x3f3   :  { %v9322_v58 = vsel %vm9076_vm2, %v2656_v43, -inf  ;;  %v2472_v22 = vpop.f32.mrf.mxu0 }
 0x3f4   :  { %v3013_v12 = vsel %vm2868_vm3, %v9322_v58, -inf  ;;  %v9364_v14 = vsel %vm9124_vm4, %v2472_v22, -inf }
 0x3f5   :  { %2948 = vmax.xlane.f32.xlu1 %v2947_v0  ;;  %v2389_v2 = vpop.f32.mrf.mxu3  ;;  %v2968_v0 = vsel %vm2868_vm3, %v9364_v14, -inf }
 0x3f6   :  { %2909 = vmax.xlane.f32.xlu0 %v2908_v23 }
 0x3f7   :  { %v2206_v37 = vpop.f32.mrf.mxu1 }
 0x3f8   :  { %2891 = vmax.xlane.f32.xlu2 %v2890_v48 }
 0x3fa   :  { %v2658_v50 = vpop.f32.mrf.mxu2 }
 0x3fb   :  { %v9354_v47 = vsel %vm9124_vm4, %v2658_v50, -inf  ;;  %v2475_v43 = vpop.f32.mrf.mxu0 }
 0x3fc   :  { %v3016_v27 = vsel %vm2868_vm3, %v9354_v47, -inf  ;;  %v9372_v23 = vsel %vm9162_vm5, %v2475_v43, -inf }
 0x3fd   :  { %2966 = vmax.xlane.f32.xlu1 %v2965_v62  ;;  %v2392_v20 = vpop.f32.mrf.mxu3  ;;  %v2971_v62 = vsel %vm2868_vm3, %v9372_v23, -inf }
 0x3fe   :  { %3014 = vmax.xlane.f32.xlu0 %v3013_v12  ;;  %v9384_v12 = vsel %vm9244_vm8, %v2389_v2, -inf  ;;  %v9400_v2 = vsel %vm9268_vm9, %v2206_v37, -inf }
 0x3ff   :  { %v2208_v42 = vpop.f32.mrf.mxu1 }
 0x400   :  { %2951 = vmax.xlane.f32.xlu2 %v2950_v29  ;;  %v9340_v51 = vsel %vm9280_vm10, %v2208_v42, -inf  ;;  %v2956_v29 = vsel %vm2868_vm3, %v9384_v12, -inf }
 0x401   :  { %v2914_v32 = vsel %vm2868_vm3, %v9340_v51, -inf }
 0x402   :  { %v2661_v54 = vpop.f32.mrf.mxu2 }
 0x403   :  { %v9358_v10 = vsel %vm9162_vm5, %v2661_v54, -inf  ;;  %v9390_v54 = vsel %vm9268_vm9, %v2392_v20, -inf  ;;  %v2477_v43 = vpop.f32.mrf.mxu0 }
 0x404   :  { %v3019_v60 = vsel %vm2868_vm3, %v9358_v10, -inf }
 0x405   :  { %2954 = vmax.xlane.f32.xlu1 %v2953_v7  ;;  %v2394_v28 = vpop.f32.mrf.mxu3 }
 0x406   :  { %2915 = vmax.xlane.f32.xlu0 %v2914_v32  ;;  %v2959_v32 = vsel %vm2868_vm3, %v9390_v54, -inf }
 0x407   :  { %v2563_v20 = vpop.f32.mrf.mxu1 }
 0x408   :  { %2906 = vmax.xlane.f32.xlu2 %v2905_v38  ;;  %v9412_v37 = vsel %vm9076_vm2, %v2563_v20, -inf }
 0x409   :  { %11118 = vst [vmem:[#allocation14_spill] sm:$0xff] %v9412_v37 }
 0x40a   :  { %v2663_v16 = vpop.f32.mrf.mxu2 }
 0x40d   :  { %3017 = vmax.xlane.f32.xlu1 %v3016_v27  ;;  %v2749_v46 = vpop.f32.mrf.mxu3 }
 0x40e   :  { %3020 = vmax.xlane.f32.xlu0 %v3019_v60  ;;  %v2911_v60 = vsel %vm2868_vm3, %v9400_v2, -inf }
 0x410   :  { %2969 = vmax.xlane.f32.xlu2 %v2968_v0 }
 0x412   :  { %v2666_v18 = vpop.f32.mrf.mxu2 }
 0x413   :  { %v9376_v48 = vsel %vm9204_vm7, %v2666_v18, -inf }
 0x414   :  { %v3025_v50 = vsel %vm2868_vm3, %v9376_v48, -inf }
 0x415   :  { %2972 = vmax.xlane.f32.xlu1 %v2971_v62  ;;  %v2751_v42 = vpop.f32.mrf.mxu3  ;;  %v2989_v62 = vsel %vm2868_vm3, %v9412_v37, -inf }
 0x416   :  { %3026 = vmax.xlane.f32.xlu0 %v3025_v50  ;;  %v9396_v7 = vsel %vm9124_vm4, %v2751_v42, -inf  ;;  %v9424_v42 = vsel %vm9180_vm6, %v2477_v43, -inf }
 0x417   :  { %11117 = vst [vmem:[#allocation18_spill] sm:$0xff] %v9396_v7  ;;  %v3040_v38 = vsel %vm2868_vm3, %v9396_v7, -inf  ;;  %v2565_v7 = vpop.f32.mrf.mxu1 }
 0x418   :  { %2957 = vmax.xlane.f32.xlu2 %v2956_v29 }
 0x41a   :  { %v9392_v22 = vpop.f32.mrf.mxu2 }
 0x41d   :  { %2960 = vmax.xlane.f32.xlu1 %v2959_v32  ;;  %v9406_v27 = vpop.f32.mrf.mxu3  ;;  %v2974_v32 = vsel %vm2868_vm3, %v9424_v42, -inf }
 0x41e   :  { %3041 = vmax.xlane.f32.xlu0 %v3040_v38 }
 0x420   :  { %2912 = vmax.xlane.f32.xlu2 %v2911_v60  ;;  %v9431_v60 = vsel %vm9180_vm6, %v2663_v16, -inf  ;;  %v2480_v16 = vpop.f32.mrf.mxu0 }
 0x422   :  { %v2671_v0 = vpop.f32.mrf.mxu2 }
 0x423   :  { %v9416_v18 = vsel %vm9268_vm9, %v2671_v0, -inf }
 0x424   :  { %v3031_v50 = vsel %vm2868_vm3, %v9416_v18, -inf }
 0x425   :  { %2990 = vmax.xlane.f32.xlu1 %v2989_v62  ;;  %v2756_v29 = vpop.f32.mrf.mxu3  ;;  %v9441_v62 = vsel %vm9280_vm10, %v2394_v28, -inf }
 0x426   :  { %3032 = vmax.xlane.f32.xlu0 %v3031_v50  ;;  %v9435_v0 = vsel %vm9180_vm6, %v2756_v29, -inf  ;;  %v3022_v50 = vsel %vm2868_vm3, %v9431_v60, -inf  ;;  %v2962_v29 = vsel %vm2868_vm3, %v9441_v62, -inf }
 0x427   :  { %11119 = vst [vmem:[#allocation15_spill] sm:$0xff] %v9435_v0 }
 0x428   :  { %v2919_v38 = vpop.xlane.xlu2 %2918  ;;  %2975 = vmax.xlane.f32.xlu2 %v2974_v32 }
 0x429   :  { %v3077_v20 = vsub.f32 %v9113_v49, %v2919_v38  ;;  %v3046_v49 = vsel %vm2868_vm3, %v9435_v0, -inf }
 0x42b   :  { %v3157_v43 = vmul.f32 1.442695, %v3077_v20  ;;  %v9449_v20 = vsel %vm9204_vm7, %v2480_v16, -inf  ;;  %v9464_v16 = vpop.xlane.xlu1 %2870 }
 0x42c   :  { %v2977_v0 = vsel %vm2868_vm3, %v9449_v20, -inf }
 0x42d   :  { %7311 = vpow2.f32 %v3157_v43  ;;  %3023 = vmax.xlane.f32.xlu1 %v3022_v50  ;;  %v9456_v50 = vsel %vm9076_vm2, %v2749_v46, -inf }
 0x42e   :  { %3047 = vmax.xlane.f32.xlu0 %v3046_v49  ;;  %11121 = vst [vmem:[#allocation38_spill] sm:$0xff] %v9456_v50 }
 0x430   :  { %v2922_v32 = vpop.xlane.xlu0 %2921  ;;  %v2874_v38 = vpop.xlane.xlu2 %2873  ;;  %2963 = vmax.xlane.f32.xlu2 %v2962_v29 }
 0x431   :  { %v3062_v28 = vsub.f32 %v9138_v44, %v2874_v38  ;;  %v2568_v29 = vpop.f32.mrf.mxu1  ;;  %v3037_v44 = vsel %vm2868_vm3, %v9456_v50, -inf  ;;  %v9479_v50 = vsel %vm9124_vm4, %v2565_v7, -inf }
 0x432   :  { %v9468_v13 = vsel %vm9162_vm5, %v2568_v29, -inf  ;;  %11124 = vst [vmem:[#allocation25_spill] sm:$0xff] %v9479_v50 }
 0x433   :  { %v9452_v37 = vpop.eup %7311  ;;  %v3127_v43 = vmul.f32 1.442695, %v3062_v28  ;;  %11122 = vst [vmem:[#allocation33_spill] sm:$0xff] %v9468_v13 }
 0x434   :  { %11120 = vst [vmem:[#allocation37_spill] sm:$0xff] %v9452_v37  ;;  %v3301_v49 = vsel %vm2868_vm3, %v9452_v37, 0.0 }
 0x435   :  { %2978 = vmax.xlane.f32.xlu1 %v2977_v0  ;;  %7313 = vpow2.f32 %v3127_v43  ;;  %v2482_v43 = vpop.f32.mrf.mxu0 }
 0x436   :  { %3302 = vadd.xlane.f32.xlu0 %v3301_v49  ;;  %v2995_v49 = vsel %vm2868_vm3, %v9468_v13, -inf }
 0x438   :  { %v2925_v38 = vpop.xlane.xlu0 %2924  ;;  %3038 = vmax.xlane.f32.xlu2 %v3037_v44  ;;  %v9471_v28 = vpop.xlane.xlu2 %2876 }
 0x439   :  { %v3079_v46 = vsub.f32 %v9172_v45, %v2925_v38  ;;  %v2992_v45 = vsel %vm2868_vm3, %v9479_v50, -inf  ;;  %v2570_v26 = vpop.f32.mrf.mxu1 }
 0x43b   :  { %v3161_v37 = vmul.f32 1.442695, %v3079_v46  ;;  %v9473_v0 = vpop.eup %7313  ;;  %v9490_v46 = vsel %vm9244_vm8, %v9392_v22, -inf }
 0x43c   :  { %11123 = vst [vmem:[#allocation34_spill] sm:$0xff] %v9473_v0  ;;  %v3256_v29 = vsel %vm2868_vm3, %v9473_v0, 0.0 }
 0x43d   :  { %7315 = vpow2.f32 %v3161_v37  ;;  %2996 = vmax.xlane.f32.xlu1 %v2995_v49  ;;  %v2485_v50 = vpop.f32.mrf.mxu0 }
 0x43e   :  { %3257 = vadd.xlane.f32.xlu0 %v3256_v29  ;;  %v3028_v29 = vsel %vm2868_vm3, %v9490_v46, -inf }
 0x440   :  { %v9485_v44 = vpop.xlane.xlu1 %2927  ;;  %2993 = vmax.xlane.f32.xlu2 %v2992_v45  ;;  %v2895_v37 = vpop.xlane.xlu2 %2894  ;;  %v9501_v45 = vsel %vm9244_vm8, %v2482_v43, -inf  ;;  %v3078_v43 = vsub.f32 %v9155_v3, %v2922_v32 }
 0x441   :  { %v2880_v38 = vpop.xlane.xlu0 %2879 }
 0x442   :  { %v3064_v17 = vsub.f32 %v9190_v36, %v2880_v38  ;;  %v2980_v36 = vsel %vm2868_vm3, %v9501_v45, -inf  ;;  %v9507_v38 = vsel %vm9268_vm9, %v2485_v50, -inf  ;;  %v3159_v3 = vmul.f32 1.442695, %v3078_v43 }
 0x443   :  { %v9493_v7 = vpop.eup %7315  ;;  %v3069_v43 = vsub.f32 %v9186_v31, %v2895_v37 }
 0x444   :  { %11125 = vst [vmem:[#allocation26_spill] sm:$0xff] %v9493_v7  ;;  %v3131_v13 = vmul.f32 1.442695, %v3064_v17  ;;  %v3307_v49 = vsel %vm2868_vm3, %v9493_v7, 0.0 }
 0x445   :  { %3029 = vmax.xlane.f32.xlu1 %v3028_v29 }
 0x446   :  { %3308 = vadd.xlane.f32.xlu0 %v3307_v49  ;;  %7317 = vpow2.f32 %v3131_v13  ;;  %v9518_v13 = vsel %vm9162_vm5, %v9406_v27, -inf  ;;  %v2983_v49 = vsel %vm2868_vm3, %v9507_v38, -inf }
 0x447   :  { %11126 = vst [vmem:[#allocation21_spill] sm:$0xff] %v9518_v13  ;;  %v3043_v32 = vsel %vm2868_vm3, %v9518_v13, -inf }
 0x448   :  { %v2943_v22 = vpop.xlane.xlu1 %2942  ;;  %2981 = vmax.xlane.f32.xlu2 %v2980_v36 }
 0x449   :  { %v3085_v17 = vsub.f32 %v9210_v52, %v2943_v22  ;;  %v9510_v7 = vpop.xlane.xlu0 %2882  ;;  %v2673_v52 = vpop.f32.mrf.mxu2 }
 0x44b   :  { %v3173_v0 = vmul.f32 1.442695, %v3085_v17  ;;  %v9513_v29 = vpop.xlane.xlu2 %2945 }
 0x44c   :  { %v9522_v36 = vpop.eup %7317 }
 0x44d   :  { %11127 = vst [vmem:[#allocation22_spill] sm:$0xff] %v9522_v36  ;;  %7319 = vpow2.f32 %v3173_v0  ;;  %2984 = vmax.xlane.f32.xlu1 %v2983_v49  ;;  %v3262_v50 = vsel %vm2868_vm3, %v9522_v36, 0.0  ;;  %v9533_v0 = vsel %vm9280_vm10, %v2673_v52, -inf  ;;  %v3061_v52 = vsub.f32 %v9094_v5, %v9464_v16 }
 0x44e   :  { %3263 = vadd.xlane.f32.xlu0 %v3262_v50  ;;  %7321 = vpow2.f32 %v3159_v3  ;;  %v3141_v3 = vmul.f32 1.442695, %v3069_v43  ;;  %v3080_v5 = vsub.f32 %v9195_v11, %v9485_v44  ;;  %v3063_v11 = vsub.f32 %v9168_v40, %v9471_v28 }
 0x450   :  { %v2931_v22 = vpop.xlane.xlu1 %2930  ;;  %3044 = vmax.xlane.f32.xlu2 %v3043_v32 }
 0x451   :  { %v3081_v27 = vsub.f32 %v9228_v56, %v2931_v22  ;;  %v9529_v17 = vpop.xlane.xlu0 %2897  ;;  %v3034_v56 = vsel %vm2868_vm3, %v9533_v0, -inf  ;;  %v9546_v22 = vsel %vm9180_vm6, %v2570_v26, -inf  ;;  %v3125_v26 = vmul.f32 1.442695, %v3061_v52 }
 0x452   :  { %v2998_v31 = vsel %vm2868_vm3, %v9546_v22, -inf }
 0x453   :  { %v9535_v49 = vpop.eup %7319  ;;  %v3165_v50 = vmul.f32 1.442695, %v3081_v27  ;;  %v9538_v36 = vpop.xlane.xlu2 %2900 }
 0x454   :  { %11128 = vst [vmem:[#allocation45_spill] sm:$0xff] %v9535_v49  ;;  %v3325_v32 = vsel %vm2868_vm3, %v9535_v49, 0.0  ;;  %v9552_v27 = vpop.eup %7321  ;;  %v2487_v49 = vpop.f32.mrf.mxu0 }
 0x455   :  { %7323 = vpow2.f32 %v3165_v50  ;;  %3035 = vmax.xlane.f32.xlu1 %v3034_v56  ;;  %v3304_v56 = vsel %vm2868_vm3, %v9552_v27, 0.0 }
 0x456   :  { %3326 = vadd.xlane.f32.xlu0 %v3325_v32  ;;  %7325 = vpow2.f32 %v3141_v3 }
 0x458   :  { %v2886_v37 = vpop.xlane.xlu1 %2885  ;;  %2999 = vmax.xlane.f32.xlu2 %v2998_v31  ;;  %v9569_v31 = vsel %vm9280_vm10, %v2487_v49, -inf  ;;  %v3129_v49 = vmul.f32 1.442695, %v3063_v11 }
 0x459   :  { %v9554_v13 = vpop.xlane.xlu0 %2903  ;;  %v3066_v25 = vsub.f32 %v9252_v6, %v2886_v37  ;;  %v3163_v6 = vmul.f32 1.442695, %v3080_v5  ;;  %v2986_v44 = vsel %vm2868_vm3, %v9569_v31, -inf }
 0x45b   :  { %v9557_v50 = vpop.eup %7323  ;;  %v3135_v16 = vmul.f32 1.442695, %v3066_v25  ;;  %v9561_v43 = vpop.xlane.xlu2 %2933 }
 0x45c   :  { %v3313_v32 = vsel %vm2868_vm3, %v9557_v50, 0.0  ;;  %v9577_v3 = vpop.eup %7325 }
 0x45d   :  { %7327 = vpow2.f32 %v3135_v16  ;;  %3305 = vadd.xlane.f32.xlu1 %v3304_v56  ;;  %v3277_v16 = vsel %vm2868_vm3, %v9577_v3, 0.0 }
 0x45e   :  { %7329 = vpow2.f32 %v3125_v26  ;;  %3314 = vadd.xlane.f32.xlu0 %v3313_v32  ;;  %v3086_v26 = vsub.f32 %v9222_v63, %v9513_v29  ;;  %v3065_v32 = vsub.f32 %v9214_v59, %v9510_v7 }
 0x45f   :  { %7331 = vpow2.f32 %v3163_v6 }
 0x460   :  { %v9575_v52 = vpop.xlane.xlu1 %2888  ;;  %2987 = vmax.xlane.f32.xlu2 %v2986_v44  ;;  %7333 = vpow2.f32 %v3129_v49  ;;  %v3175_v56 = vmul.f32 1.442695, %v3086_v26  ;;  %v3071_v49 = vsub.f32 %v9237_v33, %v9538_v36 }
 0x461   :  { %v9579_v37 = vpop.xlane.xlu0 %2939 }
 0x462   :  { %7335 = vpow2.f32 %v3175_v56 }
 0x463   :  { %v9581_v25 = vpop.eup %7327  ;;  %v2937_v40 = vpop.xlane.xlu2 %2936 }
 0x464   :  { %11129 = vst [vmem:[#allocation46_spill] sm:$0xff] %v9581_v25  ;;  %v9585_v28 = vpop.eup %7329  ;;  %v3268_v5 = vsel %vm2868_vm3, %v9581_v25, 0.0  ;;  %v3133_v25 = vmul.f32 1.442695, %v3065_v32  ;;  %v3083_v59 = vsub.f32 %v9290_v24, %v2937_v40  ;;  %v3145_v32 = vmul.f32 1.442695, %v3071_v49 }
 0x465   :  { %3278 = vadd.xlane.f32.xlu1 %v3277_v16  ;;  %v3253_v11 = vsel %vm2868_vm3, %v9585_v28, 0.0  ;;  %v9595_v29 = vpop.eup %7331 }
 0x466   :  { %3269 = vadd.xlane.f32.xlu0 %v3268_v5  ;;  %v9603_v5 = vpop.eup %7333  ;;  %v3310_v16 = vsel %vm2868_vm3, %v9595_v29, 0.0 }
 0x467   :  { %v3259_v33 = vsel %vm2868_vm3, %v9603_v5, 0.0 }
 0x468   :  { %v2949_v63 = vpop.xlane.xlu1 %2948  ;;  %3254 = vadd.xlane.f32.xlu2 %v3253_v11  ;;  %v3169_v11 = vmul.f32 1.442695, %v3083_v59  ;;  %v9611_v24 = vpop.eup %7335 }
 0x469   :  { %v9597_v6 = vpop.xlane.xlu0 %2909  ;;  %v3087_v44 = vsub.f32 %v9300_v41, %v2949_v63  ;;  %v3070_v41 = vsub.f32 %v9232_v34, %v9529_v17  ;;  %v3082_v63 = vsub.f32 %v9263_v19, %v9561_v43  ;;  %v3328_v59 = vsel %vm2868_vm3, %v9611_v24, 0.0 }
 0x46a   :  { %v3067_v19 = vsub.f32 %v9277_v61, %v9575_v52 }
 0x46b   :  { %v3177_v7 = vmul.f32 1.442695, %v3087_v44  ;;  %v2892_v26 = vpop.xlane.xlu2 %2891  ;;  %v3143_v56 = vmul.f32 1.442695, %v3070_v41 }
 0x46c   :  { %v3068_v34 = vsub.f32 %v9310_v9, %v2892_v26 }
 0x46d   :  { %7337 = vpow2.f32 %v3177_v7  ;;  %3311 = vadd.xlane.f32.xlu1 %v3310_v16  ;;  %v3167_v7 = vmul.f32 1.442695, %v3082_v63 }
 0x46e   :  { %7339 = vpow2.f32 %v3133_v25  ;;  %v3139_v43 = vmul.f32 1.442695, %v3068_v34 }
 0x46f   :  { %7341 = vpow2.f32 %v3145_v32 }
 0x470   :  { %v2967_v36 = vpop.xlane.xlu1 %2966  ;;  %3260 = vadd.xlane.f32.xlu2 %v3259_v33  ;;  %7343 = vpow2.f32 %v3169_v11  ;;  %v3137_v11 = vmul.f32 1.442695, %v3067_v19 }
 0x471   :  { %v9613_v40 = vpop.xlane.xlu0 %3014  ;;  %7345 = vpow2.f32 %v3143_v56  ;;  %v3093_v33 = vsub.f32 %v9318_v21, %v2967_v36 }
 0x472   :  { %7347 = vpow2.f32 %v3167_v7 }
 0x473   :  { %v9617_v25 = vpop.eup %7337  ;;  %v2952_v17 = vpop.xlane.xlu2 %2951  ;;  %7349 = vpow2.f32 %v3139_v43 }
 0x474   :  { %v9620_v44 = vpop.eup %7339  ;;  %v3331_v49 = vsel %vm2868_vm3, %v9617_v25, 0.0  ;;  %v3088_v56 = vsub.f32 %v9328_v30, %v2952_v17  ;;  %7351 = vpow2.f32 %v3137_v11 }
 0x475   :  { %3332 = vadd.xlane.f32.xlu0 %v3331_v49  ;;  %3329 = vadd.xlane.f32.xlu1 %v3328_v59  ;;  %v3265_v9 = vsel %vm2868_vm3, %v9620_v44, 0.0  ;;  %v9630_v26 = vpop.eup %7341  ;;  %v3072_v49 = vsub.f32 %v9257_v1, %v9554_v13  ;;  %v3189_v59 = vmul.f32 1.442695, %v3093_v33 }
 0x476   :  { %v9632_v41 = vpop.eup %7343  ;;  %v3283_v34 = vsel %vm2868_vm3, %v9630_v26, 0.0  ;;  %v3179_v21 = vmul.f32 1.442695, %v3088_v56 }
 0x477   :  { %v9638_v52 = vpop.eup %7345  ;;  %v3319_v63 = vsel %vm2868_vm3, %v9632_v41, 0.0  ;;  %v3147_v43 = vmul.f32 1.442695, %v3072_v49  ;;  %7353 = vpow2.f32 %v3189_v59 }
 0x478   :  { %v2955_v16 = vpop.xlane.xlu1 %2954  ;;  %3266 = vadd.xlane.f32.xlu2 %v3265_v9  ;;  %v3280_v30 = vsel %vm2868_vm3, %v9638_v52, 0.0  ;;  %v9648_v36 = vpop.eup %7347  ;;  %7355 = vpow2.f32 %v3179_v21 }
 0x479   :  { %v9634_v32 = vpop.xlane.xlu0 %2915  ;;  %v9650_v7 = vpop.eup %7349  ;;  %v3089_v9 = vsub.f32 %v9336_v53, %v2955_v16  ;;  %v3316_v56 = vsel %vm2868_vm3, %v9648_v36, 0.0  ;;  %7357 = vpow2.f32 %v3147_v43 }
 0x47a   :  { %v9658_v11 = vpop.eup %7351  ;;  %v3274_v33 = vsel %vm2868_vm3, %v9650_v7, 0.0  ;;  %v2759_v43 = vpop.f32.mrf.mxu3 }
 0x47b   :  { %v2907_v61 = vpop.xlane.xlu2 %2906  ;;  %v3181_v53 = vmul.f32 1.442695, %v3089_v9 }
 0x47c   :  { %v3073_v1 = vsub.f32 %v9344_v4, %v2907_v61  ;;  %v3271_v4 = vsel %vm2868_vm3, %v9658_v11, 0.0 }
 0x47d   :  { %3320 = vadd.xlane.f32.xlu0 %v3319_v63  ;;  %3284 = vadd.xlane.f32.xlu1 %v3283_v34  ;;  %v3074_v63 = vsub.f32 %v9304_v8, %v9597_v6  ;;  %v9668_v61 = vpop.eup %7353  ;;  %7359 = vpow2.f32 %v3181_v53 }
 0x47e   :  { %v3149_v16 = vmul.f32 1.442695, %v3073_v1  ;;  %11130 = vst [vmem:[#allocation41_spill] sm:$0xff] %v9668_v61  ;;  %v9670_v49 = vpop.eup %7355  ;;  %v3349_v9 = vsel %vm2868_vm3, %v9668_v61, 0.0 }
 0x47f   :  { %v3151_v21 = vmul.f32 1.442695, %v3074_v63  ;;  %v9678_v6 = vpop.eup %7357  ;;  %v3334_v1 = vsel %vm2868_vm3, %v9670_v49, 0.0 }
 0x480   :  { %v3018_v17 = vpop.xlane.xlu1 %3017  ;;  %3281 = vadd.xlane.f32.xlu2 %v3280_v30  ;;  %v3084_v30 = vsub.f32 %v9286_v57, %v9579_v37  ;;  %7361 = vpow2.f32 %v3149_v16  ;;  %v3286_v57 = vsel %vm2868_vm3, %v9678_v6, 0.0 }
 0x481   :  { %v9652_v19 = vpop.xlane.xlu0 %3020  ;;  %7363 = vpow2.f32 %v3151_v21 }
 0x483   :  { %v9656_v13 = vpop.xlane.xlu2 %2969  ;;  %v9688_v37 = vpop.eup %7359 }
 0x484   :  { %11131 = vst [vmem:[#allocation42_spill] sm:$0xff] %v9688_v37 }
 0x485   :  { %3275 = vadd.xlane.f32.xlu0 %v3274_v33  ;;  %3317 = vadd.xlane.f32.xlu1 %v3316_v56  ;;  %v3109_v33 = vsub.f32 %v9322_v58, %v9613_v40  ;;  %v3171_v56 = vmul.f32 1.442695, %v3084_v30  ;;  %v3337_v58 = vsel %vm2868_vm3, %v9688_v37, 0.0  ;;  %v2761_v30 = vpop.f32.mrf.mxu3 }
 0x486   :  { %v9690_v53 = vpop.eup %7361  ;;  %v9713_v37 = vsel %vm9244_vm8, %v2761_v30, -inf  ;;  %v3111_v30 = vsub.f32 %v9358_v10, %v9652_v19 }
 0x487   :  { %11132 = vst [vmem:[#allocation6_spill] sm:$0xff] %v9690_v53  ;;  %7365 = vpow2.f32 %v3171_v56  ;;  %v3289_v40 = vsel %vm2868_vm3, %v9690_v53, 0.0  ;;  %v2573_v53 = vpop.f32.mrf.mxu1 }
 0x488   :  { %v2973_v34 = vpop.xlane.xlu1 %2972  ;;  %3272 = vadd.xlane.f32.xlu2 %v3271_v4  ;;  %v3221_v4 = vmul.f32 1.442695, %v3109_v33 }
 0x489   :  { %v9672_v59 = vpop.xlane.xlu0 %3026 }
 0x48a   :  { %7367 = vpow2.f32 %v3221_v4  ;;  %v3095_v4 = vsub.f32 %v9372_v23, %v2973_v34 }
 0x48b   :  { %v9676_v8 = vpop.xlane.xlu2 %2957 }
 0x48c   :  { %v3090_v10 = vsub.f32 %v9384_v12, %v9676_v8 }
 0x48d   :  { %3350 = vadd.xlane.f32.xlu0 %v3349_v9  ;;  %3335 = vadd.xlane.f32.xlu1 %v3334_v1  ;;  %v3110_v9 = vsub.f32 %v9354_v47, %v3018_v17  ;;  %v9697_v1 = vpop.eup %7363 }
 0x48e   :  { %11133 = vst [vmem:[#allocation8_spill] sm:$0xff] %v9697_v1  ;;  %v3292_v33 = vsel %vm2868_vm3, %v9697_v1, 0.0  ;;  %v9707_v47 = vpop.eup %7365 }
 0x48f   :  { %11134 = vst [vmem:[#allocation9_spill] sm:$0xff] %v9707_v47  ;;  %v3322_v61 = vsel %vm2868_vm3, %v9707_v47, 0.0 }
 0x490   :  { %v2961_v63 = vpop.xlane.xlu1 %2960  ;;  %3287 = vadd.xlane.f32.xlu2 %v3286_v57  ;;  %v3223_v57 = vmul.f32 1.442695, %v3110_v9 }
 0x491   :  { %v9692_v16 = vpop.xlane.xlu0 %3041  ;;  %v3091_v19 = vsub.f32 %v9390_v54, %v2961_v63 }
 0x492   :  { %7369 = vpow2.f32 %v3223_v57  ;;  %v9732_v57 = vsel %vm9204_vm7, %v2573_v53, -inf }
 0x493   :  { %v9695_v21 = vpop.xlane.xlu2 %2912  ;;  %v3001_v53 = vsel %vm2868_vm3, %v9732_v57, -inf }
 0x495   :  { %3338 = vadd.xlane.f32.xlu0 %v3337_v58  ;;  %3290 = vadd.xlane.f32.xlu1 %v3289_v40  ;;  %v3094_v58 = vsub.f32 %v9364_v14, %v9656_v13  ;;  %v9718_v40 = vpop.eup %7367  ;;  %v3193_v14 = vmul.f32 1.442695, %v3095_v4  ;;  %v9741_v4 = vsel %vm9204_vm7, %v2759_v43, -inf }
 0x496   :  { %v3397_v23 = vsel %vm2868_vm3, %v9718_v40, 0.0  ;;  %v3049_v12 = vsel %vm2868_vm3, %v9741_v4, -inf }
 0x497   :  { %v3191_v1 = vmul.f32 1.442695, %v3094_v58 }
 0x498   :  { %v9705_v56 = vpop.xlane.xlu1 %2990  ;;  %3293 = vadd.xlane.f32.xlu2 %v3292_v33  ;;  %v3052_v33 = vsel %vm2868_vm3, %v9713_v37, -inf  ;;  %v9728_v34 = vpop.eup %7369 }
 0x499   :  { %v9709_v17 = vpop.xlane.xlu0 %3032  ;;  %7371 = vpow2.f32 %v3191_v1  ;;  %v3183_v1 = vmul.f32 1.442695, %v3090_v10 }
 0x49a   :  { %7373 = vpow2.f32 %v3193_v14 }
 0x49b   :  { %v2976_v9 = vpop.xlane.xlu2 %2975 }
 0x49c   :  { %v3096_v63 = vsub.f32 %v9424_v42, %v2976_v9 }
 0x49d   :  { %3053 = vmax.xlane.f32.xlu0 %v3052_v33  ;;  %3323 = vadd.xlane.f32.xlu1 %v3322_v61  ;;  %v3225_v61 = vmul.f32 1.442695, %v3111_v30  ;;  %v3400_v33 = vsel %vm2868_vm3, %v9728_v34, 0.0  ;;  %v3185_v30 = vmul.f32 1.442695, %v3091_v19 }
 0x49f   :  { %7375 = vpow2.f32 %v3225_v61  ;;  %v9749_v54 = vpop.eup %7371 }
 0x4a0   :  { %v3024_v13 = vpop.xlane.xlu1 %3023  ;;  %3398 = vadd.xlane.f32.xlu2 %v3397_v23  ;;  %v9751_v35 = vpop.eup %7373  ;;  %7377 = vpow2.f32 %v3183_v1  ;;  %v3352_v19 = vsel %vm2868_vm3, %v9749_v54, 0.0 }
 0x4a1   :  { %v9734_v47 = vpop.xlane.xlu0 %3047  ;;  %7379 = vpow2.f32 %v3185_v30  ;;  %v3112_v14 = vsub.f32 %v9431_v60, %v3024_v13  ;;  %v3355_v10 = vsel %vm2868_vm3, %v9751_v35, 0.0  ;;  %v2575_v30 = vpop.f32.mrf.mxu1 }
 0x4a3   :  { %v2964_v58 = vpop.xlane.xlu2 %2963  ;;  %v3227_v42 = vmul.f32 1.442695, %v3112_v14 }
 0x4a5   :  { %3401 = vadd.xlane.f32.xlu0 %v3400_v33  ;;  %3002 = vmax.xlane.f32.xlu1 %v3001_v53  ;;  %v9759_v61 = vpop.eup %7375  ;;  %v3113_v33 = vsub.f32 %v9376_v48, %v9672_v59  ;;  %v3195_v53 = vmul.f32 1.442695, %v3096_v63 }
 0x4a6   :  { %v3403_v60 = vsel %vm2868_vm3, %v9759_v61, 0.0  ;;  %v9769_v9 = vpop.eup %7377 }
 0x4a7   :  { %v9773_v1 = vpop.eup %7379  ;;  %7381 = vpow2.f32 %v3195_v53  ;;  %v3340_v14 = vsel %vm2868_vm3, %v9769_v9, 0.0 }
 0x4a8   :  { %v2979_v8 = vpop.xlane.xlu1 %2978  ;;  %3050 = vmax.xlane.f32.xlu2 %v3049_v12  ;;  %7383 = vpow2.f32 %v3227_v42  ;;  %v3343_v63 = vsel %vm2868_vm3, %v9773_v1, 0.0 }
 0x4a9   :  { %v9753_v43 = vpop.xlane.xlu0 %3302  ;;  %v3097_v48 = vsub.f32 %v9449_v20, %v2979_v8 }
 0x4ab   :  { %v9757_v23 = vpop.xlane.xlu2 %3038  ;;  %v3197_v20 = vmul.f32 1.442695, %v3097_v48 }
 0x4ad   :  { %3356 = vadd.xlane.f32.xlu0 %v3355_v10  ;;  %3353 = vadd.xlane.f32.xlu1 %v3352_v19  ;;  %v3229_v10 = vmul.f32 1.442695, %v3113_v33  ;;  %v3092_v19 = vsub.f32 %v9441_v62, %v2964_v58  ;;  %v3076_v62 = vsub.f32 %v9340_v51, %v9634_v32  ;;  %v9793_v33 = vpop.eup %7381 }
 0x4ae   :  { %v9795_v42 = vpop.eup %7383  ;;  %v3358_v48 = vsel %vm2868_vm3, %v9793_v33, 0.0 }
 0x4af   :  { %7385 = vpow2.f32 %v3229_v10  ;;  %v3187_v58 = vmul.f32 1.442695, %v3092_v19  ;;  %v3406_v19 = vsel %vm2868_vm3, %v9795_v42, 0.0 }
 0x4b0   :  { %v9771_v13 = vpop.xlane.xlu1 %2996  ;;  %3404 = vadd.xlane.f32.xlu2 %v3403_v60  ;;  %v9787_v60 = vsel %vm9244_vm8, %v2575_v30, -inf  ;;  %v3155_v30 = vmul.f32 1.442695, %v3076_v62 }
 0x4b1   :  { %v9775_v12 = vpop.xlane.xlu0 %3257  ;;  %v3004_v8 = vsel %vm2868_vm3, %v9787_v60, -inf  ;;  %7387 = vpow2.f32 %v3187_v58 }
 0x4b2   :  { %7389 = vpow2.f32 %v3197_v20 }
 0x4b3   :  { %v9779_v59 = vpop.xlane.xlu2 %2993  ;;  %7391 = vpow2.f32 %v3155_v30 }
 0x4b5   :  { %3344 = vadd.xlane.f32.xlu0 %v3343_v63  ;;  %3341 = vadd.xlane.f32.xlu1 %v3340_v14  ;;  %v9800_v32 = vpop.eup %7385  ;;  %v3115_v14 = vsub.f32 %v9416_v18, %v9709_v17 }
 0x4b6   :  { %11135 = vst [vmem:[#allocation7_spill] sm:$0xff] %v9800_v32  ;;  %v3409_v58 = vsel %vm2868_vm3, %v9800_v32, 0.0 }
 0x4b7   :  { %v9811_v20 = vpop.eup %7387 }
 0x4b8   :  { %v3030_v53 = vpop.xlane.xlu1 %3029  ;;  %3005 = vmax.xlane.f32.xlu2 %v3004_v8  ;;  %v9813_v8 = vpop.eup %7389 }
 0x4b9   :  { %v9797_v39 = vpop.xlane.xlu0 %3308  ;;  %v3114_v63 = vsub.f32 %v9490_v46, %v3030_v53  ;;  %11136 = vst [vmem:[#allocation10_spill] sm:$0xff] %v9813_v8  ;;  %v3075_v53 = vsub.f32 %v9400_v2, %v9695_v21 }
 0x4bb   :  { %v2982_v51 = vpop.xlane.xlu2 %2981  ;;  %v3231_v62 = vmul.f32 1.442695, %v3114_v63  ;;  %v9822_v63 = vpop.eup %7391 }
 0x4bc   :  { %v3098_v10 = vsub.f32 %v9501_v45, %v2982_v51  ;;  %v3233_v51 = vmul.f32 1.442695, %v3115_v14  ;;  %11137 = vst [vmem:[#allocation12_spill] sm:$0xff] %v9822_v63  ;;  %v3298_v21 = vsel %vm2868_vm3, %v9822_v63, 0.0 }
 0x4bd   :  { %3407 = vadd.xlane.f32.xlu0 %v3406_v19  ;;  %3359 = vadd.xlane.f32.xlu1 %v3358_v48  ;;  %7393 = vpow2.f32 %v3231_v62  ;;  %v3346_v19 = vsel %vm2868_vm3, %v9811_v20, 0.0  ;;  %v3153_v48 = vmul.f32 1.442695, %v3075_v53 }
 0x4be   :  { %v3199_v46 = vmul.f32 1.442695, %v3098_v10  ;;  %v3361_v10 = vsel %vm2868_vm3, %v9813_v8, 0.0 }
 0x4c0   :  { %v2985_v45 = vpop.xlane.xlu1 %2984  ;;  %3410 = vadd.xlane.f32.xlu2 %v3409_v58  ;;  %7395 = vpow2.f32 %v3199_v46 }
 0x4c1   :  { %v9817_v30 = vpop.xlane.xlu0 %3263  ;;  %v3099_v18 = vsub.f32 %v9507_v38, %v2985_v45  ;;  %7397 = vpow2.f32 %v3233_v51 }
 0x4c2   :  { %7399 = vpow2.f32 %v3153_v48 }
 0x4c3   :  { %v9820_v17 = vpop.xlane.xlu2 %3044  ;;  %v3201_v2 = vmul.f32 1.442695, %v3099_v18  ;;  %v9830_v14 = vpop.eup %7393  ;;  %7401 = vrcp.f32 %v9753_v43 }
 0x4c4   :  { %11138 = vst [vmem:[#allocation13_spill] sm:$0xff] %v9830_v14  ;;  %v3412_v51 = vsel %vm2868_vm3, %v9830_v14, 0.0 }
 0x4c5   :  { %3362 = vadd.xlane.f32.xlu0 %v3361_v10  ;;  %3347 = vadd.xlane.f32.xlu1 %v3346_v19  ;;  %7403 = vpow2.f32 %v3201_v2  ;;  %v9846_v10 = vpop.f32.mrf.mxu1  ;;  %v2764_v2 = vpop.f32.mrf.mxu3 }
 0x4c6   :  { %v9832_v62 = vpop.eup %7395  ;;  %v9856_v63 = vsel %vm9268_vm9, %v2764_v2, -inf }
 0x4c7   :  { %11139 = vst [vmem:[#allocation11_spill] sm:$0xff] %v9832_v62  ;;  %v9838_v45 = vpop.eup %7397  ;;  %v3364_v18 = vsel %vm2868_vm3, %v9832_v62, 0.0 }
 0x4c8   :  { %v3036_v38 = vpop.xlane.xlu1 %3035  ;;  %3299 = vadd.xlane.f32.xlu2 %v3298_v21  ;;  %11140 = vst [vmem:[#allocation51_spill] sm:$0xff] %v9838_v45  ;;  %v9848_v43 = vpop.eup %7399 }
 0x4c9   :  { %v3116_v46 = vsub.f32 %v9533_v0, %v3036_v38  ;;  %v9840_v53 = vpop.xlane.xlu0 %3326  ;;  %11141 = vst [vmem:[#allocation49_spill] sm:$0xff] %v9848_v43  ;;  %v3415_v0 = vsel %vm2868_vm3, %v9838_v45, 0.0  ;;  %v7402_v48 = vpop.eup %7401  ;;  %v3295_v45 = vsel %vm2868_vm3, %v9848_v43, 0.0 }
 0x4cb   :  { %v9836_v58 = vpop.xlane.xlu2 %2999  ;;  %v3235_v19 = vmul.f32 1.442695, %v3116_v46  ;;  %v9852_v38 = vpop.eup %7403 }
 0x4cc   :  { %11142 = vst [vmem:[#allocation52_spill] sm:$0xff] %v9852_v38  ;;  %v3367_v14 = vsel %vm2868_vm3, %v9852_v38, 0.0 }
 0x4cd   :  { %3413 = vadd.xlane.f32.xlu0 %v3412_v51  ;;  %3365 = vadd.xlane.f32.xlu1 %v3364_v18  ;;  %v11143_v18 = vld [vmem:[#allocation37_spill] sm:$0xff] }
 0x4ce   :  { %v3525_v62 = vmul.f32 %v7402_v48, %v11143_v18  ;;  %v11145_v48 = vld [vmem:[#allocation18_spill] sm:$0xff]  ;;  %v2580_v18 = vpop.f32.mrf.mxu1 }
 0x4d0   :  { %v3306_v21 = vpop.xlane.xlu1 %3305  ;;  %3416 = vadd.xlane.f32.xlu2 %v3415_v0  ;;  %v11144_v0 = vld [vmem:[#allocation14_spill] sm:$0xff]  ;;  %v3589_v43 = vpack.c.bf16 %v3525_v62, %v3525_v62  ;;  %v9883_v62 = vsel %vm9280_vm10, %v2580_v18, -inf }
 0x4d1   :  { %7405 = vrcp.f32 %v3306_v21  ;;  %v3101_v8 = vsub.f32 %v11144_v0, %v9705_v56  ;;  %v9867_v2 = vpop.xlane.xlu0 %3314 }
 0x4d2   :  { %7407 = vpow2.f32 %v3235_v19 }
 0x4d3   :  { %v2988_v51 = vpop.xlane.xlu2 %2987  ;;  %7409 = vrcp.f32 %v9775_v12  ;;  %v3205_v12 = vmul.f32 1.442695, %v3101_v8  ;;  %v11147_v8 = vld [vmem:[#allocation15_spill] sm:$0xff] }
 0x4d4   :  { %v3100_v46 = vsub.f32 %v9569_v31, %v2988_v51  ;;  %v3118_v31 = vsub.f32 %v11145_v48, %v9692_v16  ;;  %v3055_v51 = vsel %vm2868_vm3, %v9856_v63, -inf }
 0x4d5   :  { %3296 = vadd.xlane.f32.xlu1 %v3295_v45  ;;  %3368 = vadd.xlane.f32.xlu0 %v3367_v14  ;;  %v11146_v45 = vld [vmem:[#allocation38_spill] sm:$0xff] }
 0x4d6   :  { %v3203_v19 = vmul.f32 1.442695, %v3100_v46  ;;  %v3117_v46 = vsub.f32 %v11146_v45, %v9757_v23  ;;  %v3239_v32 = vmul.f32 1.442695, %v3118_v31  ;;  %v3120_v23 = vsub.f32 %v11147_v8, %v9734_v47  ;;  %v11148_v45 = vld [vmem:[#allocation34_spill] sm:$0xff] }
 0x4d7   :  { %v7406_v21 = vpop.eup %7405 }
 0x4d8   :  { %v3526_v38 = vmul.f32 %v7406_v21, %v9552_v27  ;;  %7411 = vpow2.f32 %v3203_v19  ;;  %v9874_v56 = vpop.xlane.xlu1 %3278  ;;  %3056 = vmax.xlane.f32.xlu2 %v3055_v51  ;;  %v9876_v14 = vpop.eup %7407  ;;  %v3815_v19 = vunpack.c.l.b16 %v3589_v43  ;;  %v3237_v31 = vmul.f32 1.442695, %v3117_v46 }
 0x4d9   :  { %7413 = vrcp.f32 %v9797_v39  ;;  %v7410_v27 = vpop.eup %7409  ;;  %v3418_v48 = vsel %vm2868_vm3, %v9876_v14, 0.0  ;;  %v2766_v39 = vpop.f32.mrf.mxu3  ;;  %v3010_v43 = vsel %vm2868_vm3, %v9883_v62, -inf }
 0x4da   :  { %v3590_v0 = vpack.c.bf16 %v3526_v38, %v3526_v38  ;;  %v3510_v18 = vmul.f32 %v7410_v27, %v11148_v45  ;;  %v9901_v46 = vsel %vm9280_vm10, %v2766_v39, -inf  ;;  %v9915_v39 = vsel %vm9268_vm9, %v9846_v10, -inf }
 0x4db   :  { %v3255_v16 = vpop.xlane.xlu2 %3254  ;;  %v3058_v15 = vsel %vm2868_vm3, %v9901_v46, -inf  ;;  %11152 = vst [vmem:[#allocation31_spill] sm:$0xff] %v9915_v39 }
 0x4dc   :  { %v3816_v21 = vunpack.c.l.b16 %v3590_v0  ;;  %7415 = vrcp.f32 %v3255_v16  ;;  %v9896_v16 = vpop.xlane.xlu0 %3269 }
 0x4dd   :  { %7417 = vpow2.f32 %v3205_v12  ;;  %3419 = vadd.xlane.f32.xlu0 %v3418_v48  ;;  %v3243_v48 = vmul.f32 1.442695, %v3120_v23  ;;  %v11151_v23 = vld [vmem:[#allocation26_spill] sm:$0xff] }
 0x4de   :  { %v9889_v38 = vpop.eup %7411  ;;  %v3823_v51 = vpack.c.b16 %v3816_v21, %v3815_v19  ;;  %7419 = vpow2.f32 %v3239_v32  ;;  %v3574_v21 = vpack.c.bf16 %v3510_v18, %v3510_v18  ;;  %v11150_v32 = vld [vmem:[#allocation25_spill] sm:$0xff] }
 0x4df   :  { %v3370_v0 = vsel %vm2868_vm3, %v9889_v38, 0.0  ;;  %v7414_v12 = vpop.eup %7413  ;;  %v3102_v8 = vsub.f32 %v11150_v32, %v9779_v59 }
 0x4e0   :  { %6761 = vmatmul.msk.bf16.vlgmr.msrb.gmra.mxu2 %vm2868_vm3, %v3823_v51  ;;  %v3312_v47 = vpop.xlane.xlu1 %3311  ;;  %3011 = vmax.xlane.f32.xlu2 %v3010_v43  ;;  %v3527_v43 = vmul.f32 %v7414_v12, %v11151_v23  ;;  %v3646_v18 = vunpack.c.l.b16 %v3574_v21  ;;  %v11154_v21 = vld [vmem:[#allocation33_spill] sm:$0xff] }
 0x4e1   :  { %7421 = vrcp.f32 %v3312_v47  ;;  %3371 = vadd.xlane.f32.xlu1 %v3370_v0  ;;  %v3207_v0 = vmul.f32 1.442695, %v3102_v8  ;;  %v11153_v47 = vld [vmem:[#allocation21_spill] sm:$0xff]  ;;  %v3103_v8 = vsub.f32 %v11154_v21, %v9771_v13 }
 0x4e2   :  { %v7416_v27 = vpop.eup %7415  ;;  %7423 = vpow2.f32 %v3237_v31  ;;  %v3119_v12 = vsub.f32 %v11153_v47, %v9820_v17  ;;  %v3591_v10 = vpack.c.bf16 %v3527_v43, %v3527_v43  ;;  %v11155_v13 = vld [vmem:[#allocation45_spill] sm:$0xff] }
 0x4e3   :  { %v9903_v19 = vpop.eup %7417  ;;  %7425 = vrcp.f32 %v9840_v53  ;;  %v3509_v51 = vmul.f32 %v7416_v27, %v9585_v28  ;;  %v3261_v45 = vpop.xlane.xlu2 %3260 }
 0x4e4   :  { %11149 = vst [vmem:[#allocation50_spill] sm:$0xff] %v9903_v19  ;;  %7427 = vrcp.f32 %v3261_v45  ;;  %v9917_v59 = vpop.eup %7419  ;;  %v3373_v28 = vsel %vm2868_vm3, %v9903_v19, 0.0 }
 0x4e5   :  { %7429 = vpow2.f32 %v3243_v48  ;;  %v3573_v31 = vpack.c.bf16 %v3509_v51, %v3509_v51  ;;  %3059 = vmax.xlane.f32.xlu0 %v3058_v15 }
 0x4e6   :  { %7431 = vrcp.f32 %v9817_v30  ;;  %v3007_v30 = vsel %vm2868_vm3, %v9915_v39, -inf  ;;  %v3209_v39 = vmul.f32 1.442695, %v3103_v8 }
 0x4e7   :  { %v7422_v53 = vpop.eup %7421  ;;  %v3645_v27 = vunpack.c.l.b16 %v3573_v31 }
 0x4e8   :  { %v9924_v55 = vpop.eup %7423  ;;  %v3528_v48 = vmul.f32 %v7422_v53, %v9595_v29  ;;  %v9927_v32 = vpop.xlane.xlu0 %3332  ;;  %3374 = vadd.xlane.f32.xlu2 %v3373_v28  ;;  %v3241_v29 = vmul.f32 1.442695, %v3119_v12  ;;  %v3817_v53 = vunpack.c.l.b16 %v3591_v10 }
 0x4e9   :  { %v3330_v51 = vpop.xlane.xlu1 %3329  ;;  %v7426_v45 = vpop.eup %7425  ;;  %v3653_v23 = vpack.c.b16 %v3646_v18, %v3645_v27  ;;  %3008 = vmax.xlane.f32.xlu1 %v3007_v30  ;;  %v3421_v19 = vsel %vm2868_vm3, %v9924_v55, 0.0 }
 0x4ea   :  { %v7428_v17 = vpop.eup %7427  ;;  %v3592_v15 = vpack.c.bf16 %v3528_v48, %v3528_v48  ;;  %7433 = vrcp.f32 %v3330_v51  ;;  %v3533_v18 = vmul.f32 %v7426_v45, %v11155_v13  ;;  %v3104_v51 = vsub.f32 %v9546_v22, %v9836_v58 }
 0x4eb   :  { %v9933_v31 = vpop.eup %7429  ;;  %7435 = vpow2.f32 %v3207_v0  ;;  %6753 = vmatmul.msk.bf16.vlgmr.msrb.gmra.mxu0 %vm2868_vm3, %v3653_v23  ;;  %v3267_v43 = vpop.xlane.xlu2 %3266  ;;  %v3511_v27 = vmul.f32 %v7428_v17, %v9603_v5  ;;  %v11156_v0 = vld [vmem:[#allocation22_spill] sm:$0xff]  ;;  %v3424_v5 = vsel %vm2868_vm3, %v9917_v59, 0.0 }
 0x4ec   :  { %v7432_v28 = vpop.eup %7431  ;;  %v3818_v47 = vunpack.c.l.b16 %v3592_v15  ;;  %7437 = vrcp.f32 %v9874_v56  ;;  %v3430_v10 = vsel %vm2868_vm3, %v9933_v31, 0.0  ;;  %v3211_v23 = vmul.f32 1.442695, %v3104_v51 }
 0x4ed   :  { %3422 = vadd.xlane.f32.xlu0 %v3421_v19  ;;  %v3512_v12 = vmul.f32 %v7432_v28, %v11156_v0  ;;  %7439 = vpow2.f32 %v3241_v29  ;;  %v3597_v19 = vpack.c.bf16 %v3533_v18, %v3533_v18  ;;  %v3575_v8 = vpack.c.bf16 %v3511_v27, %v3511_v27 }
 0x4ee   :  { %v3824_v48 = vpack.c.b16 %v3818_v47, %v3817_v53  ;;  %7441 = vpow2.f32 %v3209_v39 }
 0x4ef   :  { %7443 = vrcp.f32 %v9867_v2  ;;  %v3576_v58 = vpack.c.bf16 %v3512_v12, %v3512_v12  ;;  %v3900_v39 = vunpack.c.l.b16 %v3597_v19  ;;  %v3647_v47 = vunpack.c.l.b16 %v3575_v8 }
 0x4f0   :  { %v7434_v30 = vpop.eup %7433  ;;  %v9946_v21 = vpop.xlane.xlu0 %3320  ;;  %6762 = vmatmul.msk.bf16.gmra.mxu2 %vm2868_vm3, %v3824_v48  ;;  %3431 = vadd.xlane.f32.xlu2 %v3430_v10  ;;  %7445 = vrcp.f32 %v3267_v43 }
 0x4f1   :  { %v3285_v45 = vpop.xlane.xlu1 %3284  ;;  %v9951_v56 = vpop.eup %7435  ;;  %v3534_v22 = vmul.f32 %v7434_v30, %v9611_v24  ;;  %3425 = vadd.xlane.f32.xlu1 %v3424_v5  ;;  %v3648_v2 = vunpack.c.l.b16 %v3576_v58 }
 0x4f2   :  { %v7438_v29 = vpop.eup %7437  ;;  %v3376_v28 = vsel %vm2868_vm3, %v9951_v56, 0.0 }
 0x4f3   :  { %v3598_v17 = vpack.c.bf16 %v3534_v22, %v3534_v22  ;;  %v3282_v15 = vpop.xlane.xlu2 %3281  ;;  %v9957_v53 = vpop.eup %7439  ;;  %v3517_v43 = vmul.f32 %v7438_v29, %v9577_v3  ;;  %v3654_v10 = vpack.c.b16 %v3648_v2, %v3647_v47 }
 0x4f4   :  { %7447 = vrcp.f32 %v3282_v15  ;;  %v9960_v24 = vpop.eup %7441  ;;  %v3427_v12 = vsel %vm2868_vm3, %v9957_v53, 0.0  ;;  %v11157_v15 = vld [vmem:[#allocation46_spill] sm:$0xff] }
 0x4f5   :  { %v3901_v13 = vunpack.c.l.b16 %v3598_v17  ;;  %3377 = vadd.xlane.f32.xlu0 %v3376_v28  ;;  %7449 = vrcp.f32 %v9896_v16  ;;  %v7444_v27 = vpop.eup %7443  ;;  %v3581_v16 = vpack.c.bf16 %v3517_v43, %v3517_v43  ;;  %v3379_v8 = vsel %vm2868_vm3, %v9960_v24, 0.0 }
 0x4f6   :  { %7451 = vpow2.f32 %v3211_v23  ;;  %v7446_v51 = vpop.eup %7445  ;;  %v3529_v58 = vmul.f32 %v7444_v27, %v9557_v50 }
 0x4f7   :  { %v3908_v18 = vpack.c.b16 %v3901_v13, %v3900_v39  ;;  %v3513_v23 = vmul.f32 %v7446_v51, %v9620_v44  ;;  %v3730_v29 = vunpack.c.l.b16 %v3581_v16 }
 0x4f8   :  { %v3276_v48 = vpop.xlane.xlu0 %3275  ;;  %v3593_v2 = vpack.c.bf16 %v3529_v58, %v3529_v58 }
 0x4f9   :  { %v3318_v0 = vpop.xlane.xlu1 %3317  ;;  %6765 = vmatmul.msk.bf16.vlgmr.msrb.gmra.mxu3 %vm2868_vm3, %v3908_v18  ;;  %3428 = vadd.xlane.f32.xlu1 %v3427_v12  ;;  %v3577_v43 = vpack.c.bf16 %v3513_v23, %v3513_v23 }
 0x4fa   :  { %v7448_v30 = vpop.eup %7447  ;;  %7453 = vrcp.f32 %v3318_v0  ;;  %v3819_v51 = vunpack.c.l.b16 %v3593_v2 }
 0x4fb   :  { %v3518_v5 = vmul.f32 %v7448_v30, %v9638_v52  ;;  %6754 = vmatmul.msk.bf16.gmra.mxu0 %vm2868_vm3, %v3654_v10  ;;  %v3273_v3 = vpop.xlane.xlu2 %3272  ;;  %v7450_v19 = vpop.eup %7449  ;;  %7455 = vrcp.f32 %v9927_v32  ;;  %v3649_v30 = vunpack.c.l.b16 %v3577_v43 }
 0x4fc   :  { %v9971_v22 = vpop.eup %7451  ;;  %7457 = vrcp.f32 %v3285_v45  ;;  %v3514_v52 = vmul.f32 %v7450_v19, %v11157_v15 }
 0x4fd   :  { %v3582_v17 = vpack.c.bf16 %v3518_v5, %v3518_v5  ;;  %3380 = vadd.xlane.f32.xlu0 %v3379_v8  ;;  %v3382_v13 = vsel %vm2868_vm3, %v9971_v22, 0.0 }
 0x4fe   :  { %v3578_v45 = vpack.c.bf16 %v3514_v52, %v3514_v52 }
 0x4ff   :  { %v3731_v28 = vunpack.c.l.b16 %v3582_v17 }
 0x500   :  { %v7454_v39 = vpop.eup %7453  ;;  %v9976_v47 = vpop.xlane.xlu0 %3350  ;;  %v3650_v5 = vunpack.c.l.b16 %v3578_v45 }
 0x501   :  { %v3336_v32 = vpop.xlane.xlu1 %3335  ;;  %v3738_v18 = vpack.c.b16 %v3731_v28, %v3730_v29  ;;  %v3530_v50 = vmul.f32 %v7454_v39, %v9648_v36  ;;  %3383 = vadd.xlane.f32.xlu1 %v3382_v13  ;;  %v7456_v44 = vpop.eup %7455 }
 0x502   :  { %7459 = vrcp.f32 %v3336_v32  ;;  %v7458_v12 = vpop.eup %7457  ;;  %v3535_v10 = vmul.f32 %v7456_v44, %v9617_v25  ;;  %v3655_v52 = vpack.c.b16 %v3650_v5, %v3649_v30 }
 0x503   :  { %v3594_v27 = vpack.c.bf16 %v3530_v50, %v3530_v50  ;;  %7461 = vrcp.f32 %v3273_v3  ;;  %v3288_v0 = vpop.xlane.xlu2 %3287  ;;  %6757 = vmatmul.msk.bf16.vlgmr.msrb.gmra.mxu1 %vm2868_vm3, %v3738_v18  ;;  %v3519_v36 = vmul.f32 %v7458_v12, %v9630_v26 }
 0x504   :  { %7463 = vrcp.f32 %v3288_v0  ;;  %v3599_v17 = vpack.c.bf16 %v3535_v10, %v3535_v10 }
 0x505   :  { %v3820_v16 = vunpack.c.l.b16 %v3594_v27  ;;  %7465 = vrcp.f32 %v3276_v48  ;;  %v3583_v25 = vpack.c.bf16 %v3519_v36, %v3519_v36  ;;  %v11158_v36 = vld [vmem:[#allocation8_spill] sm:$0xff] }
 0x506   :  { %7467 = vrcp.f32 %v9946_v21  ;;  %v3902_v32 = vunpack.c.l.b16 %v3599_v17 }
 0x507   :  { %v3825_v19 = vpack.c.b16 %v3820_v16, %v3819_v51  ;;  %v3732_v43 = vunpack.c.l.b16 %v3583_v25 }
 0x508   :  { %v7460_v8 = vpop.eup %7459  ;;  %v9984_v58 = vpop.xlane.xlu0 %3338 }
 0x509   :  { %v3291_v23 = vpop.xlane.xlu1 %3290  ;;  %v7462_v3 = vpop.eup %7461  ;;  %v3536_v15 = vmul.f32 %v7460_v8, %v9670_v49  ;;  %6763 = vmatmul.msk.bf16.gmra.mxu2 %vm2868_vm3, %v3825_v19 }
 0x50a   :  { %v7464_v29 = vpop.eup %7463  ;;  %v3515_v13 = vmul.f32 %v7462_v3, %v9658_v11  ;;  %v11159_v3 = vld [vmem:[#allocation6_spill] sm:$0xff] }
 0x50b   :  { %v3600_v48 = vpack.c.bf16 %v3536_v15, %v3536_v15  ;;  %v3520_v28 = vmul.f32 %v7464_v29, %v9678_v6  ;;  %6755 = vmatmul.msk.bf16.gmra.mxu0 %vm2868_vm3, %v3655_v52  ;;  %v3294_v26 = vpop.xlane.xlu2 %3293  ;;  %v7466_v39 = vpop.eup %7465  ;;  %v11160_v15 = vld [vmem:[#allocation9_spill] sm:$0xff] }
 0x50c   :  { %7469 = vrcp.f32 %v3294_v26  ;;  %v3516_v18 = vmul.f32 %v7466_v39, %v9650_v7  ;;  %v7468_v44 = vpop.eup %7467  ;;  %v3579_v6 = vpack.c.bf16 %v3515_v13, %v3515_v13 }
 0x50d   :  { %v3903_v2 = vunpack.c.l.b16 %v3600_v48  ;;  %v3584_v49 = vpack.c.bf16 %v3520_v28, %v3520_v28  ;;  %7471 = vrcp.f32 %v3291_v23  ;;  %v3531_v11 = vmul.f32 %v7468_v44, %v9632_v41 }
 0x50e   :  { %v3580_v10 = vpack.c.bf16 %v3516_v18, %v3516_v18  ;;  %v3651_v5 = vunpack.c.l.b16 %v3579_v6 }
 0x50f   :  { %v3733_v50 = vunpack.c.l.b16 %v3584_v49  ;;  %v3909_v21 = vpack.c.b16 %v3903_v2, %v3902_v32  ;;  %v3595_v23 = vpack.c.bf16 %v3531_v11, %v3531_v11 }
 0x510   :  { %v3054_v45 = vpop.xlane.xlu0 %3053 }
 0x511   :  { %v3324_v27 = vpop.xlane.xlu1 %3323  ;;  %v3122_v0 = vsub.f32 %v9713_v37, %v3054_v45  ;;  %6766 = vmatmul.msk.bf16.gmra.mxu3 %vm2868_vm3, %v3909_v21  ;;  %v3739_v12 = vpack.c.b16 %v3733_v50, %v3732_v43  ;;  %v3652_v37 = vunpack.c.l.b16 %v3580_v10  ;;  %v3821_v32 = vunpack.c.l.b16 %v3595_v23 }
 0x512   :  { %7473 = vrcp.f32 %v3324_v27  ;;  %v7470_v51 = vpop.eup %7469 }
 0x513   :  { %v3247_v30 = vmul.f32 1.442695, %v3122_v0  ;;  %v3399_v16 = vpop.xlane.xlu2 %3398  ;;  %6758 = vmatmul.msk.bf16.gmra.mxu1 %vm2868_vm3, %v3739_v12  ;;  %v7472_v7 = vpop.eup %7471  ;;  %v3522_v19 = vmul.f32 %v7470_v51, %v11158_v36  ;;  %v3656_v28 = vpack.c.b16 %v3652_v37, %v3651_v5 }
 0x514   :  { %v3521_v17 = vmul.f32 %v7472_v7, %v11159_v3  ;;  %v11161_v7 = vld [vmem:[#allocation41_spill] sm:$0xff] }
 0x515   :  { %7475 = vpow2.f32 %v3247_v30  ;;  %v3586_v41 = vpack.c.bf16 %v3522_v19, %v3522_v19 }
 0x516   :  { %v3585_v13 = vpack.c.bf16 %v3521_v17, %v3521_v17 }
 0x518   :  { %v7474_v8 = vpop.eup %7473  ;;  %v3402_v29 = vpop.xlane.xlu0 %3401  ;;  %v3734_v27 = vunpack.c.l.b16 %v3585_v13 }
 0x519   :  { %v3532_v52 = vmul.f32 %v7474_v8, %v11160_v15  ;;  %v3003_v25 = vpop.xlane.xlu1 %3002  ;;  %7477 = vrcp.f32 %v3402_v29 }
 0x51a   :  { %v3105_v48 = vsub.f32 %v9732_v57, %v3003_v25  ;;  %7479 = vrcp.f32 %v3399_v16  ;;  %v3735_v57 = vunpack.c.l.b16 %v3586_v41 }
 0x51b   :  { %v3596_v26 = vpack.c.bf16 %v3532_v52, %v3532_v52  ;;  %v10001_v39 = vpop.eup %7475  ;;  %6756 = vmatmul.msk.bf16.gmra.mxu0 %vm2868_vm3, %v3656_v28  ;;  %v3051_v49 = vpop.xlane.xlu2 %3050  ;;  %7481 = vrcp.f32 %v9976_v47  ;;  %v11162_v28 = vld [vmem:[#allocation42_spill] sm:$0xff] }
 0x51c   :  { %v3213_v2 = vmul.f32 1.442695, %v3105_v48  ;;  %v3121_v18 = vsub.f32 %v9741_v4, %v3051_v49  ;;  %v3436_v50 = vsel %vm2868_vm3, %v10001_v39, 0.0  ;;  %v3740_v47 = vpack.c.b16 %v3735_v57, %v3734_v27 }
 0x51d   :  { %v3822_v43 = vunpack.c.l.b16 %v3596_v26  ;;  %3437 = vadd.xlane.f32.xlu0 %v3436_v50 }
 0x51e   :  { %7483 = vpow2.f32 %v3213_v2  ;;  %v3245_v21 = vmul.f32 1.442695, %v3121_v18 }
 0x51f   :  { %v3826_v44 = vpack.c.b16 %v3822_v43, %v3821_v32  ;;  %v7478_v45 = vpop.eup %7477 }
 0x520   :  { %7485 = vpow2.f32 %v3245_v21  ;;  %v3357_v6 = vpop.xlane.xlu0 %3356  ;;  %v7480_v12 = vpop.eup %7479  ;;  %v3558_v4 = vmul.f32 %v7478_v45, %v9728_v34 }
 0x521   :  { %6764 = vmatmul.msk.bf16.gmra.mxu2 %vm2868_vm3, %v3826_v44  ;;  %v3354_v0 = vpop.xlane.xlu1 %3353  ;;  %v7482_v51 = vpop.eup %7481  ;;  %v3557_v30 = vmul.f32 %v7480_v12, %v9718_v40 }
 0x522   :  { %7487 = vrcp.f32 %v3354_v0  ;;  %v3541_v5 = vmul.f32 %v7482_v51, %v11161_v7  ;;  %v3622_v19 = vpack.c.bf16 %v3558_v4, %v3558_v4 }
 0x523   :  { %v3405_v10 = vpop.xlane.xlu2 %3404  ;;  %6759 = vmatmul.msk.bf16.gmra.mxu1 %vm2868_vm3, %v3740_v47  ;;  %7489 = vrcp.f32 %v9984_v58  ;;  %v3621_v23 = vpack.c.bf16 %v3557_v30, %v3557_v30 }
 0x524   :  { %v10010_v11 = vpop.eup %7483  ;;  %v3605_v58 = vpack.c.bf16 %v3541_v5, %v3541_v5  ;;  %v4156_v15 = vunpack.c.l.b16 %v3622_v19 }
 0x525   :  { %v3385_v16 = vsel %vm2868_vm3, %v10010_v11, 0.0  ;;  %v4155_v25 = vunpack.c.l.b16 %v3621_v23 }
 0x526   :  { %3386 = vadd.xlane.f32.xlu1 %v3385_v16  ;;  %v10018_v36 = vpop.eup %7485  ;;  %v3985_v48 = vunpack.c.l.b16 %v3605_v58 }
 0x527   :  { %v3433_v34 = vsel %vm2868_vm3, %v10018_v36, 0.0  ;;  %v4163_v13 = vpack.c.b16 %v4156_v15, %v4155_v25 }
 0x528   :  { %v7488_v8 = vpop.eup %7487  ;;  %v3345_v37 = vpop.xlane.xlu0 %3344  ;;  %3434 = vadd.xlane.f32.xlu2 %v3433_v34 }
 0x529   :  { %v3342_v3 = vpop.xlane.xlu1 %3341  ;;  %v3542_v40 = vmul.f32 %v7488_v8, %v9749_v54  ;;  %v7490_v17 = vpop.eup %7489 }
 0x52a   :  { %7491 = vrcp.f32 %v3342_v3  ;;  %v3537_v26 = vmul.f32 %v7490_v17, %v11162_v28 }
 0x52b   :  { %v3606_v52 = vpack.c.bf16 %v3542_v40, %v3542_v40  ;;  %7493 = vrcp.f32 %v3405_v10  ;;  %v3006_v29 = vpop.xlane.xlu2 %3005 }
 0x52c   :  { %7495 = vrcp.f32 %v3357_v6  ;;  %v3106_v41 = vsub.f32 %v9787_v60, %v3006_v29  ;;  %v3601_v57 = vpack.c.bf16 %v3537_v26, %v3537_v26 }
 0x52d   :  { %v3986_v32 = vunpack.c.l.b16 %v3606_v52 }
 0x52e   :  { %v3215_v2 = vmul.f32 1.442695, %v3106_v41  ;;  %v3904_v6 = vunpack.c.l.b16 %v3601_v57 }
 0x52f   :  { %v3993_v49 = vpack.c.b16 %v3986_v32, %v3985_v48 }
 0x530   :  { %v7492_v43 = vpop.eup %7491  ;;  %7497 = vpow2.f32 %v3215_v2  ;;  %v3408_v54 = vpop.xlane.xlu0 %3407 }
 0x531   :  { %v3360_v18 = vpop.xlane.xlu1 %3359  ;;  %6777 = vmatmul.msk.bf16.vlgmr.msra.gmra.mxu2 %vm2868_vm3, %v4163_v13  ;;  %v7494_v50 = vpop.eup %7493  ;;  %v3538_v21 = vmul.f32 %v7492_v43, %v9769_v9  ;;  %7499 = vrcp.f32 %v3408_v54  ;;  %6769 = vmatmul.msk.bf16.vlgmr.msra.gmra.mxu0 %vm2868_vm3, %v3993_v49  ;;  %v11164_v49 = vld [vmem:[#allocation10_spill] sm:$0xff] }
 0x532   :  { %v7496_v60 = vpop.eup %7495  ;;  %7501 = vrcp.f32 %v3360_v18  ;;  %v3559_v27 = vmul.f32 %v7494_v50, %v9759_v61 }
 0x533   :  { %v3602_v44 = vpack.c.bf16 %v3538_v21, %v3538_v21  ;;  %v3411_v45 = vpop.xlane.xlu2 %3410  ;;  %7503 = vrcp.f32 %v3345_v37  ;;  %v3543_v0 = vmul.f32 %v7496_v60, %v9751_v35  ;;  %v11165_v60 = vld [vmem:[#allocation13_spill] sm:$0xff] }
 0x534   :  { %v3623_v30 = vpack.c.bf16 %v3559_v27, %v3559_v27 }
 0x535   :  { %v3905_v12 = vunpack.c.l.b16 %v3602_v44  ;;  %v3607_v61 = vpack.c.bf16 %v3543_v0, %v3543_v0 }
 0x536   :  { %v10030_v47 = vpop.eup %7497  ;;  %v4157_v37 = vunpack.c.l.b16 %v3623_v30 }
 0x537   :  { %v7500_v51 = vpop.eup %7499  ;;  %v3910_v4 = vpack.c.b16 %v3905_v12, %v3904_v6  ;;  %v3388_v9 = vsel %vm2868_vm3, %v10030_v47, 0.0  ;;  %v3987_v58 = vunpack.c.l.b16 %v3607_v61  ;;  %v11166_v6 = vld [vmem:[#allocation11_spill] sm:$0xff] }
 0x538   :  { %v7502_v10 = vpop.eup %7501  ;;  %v3560_v16 = vmul.f32 %v7500_v51, %v9795_v42  ;;  %v3363_v7 = vpop.xlane.xlu0 %3362  ;;  %3389 = vadd.xlane.f32.xlu2 %v3388_v9 }
 0x539   :  { %v3348_v5 = vpop.xlane.xlu1 %3347  ;;  %v3544_v19 = vmul.f32 %v7502_v10, %v9793_v33  ;;  %6767 = vmatmul.msk.bf16.gmra.mxu3 %vm2868_vm3, %v3910_v4  ;;  %v7504_v35 = vpop.eup %7503 }
 0x53a   :  { %v3624_v34 = vpack.c.bf16 %v3560_v16, %v3560_v16  ;;  %7505 = vrcp.f32 %v3348_v5  ;;  %v3539_v42 = vmul.f32 %v7504_v35, %v9773_v1  ;;  %v11163_v1 = vld [vmem:[#allocation7_spill] sm:$0xff]  ;;  %v11167_v5 = vld [vmem:[#allocation12_spill] sm:$0xff] }
 0x53b   :  { %v3608_v8 = vpack.c.bf16 %v3544_v19, %v3544_v19  ;;  %7507 = vrcp.f32 %v3411_v45  ;;  %v3300_v23 = vpop.xlane.xlu2 %3299 }
 0x53c   :  { %v4158_v3 = vunpack.c.l.b16 %v3624_v34  ;;  %7509 = vrcp.f32 %v3363_v7  ;;  %v3603_v41 = vpack.c.bf16 %v3539_v42, %v3539_v42  ;;  %v11168_v42 = vld [vmem:[#allocation49_spill] sm:$0xff] }
 0x53d   :  { %v3988_v40 = vunpack.c.l.b16 %v3608_v8 }
 0x53e   :  { %v4164_v17 = vpack.c.b16 %v4158_v3, %v4157_v37  ;;  %v3906_v2 = vunpack.c.l.b16 %v3603_v41 }
 0x53f   :  { %v3994_v15 = vpack.c.b16 %v3988_v40, %v3987_v58 }
 0x540   :  { %v7506_v52 = vpop.eup %7505  ;;  %v3414_v29 = vpop.xlane.xlu0 %3413 }
 0x541   :  { %v3366_v33 = vpop.xlane.xlu1 %3365  ;;  %6778 = vmatmul.msk.bf16.gmra.mxu2 %vm2868_vm3, %v4164_v17  ;;  %v7508_v25 = vpop.eup %7507  ;;  %v3540_v48 = vmul.f32 %v7506_v52, %v9811_v20  ;;  %7511 = vrcp.f32 %v3414_v29  ;;  %6770 = vmatmul.msk.bf16.gmra.mxu0 %vm2868_vm3, %v3994_v15  ;;  %v7202_v15 = vld [vmem:[%s10941_s4 + $0x8] sm:$0xff]  ;;  %v11169_v52 = vld [vmem:[#allocation51_spill] sm:$0xff] }
 0x542   :  { %v7510_v28 = vpop.eup %7509  ;;  %7513 = vrcp.f32 %v3366_v33  ;;  %v3561_v13 = vmul.f32 %v7508_v25, %v11163_v1  ;;  %4479 = vmatpush.bf16.msrb.mxu0 %v7202_v15 }
 0x543   :  { %v3604_v26 = vpack.c.bf16 %v3540_v48, %v3540_v48  ;;  %v3417_v32 = vpop.xlane.xlu2 %3416  ;;  %7515 = vrcp.f32 %v3300_v23  ;;  %v3545_v43 = vmul.f32 %v7510_v28, %v11164_v49  ;;  %v7201_v49 = vld [vmem:[%s10941_s4] sm:$0xff] }
 0x544   :  { %v3625_v21 = vpack.c.bf16 %v3561_v13, %v3561_v13 }
 0x545   :  { %v3907_v54 = vunpack.c.l.b16 %v3604_v26  ;;  %v3609_v27 = vpack.c.bf16 %v3545_v43, %v3545_v43 }
 0x546   :  { %v4159_v10 = vunpack.c.l.b16 %v3625_v21  ;;  %4480 = vmatpush.bf16.msrb.mxu0 %v7201_v49 }
 0x547   :  { %v7512_v18 = vpop.eup %7511  ;;  %v3911_v50 = vpack.c.b16 %v3907_v54, %v3906_v2  ;;  %v3989_v7 = vunpack.c.l.b16 %v3609_v27  ;;  %v11170_v54 = vld [vmem:[#allocation52_spill] sm:$0xff] }
 0x548   :  { %v7514_v57 = vpop.eup %7513  ;;  %v3562_v20 = vmul.f32 %v7512_v18, %v11165_v60  ;;  %v3369_v44 = vpop.xlane.xlu0 %3368 }
 0x549   :  { %v3297_v45 = vpop.xlane.xlu1 %3296  ;;  %v3546_v0 = vmul.f32 %v7514_v57, %v11166_v6  ;;  %6768 = vmatmul.msk.bf16.gmra.mxu3 %vm2868_vm3, %v3911_v50  ;;  %v7516_v12 = vpop.eup %7515 }
 0x54a   :  { %v3626_v51 = vpack.c.bf16 %v3562_v20, %v3562_v20  ;;  %7517 = vrcp.f32 %v3297_v45  ;;  %v3524_v61 = vmul.f32 %v7516_v12, %v11167_v5  ;;  %v11171_v12 = vld [vmem:[#allocation31_spill] sm:$0xff] }
 0x54b   :  { %v3610_v4 = vpack.c.bf16 %v3546_v0, %v3546_v0  ;;  %7519 = vrcp.f32 %v3417_v32  ;;  %v3057_v9 = vpop.xlane.xlu2 %3056 }
 0x54c   :  { %v4160_v30 = vunpack.c.l.b16 %v3626_v51  ;;  %v3123_v16 = vsub.f32 %v9856_v63, %v3057_v9  ;;  %7521 = vrcp.f32 %v3369_v44  ;;  %v3588_v58 = vpack.c.bf16 %v3524_v61, %v3524_v61 }
 0x54d   :  { %v3990_v19 = vunpack.c.l.b16 %v3610_v4 }
 0x54e   :  { %v3249_v35 = vmul.f32 1.442695, %v3123_v16  ;;  %v4165_v34 = vpack.c.b16 %v4160_v30, %v4159_v10  ;;  %v3737_v48 = vunpack.c.l.b16 %v3588_v58 }
 0x54f   :  { %v3995_v8 = vpack.c.b16 %v3990_v19, %v3989_v7 }
 0x550   :  { %v7518_v23 = vpop.eup %7517  ;;  %7523 = vpow2.f32 %v3249_v35  ;;  %v3420_v37 = vpop.xlane.xlu0 %3419 }
 0x551   :  { %6779 = vmatmul.msk.bf16.gmra.mxu2 %vm2868_vm3, %v4165_v34  ;;  %v7520_v3 = vpop.eup %7519  ;;  %v3523_v40 = vmul.f32 %v7518_v23, %v11168_v42  ;;  %7525 = vrcp.f32 %v3420_v37  ;;  %6771 = vmatmul.msk.bf16.gmra.mxu0 %vm2868_vm3, %v3995_v8 }
 0x552   :  { %v3563_v29 = vmul.f32 %v7520_v3, %v11169_v52  ;;  %v7522_v41 = vpop.eup %7521 }
 0x553   :  { %v3587_v63 = vpack.c.bf16 %v3523_v40, %v3523_v40  ;;  %v3012_v17 = vpop.xlane.xlu2 %3011 }
 0x554   :  { %v3372_v33 = vpop.xlane.xlu1 %3371  ;;  %v3108_v25 = vsub.f32 %v9883_v62, %v3012_v17  ;;  %v3627_v43 = vpack.c.bf16 %v3563_v29, %v3563_v29  ;;  %v3547_v62 = vmul.f32 %v7522_v41, %v11170_v54 }
 0x555   :  { %v3736_v28 = vunpack.c.l.b16 %v3587_v63  ;;  %7527 = vrcp.f32 %v3372_v33  ;;  %v11172_v63 = vld [vmem:[#allocation50_spill] sm:$0xff] }
 0x556   :  { %v10056_v26 = vpop.eup %7523  ;;  %v3219_v32 = vmul.f32 1.442695, %v3108_v25  ;;  %v4161_v44 = vunpack.c.l.b16 %v3627_v43  ;;  %v3611_v45 = vpack.c.bf16 %v3547_v62, %v3547_v62 }
 0x557   :  { %v7526_v1 = vpop.eup %7525  ;;  %v3741_v13 = vpack.c.b16 %v3737_v48, %v3736_v28  ;;  %v3439_v2 = vsel %vm2868_vm3, %v10056_v26, 0.0 }
 0x558   :  { %v3564_v18 = vmul.f32 %v7526_v1, %v9876_v14  ;;  %7529 = vpow2.f32 %v3219_v32  ;;  %v3060_v50 = vpop.xlane.xlu0 %3059  ;;  %3440 = vadd.xlane.f32.xlu0 %v3439_v2  ;;  %v3991_v30 = vunpack.c.l.b16 %v3611_v45 }
 0x559   :  { %v3124_v57 = vsub.f32 %v9901_v46, %v3060_v50  ;;  %6760 = vmatmul.msk.bf16.gmra.mxu1 %vm2868_vm3, %v3741_v13 }
 0x55a   :  { %v3628_v21 = vpack.c.bf16 %v3564_v18, %v3564_v18 }
 0x55b   :  { %v7528_v60 = vpop.eup %7527  ;;  %v3251_v20 = vmul.f32 1.442695, %v3124_v57  ;;  %v3375_v7 = vpop.xlane.xlu2 %3374 }
 0x55c   :  { %v4162_v27 = vunpack.c.l.b16 %v3628_v21  ;;  %v3548_v6 = vmul.f32 %v7528_v60, %v9889_v38  ;;  %v3009_v0 = vpop.xlane.xlu1 %3008 }
 0x55d   :  { %7531 = vpow2.f32 %v3251_v20  ;;  %v3107_v14 = vsub.f32 %v11171_v12, %v3009_v0 }
 0x55e   :  { %v10069_v51 = vpop.eup %7529  ;;  %v3612_v4 = vpack.c.bf16 %v3548_v6, %v3548_v6  ;;  %v4166_v9 = vpack.c.b16 %v4162_v27, %v4161_v44 }
 0x55f   :  { %v3217_v46 = vmul.f32 1.442695, %v3107_v14  ;;  %v3394_v10 = vsel %vm2868_vm3, %v10069_v51, 0.0 }
 0x560   :  { %v3992_v16 = vunpack.c.l.b16 %v3612_v4  ;;  %v3423_v5 = vpop.xlane.xlu0 %3422  ;;  %3395 = vadd.xlane.f32.xlu0 %v3394_v10 }
 0x561   :  { %6780 = vmatmul.msk.bf16.gmra.mxu2 %vm2868_vm3, %v4166_v9  ;;  %7533 = vpow2.f32 %v3217_v46 }
 0x562   :  { %7535 = vrcp.f32 %v3423_v5  ;;  %v3996_v38 = vpack.c.b16 %v3992_v16, %v3991_v30 }
 0x563   :  { %v10074_v61 = vpop.eup %7531  ;;  %7537 = vrcp.f32 %v3375_v7  ;;  %v3432_v29 = vpop.xlane.xlu2 %3431 }
 0x564   :  { %v3426_v19 = vpop.xlane.xlu1 %3425  ;;  %6772 = vmatmul.msk.bf16.gmra.mxu0 %vm2868_vm3, %v3996_v38  ;;  %v3442_v35 = vsel %vm2868_vm3, %v10074_v61, 0.0 }
 0x565   :  { %7539 = vrcp.f32 %v3426_v19  ;;  %3443 = vadd.xlane.f32.xlu1 %v3442_v35 }
 0x567   :  { %v10079_v34 = vpop.eup %7533 }
 0x568   :  { %v7536_v8 = vpop.eup %7535  ;;  %v3378_v23 = vpop.xlane.xlu0 %3377  ;;  %v3391_v3 = vsel %vm2868_vm3, %v10079_v34, 0.0 }
 0x569   :  { %v3702_v37 = vpop.f32.mrf.mxu0  ;;  %v7538_v58 = vpop.eup %7537  ;;  %v3565_v42 = vmul.f32 %v7536_v8, %v9924_v55  ;;  %7541 = vrcp.f32 %v3378_v23  ;;  %3392 = vadd.xlane.f32.xlu2 %v3391_v3 }
 0x56a   :  { %v3549_v17 = vmul.f32 %v7538_v58, %v11172_v63  ;;  %v4317_v48 = vpack.c.bf16 %v3702_v37, %v3702_v37 }
 0x56b   :  { %v7540_v40 = vpop.eup %7539  ;;  %v3629_v15 = vpack.c.bf16 %v3565_v42, %v3565_v42 }
 0x56c   :  { %v3566_v52 = vmul.f32 %v7540_v40, %v9917_v59  ;;  %v3429_v33 = vpop.xlane.xlu1 %3428  ;;  %v3613_v28 = vpack.c.bf16 %v3549_v17, %v3549_v17  ;;  %v4413_v18 = vunpack.c.l.b16 %v4317_v48  ;;  %v10101_v17 = vpop.f32.mrf.mxu2 }
 0x56d   :  { %7543 = vrcp.f32 %v3429_v33  ;;  %v4240_v32 = vunpack.c.l.b16 %v3629_v15 }
 0x56e   :  { %v3630_v25 = vpack.c.bf16 %v3566_v52, %v3566_v52  ;;  %7545 = vrcp.f32 %v3432_v29  ;;  %v4070_v50 = vunpack.c.l.b16 %v3613_v28 }
 0x56f   :  { %v7542_v41 = vpop.eup %7541 }
 0x570   :  { %v4241_v1 = vunpack.c.l.b16 %v3630_v25  ;;  %v3550_v55 = vmul.f32 %v7542_v41, %v9951_v56  ;;  %v3381_v13 = vpop.xlane.xlu0 %3380 }
 0x571   :  { %v3704_v2 = vpop.f32.mrf.mxu0  ;;  %7547 = vrcp.f32 %v3381_v13 }
 0x572   :  { %v4318_v49 = vpack.c.bf16 %v3704_v2, %v3704_v2  ;;  %v4248_v43 = vpack.c.b16 %v4241_v1, %v4240_v32  ;;  %v3614_v54 = vpack.c.bf16 %v3550_v55, %v3550_v55  ;;  %v7206_v55 = vld [vmem:[%s10941_s4 + $0x28] sm:$0xff] }
 0x573   :  { %v7544_v62 = vpop.eup %7543  ;;  %4729 = vmatpush.bf16.msrb.mxu2 %v7206_v55 }
 0x574   :  { %v4414_v59 = vunpack.c.l.b16 %v4318_v49  ;;  %v4071_v57 = vunpack.c.l.b16 %v3614_v54  ;;  %6781 = vmatmul.msk.bf16.vlgmr.msra.gmra.mxu3 %vm2868_vm3, %v4248_v43  ;;  %v3384_v21 = vpop.xlane.xlu1 %3383  ;;  %v7546_v60 = vpop.eup %7545  ;;  %v3567_v56 = vmul.f32 %v7544_v62, %v9957_v53  ;;  %v7205_v54 = vld [vmem:[%s10941_s4 + $0x20] sm:$0xff] }
 0x575   :  { %7549 = vrcp.f32 %v3384_v21  ;;  %v3568_v45 = vmul.f32 %v7546_v60, %v9933_v31  ;;  %v10105_v25 = vpop.f32.mrf.mxu2 }
 0x576   :  { %v4429_v20 = vpack.c.b16 %v4414_v59, %v4413_v18  ;;  %v4078_v44 = vpack.c.b16 %v4071_v57, %v4070_v50  ;;  %v3631_v0 = vpack.c.bf16 %v3567_v56, %v3567_v56 }
 0x577   :  { %v7548_v6 = vpop.eup %7547  ;;  %v3632_v14 = vpack.c.bf16 %v3568_v45, %v3568_v45  ;;  %4730 = vmatpush.bf16.msrb.mxu2 %v7205_v54 }
 0x578   :  { %6793 = vmatmul.msk.bf16.vlgmr.msrb.gmra.mxu0 %vm2064_vm1, %v4429_v20  ;;  %6773 = vmatmul.msk.bf16.vlgmr.msra.gmra.mxu1 %vm2868_vm3, %v4078_v44  ;;  %v3551_v4 = vmul.f32 %v7548_v6, %v9960_v24  ;;  %v4242_v10 = vunpack.c.l.b16 %v3631_v0 }
 0x579   :  { %v3707_v27 = vpop.f32.mrf.mxu0  ;;  %v4243_v53 = vunpack.c.l.b16 %v3632_v14 }
 0x57a   :  { %v4319_v16 = vpack.c.bf16 %v3707_v27, %v3707_v27  ;;  %v3615_v7 = vpack.c.bf16 %v3551_v4, %v3551_v4 }
 0x57b   :  { %v7550_v12 = vpop.eup %7549  ;;  %v4249_v19 = vpack.c.b16 %v4243_v53, %v4242_v10 }
 0x57c   :  { %v3552_v9 = vmul.f32 %v7550_v12, %v9971_v22  ;;  %v3957_v46 = vpop.f32.mrf.mxu3  ;;  %v4415_v35 = vunpack.c.l.b16 %v4319_v16  ;;  %v4072_v37 = vunpack.c.l.b16 %v3615_v7 }
 0x57d   :  { %v4341_v8 = vpack.c.bf16 %v3957_v46, %v3957_v46  ;;  %v10114_v59 = vpop.f32.mrf.mxu2 }
 0x57e   :  { %v3616_v30 = vpack.c.bf16 %v3552_v9, %v3552_v9 }
 0x57f   :  { %v10095_v42 = vunpack.c.l.b16 %v4341_v8 }
 0x580   :  { %v4073_v31 = vunpack.c.l.b16 %v3616_v30  ;;  %v3787_v13 = vpop.f32.mrf.mxu1 }
 0x581   :  { %v3709_v5 = vpop.f32.mrf.mxu0 }
 0x582   :  { %v4320_v38 = vpack.c.bf16 %v3709_v5, %v3709_v5  ;;  %v4079_v22 = vpack.c.b16 %v4073_v31, %v4072_v37 }
 0x584   :  { %v4416_v23 = vunpack.c.l.b16 %v4320_v38  ;;  %v3959_v3 = vpop.f32.mrf.mxu3  ;;  %6782 = vmatmul.msk.bf16.gmra.mxu3 %vm2868_vm3, %v4249_v19 }
 0x585   :  { %v4342_v58 = vpack.c.bf16 %v3959_v3, %v3959_v3  ;;  %v10124_v10 = vpop.f32.mrf.mxu2 }
 0x586   :  { %v4430_v24 = vpack.c.b16 %v4416_v23, %v4415_v35 }
 0x587   :  { %v10097_v40 = vunpack.c.l.b16 %v4342_v58 }
 0x588   :  { %6794 = vmatmul.msk.bf16.gmra.mxu0 %vm2064_vm1, %v4430_v24  ;;  %6774 = vmatmul.msk.bf16.gmra.mxu1 %vm2868_vm3, %v4079_v22  ;;  %v3789_v6 = vpop.f32.mrf.mxu1 }
 0x589   :  { %v3712_v63 = vpop.f32.mrf.mxu0  ;;  %v4558_v15 = vpack.c.b16 %v10097_v40, %v10095_v42  ;;  %v4326_v31 = vpack.c.bf16 %v3789_v6, %v3789_v6 }
 0x58a   :  { %v4321_v52 = vpack.c.bf16 %v3712_v63, %v3712_v63 }
 0x58b   :  { %v4422_v23 = vunpack.c.l.b16 %v4326_v31  ;;  %v7208_v31 = vld [vmem:[%s10941_s4 + $0x38] sm:$0xff] }
 0x58c   :  { %v4417_v41 = vunpack.c.l.b16 %v4321_v52  ;;  %4854 = vmatpush.bf16.msrb.mxu3 %v7208_v31 }
 0x58d   :  { %v10128_v35 = vpop.f32.mrf.mxu2 }
 0x590   :  { %v3438_v48 = vpop.xlane.xlu0 %3437  ;;  %v3792_v38 = vpop.f32.mrf.mxu1 }
 0x591   :  { %v3714_v29 = vpop.f32.mrf.mxu0  ;;  %7551 = vrcp.f32 %v3438_v48 }
 0x592   :  { %v4322_v33 = vpack.c.bf16 %v3714_v29, %v3714_v29 }
 0x594   :  { %v4418_v28 = vunpack.c.l.b16 %v4322_v33  ;;  %v3962_v32 = vpop.f32.mrf.mxu3 }
 0x595   :  { %v4343_v49 = vpack.c.bf16 %v3962_v32, %v3962_v32  ;;  %v10133_v32 = vpop.f32.mrf.mxu2 }
 0x596   :  { %v4431_v1 = vpack.c.b16 %v4418_v28, %v4417_v41 }
 0x597   :  { %v7552_v62 = vpop.eup %7551  ;;  %v10117_v21 = vunpack.c.l.b16 %v4343_v49 }
 0x598   :  { %6795 = vmatmul.msk.bf16.gmra.mxu0 %vm2064_vm1, %v4431_v1  ;;  %v3570_v57 = vmul.f32 %v7552_v62, %v10001_v39  ;;  %v3794_v29 = vpop.f32.mrf.mxu1 }
 0x599   :  { %v3717_v2 = vpop.f32.mrf.mxu0  ;;  %v3387_v12 = vpop.xlane.xlu1 %3386 }
 0x59a   :  { %v4323_v60 = vpack.c.bf16 %v3717_v2, %v3717_v2  ;;  %v3634_v0 = vpack.c.bf16 %v3570_v57, %v3570_v57 }
 0x59b   :  { %v3435_v43 = vpop.xlane.xlu2 %3434 }
 0x59c   :  { %v3964_v18 = vpop.f32.mrf.mxu3  ;;  %7553 = vrcp.f32 %v3435_v43  ;;  %v4419_v14 = vunpack.c.l.b16 %v4323_v60  ;;  %v4245_v30 = vunpack.c.l.b16 %v3634_v0  ;;  %v4327_v43 = vpack.c.bf16 %v3792_v38, %v3792_v38 }
 0x59d   :  { %v4344_v50 = vpack.c.bf16 %v3964_v18, %v3964_v18  ;;  %7555 = vrcp.f32 %v3387_v12 }
 0x59f   :  { %v10119_v20 = vunpack.c.l.b16 %v4344_v50  ;;  %v4423_v50 = vunpack.c.l.b16 %v4327_v43 }
 0x5a0   :  { %v3797_v54 = vpop.f32.mrf.mxu1 }
 0x5a1   :  { %v3719_v44 = vpop.f32.mrf.mxu0  ;;  %v4559_v56 = vpack.c.b16 %v10119_v20, %v10117_v21  ;;  %v4329_v38 = vpack.c.bf16 %v3797_v54, %v3797_v54 }
 0x5a2   :  { %v4324_v45 = vpack.c.bf16 %v3719_v44, %v3719_v44  ;;  %v7554_v27 = vpop.eup %7553 }
 0x5a3   :  { %v3569_v4 = vmul.f32 %v7554_v27, %v10018_v36  ;;  %v7556_v5 = vpop.eup %7555  ;;  %v4325_v36 = vpack.c.bf16 %v3787_v13, %v3787_v13 }
 0x5a4   :  { %v4420_v9 = vunpack.c.l.b16 %v4324_v45  ;;  %v3553_v8 = vmul.f32 %v7556_v5, %v10010_v11  ;;  %v10137_v18 = vpop.f32.mrf.mxu2 }
 0x5a5   :  { %v3633_v46 = vpack.c.bf16 %v3569_v4, %v3569_v4  ;;  %v4421_v3 = vunpack.c.l.b16 %v4325_v36  ;;  %v4425_v36 = vunpack.c.l.b16 %v4329_v38 }
 0x5a6   :  { %v4432_v39 = vpack.c.b16 %v4420_v9, %v4419_v14  ;;  %v3617_v24 = vpack.c.bf16 %v3553_v8, %v3553_v8 }
 0x5a7   :  { %v4244_v16 = vunpack.c.l.b16 %v3633_v46  ;;  %v4433_v22 = vpack.c.b16 %v4422_v23, %v4421_v3 }
 0x5a8   :  { %6796 = vmatmul.msk.bf16.gmra.mxu0 %vm2064_vm1, %v4432_v39  ;;  %v4074_v41 = vunpack.c.l.b16 %v3617_v24  ;;  %v3799_v39 = vpop.f32.mrf.mxu1 }
 0x5a9   :  { %v4250_v53 = vpack.c.b16 %v4245_v30, %v4244_v16 }
 0x5ab   :  { %6783 = vmatmul.msk.bf16.gmra.mxu3 %vm2868_vm3, %v4250_v53  ;;  %v3390_v7 = vpop.xlane.xlu2 %3389 }
 0x5ac   :  { %7557 = vrcp.f32 %v3390_v7  ;;  %v10146_v30 = vpop.f32.mrf.mxu2  ;;  %v4330_v7 = vpack.c.bf16 %v3799_v39, %v3799_v39 }
 0x5ae   :  { %v4042_v19 = vpop.f32.mrf.mxu0 }
 0x5af   :  { %v4349_v52 = vpack.c.bf16 %v4042_v19, %v4042_v19  ;;  %v4426_v19 = vunpack.c.l.b16 %v4330_v7 }
 0x5b1   :  { %v4663_v1 = vunpack.c.l.b16 %v4349_v52  ;;  %v4435_v23 = vpack.c.b16 %v4426_v19, %v4425_v36  ;;  %v7207_v52 = vld [vmem:[%s10941_s4 + $0x30] sm:$0xff] }
 0x5b2   :  { %v7558_v37 = vpop.eup %7557  ;;  %4855 = vmatpush.bf16.msrb.mxu3 %v7207_v52 }
 0x5b3   :  { %v3554_v58 = vmul.f32 %v7558_v37, %v10030_v47  ;;  %v4328_v47 = vpack.c.bf16 %v3794_v29, %v3794_v29 }
 0x5b4   :  { %v10152_v37 = vpop.f32.mrf.mxu2 }
 0x5b5   :  { %v3618_v63 = vpack.c.bf16 %v3554_v58, %v3554_v58  ;;  %v4424_v62 = vunpack.c.l.b16 %v4328_v47 }
 0x5b6   :  { %v4044_v33 = vpop.f32.mrf.mxu0 }
 0x5b7   :  { %v4075_v48 = vunpack.c.l.b16 %v3618_v63  ;;  %v4350_v28 = vpack.c.bf16 %v4044_v33, %v4044_v33  ;;  %v4434_v44 = vpack.c.b16 %v4424_v62, %v4423_v50  ;;  %v7204_v63 = vld [vmem:[%s10941_s4 + $0x18] sm:$0xff] }
 0x5b8   :  { %6797 = vmatmul.msk.bf16.gmra.mxu0 %vm2064_vm1, %v4433_v22  ;;  %4604 = vmatpush.bf16.msrb.mxu1 %v7204_v63  ;;  %v4333_v63 = vpack.c.bf16 %v10101_v17, %v10101_v17  ;;  %v4336_v17 = vpack.c.bf16 %v10124_v10, %v10124_v10 }
 0x5b9   :  { %v4664_v11 = vunpack.c.l.b16 %v4350_v28  ;;  %v4080_v55 = vpack.c.b16 %v4075_v48, %v4074_v41  ;;  %v7203_v28 = vld [vmem:[%s10941_s4 + $0x10] sm:$0xff]  ;;  %s6325_s4 = sshll.u32 %s10946_s9, 4  ;;  %s6326_s4 = int_to_ptr.hbm [resolvable:$true] %s6325_s4 }
 0x5bb   :  { %v4679_v13 = vpack.c.b16 %v4664_v11, %v4663_v1  ;;  %6775 = vmatmul.msk.bf16.gmra.mxu1 %vm2868_vm3, %v4080_v55 }
 0x5bc   :  { %v3967_v2 = vpop.f32.mrf.mxu3  ;;  %4605 = vmatpush.bf16.msrb.mxu1 %v7203_v28 }
 0x5bd   :  { %6825 = vmatmul.msk.bf16.vlgmr.msrb.gmra.mxu2 %vm2064_vm1, %v4679_v13  ;;  %v4345_v57 = vpack.c.bf16 %v3967_v2, %v3967_v2 }
 0x5be   :  { %v4047_v49 = vpop.f32.mrf.mxu0 }
 0x5bf   :  { %v4351_v45 = vpack.c.bf16 %v4047_v49, %v4047_v49  ;;  %v10139_v0 = vunpack.c.l.b16 %v4345_v57  ;;  %v4214_v49 = vpop.f32.mrf.mxu2 }
 0x5c1   :  { %v4665_v4 = vunpack.c.l.b16 %v4351_v45 }
 0x5c4   :  { %v3969_v60 = vpop.f32.mrf.mxu3 }
 0x5c5   :  { %v4346_v27 = vpack.c.bf16 %v3969_v60, %v3969_v60 }
 0x5c6   :  { %v4049_v6 = vpop.f32.mrf.mxu0 }
 0x5c7   :  { %v10141_v12 = vunpack.c.l.b16 %v4346_v27  ;;  %v4352_v14 = vpack.c.bf16 %v4049_v6, %v4049_v6 }
 0x5c8   :  { %6798 = vmatmul.msk.bf16.gmra.mxu0 %vm2064_vm1, %v4434_v44 }
 0x5c9   :  { %v4560_v9 = vpack.c.b16 %v10141_v12, %v10139_v0  ;;  %v4666_v46 = vunpack.c.l.b16 %v4352_v14 }
 0x5cb   :  { %v4680_v16 = vpack.c.b16 %v4666_v46, %v4665_v4  ;;  %v3441_v53 = vpop.xlane.xlu0 %3440 }
 0x5cc   :  { %7559 = vrcp.f32 %v3441_v53 }
 0x5cd   :  { %6826 = vmatmul.msk.bf16.gmra.mxu2 %vm2064_vm1, %v4680_v16 }
 0x5ce   :  { %v4052_v5 = vpop.f32.mrf.mxu0 }
 0x5cf   :  { %v4353_v3 = vpack.c.bf16 %v4052_v5, %v4052_v5 }
 0x5d1   :  { %v4667_v41 = vunpack.c.l.b16 %v4353_v3  ;;  %v4365_v3 = vpack.c.bf16 %v10152_v37, %v10152_v37 }
 0x5d2   :  { %v7560_v33 = vpop.eup %7559 }
 0x5d3   :  { %v3396_v8 = vpop.xlane.xlu0 %3395  ;;  %v3571_v11 = vmul.f32 %v7560_v33, %v10056_v26  ;;  %v4788_v52 = vunpack.c.l.b16 %v4365_v3 }
 0x5d4   :  { %7561 = vrcp.f32 %v3396_v8 }
 0x5d5   :  { %v3635_v62 = vpack.c.bf16 %v3571_v11, %v3571_v11 }
 0x5d6   :  { %v3802_v24 = vpop.f32.mrf.mxu1  ;;  %v4054_v58 = vpop.f32.mrf.mxu0 }
 0x5d7   :  { %v4354_v22 = vpack.c.bf16 %v4054_v58, %v4054_v58  ;;  %v4331_v43 = vpack.c.bf16 %v3802_v24, %v3802_v24  ;;  %v4246_v6 = vunpack.c.l.b16 %v3635_v62  ;;  %v4334_v24 = vpack.c.bf16 %v10105_v25, %v10105_v25 }
 0x5d8   :  { %6799 = vmatmul.msk.bf16.gmra.mxu0 %vm2064_vm1, %v4435_v23  ;;  %v3444_v29 = vpop.xlane.xlu1 %3443  ;;  %v4366_v23 = vpack.c.bf16 %v4214_v49, %v4214_v49 }
 0x5d9   :  { %v4668_v48 = vunpack.c.l.b16 %v4354_v22  ;;  %7563 = vrcp.f32 %v3444_v29  ;;  %v4427_v27 = vunpack.c.l.b16 %v4331_v43  ;;  %v4539_v33 = vunpack.c.l.b16 %v4334_v24 }
 0x5da   :  { %v7562_v13 = vpop.eup %7561  ;;  %v4789_v58 = vunpack.c.l.b16 %v4366_v23  ;;  %v4340_v24 = vpack.c.bf16 %v10146_v30, %v10146_v30 }
 0x5db   :  { %v4681_v1 = vpack.c.b16 %v4668_v48, %v4667_v41  ;;  %v3556_v50 = vmul.f32 %v7562_v13, %v10069_v51  ;;  %v4538_v48 = vunpack.c.l.b16 %v4333_v63 }
 0x5dc   :  { %v3393_v55 = vpop.xlane.xlu2 %3392  ;;  %v4804_v41 = vpack.c.b16 %v4789_v58, %v4788_v52  ;;  %v4545_v52 = vunpack.c.l.b16 %v4340_v24 }
 0x5dd   :  { %6827 = vmatmul.msk.bf16.gmra.mxu2 %vm2064_vm1, %v4681_v1  ;;  %7565 = vrcp.f32 %v3393_v55  ;;  %v3620_v14 = vpack.c.bf16 %v3556_v50, %v3556_v50  ;;  %v4554_v28 = vpack.c.b16 %v4539_v33, %v4538_v48 }
 0x5de   :  { %v3804_v2 = vpop.f32.mrf.mxu1 }
 0x5df   :  { %v7564_v47 = vpop.eup %7563  ;;  %v4332_v54 = vpack.c.bf16 %v3804_v2, %v3804_v2  ;;  %v4077_v7 = vunpack.c.l.b16 %v3620_v14 }
 0x5e0   :  { %v3572_v57 = vmul.f32 %v7564_v47, %v10074_v61  ;;  %v4217_v61 = vpop.f32.mrf.mxu2 }
 0x5e1   :  { %v4428_v60 = vunpack.c.l.b16 %v4332_v54  ;;  %v4057_v44 = vpop.f32.mrf.mxu0  ;;  %v4367_v13 = vpack.c.bf16 %v4217_v61, %v4217_v61  ;;  %v4335_v54 = vpack.c.bf16 %v10114_v59, %v10114_v59  ;;  %v4337_v61 = vpack.c.bf16 %v10128_v35, %v10128_v35 }
 0x5e2   :  { %v3636_v45 = vpack.c.bf16 %v3572_v57, %v3572_v57  ;;  %v4355_v51 = vpack.c.bf16 %v4057_v44, %v4057_v44  ;;  %v4541_v57 = vunpack.c.l.b16 %v4336_v17  ;;  %v4339_v35 = vpack.c.bf16 %v10137_v18, %v10137_v18 }
 0x5e3   :  { %v7566_v26 = vpop.eup %7565  ;;  %v4436_v39 = vpack.c.b16 %v4428_v60, %v4427_v27  ;;  %v4790_v62 = vunpack.c.l.b16 %v4367_v13 }
 0x5e4   :  { %v4247_v4 = vunpack.c.l.b16 %v3636_v45  ;;  %v3555_v46 = vmul.f32 %v7566_v26, %v10079_v34  ;;  %v4669_v36 = vunpack.c.l.b16 %v4355_v51  ;;  %v4540_v45 = vunpack.c.l.b16 %v4335_v54  ;;  %v10187_v26 = vpop.f32.mrf.mxu3 }
 0x5e5   :  { %v4544_v33 = vunpack.c.l.b16 %v4339_v35 }
 0x5e6   :  { %v3619_v16 = vpack.c.bf16 %v3555_v46, %v3555_v46  ;;  %v4251_v53 = vpack.c.b16 %v4247_v4, %v4246_v6  ;;  %v4555_v27 = vpack.c.b16 %v4541_v57, %v4540_v45 }
 0x5e8   :  { %6800 = vmatmul.msk.bf16.gmra.mxu0 %vm2064_vm1, %v4436_v39  ;;  %v4076_v5 = vunpack.c.l.b16 %v3619_v16  ;;  %6784 = vmatmul.msk.bf16.gmra.mxu3 %vm2868_vm3, %v4251_v53  ;;  %v4219_v22 = vpop.f32.mrf.mxu2  ;;  %v4338_v53 = vpack.c.bf16 %v10133_v32, %v10133_v32 }
 0x5e9   :  { %v4059_v38 = vpop.f32.mrf.mxu0  ;;  %v4368_v55 = vpack.c.bf16 %v4219_v22, %v4219_v22 }
 0x5ea   :  { %v4356_v31 = vpack.c.bf16 %v4059_v38, %v4059_v38  ;;  %v4081_v19 = vpack.c.b16 %v4077_v7, %v4076_v5 }
 0x5eb   :  { %v4791_v49 = vunpack.c.l.b16 %v4368_v55 }
 0x5ec   :  { %v4670_v8 = vunpack.c.l.b16 %v4356_v31  ;;  %6776 = vmatmul.msk.bf16.gmra.mxu1 %vm2868_vm3, %v4081_v19  ;;  %v3974_v51 = vpop.f32.mrf.mxu3  ;;  %v4543_v31 = vunpack.c.l.b16 %v4338_v53 }
 0x5ed   :  { %v4805_v60 = vpack.c.b16 %v4791_v49, %v4790_v62 }
 0x5ee   :  { %v4682_v34 = vpack.c.b16 %v4670_v8, %v4669_v36  ;;  %v4542_v36 = vunpack.c.l.b16 %v4337_v61 }
 0x5f0   :  { %6828 = vmatmul.msk.bf16.gmra.mxu2 %vm2064_vm1, %v4682_v34  ;;  %v4222_v37 = vpop.f32.mrf.mxu2  ;;  %v4556_v8 = vpack.c.b16 %v4543_v31, %v4542_v36 }
 0x5f1   :  { %v4369_v59 = vpack.c.bf16 %v4222_v37, %v4222_v37 }
 0x5f3   :  { %v4792_v38 = vunpack.c.l.b16 %v4369_v59 }
 0x5f5   :  { %v4127_v29 = vpop.f32.mrf.mxu1  ;;  %v4482_v59 = vpop.f32.mrf.mxu0 }
 0x5f6   :  { %v4357_v1 = vpack.c.bf16 %v4127_v29, %v4127_v29 }
 0x5f7   :  { %v4297_v34 = vpop.f32.mrf.mxu3 }
 0x5f8   :  { %6841 = vmatmul.msk.bf16.vlgmr.msrb.gmra.mxu3 %vm2064_vm1, %v4804_v41  ;;  %v4671_v2 = vunpack.c.l.b16 %v4357_v1  ;;  %v4224_v44 = vpop.f32.mrf.mxu2  ;;  %v4557_v41 = vpack.c.b16 %v4545_v52, %v4544_v33  ;;  %v4373_v1 = vpack.c.bf16 %v4297_v34, %v4297_v34  ;;  %v7600_v52 = vld [vmem:[%s10937_s0] sm:$0xff] }
 0x5f9   :  { %v4370_v14 = vpack.c.bf16 %v4224_v44, %v4224_v44 }
 0x5fb   :  { %v4793_v7 = vunpack.c.l.b16 %v4370_v14 }
 0x5fc   :  { %6809 = vmatmul.msk.bf16.vlgmr.msrb.gmra.mxu1 %vm2064_vm1, %v4554_v28 }
 0x5fd   :  { %v4129_v11 = vpop.f32.mrf.mxu1  ;;  %v4806_v19 = vpack.c.b16 %v4793_v7, %v4792_v38  ;;  %v4484_v38 = vpop.f32.mrf.mxu0 }
 0x5fe   :  { %v4358_v25 = vpack.c.bf16 %v4129_v11, %v4129_v11  ;;  %v4796_v11 = vunpack.c.l.b16 %v4373_v1 }
 0x5ff   :  { %v4299_v63 = vpop.f32.mrf.mxu3 }
 0x600   :  { %v4672_v47 = vunpack.c.l.b16 %v4358_v25  ;;  %v4227_v16 = vpop.f32.mrf.mxu2  ;;  %v4374_v48 = vpack.c.bf16 %v4299_v63, %v4299_v63 }
 0x601   :  { %v4371_v3 = vpack.c.bf16 %v4227_v16, %v4227_v16 }
 0x602   :  { %v4683_v43 = vpack.c.b16 %v4672_v47, %v4671_v2  ;;  %v4797_v37 = vunpack.c.l.b16 %v4374_v48 }
 0x603   :  { %v4794_v22 = vunpack.c.l.b16 %v4371_v3 }
 0x604   :  { %6829 = vmatmul.msk.bf16.gmra.mxu2 %vm2064_vm1, %v4683_v43  ;;  %v4808_v30 = vpack.c.b16 %v4797_v37, %v4796_v11 }
 0x605   :  { %v4132_v50 = vpop.f32.mrf.mxu1  ;;  %v4487_v35 = vpop.f32.mrf.mxu0 }
 0x606   :  { %v4359_v6 = vpack.c.bf16 %v4132_v50, %v4132_v50 }
 0x607   :  { %v4302_v28 = vpop.f32.mrf.mxu3 }
 0x608   :  { %6842 = vmatmul.msk.bf16.gmra.mxu3 %vm2064_vm1, %v4805_v60  ;;  %v4673_v46 = vunpack.c.l.b16 %v4359_v6  ;;  %v4229_v23 = vpop.f32.mrf.mxu2  ;;  %v4375_v2 = vpack.c.bf16 %v4302_v28, %v4302_v28  ;;  %v4348_v6 = vpack.c.bf16 %v3974_v51, %v3974_v51 }
 0x609   :  { %v4372_v32 = vpack.c.bf16 %v4229_v23, %v4229_v23 }
 0x60a   :  { %v4798_v50 = vunpack.c.l.b16 %v4375_v2  ;;  %v4553_v14 = vunpack.c.l.b16 %v4348_v6 }
 0x60b   :  { %v4795_v58 = vunpack.c.l.b16 %v4372_v32  ;;  %v10227_v32 = vld [vmem:[%s10945_s8] sm:$0x3f] }
 0x60c   :  { %6810 = vmatmul.msk.bf16.gmra.mxu1 %vm2064_vm1, %v4555_v27  ;;  %v10230_v3 = vperm.slane %v10227_v32, 4 }
 0x60d   :  { %v4134_v10 = vpop.f32.mrf.mxu1  ;;  %v4807_v29 = vpack.c.b16 %v4795_v58, %v4794_v22 }
 0x60e   :  { %v4360_v4 = vpack.c.bf16 %v4134_v10, %v4134_v10  ;;  %v4347_v10 = vpack.c.bf16 %v10187_v26, %v10187_v26 }
 0x60f   :  { %v4304_v18 = vpop.f32.mrf.mxu3 }
 0x610   :  { %v4674_v39 = vunpack.c.l.b16 %v4360_v4  ;;  %v4376_v25 = vpack.c.bf16 %v4304_v18, %v4304_v18  ;;  %v4552_v21 = vunpack.c.l.b16 %v4347_v10  ;;  %v4489_v18 = vpop.f32.mrf.mxu0 }
 0x612   :  { %v4684_v5 = vpack.c.b16 %v4674_v39, %v4673_v46  ;;  %v4799_v43 = vunpack.c.l.b16 %v4376_v25 }
 0x614   :  { %6830 = vmatmul.msk.bf16.gmra.mxu2 %vm2064_vm1, %v4684_v5  ;;  %v4809_v60 = vpack.c.b16 %v4799_v43, %v4798_v50 }
 0x618   :  { %6843 = vmatmul.msk.bf16.gmra.mxu3 %vm2064_vm1, %v4806_v19 }
 0x61c   :  { %6811 = vmatmul.msk.bf16.gmra.mxu1 %vm2064_vm1, %v4556_v8 }
 0x628   :  { %6844 = vmatmul.msk.bf16.gmra.mxu3 %vm2064_vm1, %v4807_v29 }
 0x62c   :  { %6812 = vmatmul.msk.bf16.gmra.mxu1 %vm2064_vm1, %v4557_v41 }
 0x62e   :  { %v4307_v17 = vpop.f32.mrf.mxu3 }
 0x62f   :  { %v4377_v40 = vpack.c.bf16 %v4307_v17, %v4307_v17 }
 0x631   :  { %v4800_v45 = vunpack.c.l.b16 %v4377_v40 }
 0x636   :  { %v4309_v44 = vpop.f32.mrf.mxu3 }
 0x637   :  { %v4378_v42 = vpack.c.bf16 %v4309_v44, %v4309_v44 }
 0x638   :  { %6845 = vmatmul.msk.bf16.gmra.mxu3 %vm2064_vm1, %v4808_v30  ;;  %v4137_v55 = vpop.f32.mrf.mxu1  ;;  %v7601_v30 = vld [vmem:[%s10937_s0 + $0x8] sm:$0xff] }
 0x639   :  { %v4361_v13 = vpack.c.bf16 %v4137_v55, %v4137_v55 }
 0x63b   :  { %v4675_v54 = vunpack.c.l.b16 %v4361_v13 }
 0x63c   :  { %6813 = vmatmul.msk.bf16.gmra.mxu1 %vm2064_vm1, %v4558_v15  ;;  %v4801_v15 = vunpack.c.l.b16 %v4378_v42 }
 0x63e   :  { %v4810_v27 = vpack.c.b16 %v4801_v15, %v4800_v45 }
 0x640   :  { %v4139_v47 = vpop.f32.mrf.mxu1  ;;  %v4732_v39 = vpop.f32.mrf.mxu2 }
 0x641   :  { %v4362_v49 = vpack.c.bf16 %v4139_v47, %v4139_v47 }
 0x643   :  { %v4676_v62 = vunpack.c.l.b16 %v4362_v49 }
 0x645   :  { %v4685_v57 = vpack.c.b16 %v4676_v62, %v4675_v54  ;;  %v7602_v54 = vld [vmem:[%s10937_s0 + $0x10] sm:$0xff] }
 0x647   :  { %6831 = vmatmul.msk.bf16.gmra.mxu2 %vm2064_vm1, %v4685_v57 }
 0x648   :  { %6846 = vmatmul.msk.bf16.gmra.mxu3 %vm2064_vm1, %v4809_v60  ;;  %v4734_v8 = vpop.f32.mrf.mxu2  ;;  %v4492_v60 = vpop.f32.mrf.mxu0 }
 0x64c   :  { %6814 = vmatmul.msk.bf16.gmra.mxu1 %vm2064_vm1, %v4559_v56  ;;  %v4561_v56 = vpack.c.b16 %v4553_v14, %v4552_v21 }
 0x650   :  { %v4737_v48 = vpop.f32.mrf.mxu2 }
 0x658   :  { %6847 = vmatmul.msk.bf16.gmra.mxu3 %vm2064_vm1, %v4810_v27  ;;  %v4739_v47 = vpop.f32.mrf.mxu2  ;;  %v7603_v27 = vld [vmem:[%s10937_s0 + $0x18] sm:$0xff] }
 0x65c   :  { %6815 = vmatmul.msk.bf16.gmra.mxu1 %vm2064_vm1, %v4560_v9 }
 0x660   :  { %v4742_v40 = vpop.f32.mrf.mxu2 }
 0x669   :  { %v4142_v20 = vpop.f32.mrf.mxu1 }
 0x66a   :  { %v4363_v46 = vpack.c.bf16 %v4142_v20, %v4142_v20  ;;  %v4494_v20 = vpop.f32.mrf.mxu0 }
 0x66b   :  { %v4312_v4 = vpop.f32.mrf.mxu3 }
 0x66c   :  { %6816 = vmatmul.msk.bf16.gmra.mxu1 %vm2064_vm1, %v4561_v56  ;;  %v4379_v53 = vpack.c.bf16 %v4312_v4, %v4312_v4  ;;  %v4677_v12 = vunpack.c.l.b16 %v4363_v46  ;;  %v7604_v46 = vld [vmem:[%s10937_s0 + $0x20] sm:$0xff] }
 0x66e   :  { %v4802_v51 = vunpack.c.l.b16 %v4379_v53 }
 0x671   :  { %v4144_v16 = vpop.f32.mrf.mxu1 }
 0x672   :  { %v4364_v7 = vpack.c.bf16 %v4144_v16, %v4144_v16  ;;  %v4744_v16 = vpop.f32.mrf.mxu2 }
 0x673   :  { %v4314_v0 = vpop.f32.mrf.mxu3 }
 0x674   :  { %v4678_v9 = vunpack.c.l.b16 %v4364_v7  ;;  %v4380_v5 = vpack.c.bf16 %v4314_v0, %v4314_v0 }
 0x676   :  { %v4686_v61 = vpack.c.b16 %v4678_v9, %v4677_v12  ;;  %v4803_v26 = vunpack.c.l.b16 %v4380_v5  ;;  %v4497_v9 = vpop.f32.mrf.mxu0 }
 0x678   :  { %v4811_v31 = vpack.c.b16 %v4803_v26, %v4802_v51  ;;  %6832 = vmatmul.msk.bf16.gmra.mxu2 %vm2064_vm1, %v4686_v61  ;;  %v7605_v61 = vld [vmem:[%s10937_s0 + $0x28] sm:$0xff] }
 0x679   :  { %v4607_v19 = vpop.f32.mrf.mxu1 }
 0x67a   :  { %v4897_v36 = vadd.f32 %v4607_v19, %v4482_v59  ;;  %6848 = vmatmul.msk.bf16.gmra.mxu3 %vm2064_vm1, %v4811_v31 }
 0x67b   :  { %v4857_v23 = vpop.f32.mrf.mxu3 }
 0x67c   :  { %v4898_v34 = vadd.f32 %v4897_v36, %v4732_v39 }
 0x67e   :  { %v4899_v24 = vadd.f32 %v4898_v34, %v4857_v23  ;;  %v7606_v23 = vld [vmem:[%s10937_s0 + $0x30] sm:$0xff] }
 0x680   :  { %v4946_v58 = vadd.f32 %v10230_v3, %v4899_v24 }
 0x681   :  { %v4609_v22 = vpop.f32.mrf.mxu1 }
 0x682   :  { %v4900_v63 = vadd.f32 %v4609_v22, %v4484_v38  ;;  %v10236_v29 = vadd.f32 %v7600_v52, %v4946_v58  ;;  %v4747_v38 = vpop.f32.mrf.mxu2  ;;  %v4499_v58 = vpop.f32.mrf.mxu0 }
 0x683   :  { %v4859_v33 = vpop.f32.mrf.mxu3 }
 0x684   :  { %v4901_v41 = vadd.f32 %v4900_v63, %v4734_v8  ;;  %4978 = vadd.xlane.f32.xlu1 %v10236_v29 }
 0x686   :  { %v4902_v28 = vadd.f32 %v4901_v41, %v4859_v33 }
 0x688   :  { %v4947_v1 = vadd.f32 %v10230_v3, %v4902_v28 }
 0x689   :  { %v4612_v37 = vpop.f32.mrf.mxu1 }
 0x68a   :  { %v4903_v11 = vadd.f32 %v4612_v37, %v4487_v35  ;;  %v10243_v55 = vadd.f32 %v7601_v30, %v4947_v1  ;;  %v4749_v35 = vpop.f32.mrf.mxu2  ;;  %v4502_v52 = vpop.f32.mrf.mxu0  ;;  %v11173_v37 = vld [vmem:[#allocation5_spill] sm:$0xff] }
 0x68b   :  { %v4862_v25 = vpop.f32.mrf.mxu3 }
 0x68c   :  { %v4904_v13 = vadd.f32 %v4903_v11, %v4737_v48  ;;  %4980 = vadd.xlane.f32.xlu2 %v10243_v55 }
 0x68e   :  { %v4905_v2 = vadd.f32 %v4904_v13, %v4862_v25 }
 0x690   :  { %v4948_v17 = vadd.f32 %v10230_v3, %v4905_v2 }
 0x691   :  { %v4614_v49 = vpop.f32.mrf.mxu1 }
 0x692   :  { %v4906_v43 = vadd.f32 %v4614_v49, %v4489_v18  ;;  %v10250_v62 = vadd.f32 %v7602_v54, %v4948_v17  ;;  %v4752_v41 = vpop.f32.mrf.mxu2  ;;  %v4504_v25 = vpop.f32.mrf.mxu0 }
 0x693   :  { %v4864_v50 = vpop.f32.mrf.mxu3 }
 0x694   :  { %v4907_v57 = vadd.f32 %v4906_v43, %v4739_v47  ;;  %4982 = vadd.xlane.f32.xlu0 %v10250_v62 }
 0x696   :  { %v4908_v44 = vadd.f32 %v4907_v57, %v4864_v50 }
 0x698   :  { %v4949_v42 = vadd.f32 %v10230_v3, %v4908_v44 }
 0x699   :  { %v4617_v15 = vpop.f32.mrf.mxu1 }
 0x69a   :  { %v4909_v45 = vadd.f32 %v4617_v15, %v4492_v60  ;;  %v10257_v6 = vadd.f32 %v7603_v27, %v4949_v42  ;;  %v4754_v17 = vpop.f32.mrf.mxu2 }
 0x69b   :  { %v4867_v10 = vpop.f32.mrf.mxu3 }
 0x69c   :  { %v4910_v14 = vadd.f32 %v4909_v45, %v4742_v40  ;;  %4984 = vadd.xlane.f32.xlu1 %v10257_v6  ;;  %v7607_v45 = vld [vmem:[%s10937_s0 + $0x38] sm:$0xff] }
 0x69e   :  { %v4911_v21 = vadd.f32 %v4910_v14, %v4867_v10  ;;  %v4507_v10 = vpop.f32.mrf.mxu0 }
 0x6a0   :  { %v4950_v56 = vadd.f32 %v10230_v3, %v4911_v21 }
 0x6a1   :  { %v4619_v4 = vpop.f32.mrf.mxu1 }
 0x6a2   :  { %v4912_v59 = vadd.f32 %v4619_v4, %v4494_v20  ;;  %v10264_v39 = vadd.f32 %v7604_v46, %v4950_v56  ;;  %v4757_v4 = vpop.f32.mrf.mxu2 }
 0x6a3   :  { %v4869_v53 = vpop.f32.mrf.mxu3 }
 0x6a4   :  { %v4913_v7 = vadd.f32 %v4912_v59, %v4744_v16  ;;  %4986 = vadd.xlane.f32.xlu2 %v10264_v39 }
 0x6a6   :  { %v4914_v0 = vadd.f32 %v4913_v7, %v4869_v53 }
 0x6a8   :  { %v4951_v12 = vadd.f32 %v10230_v3, %v4914_v0  ;;  %v7608_v0 = vld [vmem:[%s10937_s0 + $0x40] sm:$0xff] }
 0x6a9   :  { %v4622_v5 = vpop.f32.mrf.mxu1 }
 0x6aa   :  { %v4915_v51 = vadd.f32 %v4622_v5, %v4497_v9  ;;  %v10271_v26 = vadd.f32 %v7605_v61, %v4951_v12  ;;  %v4509_v5 = vpop.f32.mrf.mxu0 }
 0x6ab   :  { %v4872_v19 = vpop.f32.mrf.mxu3 }
 0x6ac   :  { %v4916_v31 = vadd.f32 %v4915_v51, %v4747_v38  ;;  %4988 = vadd.xlane.f32.xlu0 %v10271_v26 }
 0x6ae   :  { %v4917_v36 = vadd.f32 %v4916_v31, %v4872_v19 }
 0x6b0   :  { %v4952_v8 = vadd.f32 %v10230_v3, %v4917_v36  ;;  %v4759_v36 = vpop.f32.mrf.mxu2 }
 0x6b1   :  { %v4624_v24 = vpop.f32.mrf.mxu1 }
 0x6b2   :  { %v10278_v34 = vadd.f32 %v7606_v23, %v4952_v8  ;;  %v4918_v33 = vadd.f32 %v4624_v24, %v4499_v58  ;;  %v7609_v58 = vld [vmem:[%s10937_s0 + $0x48] sm:$0xff] }
 0x6b3   :  { %v4874_v22 = vpop.f32.mrf.mxu3 }
 0x6b4   :  { %4990 = vadd.xlane.f32.xlu0 %v10278_v34  ;;  %v4919_v1 = vadd.f32 %v4918_v33, %v4749_v35 }
 0x6b6   :  { %v4920_v13 = vadd.f32 %v4919_v1, %v4874_v22 }
 0x6b8   :  { %v4953_v43 = vadd.f32 %v10230_v3, %v4920_v13 }
 0x6b9   :  { %v4627_v63 = vpop.f32.mrf.mxu1 }
 0x6ba   :  { %v4921_v2 = vadd.f32 %v4627_v63, %v4502_v52  ;;  %v10297_v27 = vadd.f32 %v7607_v45, %v4953_v43 }
 0x6bb   :  { %v4877_v48 = vpop.f32.mrf.mxu3 }
 0x6bc   :  { %v4922_v54 = vadd.f32 %v4921_v2, %v4752_v41  ;;  %v7610_v2 = vld [vmem:[%s10937_s0 + $0x50] sm:$0xff] }
 0x6be   :  { %v4923_v42 = vadd.f32 %v4922_v54, %v4877_v48 }
 0x6c0   :  { %v4954_v21 = vadd.f32 %v10230_v3, %v4923_v42 }
 0x6c1   :  { %v4629_v30 = vpop.f32.mrf.mxu1 }
 0x6c2   :  { %v4924_v40 = vadd.f32 %v4629_v30, %v4504_v25  ;;  %v10310_v12 = vadd.f32 %v7608_v0, %v4954_v21 }
 0x6c3   :  { %v4879_v57 = vpop.f32.mrf.mxu3 }
 0x6c4   :  { %v4925_v20 = vadd.f32 %v4924_v40, %v4754_v17 }
 0x6c6   :  { %v4926_v16 = vadd.f32 %v4925_v20, %v4879_v57 }
 0x6c8   :  { %v4955_v61 = vadd.f32 %v10230_v3, %v4926_v16 }
 0x6c9   :  { %v4632_v44 = vpop.f32.mrf.mxu1 }
 0x6ca   :  { %v4927_v53 = vadd.f32 %v4632_v44, %v4507_v10  ;;  %v10323_v35 = vadd.f32 %v7609_v58, %v4955_v61  ;;  %v7611_v10 = vld [vmem:[%s10937_s0 + $0x58] sm:$0xff]  ;;  %v7613_v58 = vld [vmem:[%s10937_s0 + $0x68] sm:$0xff] }
 0x6cb   :  { %v4882_v46 = vpop.f32.mrf.mxu3 }
 0x6cc   :  { %v4928_v38 = vadd.f32 %v4927_v53, %v4757_v4 }
 0x6ce   :  { %v4929_v8 = vadd.f32 %v4928_v38, %v4882_v46 }
 0x6d0   :  { %v4956_v33 = vadd.f32 %v10230_v3, %v4929_v8 }
 0x6d1   :  { %v4634_v9 = vpop.f32.mrf.mxu1 }
 0x6d2   :  { %v4930_v23 = vadd.f32 %v4634_v9, %v4509_v5  ;;  %v7612_v5 = vld [vmem:[%s10937_s0 + $0x60] sm:$0xff] }
 0x6d3   :  { %v4884_v22 = vpop.f32.mrf.mxu3 }
 0x6d4   :  { %v4931_v41 = vadd.f32 %v4930_v23, %v4759_v36 }
 0x6d6   :  { %v4932_v30 = vadd.f32 %v4931_v41, %v4884_v22  ;;  %v6963_v41 = vld [vmem:[%s10942_s5 + $0xe0] sm:$0xf] }
 0x6d8   :  { %v4957_v43 = vadd.f32 %v10230_v3, %v4932_v30  ;;  %v6965_v30 = vld [vmem:[%s10942_s5 + $0xf0] sm:$0xf0] }
 0x6d9   :  { %v4637_v63 = vpop.f32.mrf.mxu1 }
 0x6db   :  { %v4887_v17 = vpop.f32.mrf.mxu3 }
 0x6e1   :  { %v4639_v57 = vpop.f32.mrf.mxu1 }
 0x6e3   :  { %v4889_v16 = vpop.f32.mrf.mxu3 }
 0x6f7   :  { %v4979_v28 = vpop.xlane.xlu1 %4978 }
 0x6f8   :  { %v5010_v11 = vmul.f32 %v4979_v28, %v11173_v37  ;;  %v4512_v28 = vpop.f32.mrf.mxu0 }
 0x6f9   :  { %v4933_v25 = vadd.f32 %v4637_v63, %v4512_v28  ;;  %v7237_v28 = vld [vmem:[%s10942_s5 + $0xe4] sm:$0xf] }
 0x6fa   :  { %v10283_v18 = vsub.f32 %v10236_v29, %v5010_v11  ;;  %v4762_v11 = vpop.f32.mrf.mxu2 }
 0x6fb   :  { %v4934_v54 = vadd.f32 %v4933_v25, %v4762_v11  ;;  %v6971_v25 = vld [vmem:[%s10942_s5 + $0xe8] sm:$0xf] }
 0x6fc   :  { %v5042_v47 = vmul.f32 %v10283_v18, %v10283_v18 }
 0x6fd   :  { %v4935_v40 = vadd.f32 %v4934_v54, %v4887_v17  ;;  %v4892_v23 = vpop.f32.mrf.mxu3 }
 0x6fe   :  { %5058 = vadd.xlane.f32.xlu1 %v5042_v47  ;;  %v10336_v47 = vadd.f32 %v7610_v2, %v4956_v33  ;;  %v6968_v2 = vor.u32 %v7237_v28, %v6965_v30  ;;  %v6923_v28 = vld [vmem:[%s10942_s5 + $0x88] sm:$0xf] }
 0x6ff   :  { %v4981_v49 = vpop.xlane.xlu2 %4980 }
 0x700   :  { %v5011_v50 = vmul.f32 %v4981_v49, %v11173_v37  ;;  %v4514_v42 = vpop.f32.mrf.mxu0  ;;  %5591 = vmatpush.bf16.msra.mxu1 %v6968_v2  ;;  %v6925_v2 = vld [vmem:[%s10942_s5 + $0x98] sm:$0xf0] }
 0x702   :  { %v10290_v60 = vsub.f32 %v10243_v55, %v5011_v50  ;;  %v4764_v21 = vpop.f32.mrf.mxu2 }
 0x704   :  { %v5043_v15 = vmul.f32 %v10290_v60, %v10290_v60 }
 0x706   :  { %5060 = vadd.xlane.f32.xlu2 %v5043_v15  ;;  %4992 = vadd.xlane.f32.xlu1 %v10297_v27  ;;  %v4936_v15 = vadd.f32 %v4639_v57, %v4514_v42  ;;  %v7235_v57 = vld [vmem:[%s10942_s5 + $0xcc] sm:$0xf0]  ;;  %v7233_v42 = vld [vmem:[%s10942_s5 + $0xc4] sm:$0xf] }
 0x707   :  { %v4983_v14 = vpop.xlane.xlu0 %4982 }
 0x708   :  { %v5012_v56 = vmul.f32 %v4983_v14, %v11173_v37  ;;  %v10349_v14 = vadd.f32 %v7611_v10, %v4957_v43  ;;  %v4937_v4 = vadd.f32 %v4936_v15, %v4764_v21  ;;  %v4517_v61 = vpop.f32.mrf.mxu0  ;;  %v6973_v43 = vld [vmem:[%s10942_s5 + $0xf8] sm:$0xf0]  ;;  %v6949_v15 = vld [vmem:[%s10942_s5 + $0xd0] sm:$0xf0]  ;;  %v7236_v10 = vld [vmem:[%s10942_s5 + $0xd4] sm:$0xf0] }
 0x709   :  { %v6952_v21 = vor.u32 %v7233_v42, %v6949_v15  ;;  %v6907_v42 = vld [vmem:[%s10942_s5 + $0x68] sm:$0xf] }
 0x70a   :  { %v10303_v59 = vsub.f32 %v10250_v62, %v5012_v56  ;;  %v4958_v56 = vadd.f32 %v10230_v3, %v4935_v40  ;;  %v4938_v0 = vadd.f32 %v4937_v4, %v4889_v16  ;;  %v4767_v38 = vpop.f32.mrf.mxu2  ;;  %v6957_v4 = vld [vmem:[%s10942_s5 + $0xd8] sm:$0xf0]  ;;  %v6931_v16 = vld [vmem:[%s10942_s5 + $0xa0] sm:$0xf] }
 0x70b   :  { %5592 = vmatpush.bf16.msra.mxu1 %v6952_v21  ;;  %v6909_v21 = vld [vmem:[%s10942_s5 + $0x78] sm:$0xf0] }
 0x70c   :  { %v5044_v7 = vmul.f32 %v10303_v59, %v10303_v59  ;;  %v4959_v36 = vadd.f32 %v10230_v3, %v4938_v0  ;;  %v7229_v0 = vld [vmem:[%s10942_s5 + $0xa4] sm:$0xf] }
 0x70e   :  { %5062 = vadd.xlane.f32.xlu2 %v5044_v7  ;;  %4994 = vadd.xlane.f32.xlu1 %v10310_v12  ;;  %v4642_v7 = vpop.f32.mrf.mxu1  ;;  %v10369_v22 = vadd.f32 %v7613_v58, %v4959_v36  ;;  %v6915_v58 = vld [vmem:[%s10942_s5 + $0x80] sm:$0xf] }
 0x70f   :  { %v4985_v51 = vpop.xlane.xlu1 %4984 }
 0x710   :  { %v5013_v31 = vmul.f32 %v4985_v51, %v11173_v37  ;;  %v10362_v51 = vadd.f32 %v7612_v5, %v4958_v56  ;;  %v7234_v56 = vld [vmem:[%s10942_s5 + $0xcc] sm:$0xf]  ;;  %v6933_v5 = vld [vmem:[%s10942_s5 + $0xb0] sm:$0xf0] }
 0x712   :  { %v10316_v19 = vsub.f32 %v10257_v6, %v5013_v31  ;;  %v4939_v31 = vadd.f32 %v4642_v7, %v4517_v61  ;;  %v7231_v7 = vld [vmem:[%s10942_s5 + $0xac] sm:$0xf0]  ;;  %v6939_v61 = vld [vmem:[%s10942_s5 + $0xa8] sm:$0xf] }
 0x714   :  { %v5045_v24 = vmul.f32 %v10316_v19, %v10316_v19  ;;  %v4940_v8 = vadd.f32 %v4939_v31, %v4767_v38  ;;  %v7232_v38 = vld [vmem:[%s10942_s5 + $0xb4] sm:$0xf0]  ;;  %v6936_v31 = vor.u32 %v7229_v0, %v6933_v5  ;;  %v6891_v0 = vld [vmem:[%s10942_s5 + $0x48] sm:$0xf] }
 0x715   :  { %v6940_v36 = vor.u32 %v7232_v38, %v6939_v61  ;;  %v7218_v38 = vld [vmem:[%s10942_s5 + $0x4c] sm:$0xf] }
 0x716   :  { %5064 = vadd.xlane.f32.xlu0 %v5045_v24  ;;  %4996 = vadd.xlane.f32.xlu2 %v10323_v35  ;;  %v4941_v24 = vadd.f32 %v4940_v8, %v4892_v23  ;;  %v7230_v8 = vld [vmem:[%s10942_s5 + $0xac] sm:$0xf]  ;;  %v6941_v23 = vld [vmem:[%s10942_s5 + $0xb8] sm:$0xf0] }
 0x717   :  { %v4987_v52 = vpop.xlane.xlu2 %4986  ;;  %5593 = vmatpush.bf16.msra.mxu1 %v6936_v31  ;;  %v6893_v31 = vld [vmem:[%s10942_s5 + $0x58] sm:$0xf0] }
 0x718   :  { %v5014_v48 = vmul.f32 %v4987_v52, %v11173_v37  ;;  %v4960_v63 = vadd.f32 %v10230_v3, %v4941_v24  ;;  %v7614_v52 = vld [vmem:[%s10937_s0 + $0x70] sm:$0xff]  ;;  %v6944_v24 = vor.u32 %v7230_v8, %v6941_v23  ;;  %v6896_v8 = vor.u32 %v7218_v38, %v6893_v31  ;;  %v4519_v31 = vpop.f32.mrf.mxu0 }
 0x71a   :  { %v10329_v1 = vsub.f32 %v10264_v39, %v5014_v48  ;;  %v10376_v33 = vadd.f32 %v7614_v52, %v4960_v63  ;;  %v7239_v48 = vld [vmem:[%s10942_s5 + $0xec] sm:$0xf0]  ;;  %v7225_v52 = vld [vmem:[%s10942_s5 + $0x84] sm:$0xf] }
 0x71b   :  { %v6964_v11 = vor.u32 %v7239_v48, %v6963_v41  ;;  %v7227_v63 = vld [vmem:[%s10942_s5 + $0x8c] sm:$0xf0]  ;;  %v6917_v48 = vld [vmem:[%s10942_s5 + $0x90] sm:$0xf0] }
 0x71c   :  { %v5046_v13 = vmul.f32 %v10329_v1, %v10329_v1  ;;  %v6916_v41 = vor.u32 %v7227_v63, %v6915_v58  ;;  %v6920_v30 = vor.u32 %v7225_v52, %v6917_v48  ;;  %v7215_v58 = vld [vmem:[%s10942_s5 + $0x2c] sm:$0xf0]  ;;  %v7213_v63 = vld [vmem:[%s10942_s5 + $0x24] sm:$0xf]  ;;  %v6875_v48 = vld [vmem:[%s10942_s5 + $0x28] sm:$0xf] }
 0x71d   :  { %5542 = vmatpush.bf16.msra.mxu0 %v6964_v11  ;;  %v7228_v11 = vld [vmem:[%s10942_s5 + $0x94] sm:$0xf0] }
 0x71e   :  { %5066 = vadd.xlane.f32.xlu0 %v5046_v13  ;;  %4998 = vadd.xlane.f32.xlu2 %v10336_v47  ;;  %v7240_v13 = vld [vmem:[%s10942_s5 + $0xf4] sm:$0xf0] }
 0x71f   :  { %v4989_v49 = vpop.xlane.xlu0 %4988  ;;  %v6972_v17 = vor.u32 %v7240_v13, %v6971_v25  ;;  %v6924_v25 = vor.u32 %v7228_v11, %v6923_v28  ;;  %v7226_v13 = vld [vmem:[%s10942_s5 + $0x8c] sm:$0xf]  ;;  %5594 = vmatpush.bf16.msra.mxu1 %v6920_v30  ;;  %v7216_v28 = vld [vmem:[%s10942_s5 + $0x34] sm:$0xf0] }
 0x720   :  { %v5015_v50 = vmul.f32 %v4989_v49, %v11173_v37  ;;  %v7238_v49 = vld [vmem:[%s10942_s5 + $0xec] sm:$0xf] }
 0x721   :  { %v6976_v54 = vor.u32 %v7238_v49, %v6973_v43  ;;  %5640 = vmatpush.bf16.msra.mxu2 %v6972_v17  ;;  %v6928_v17 = vor.u32 %v7226_v13, %v6925_v2  ;;  %v6899_v49 = vld [vmem:[%s10942_s5 + $0x60] sm:$0xf]  ;;  %v7223_v43 = vld [vmem:[%s10942_s5 + $0x6c] sm:$0xf0]  ;;  %v7214_v13 = vld [vmem:[%s10942_s5 + $0x2c] sm:$0xf] }
 0x722   :  { %v10342_v44 = vsub.f32 %v10271_v26, %v5015_v50  ;;  %v6947_v50 = vld [vmem:[%s10942_s5 + $0xc0] sm:$0xf]  ;;  %v6877_v2 = vld [vmem:[%s10942_s5 + $0x38] sm:$0xf0] }
 0x723   :  { %5689 = vmatpush.bf16.msra.mxu3 %v6976_v54  ;;  %v6948_v40 = vor.u32 %v7235_v57, %v6947_v50  ;;  %v7221_v54 = vld [vmem:[%s10942_s5 + $0x64] sm:$0xf]  ;;  %v6900_v50 = vor.u32 %v7223_v43, %v6899_v49  ;;  %v6901_v57 = vld [vmem:[%s10942_s5 + $0x70] sm:$0xf0]  ;;  %v6851_v49 = vld [vmem:[%s10942_s5] sm:$0xf] }
 0x724   :  { %v5047_v45 = vmul.f32 %v10342_v44, %v10342_v44  ;;  %v6904_v15 = vor.u32 %v7221_v54, %v6901_v57  ;;  %v7211_v43 = vld [vmem:[%s10942_s5 + $0xc] sm:$0xf0]  ;;  %v7209_v54 = vld [vmem:[%s10942_s5 + $0x4] sm:$0xf]  ;;  %v6853_v57 = vld [vmem:[%s10942_s5 + $0x10] sm:$0xf0] }
 0x725   :  { %5543 = vmatpush.bf16.msra.mxu0 %v6948_v40  ;;  %v7224_v40 = vld [vmem:[%s10942_s5 + $0x74] sm:$0xf0] }
 0x726   :  { %5068 = vadd.xlane.f32.xlu1 %v5047_v45  ;;  %5000 = vadd.xlane.f32.xlu0 %v10349_v14  ;;  %v6955_v45 = vld [vmem:[%s10942_s5 + $0xc8] sm:$0xf] }
 0x727   :  { %v4991_v20 = vpop.xlane.xlu0 %4990  ;;  %5595 = vmatpush.bf16.msra.mxu1 %v6904_v15  ;;  %v6856_v15 = vor.u32 %v7209_v54, %v6853_v57 }
 0x728   :  { %v5016_v46 = vmul.f32 %v4991_v20, %v11173_v37  ;;  %v6956_v20 = vor.u32 %v7236_v10, %v6955_v45  ;;  %v6908_v45 = vor.u32 %v7224_v40, %v6907_v42  ;;  %v7222_v10 = vld [vmem:[%s10942_s5 + $0x6c] sm:$0xf]  ;;  %v6859_v42 = vld [vmem:[%s10942_s5 + $0x8] sm:$0xf]  ;;  %v7212_v40 = vld [vmem:[%s10942_s5 + $0x14] sm:$0xf0] }
 0x72a   :  { %v10355_v53 = vsub.f32 %v10278_v34, %v5016_v46  ;;  %v6960_v46 = vor.u32 %v7234_v56, %v6957_v4  ;;  %5641 = vmatpush.bf16.msra.mxu2 %v6956_v20  ;;  %v6912_v20 = vor.u32 %v7222_v10, %v6909_v21  ;;  %v6883_v56 = vld [vmem:[%s10942_s5 + $0x40] sm:$0xf]  ;;  %v7219_v4 = vld [vmem:[%s10942_s5 + $0x4c] sm:$0xf0]  ;;  %v7210_v10 = vld [vmem:[%s10942_s5 + $0xc] sm:$0xf] }
 0x72b   :  { %v6861_v21 = vld [vmem:[%s10942_s5 + $0x18] sm:$0xf0] }
 0x72c   :  { %v5048_v9 = vmul.f32 %v10355_v53, %v10355_v53  ;;  %5690 = vmatpush.bf16.msra.mxu3 %v6960_v46  ;;  %v7217_v46 = vld [vmem:[%s10942_s5 + $0x44] sm:$0xf] }
 0x72e   :  { %5070 = vadd.xlane.f32.xlu1 %v5048_v9  ;;  %5002 = vadd.xlane.f32.xlu0 %v10362_v51  ;;  %v6932_v9 = vor.u32 %v7231_v7, %v6931_v16  ;;  %v6884_v16 = vor.u32 %v7219_v4, %v6883_v56  ;;  %v6885_v7 = vld [vmem:[%s10942_s5 + $0x50] sm:$0xf0]  ;;  %v6864_v4 = vor.u32 %v7210_v10, %v6861_v21 }
 0x72f   :  { %5642 = vmatpush.bf16.msra.mxu2 %v6940_v36  ;;  %v6888_v5 = vor.u32 %v7217_v46, %v6885_v7 }
 0x730   :  { %5544 = vmatpush.bf16.msra.mxu0 %v6932_v9  ;;  %5691 = vmatpush.bf16.msra.mxu3 %v6944_v24  ;;  %v7220_v9 = vld [vmem:[%s10942_s5 + $0x54] sm:$0xf0]  ;;  %v6867_v24 = vld [vmem:[%s10942_s5 + $0x20] sm:$0xf] }
 0x731   :  { %v6892_v61 = vor.u32 %v7220_v9, %v6891_v0  ;;  %5596 = vmatpush.bf16.msra.mxu1 %v6888_v5  ;;  %v6868_v52 = vor.u32 %v7215_v58, %v6867_v24  ;;  %v4644_v5 = vpop.f32.mrf.mxu1 }
 0x733   :  { %5643 = vmatpush.bf16.msra.mxu2 %v6924_v25  ;;  %v6876_v25 = vor.u32 %v7216_v28, %v6875_v48  ;;  %v4894_v28 = vpop.f32.mrf.mxu3 }
 0x734   :  { %5545 = vmatpush.bf16.msra.mxu0 %v6916_v41  ;;  %5692 = vmatpush.bf16.msra.mxu3 %v6928_v17  ;;  %v6869_v41 = vld [vmem:[%s10942_s5 + $0x30] sm:$0xf0]  ;;  %v6880_v17 = vor.u32 %v7214_v13, %v6877_v2 }
 0x735   :  { %v6872_v30 = vor.u32 %v7213_v63, %v6869_v41 }
 0x736   :  { %5004 = vadd.xlane.f32.xlu1 %v10369_v22 }
 0x737   :  { %5644 = vmatpush.bf16.msra.mxu2 %v6908_v45  ;;  %5597 = vmatpush.bf16.msra.mxu1 %v6872_v30  ;;  %v6860_v45 = vor.u32 %v7212_v40, %v6859_v42 }
 0x738   :  { %5546 = vmatpush.bf16.msra.mxu0 %v6900_v50  ;;  %5693 = vmatpush.bf16.msra.mxu3 %v6912_v20  ;;  %v6852_v50 = vor.u32 %v7211_v43, %v6851_v49 }
 0x73b   :  { %5645 = vmatpush.bf16.msra.mxu2 %v6892_v61  ;;  %5598 = vmatpush.bf16.msra.mxu1 %v6856_v15 }
 0x73c   :  { %5547 = vmatpush.bf16.msra.mxu0 %v6884_v16  ;;  %5694 = vmatpush.bf16.msra.mxu3 %v6896_v8 }
 0x73e   :  { %5006 = vadd.xlane.f32.xlu1 %v10376_v33 }
 0x73f   :  { %5646 = vmatpush.bf16.msra.mxu2 %v6876_v25 }
 0x740   :  { %5548 = vmatpush.bf16.msra.mxu0 %v6868_v52  ;;  %5695 = vmatpush.bf16.msra.mxu3 %v6880_v17 }
 0x743   :  { %5647 = vmatpush.bf16.msra.mxu2 %v6860_v45 }
 0x744   :  { %5549 = vmatpush.bf16.msra.mxu0 %v6852_v50  ;;  %5696 = vmatpush.bf16.msra.mxu3 %v6864_v4  ;;  %v10590_v4 = vperm.slane %v10227_v32, 2 }
 0x771   :  { %v5059_v36 = vpop.xlane.xlu1 %5058 }
 0x772   :  { %v5090_v23 = vmul.f32 %v5059_v36, %v11173_v37  ;;  %v4769_v36 = vpop.f32.mrf.mxu2 }
 0x774   :  { %v5106_v11 = vadd.f32 1e-05, %v5090_v23  ;;  %v4942_v23 = vadd.f32 %v4644_v5, %v4519_v31 }
 0x776   :  { %7567 = vrsqrt.f32 %v5106_v11  ;;  %v4943_v52 = vadd.f32 %v4942_v23, %v4769_v36  ;;  %vm5128_vm12 = vweird.f32 %v5106_v11  ;;  %v10604_v36 = vperm.slane %v10227_v32, 3 }
 0x778   :  { %v4944_v43 = vadd.f32 %v4943_v52, %v4894_v28 }
 0x779   :  { %v5061_v20 = vpop.xlane.xlu2 %5060  ;;  %v4993_v56 = vpop.xlane.xlu1 %4992 }
 0x77a   :  { %v5091_v46 = vmul.f32 %v5061_v20, %v11173_v37  ;;  %v5017_v16 = vmul.f32 %v4993_v56, %v11173_v37  ;;  %v4961_v45 = vadd.f32 %v10230_v3, %v4944_v43 }
 0x77c   :  { %v7568_v7 = vpop.eup %7567  ;;  %v5107_v0 = vadd.f32 1e-05, %v5091_v46  ;;  %v10575_v9 = vsub.f32 %v10297_v27, %v5017_v16 }
 0x77d   :  { %v5123_v61 = vmul.f32 %v7568_v7, %v5106_v11  ;;  %vm5129_vm11 = vweird.f32 %v7568_v7 }
 0x77e   :  { %7569 = vrsqrt.f32 %v5107_v0  ;;  %v5049_v38 = vmul.f32 %v10575_v9, %v10575_v9  ;;  %vm5130_vm13 = vmor %vm5128_vm12, %vm5129_vm11  ;;  %vm5138_vm15 = vweird.f32 %v5107_v0 }
 0x77f   :  { %v5124_v8 = vmul.f32 %v7568_v7, %v5123_v61  ;;  %v7615_v61 = vld [vmem:[%s10937_s0 + $0x78] sm:$0xff] }
 0x780   :  { %5072 = vadd.xlane.f32.xlu2 %v5049_v38  ;;  %v10601_v38 = vadd.f32 %v7615_v61, %v4961_v45 }
 0x781   :  { %v5125_v24 = vmul.f32 0.5, %v5124_v8  ;;  %v5063_v58 = vpop.xlane.xlu2 %5062  ;;  %v4995_v63 = vpop.xlane.xlu1 %4994 }
 0x782   :  { %v5092_v41 = vmul.f32 %v5063_v58, %v11173_v37  ;;  %v5018_v48 = vmul.f32 %v4995_v63, %v11173_v37 }
 0x783   :  { %v5126_v30 = vsub.f32 1.5, %v5125_v24 }
 0x784   :  { %v7570_v25 = vpop.eup %7569  ;;  %v5108_v13 = vadd.f32 1e-05, %v5092_v41  ;;  %v10582_v2 = vsub.f32 %v10310_v12, %v5018_v48 }
 0x785   :  { %v5127_v17 = vmul.f32 %v7568_v7, %v5126_v30  ;;  %v5133_v49 = vmul.f32 %v7570_v25, %v5107_v0  ;;  %vm5139_vm14 = vweird.f32 %v7570_v25 }
 0x786   :  { %7571 = vrsqrt.f32 %v5108_v13  ;;  %v5050_v54 = vmul.f32 %v10582_v2, %v10582_v2  ;;  %vm5140_vm0 = vmor %vm5138_vm15, %vm5139_vm14  ;;  %vm5148_vm2 = vweird.f32 %v5108_v13 }
 0x787   :  { %v5134_v50 = vmul.f32 %v7570_v25, %v5133_v49  ;;  %v5131_v57 = vsel %vm5130_vm13, %v7568_v7, %v5127_v17 }
 0x788   :  { %5074 = vadd.xlane.f32.xlu2 %v5050_v54  ;;  %v5282_v11 = vmul.f32 %v5131_v57, %v10283_v18 }
 0x789   :  { %v5135_v42 = vmul.f32 0.5, %v5134_v50  ;;  %v5065_v40 = vpop.xlane.xlu0 %5064  ;;  %v4997_v15 = vpop.xlane.xlu2 %4996 }
 0x78a   :  { %v5093_v10 = vmul.f32 %v5065_v40, %v11173_v37  ;;  %v5019_v21 = vmul.f32 %v4997_v15, %v11173_v37  ;;  %v5299_v8 = vmul.f32 %v10590_v4, %v5282_v11 }
 0x78b   :  { %v5136_v20 = vsub.f32 1.5, %v5135_v42 }
 0x78c   :  { %v7572_v56 = vpop.eup %7571  ;;  %v5109_v46 = vadd.f32 1e-05, %v5093_v10  ;;  %v10594_v16 = vsub.f32 %v10323_v35, %v5019_v21  ;;  %v5316_v32 = vadd.f32 %v10604_v36, %v5299_v8 }
 0x78d   :  { %v5137_v7 = vmul.f32 %v7570_v25, %v5136_v20  ;;  %v5143_v5 = vmul.f32 %v7572_v56, %v5108_v13  ;;  %vm5149_vm1 = vweird.f32 %v7572_v56 }
 0x78e   :  { %7573 = vrsqrt.f32 %v5109_v46  ;;  %v5051_v3 = vmul.f32 %v10594_v16, %v10594_v16  ;;  %vm5150_vm3 = vmor %vm5148_vm2, %vm5149_vm1  ;;  %vm5158_vm5 = vweird.f32 %v5109_v46 }
 0x78f   :  { %v5141_v31 = vsel %vm5140_vm0, %v7570_v25, %v5137_v7  ;;  %v5144_v18 = vmul.f32 %v7572_v56, %v5143_v5 }
 0x790   :  { %v5283_v0 = vmul.f32 %v5141_v31, %v10290_v60  ;;  %5076 = vadd.xlane.f32.xlu0 %v5051_v3  ;;  %5008 = vadd.xlane.f32.xlu2 %v10601_v38 }
 0x791   :  { %v5145_v23 = vmul.f32 0.5, %v5144_v18  ;;  %v5067_v24 = vpop.xlane.xlu0 %5066  ;;  %v4999_v58 = vpop.xlane.xlu2 %4998 }
 0x792   :  { %v5300_v63 = vmul.f32 %v10590_v4, %v5283_v0  ;;  %v5094_v52 = vmul.f32 %v5067_v24, %v11173_v37  ;;  %v5020_v41 = vmul.f32 %v4999_v58, %v11173_v37 }
 0x793   :  { %v5146_v48 = vsub.f32 1.5, %v5145_v23 }
 0x794   :  { %v7574_v28 = vpop.eup %7573  ;;  %v5317_v30 = vadd.f32 %v10604_v36, %v5300_v63  ;;  %v5110_v25 = vadd.f32 1e-05, %v5094_v52  ;;  %v10615_v60 = vsub.f32 %v10336_v47, %v5020_v41 }
 0x795   :  { %v5147_v17 = vmul.f32 %v7572_v56, %v5146_v48  ;;  %v5153_v49 = vmul.f32 %v7574_v28, %v5109_v46  ;;  %vm5159_vm4 = vweird.f32 %v7574_v28 }
 0x796   :  { %7575 = vrsqrt.f32 %v5110_v25  ;;  %v5332_v43 = vpack.c.bf16 %v5317_v30, %v5316_v32  ;;  %v5052_v54 = vmul.f32 %v10615_v60, %v10615_v60  ;;  %vm5160_vm6 = vmor %vm5158_vm5, %vm5159_vm4  ;;  %vm5168_vm8 = vweird.f32 %v5110_v25 }
 0x797   :  { %v5154_v50 = vmul.f32 %v7574_v28, %v5153_v49  ;;  %v5151_v57 = vsel %vm5150_vm3, %v7572_v56, %v5147_v17 }
 0x798   :  { %5550 = vmatmul.bf16.vlgmr.msra.gmra.mxu0 %v5332_v43  ;;  %5599 = vmatmul.bf16.vlgmr.msra.gmra.mxu1 %v5332_v43  ;;  %v5284_v13 = vmul.f32 %v5151_v57, %v10303_v59 }
 0x799   :  { %v5155_v42 = vmul.f32 0.5, %v5154_v50  ;;  %5697 = vmatmul.bf16.vlgmr.msra.gmra.mxu3 %v5332_v43  ;;  %5078 = vadd.xlane.f32.xlu0 %v5052_v54  ;;  %v5069_v40 = vpop.xlane.xlu1 %5068  ;;  %v5001_v15 = vpop.xlane.xlu0 %5000 }
 0x79a   :  { %5648 = vmatmul.bf16.vlgmr.msra.gmra.mxu2 %v5332_v43  ;;  %v5095_v45 = vmul.f32 %v5069_v40, %v11173_v37  ;;  %v5021_v10 = vmul.f32 %v5001_v15, %v11173_v37  ;;  %v5301_v8 = vmul.f32 %v10590_v4, %v5284_v13 }
 0x79b   :  { %v5156_v21 = vsub.f32 1.5, %v5155_v42 }
 0x79c   :  { %v7576_v20 = vpop.eup %7575  ;;  %v5111_v11 = vadd.f32 1e-05, %v5095_v45  ;;  %v10623_v7 = vsub.f32 %v10349_v14, %v5021_v10  ;;  %v5318_v41 = vadd.f32 %v10604_v36, %v5301_v8 }
 0x79d   :  { %v5157_v56 = vmul.f32 %v7574_v28, %v5156_v21  ;;  %v5163_v5 = vmul.f32 %v7576_v20, %v5110_v25  ;;  %vm5169_vm7 = vweird.f32 %v7576_v20 }
 0x79e   :  { %7577 = vrsqrt.f32 %v5111_v11  ;;  %v5053_v3 = vmul.f32 %v10623_v7, %v10623_v7  ;;  %vm5170_vm9 = vmor %vm5168_vm8, %vm5169_vm7  ;;  %vm5178_vm11 = vweird.f32 %v5111_v11 }
 0x79f   :  { %v5161_v61 = vsel %vm5160_vm6, %v7574_v28, %v5157_v56  ;;  %v5164_v31 = vmul.f32 %v7576_v20, %v5163_v5 }
 0x7a0   :  { %v5285_v18 = vmul.f32 %v5161_v61, %v10316_v19  ;;  %5080 = vadd.xlane.f32.xlu1 %v5053_v3 }
 0x7a1   :  { %v5165_v59 = vmul.f32 0.5, %v5164_v31  ;;  %v5071_v0 = vpop.xlane.xlu1 %5070  ;;  %v5003_v23 = vpop.xlane.xlu0 %5002 }
 0x7a2   :  { %v5022_v24 = vmul.f32 %v5003_v23, %v11173_v37  ;;  %v5302_v46 = vmul.f32 %v10590_v4, %v5285_v18 }
 0x7a3   :  { %v5166_v58 = vsub.f32 1.5, %v5165_v59 }
 0x7a4   :  { %v7578_v63 = vpop.eup %7577  ;;  %v10632_v52 = vsub.f32 %v10362_v51, %v5022_v24  ;;  %v5319_v48 = vadd.f32 %v10604_v36, %v5302_v46 }
 0x7a5   :  { %v5167_v19 = vmul.f32 %v7576_v20, %v5166_v58  ;;  %v5173_v28 = vmul.f32 %v7578_v63, %v5111_v11  ;;  %vm5179_vm10 = vweird.f32 %v7578_v63 }
 0x7a6   :  { %v5333_v32 = vpack.c.bf16 %v5319_v48, %v5318_v41  ;;  %v5054_v30 = vmul.f32 %v10632_v52, %v10632_v52  ;;  %vm5180_vm12 = vmor %vm5178_vm11, %vm5179_vm10 }
 0x7a7   :  { %v5174_v17 = vmul.f32 %v7578_v63, %v5173_v28  ;;  %v5171_v49 = vsel %vm5170_vm9, %v7576_v20, %v5167_v19 }
 0x7a8   :  { %5555 = vmatmul.bf16.gmra.mxu0 %v5333_v32  ;;  %5604 = vmatmul.bf16.gmra.mxu1 %v5333_v32  ;;  %v5286_v42 = vmul.f32 %v5171_v49, %v10329_v1 }
 0x7a9   :  { %v5175_v43 = vmul.f32 0.5, %v5174_v17  ;;  %5702 = vmatmul.bf16.gmra.mxu3 %v5333_v32  ;;  %5082 = vadd.xlane.f32.xlu2 %v5054_v30  ;;  %v5005_v54 = vpop.xlane.xlu1 %5004 }
 0x7aa   :  { %5653 = vmatmul.bf16.gmra.mxu2 %v5333_v32  ;;  %v5023_v50 = vmul.f32 %v5005_v54, %v11173_v37  ;;  %v5303_v21 = vmul.f32 %v10590_v4, %v5286_v42 }
 0x7ab   :  { %v5176_v57 = vsub.f32 1.5, %v5175_v43 }
 0x7ac   :  { %v10641_v40 = vsub.f32 %v10369_v22, %v5023_v50  ;;  %v5320_v11 = vadd.f32 %v10604_v36, %v5303_v21 }
 0x7ad   :  { %v5177_v25 = vmul.f32 %v7578_v63, %v5176_v57 }
 0x7ae   :  { %v5055_v15 = vmul.f32 %v10641_v40, %v10641_v40 }
 0x7af   :  { %v5181_v45 = vsel %vm5180_vm12, %v7578_v63, %v5177_v25 }
 0x7b0   :  { %v5287_v10 = vmul.f32 %v5181_v45, %v10342_v44  ;;  %5084 = vadd.xlane.f32.xlu0 %v5055_v15  ;;  %v5096_v44 = vmul.f32 %v5071_v0, %v11173_v37 }
 0x7b1   :  { %v5007_v20 = vpop.xlane.xlu1 %5006 }
 0x7b2   :  { %v5024_v13 = vmul.f32 %v5007_v20, %v11173_v37  ;;  %v5304_v1 = vmul.f32 %v10590_v4, %v5287_v10  ;;  %v5112_v31 = vadd.f32 1e-05, %v5096_v44 }
 0x7b4   :  { %v10650_v56 = vsub.f32 %v10376_v33, %v5024_v13  ;;  %v5321_v5 = vadd.f32 %v10604_v36, %v5304_v1  ;;  %7579 = vrsqrt.f32 %v5112_v31  ;;  %vm5188_vm14 = vweird.f32 %v5112_v31 }
 0x7b6   :  { %v5334_v3 = vpack.c.bf16 %v5321_v5, %v5320_v11  ;;  %v5056_v61 = vmul.f32 %v10650_v56, %v10650_v56 }
 0x7b8   :  { %5560 = vmatmul.bf16.gmra.mxu0 %v5334_v3  ;;  %5609 = vmatmul.bf16.gmra.mxu1 %v5334_v3 }
 0x7b9   :  { %5707 = vmatmul.bf16.gmra.mxu3 %v5334_v3  ;;  %5086 = vadd.xlane.f32.xlu1 %v5056_v61 }
 0x7ba   :  { %5658 = vmatmul.bf16.gmra.mxu2 %v5334_v3  ;;  %v7580_v18 = vpop.eup %7579 }
 0x7bb   :  { %v5183_v8 = vmul.f32 %v7580_v18, %v5112_v31  ;;  %vm5189_vm13 = vweird.f32 %v7580_v18 }
 0x7bc   :  { %vm5190_vm15 = vmor %vm5188_vm14, %vm5189_vm13 }
 0x7bd   :  { %v5184_v59 = vmul.f32 %v7580_v18, %v5183_v8 }
 0x7bf   :  { %v5185_v58 = vmul.f32 0.5, %v5184_v59 }
 0x7c1   :  { %v5186_v63 = vsub.f32 1.5, %v5185_v58 }
 0x7c3   :  { %v5187_v32 = vmul.f32 %v7580_v18, %v5186_v63 }
 0x7c5   :  { %v5191_v17 = vsel %vm5190_vm15, %v7580_v18, %v5187_v32 }
 0x7c6   :  { %v5288_v15 = vmul.f32 %v5191_v17, %v10355_v53 }
 0x7c8   :  { %v5305_v3 = vmul.f32 %v10590_v4, %v5288_v15 }
 0x7ca   :  { %v5322_v59 = vadd.f32 %v10604_v36, %v5305_v3 }
 0x7f3   :  { %v5073_v23 = vpop.xlane.xlu2 %5072 }
 0x7f4   :  { %v5097_v24 = vmul.f32 %v5073_v23, %v11173_v37 }
 0x7f6   :  { %v5113_v46 = vadd.f32 1e-05, %v5097_v24 }
 0x7f8   :  { %7581 = vrsqrt.f32 %v5113_v46  ;;  %vm5198_vm1 = vweird.f32 %v5113_v46 }
 0x7fb   :  { %v5075_v41 = vpop.xlane.xlu2 %5074 }
 0x7fc   :  { %v5098_v48 = vmul.f32 %v5075_v41, %v11173_v37 }
 0x7fe   :  { %v7582_v19 = vpop.eup %7581  ;;  %v5114_v28 = vadd.f32 1e-05, %v5098_v48 }
 0x7ff   :  { %v5193_v0 = vmul.f32 %v7582_v19, %v5113_v46  ;;  %vm5199_vm0 = vweird.f32 %v7582_v19 }
 0x800   :  { %7583 = vrsqrt.f32 %v5114_v28  ;;  %vm5200_vm2 = vmor %vm5198_vm1, %vm5199_vm0  ;;  %vm5208_vm4 = vweird.f32 %v5114_v28 }
 0x801   :  { %v5194_v30 = vmul.f32 %v7582_v19, %v5193_v0 }
 0x803   :  { %v5195_v49 = vmul.f32 0.5, %v5194_v30  ;;  %v5077_v43 = vpop.xlane.xlu0 %5076  ;;  %v5009_v54 = vpop.xlane.xlu2 %5008 }
 0x804   :  { %v5099_v50 = vmul.f32 %v5077_v43, %v11173_v37  ;;  %v5025_v57 = vmul.f32 %v5009_v54, %v11173_v37 }
 0x805   :  { %v5196_v42 = vsub.f32 1.5, %v5195_v49 }
 0x806   :  { %v7584_v25 = vpop.eup %7583  ;;  %v5115_v45 = vadd.f32 1e-05, %v5099_v50  ;;  %v10663_v10 = vsub.f32 %v10601_v38, %v5025_v57 }
 0x807   :  { %v5197_v21 = vmul.f32 %v7582_v19, %v5196_v42  ;;  %v5203_v20 = vmul.f32 %v7584_v25, %v5114_v28  ;;  %vm5209_vm3 = vweird.f32 %v7584_v25 }
 0x808   :  { %7585 = vrsqrt.f32 %v5115_v45  ;;  %v5057_v13 = vmul.f32 %v10663_v10, %v10663_v10  ;;  %vm5210_vm5 = vmor %vm5208_vm4, %vm5209_vm3  ;;  %vm5218_vm7 = vweird.f32 %v5115_v45 }
 0x809   :  { %v5201_v1 = vsel %vm5200_vm2, %v7582_v19, %v5197_v21  ;;  %v5204_v11 = vmul.f32 %v7584_v25, %v5203_v20 }
 0x80a   :  { %v5289_v5 = vmul.f32 %v5201_v1, %v10575_v9  ;;  %5088 = vadd.xlane.f32.xlu2 %v5057_v13 }
 0x80b   :  { %v5205_v53 = vmul.f32 0.5, %v5204_v11 }
 0x80c   :  { %v5079_v61 = vpop.xlane.xlu0 %5078  ;;  %v5306_v44 = vmul.f32 %v10590_v4, %v5289_v5 }
 0x80d   :  { %v5206_v31 = vsub.f32 1.5, %v5205_v53  ;;  %v5100_v18 = vmul.f32 %v5079_v61, %v11173_v37 }
 0x80e   :  { %v7586_v8 = vpop.eup %7585  ;;  %v5323_v23 = vadd.f32 %v10604_v36, %v5306_v44 }
 0x80f   :  { %v5213_v24 = vmul.f32 %v7586_v8, %v5115_v45  ;;  %v5116_v46 = vadd.f32 1e-05, %v5100_v18  ;;  %v5207_v58 = vmul.f32 %v7584_v25, %v5206_v31  ;;  %vm5219_vm6 = vweird.f32 %v7586_v8 }
 0x810   :  { %v5335_v9 = vpack.c.bf16 %v5323_v23, %v5322_v59  ;;  %vm5220_vm8 = vmor %vm5218_vm7, %vm5219_vm6 }
 0x811   :  { %v5214_v63 = vmul.f32 %v7586_v8, %v5213_v24  ;;  %7587 = vrsqrt.f32 %v5116_v46  ;;  %v5211_v19 = vsel %vm5210_vm5, %v7584_v25, %v5207_v58  ;;  %vm5228_vm10 = vweird.f32 %v5116_v46 }
 0x812   :  { %5565 = vmatmul.bf16.gmra.mxu0 %v5335_v9  ;;  %5614 = vmatmul.bf16.gmra.mxu1 %v5335_v9  ;;  %v5290_v49 = vmul.f32 %v5211_v19, %v10582_v2 }
 0x813   :  { %v5215_v41 = vmul.f32 0.5, %v5214_v63  ;;  %5663 = vmatmul.bf16.gmra.mxu2 %v5335_v9  ;;  %5712 = vmatmul.bf16.gmra.mxu3 %v5335_v9  ;;  %v5081_v48 = vpop.xlane.xlu1 %5080 }
 0x814   :  { %v5101_v32 = vmul.f32 %v5081_v48, %v11173_v37  ;;  %v5307_v42 = vmul.f32 %v10590_v4, %v5290_v49 }
 0x815   :  { %v5216_v0 = vsub.f32 1.5, %v5215_v41 }
 0x816   :  { %v5117_v30 = vadd.f32 1e-05, %v5101_v32  ;;  %v5324_v5 = vadd.f32 %v10604_v36, %v5307_v42 }
 0x817   :  { %v7588_v17 = vpop.eup %7587  ;;  %v5217_v43 = vmul.f32 %v7586_v8, %v5216_v0 }
 0x818   :  { %v5223_v28 = vmul.f32 %v7588_v17, %v5116_v46  ;;  %7589 = vrsqrt.f32 %v5117_v30  ;;  %vm5229_vm9 = vweird.f32 %v7588_v17  ;;  %vm5238_vm13 = vweird.f32 %v5117_v30 }
 0x819   :  { %v5221_v54 = vsel %vm5220_vm8, %v7586_v8, %v5217_v43  ;;  %vm5230_vm11 = vmor %vm5228_vm10, %vm5229_vm9 }
 0x81a   :  { %v5291_v50 = vmul.f32 %v5221_v54, %v10594_v16  ;;  %v5224_v57 = vmul.f32 %v7588_v17, %v5223_v28 }
 0x81c   :  { %v5225_v25 = vmul.f32 0.5, %v5224_v57  ;;  %v5083_v15 = vpop.xlane.xlu2 %5082  ;;  %v5308_v21 = vmul.f32 %v10590_v4, %v5291_v50 }
 0x81d   :  { %v5102_v20 = vmul.f32 %v5083_v15, %v11173_v37 }
 0x81e   :  { %v7590_v13 = vpop.eup %7589  ;;  %v5226_v1 = vsub.f32 1.5, %v5225_v25  ;;  %v5325_v2 = vadd.f32 %v10604_v36, %v5308_v21 }
 0x81f   :  { %v5233_v45 = vmul.f32 %v7590_v13, %v5117_v30  ;;  %v5118_v11 = vadd.f32 1e-05, %v5102_v20  ;;  %vm5239_vm12 = vweird.f32 %v7590_v13 }
 0x820   :  { %v5227_v3 = vmul.f32 %v7588_v17, %v5226_v1  ;;  %v5336_v53 = vpack.c.bf16 %v5325_v2, %v5324_v5  ;;  %vm5240_vm14 = vmor %vm5238_vm13, %vm5239_vm12 }
 0x821   :  { %v5234_v16 = vmul.f32 %v7590_v13, %v5233_v45  ;;  %7591 = vrsqrt.f32 %v5118_v11  ;;  %vm5248_vm0 = vweird.f32 %v5118_v11 }
 0x822   :  { %5570 = vmatmul.bf16.gmra.mxu0 %v5336_v53  ;;  %5619 = vmatmul.bf16.gmra.mxu1 %v5336_v53  ;;  %v5231_v31 = vsel %vm5230_vm11, %v7588_v17, %v5227_v3  ;;  %v7256_v3 = vld [vmem:[%s10944_s7 + $0x78] sm:$0xff] }
 0x823   :  { %v5235_v61 = vmul.f32 0.5, %v5234_v16  ;;  %v5085_v44 = vpop.xlane.xlu0 %5084  ;;  %5668 = vmatmul.bf16.gmra.mxu2 %v5336_v53  ;;  %5717 = vmatmul.bf16.gmra.mxu3 %v5336_v53  ;;  %v5292_v24 = vmul.f32 %v5231_v31, %v10615_v60  ;;  %v7264_v16 = vld [vmem:[%s10944_s7 + $0xb8] sm:$0xff]  ;;  %v7263_v31 = vld [vmem:[%s10944_s7 + $0xb0] sm:$0xff] }
 0x824   :  { %v5103_v18 = vmul.f32 %v5085_v44, %v11173_v37  ;;  %v7272_v53 = vld [vmem:[%s10944_s7 + $0xf8] sm:$0xff]  ;;  %6140 = vmatpush.bf16.msrb.mxu1 %v7256_v3  ;;  %6189 = vmatpush.bf16.msrb.mxu2 %v7264_v16  ;;  %v7255_v44 = vld [vmem:[%s10944_s7 + $0x70] sm:$0xff] }
 0x825   :  { %v5236_v8 = vsub.f32 1.5, %v5235_v61  ;;  %v5309_v48 = vmul.f32 %v10590_v4, %v5292_v24  ;;  %6238 = vmatpush.bf16.msrb.mxu3 %v7272_v53  ;;  %v7247_v61 = vld [vmem:[%s10944_s7 + $0x30] sm:$0xff]  ;;  %v7262_v24 = vld [vmem:[%s10944_s7 + $0xa8] sm:$0xff] }
 0x826   :  { %v5119_v59 = vadd.f32 1e-05, %v5103_v18  ;;  %v7271_v18 = vld [vmem:[%s10944_s7 + $0xf0] sm:$0xff] }
 0x827   :  { %v7592_v23 = vpop.eup %7591  ;;  %v5237_v58 = vmul.f32 %v7590_v13, %v5236_v8  ;;  %v5326_v30 = vadd.f32 %v10604_v36, %v5309_v48  ;;  %v7269_v48 = vld [vmem:[%s10944_s7 + $0xe0] sm:$0xff] }
 0x828   :  { %v5243_v46 = vmul.f32 %v7592_v23, %v5118_v11  ;;  %7593 = vrsqrt.f32 %v5119_v59  ;;  %vm5249_vm15 = vweird.f32 %v7592_v23  ;;  %vm5258_vm3 = vweird.f32 %v5119_v59  ;;  %6141 = vmatpush.bf16.msrb.mxu1 %v7255_v44  ;;  %6190 = vmatpush.bf16.msrb.mxu2 %v7263_v31  ;;  %v7241_v44 = vld [vmem:[%s10944_s7] sm:$0xff] }
 0x829   :  { %v5241_v9 = vsel %vm5240_vm14, %v7590_v13, %v5237_v58  ;;  %vm5250_vm1 = vmor %vm5248_vm0, %vm5249_vm15  ;;  %6239 = vmatpush.bf16.msrb.mxu3 %v7271_v18  ;;  %v7270_v58 = vld [vmem:[%s10944_s7 + $0xe8] sm:$0xff]  ;;  %v7249_v31 = vld [vmem:[%s10944_s7 + $0x40] sm:$0xff] }
 0x82a   :  { %v5293_v63 = vmul.f32 %v5241_v9, %v10623_v7  ;;  %v5244_v41 = vmul.f32 %v7592_v23, %v5243_v46  ;;  %v7245_v9 = vld [vmem:[%s10944_s7 + $0x20] sm:$0xff] }
 0x82b   :  { %v7257_v18 = vld [vmem:[%s10944_s7 + $0x80] sm:$0xff] }
 0x82c   :  { %v5245_v19 = vmul.f32 0.5, %v5244_v41  ;;  %v5310_v32 = vmul.f32 %v10590_v4, %v5293_v63  ;;  %6191 = vmatpush.bf16.msrb.mxu2 %v7262_v24  ;;  %v7253_v63 = vld [vmem:[%s10944_s7 + $0x60] sm:$0xff] }
 0x82d   :  { %6240 = vmatpush.bf16.msrb.mxu3 %v7270_v58  ;;  %v7261_v41 = vld [vmem:[%s10944_s7 + $0xa0] sm:$0xff] }
 0x82e   :  { %v7594_v0 = vpop.eup %7593  ;;  %v5246_v17 = vsub.f32 1.5, %v5245_v19  ;;  %v5327_v49 = vadd.f32 %v10604_v36, %v5310_v32 }
 0x82f   :  { %v5253_v60 = vmul.f32 %v7594_v0, %v5119_v59  ;;  %vm5259_vm2 = vweird.f32 %v7594_v0  ;;  %v7246_v59 = vld [vmem:[%s10944_s7 + $0x28] sm:$0xff] }
 0x830   :  { %v5247_v43 = vmul.f32 %v7592_v23, %v5246_v17  ;;  %v5337_v54 = vpack.c.bf16 %v5327_v49, %v5326_v30  ;;  %vm5260_vm4 = vmor %vm5258_vm3, %vm5259_vm2  ;;  %6192 = vmatpush.bf16.msrb.mxu2 %v7261_v41  ;;  %v10752_v17 = vpop.f32.mrf.mxu0  ;;  %v10754_v49 = vpop.f32.mrf.mxu1  ;;  %v7252_v30 = vld [vmem:[%s10944_s7 + $0x58] sm:$0xff] }
 0x831   :  { %v5254_v28 = vmul.f32 %v7594_v0, %v5253_v60  ;;  %6241 = vmatpush.bf16.msrb.mxu3 %v7269_v48  ;;  %v7244_v60 = vld [vmem:[%s10944_s7 + $0x18] sm:$0xff] }
 0x832   :  { %v5251_v7 = vsel %vm5250_vm1, %v7592_v23, %v5247_v43  ;;  %5575 = vmatmul.bf16.gmra.mxu0 %v5337_v54  ;;  %5624 = vmatmul.bf16.gmra.mxu1 %v5337_v54  ;;  %v7254_v23 = vld [vmem:[%s10944_s7 + $0x68] sm:$0xff]  ;;  %v7260_v43 = vld [vmem:[%s10944_s7 + $0x98] sm:$0xff] }
 0x833   :  { %v5255_v50 = vmul.f32 0.5, %v5254_v28  ;;  %5673 = vmatmul.bf16.gmra.mxu2 %v5337_v54  ;;  %5722 = vmatmul.bf16.gmra.mxu3 %v5337_v54  ;;  %v5294_v42 = vmul.f32 %v5251_v7, %v10632_v52  ;;  %v5087_v52 = vpop.xlane.xlu1 %5086  ;;  %v10765_v28 = vpop.f32.mrf.mxu2  ;;  %v7268_v7 = vld [vmem:[%s10944_s7 + $0xd8] sm:$0xff] }
 0x834   :  { %v5104_v11 = vmul.f32 %v5087_v52, %v11173_v37  ;;  %6142 = vmatpush.bf16.msrb.mxu1 %v7254_v23  ;;  %6193 = vmatpush.bf16.msrb.mxu2 %v7260_v43 }
 0x835   :  { %v5256_v57 = vsub.f32 1.5, %v5255_v50  ;;  %v5311_v20 = vmul.f32 %v10590_v4, %v5294_v42  ;;  %6242 = vmatpush.bf16.msrb.mxu3 %v7268_v7  ;;  %v7251_v42 = vld [vmem:[%s10944_s7 + $0x50] sm:$0xff] }
 0x836   :  { %v10695_v5 = vadd.f32 1e-05, %v5104_v11 }
 0x837   :  { %v5257_v25 = vmul.f32 %v7594_v0, %v5256_v57  ;;  %v5328_v1 = vadd.f32 %v10604_v36, %v5311_v20  ;;  %v7243_v57 = vld [vmem:[%s10944_s7 + $0x10] sm:$0xff]  ;;  %v7242_v20 = vld [vmem:[%s10944_s7 + $0x8] sm:$0xff] }
 0x838   :  { %7595 = vrsqrt.f32 %v10695_v5  ;;  %6143 = vmatpush.bf16.msrb.mxu1 %v7253_v63  ;;  %v5553_v52 = vpop.f32.mrf.mxu0  ;;  %v5602_v11 = vpop.f32.mrf.mxu1  ;;  %vm5268_vm6 = vweird.f32 %v10695_v5 }
 0x839   :  { %v5261_v15 = vsel %vm5260_vm4, %v7594_v0, %v5257_v25  ;;  %v7259_v25 = vld [vmem:[%s10944_s7 + $0x90] sm:$0xff] }
 0x83a   :  { %v5295_v21 = vmul.f32 %v5261_v15, %v10641_v40  ;;  %v7248_v40 = vld [vmem:[%s10944_s7 + $0x38] sm:$0xff]  ;;  %v7267_v15 = vld [vmem:[%s10944_s7 + $0xd0] sm:$0xff]  ;;  %6194 = vmatpush.bf16.msrb.mxu2 %v7259_v25 }
 0x83b   :  { %6091 = vmatpush.bf16.msrb.mxu0 %v7248_v40  ;;  %6243 = vmatpush.bf16.msrb.mxu3 %v7267_v15  ;;  %v5651_v53 = vpop.f32.mrf.mxu2 }
 0x83c   :  { %v5312_v13 = vmul.f32 %v10590_v4, %v5295_v21  ;;  %6144 = vmatpush.bf16.msrb.mxu1 %v7252_v30 }
 0x83e   :  { %v5329_v2 = vadd.f32 %v10604_v36, %v5312_v13  ;;  %v10722_v8 = vpop.eup %7595  ;;  %v7250_v13 = vld [vmem:[%s10944_s7 + $0x48] sm:$0xff] }
 0x83f   :  { %6092 = vmatpush.bf16.msrb.mxu0 %v7247_v61  ;;  %v5263_v46 = vmul.f32 %v10722_v8, %v10695_v5  ;;  %vm5269_vm5 = vweird.f32 %v10722_v8 }
 0x840   :  { %v5338_v45 = vpack.c.bf16 %v5329_v2, %v5328_v1  ;;  %6145 = vmatpush.bf16.msrb.mxu1 %v7251_v42  ;;  %v7258_v1 = vld [vmem:[%s10944_s7 + $0x88] sm:$0xff]  ;;  %vm5270_vm7 = vmor %vm5268_vm6, %vm5269_vm5  ;;  %v5605_v63 = vpop.f32.mrf.mxu1 }
 0x841   :  { %v5264_v19 = vmul.f32 %v10722_v8, %v5263_v46  ;;  %6195 = vmatpush.bf16.msrb.mxu2 %v7258_v1 }
 0x842   :  { %5580 = vmatmul.bf16.gmra.mxu0 %v5338_v45  ;;  %5629 = vmatmul.bf16.gmra.mxu1 %v5338_v45 }
 0x843   :  { %5678 = vmatmul.bf16.gmra.mxu2 %v5338_v45  ;;  %5727 = vmatmul.bf16.gmra.mxu3 %v5338_v45  ;;  %v5265_v50 = vmul.f32 0.5, %v5264_v19  ;;  %v7266_v45 = vld [vmem:[%s10944_s7 + $0xc8] sm:$0xff]  ;;  %v5654_v19 = vpop.f32.mrf.mxu2 }
 0x844   :  { %6093 = vmatpush.bf16.msrb.mxu0 %v7246_v59  ;;  %6146 = vmatpush.bf16.msrb.mxu1 %v7250_v13  ;;  %v7265_v59 = vld [vmem:[%s10944_s7 + $0xc0] sm:$0xff] }
 0x845   :  { %v5266_v21 = vsub.f32 1.5, %v5265_v50  ;;  %6244 = vmatpush.bf16.msrb.mxu3 %v7266_v45  ;;  %6196 = vmatpush.bf16.msrb.mxu2 %v7257_v18 }
 0x847   :  { %v5267_v40 = vmul.f32 %v10722_v8, %v5266_v21 }
 0x848   :  { %6094 = vmatpush.bf16.msrb.mxu0 %v7245_v9  ;;  %6147 = vmatpush.bf16.msrb.mxu1 %v7249_v31  ;;  %v5556_v9 = vpop.f32.mrf.mxu0  ;;  %v5607_v7 = vpop.f32.mrf.mxu1 }
 0x849   :  { %v5271_v5 = vsel %vm5270_vm7, %v10722_v8, %v5267_v40  ;;  %6245 = vmatpush.bf16.msrb.mxu3 %v7265_v59 }
 0x84a   :  { %v5296_v58 = vmul.f32 %v5271_v5, %v10650_v56  ;;  %v5372_v56 = vld [vmem:[%s10943_s6] sm:$0xf] }
 0x84b   :  { %v10825_v42 = vperm.slane %v5372_v56, 2 }
 0x84c   :  { %6095 = vmatpush.bf16.msrb.mxu0 %v7244_v60  ;;  %v5313_v8 = vmul.f32 %v10590_v4, %v5296_v58 }
 0x84e   :  { %v5330_v60 = vadd.f32 %v10604_v36, %v5313_v8 }
 0x850   :  { %6096 = vmatpush.bf16.msrb.mxu0 %v7243_v57  ;;  %v10821_v57 = vperm.slane %v5372_v56, 0 }
 0x852   :  { %v5554_v25 = vadd.f32 %v5553_v52, %v10821_v57  ;;  %v5552_v13 = vadd.f32 %v10752_v17, %v10821_v57 }
 0x854   :  { %6097 = vmatpush.bf16.msrb.mxu0 %v7242_v20  ;;  %v5652_v20 = vadd.f32 %v5651_v53, %v10825_v42  ;;  %v5742_v40 = vmax.f32 %v5554_v25, 0.0 }
 0x858   :  { %6098 = vmatpush.bf16.msrb.mxu0 %v7241_v44  ;;  %v5738_v44 = vmax.f32 %v5552_v13, 0.0 }
 0x85a   :  { %v5802_v5 = vpack.c.bf16 %v5742_v40, %v5738_v44 }
 0x87d   :  { %v5089_v32 = vpop.xlane.xlu2 %5088 }
 0x87e   :  { %v5105_v0 = vmul.f32 %v5089_v32, %v11173_v37  ;;  %v10767_v37 = vpop.f32.mrf.mxu3 }
 0x880   :  { %v5121_v54 = vadd.f32 1e-05, %v5105_v0 }
 0x882   :  { %7597 = vrsqrt.f32 %v5121_v54  ;;  %vm5278_vm9 = vweird.f32 %v5121_v54 }
 0x886   :  { %v5700_v16 = vpop.f32.mrf.mxu3 }
 0x888   :  { %v7598_v2 = vpop.eup %7597 }
 0x889   :  { %v5273_v3 = vmul.f32 %v7598_v2, %v5121_v54  ;;  %vm5279_vm8 = vweird.f32 %v7598_v2  ;;  %v5558_v54 = vpop.f32.mrf.mxu0 }
 0x88a   :  { %vm5280_vm10 = vmor %vm5278_vm9, %vm5279_vm8  ;;  %v5559_v58 = vadd.f32 %v5558_v54, %v10821_v57 }
 0x88b   :  { %v5274_v61 = vmul.f32 %v7598_v2, %v5273_v3 }
 0x88c   :  { %v5750_v25 = vmax.f32 %v5559_v58, 0.0 }
 0x88d   :  { %v5275_v23 = vmul.f32 0.5, %v5274_v61 }
 0x88e   :  { %v5703_v48 = vpop.f32.mrf.mxu3 }
 0x88f   :  { %v5276_v24 = vsub.f32 1.5, %v5275_v23 }
 0x891   :  { %v5277_v46 = vmul.f32 %v7598_v2, %v5276_v24  ;;  %v5561_v61 = vpop.f32.mrf.mxu0 }
 0x893   :  { %v5281_v41 = vsel %vm5280_vm10, %v7598_v2, %v5277_v46  ;;  %v5650_v2 = vadd.f32 %v10765_v28, %v10825_v42 }
 0x894   :  { %v5297_v32 = vmul.f32 %v5281_v41, %v10663_v10  ;;  %v5656_v10 = vpop.f32.mrf.mxu2 }
 0x895   :  { %v5740_v17 = vmax.f32 %v5650_v2, 0.0  ;;  %v5657_v8 = vadd.f32 %v5656_v10, %v10825_v42 }
 0x896   :  { %v5314_v0 = vmul.f32 %v10590_v4, %v5297_v32  ;;  %v5705_v50 = vpop.f32.mrf.mxu3  ;;  %v10823_v4 = vperm.slane %v5372_v56, 1 }
 0x898   :  { %v5331_v30 = vadd.f32 %v10604_v36, %v5314_v0  ;;  %v10827_v36 = vperm.slane %v5372_v56, 3  ;;  %v5603_v15 = vadd.f32 %v5602_v11, %v10823_v4  ;;  %v5601_v1 = vadd.f32 %v10754_v49, %v10823_v4 }
 0x899   :  { %v5744_v11 = vmax.f32 %v5652_v20, 0.0  ;;  %v5563_v28 = vpop.f32.mrf.mxu0  ;;  %v5608_v46 = vadd.f32 %v5607_v7, %v10823_v4  ;;  %v5655_v56 = vadd.f32 %v5654_v19, %v10825_v42 }
 0x89a   :  { %v5339_v43 = vpack.c.bf16 %v5331_v30, %v5330_v60  ;;  %v5701_v21 = vadd.f32 %v5700_v16, %v10827_v36  ;;  %v5699_v45 = vadd.f32 %v10767_v37, %v10827_v36  ;;  %v5743_v52 = vmax.f32 %v5603_v15, 0.0  ;;  %v5610_v16 = vpop.f32.mrf.mxu1 }
 0x89b   :  { %v5739_v53 = vmax.f32 %v5601_v1, 0.0  ;;  %v5804_v24 = vpack.c.bf16 %v5744_v11, %v5740_v17  ;;  %v5706_v0 = vadd.f32 %v5705_v50, %v10827_v36  ;;  %v5557_v60 = vadd.f32 %v5556_v9, %v10821_v57 }
 0x89c   :  { %5585 = vmatmul.bf16.gmra.mxu0 %v5339_v43  ;;  %5634 = vmatmul.bf16.gmra.mxu1 %v5339_v43  ;;  %v5745_v3 = vmax.f32 %v5701_v21, 0.0  ;;  %v5659_v31 = vpop.f32.mrf.mxu2  ;;  %v5741_v59 = vmax.f32 %v5699_v45, 0.0  ;;  %v5606_v30 = vadd.f32 %v5605_v63, %v10823_v4  ;;  %v5751_v15 = vmax.f32 %v5608_v46, 0.0 }
 0x89d   :  { %5683 = vmatmul.bf16.gmra.mxu2 %v5339_v43  ;;  %5732 = vmatmul.bf16.gmra.mxu3 %v5339_v43  ;;  %v5803_v49 = vpack.c.bf16 %v5743_v52, %v5739_v53  ;;  %v5704_v43 = vadd.f32 %v5703_v48, %v10827_v36  ;;  %v5752_v21 = vmax.f32 %v5657_v8, 0.0  ;;  %v5753_v54 = vmax.f32 %v5706_v0, 0.0 }
 0x89e   :  { %v5708_v18 = vpop.f32.mrf.mxu3  ;;  %v5805_v23 = vpack.c.bf16 %v5745_v3, %v5741_v59  ;;  %v5746_v20 = vmax.f32 %v5557_v60, 0.0  ;;  %v5747_v7 = vmax.f32 %v5606_v30, 0.0  ;;  %v5748_v1 = vmax.f32 %v5655_v56, 0.0 }
 0x89f   :  { %v5749_v13 = vmax.f32 %v5704_v43, 0.0  ;;  %v5564_v48 = vadd.f32 %v5563_v28, %v10821_v57  ;;  %v5562_v17 = vadd.f32 %v5561_v61, %v10821_v57  ;;  %v5611_v59 = vadd.f32 %v5610_v16, %v10823_v4 }
 0x8a0   :  { %v5806_v40 = vpack.c.bf16 %v5750_v25, %v5746_v20  ;;  %v5807_v9 = vpack.c.bf16 %v5751_v15, %v5747_v7  ;;  %v5808_v52 = vpack.c.bf16 %v5752_v21, %v5748_v1 }
 0x8a1   :  { %v5566_v2 = vpop.f32.mrf.mxu0  ;;  %v5809_v63 = vpack.c.bf16 %v5753_v54, %v5749_v13  ;;  %v5758_v58 = vmax.f32 %v5564_v48, 0.0  ;;  %v5754_v8 = vmax.f32 %v5562_v17, 0.0 }
 0x8a2   :  { %v5612_v37 = vpop.f32.mrf.mxu1  ;;  %v5567_v20 = vadd.f32 %v5566_v2, %v10821_v57 }
 0x8a3   :  { %v5613_v19 = vadd.f32 %v5612_v37, %v10823_v4  ;;  %v5810_v60 = vpack.c.bf16 %v5758_v58, %v5754_v8 }
 0x8a4   :  { %v5661_v41 = vpop.f32.mrf.mxu2 }
 0x8a5   :  { %v5662_v3 = vadd.f32 %v5661_v41, %v10825_v42  ;;  %v5759_v28 = vmax.f32 %v5613_v19, 0.0  ;;  %v5755_v41 = vmax.f32 %v5611_v59, 0.0 }
 0x8a6   :  { %v5710_v32 = vpop.f32.mrf.mxu3 }
 0x8a7   :  { %v5711_v11 = vadd.f32 %v5710_v32, %v10827_v36  ;;  %v5760_v46 = vmax.f32 %v5662_v3, 0.0  ;;  %v5811_v30 = vpack.c.bf16 %v5759_v28, %v5755_v41  ;;  %v5762_v3 = vmax.f32 %v5567_v20, 0.0 }
 0x8a9   :  { %v5568_v44 = vpop.f32.mrf.mxu0  ;;  %v5761_v37 = vmax.f32 %v5711_v11, 0.0 }
 0x8aa   :  { %v5615_v10 = vpop.f32.mrf.mxu1  ;;  %v5569_v25 = vadd.f32 %v5568_v44, %v10821_v57 }
 0x8ab   :  { %v5616_v7 = vadd.f32 %v5615_v10, %v10823_v4 }
 0x8ac   :  { %6099 = vmatmul.bf16.vlgmr.msrb.gmra.mxu0 %v5802_v5  ;;  %6148 = vmatmul.bf16.vlgmr.msrb.gmra.mxu1 %v5803_v49  ;;  %v5664_v45 = vpop.f32.mrf.mxu2 }
 0x8ad   :  { %6197 = vmatmul.bf16.vlgmr.msrb.gmra.mxu2 %v5804_v24  ;;  %6246 = vmatmul.bf16.vlgmr.msrb.gmra.mxu3 %v5805_v23  ;;  %v5660_v23 = vadd.f32 %v5659_v31, %v10825_v42  ;;  %v5709_v24 = vadd.f32 %v5708_v18, %v10827_v36  ;;  %v5665_v13 = vadd.f32 %v5664_v45, %v10825_v42  ;;  %v5763_v11 = vmax.f32 %v5616_v7, 0.0 }
 0x8ae   :  { %v5713_v50 = vpop.f32.mrf.mxu3 }
 0x8af   :  { %v5756_v0 = vmax.f32 %v5660_v23, 0.0  ;;  %v5757_v32 = vmax.f32 %v5709_v24, 0.0  ;;  %v5714_v1 = vadd.f32 %v5713_v50, %v10827_v36  ;;  %v5764_v17 = vmax.f32 %v5665_v13, 0.0 }
 0x8b1   :  { %v5812_v43 = vpack.c.bf16 %v5760_v46, %v5756_v0  ;;  %v5813_v61 = vpack.c.bf16 %v5761_v37, %v5757_v32  ;;  %v5571_v16 = vpop.f32.mrf.mxu0  ;;  %v5765_v59 = vmax.f32 %v5714_v1, 0.0 }
 0x8b2   :  { %v5617_v53 = vpop.f32.mrf.mxu1  ;;  %v5572_v8 = vadd.f32 %v5571_v16, %v10821_v57 }
 0x8b3   :  { %v5618_v15 = vadd.f32 %v5617_v53, %v10823_v4 }
 0x8b4   :  { %v5666_v5 = vpop.f32.mrf.mxu2 }
 0x8b5   :  { %v5667_v21 = vadd.f32 %v5666_v5, %v10825_v42 }
 0x8b6   :  { %v5715_v49 = vpop.f32.mrf.mxu3 }
 0x8b7   :  { %v5716_v54 = vadd.f32 %v5715_v49, %v10827_v36 }
 0x8b9   :  { %v5573_v48 = vpop.f32.mrf.mxu0 }
 0x8ba   :  { %v5620_v56 = vpop.f32.mrf.mxu1  ;;  %v5574_v23 = vadd.f32 %v5573_v48, %v10821_v57 }
 0x8bb   :  { %v5621_v41 = vadd.f32 %v5620_v56, %v10823_v4 }
 0x8bc   :  { %6104 = vmatmul.bf16.gmra.mxu0 %v5806_v40  ;;  %6153 = vmatmul.bf16.gmra.mxu1 %v5807_v9  ;;  %v5669_v31 = vpop.f32.mrf.mxu2  ;;  %v5766_v40 = vmax.f32 %v5569_v25, 0.0  ;;  %v5767_v9 = vmax.f32 %v5618_v15, 0.0  ;;  %v5770_v25 = vmax.f32 %v5572_v8, 0.0 }
 0x8bd   :  { %6202 = vmatmul.bf16.gmra.mxu2 %v5808_v52  ;;  %6251 = vmatmul.bf16.gmra.mxu3 %v5809_v63  ;;  %v5768_v52 = vmax.f32 %v5667_v21, 0.0  ;;  %v5769_v63 = vmax.f32 %v5716_v54, 0.0  ;;  %v5670_v0 = vadd.f32 %v5669_v31, %v10825_v42  ;;  %v5771_v15 = vmax.f32 %v5621_v41, 0.0 }
 0x8be   :  { %v5718_v18 = vpop.f32.mrf.mxu3  ;;  %v5814_v5 = vpack.c.bf16 %v5766_v40, %v5762_v3  ;;  %v5815_v2 = vpack.c.bf16 %v5767_v9, %v5763_v11 }
 0x8bf   :  { %v5816_v49 = vpack.c.bf16 %v5768_v52, %v5764_v17  ;;  %v5817_v10 = vpack.c.bf16 %v5769_v63, %v5765_v59  ;;  %v5719_v32 = vadd.f32 %v5718_v18, %v10827_v36  ;;  %v5772_v21 = vmax.f32 %v5670_v0, 0.0 }
 0x8c1   :  { %v5576_v45 = vpop.f32.mrf.mxu0  ;;  %v5773_v54 = vmax.f32 %v5719_v32, 0.0 }
 0x8c2   :  { %v5622_v19 = vpop.f32.mrf.mxu1  ;;  %v5577_v48 = vadd.f32 %v5576_v45, %v10821_v57 }
 0x8c3   :  { %v5623_v24 = vadd.f32 %v5622_v19, %v10823_v4 }
 0x8c4   :  { %v5671_v44 = vpop.f32.mrf.mxu2 }
 0x8c5   :  { %v5672_v46 = vadd.f32 %v5671_v44, %v10825_v42 }
 0x8c6   :  { %v5720_v53 = vpop.f32.mrf.mxu3 }
 0x8c7   :  { %v5721_v37 = vadd.f32 %v5720_v53, %v10827_v36 }
 0x8c9   :  { %v5578_v40 = vpop.f32.mrf.mxu0 }
 0x8ca   :  { %v5625_v50 = vpop.f32.mrf.mxu1  ;;  %v5579_v31 = vadd.f32 %v5578_v40, %v10821_v57 }
 0x8cb   :  { %v5626_v19 = vadd.f32 %v5625_v50, %v10823_v4 }
 0x8cc   :  { %6109 = vmatmul.bf16.gmra.mxu0 %v5810_v60  ;;  %6158 = vmatmul.bf16.gmra.mxu1 %v5811_v30  ;;  %v5674_v58 = vpop.f32.mrf.mxu2  ;;  %v5774_v60 = vmax.f32 %v5574_v23, 0.0  ;;  %v5775_v30 = vmax.f32 %v5623_v24, 0.0  ;;  %v5782_v17 = vmax.f32 %v5579_v31, 0.0  ;;  %v5778_v23 = vmax.f32 %v5577_v48, 0.0 }
 0x8cd   :  { %6207 = vmatmul.bf16.gmra.mxu2 %v5812_v43  ;;  %6256 = vmatmul.bf16.gmra.mxu3 %v5813_v61  ;;  %v5776_v43 = vmax.f32 %v5672_v46, 0.0  ;;  %v5777_v61 = vmax.f32 %v5721_v37, 0.0  ;;  %v5675_v3 = vadd.f32 %v5674_v58, %v10825_v42  ;;  %v5779_v24 = vmax.f32 %v5626_v19, 0.0 }
 0x8ce   :  { %v5723_v28 = vpop.f32.mrf.mxu3  ;;  %v5818_v20 = vpack.c.bf16 %v5774_v60, %v5770_v25  ;;  %v5819_v7 = vpack.c.bf16 %v5775_v30, %v5771_v15  ;;  %v5822_v8 = vpack.c.bf16 %v5782_v17, %v5778_v23 }
 0x8cf   :  { %v5820_v13 = vpack.c.bf16 %v5776_v43, %v5772_v21  ;;  %v5821_v1 = vpack.c.bf16 %v5777_v61, %v5773_v54  ;;  %v5724_v11 = vadd.f32 %v5723_v28, %v10827_v36  ;;  %v5780_v46 = vmax.f32 %v5675_v3, 0.0 }
 0x8d1   :  { %v5581_v44 = vpop.f32.mrf.mxu0  ;;  %v5781_v37 = vmax.f32 %v5724_v11, 0.0 }
 0x8d2   :  { %v5627_v16 = vpop.f32.mrf.mxu1  ;;  %v5582_v25 = vadd.f32 %v5581_v44, %v10821_v57 }
 0x8d3   :  { %v5628_v18 = vadd.f32 %v5627_v16, %v10823_v4 }
 0x8d4   :  { %v5676_v9 = vpop.f32.mrf.mxu2  ;;  %v5786_v40 = vmax.f32 %v5582_v25, 0.0 }
 0x8d5   :  { %v5677_v52 = vadd.f32 %v5676_v9, %v10825_v42  ;;  %v5783_v59 = vmax.f32 %v5628_v18, 0.0 }
 0x8d6   :  { %v5725_v56 = vpop.f32.mrf.mxu3 }
 0x8d7   :  { %v5726_v63 = vadd.f32 %v5725_v56, %v10827_v36  ;;  %v5823_v45 = vpack.c.bf16 %v5783_v59, %v5779_v24 }
 0x8d9   :  { %v5583_v58 = vpop.f32.mrf.mxu0 }
 0x8da   :  { %v5630_v53 = vpop.f32.mrf.mxu1  ;;  %v5584_v60 = vadd.f32 %v5583_v58, %v10821_v57 }
 0x8db   :  { %v5631_v15 = vadd.f32 %v5630_v53, %v10823_v4 }
 0x8dc   :  { %6114 = vmatmul.bf16.gmra.mxu0 %v5814_v5  ;;  %6163 = vmatmul.bf16.gmra.mxu1 %v5815_v2  ;;  %v5679_v5 = vpop.f32.mrf.mxu2 }
 0x8dd   :  { %6212 = vmatmul.bf16.gmra.mxu2 %v5816_v49  ;;  %6261 = vmatmul.bf16.gmra.mxu3 %v5817_v10  ;;  %v5784_v49 = vmax.f32 %v5677_v52, 0.0  ;;  %v5785_v10 = vmax.f32 %v5726_v63, 0.0  ;;  %v5680_v21 = vadd.f32 %v5679_v5, %v10825_v42  ;;  %v5787_v16 = vmax.f32 %v5631_v15, 0.0 }
 0x8de   :  { %v5728_v2 = vpop.f32.mrf.mxu3 }
 0x8df   :  { %v5824_v41 = vpack.c.bf16 %v5784_v49, %v5780_v46  ;;  %v5825_v50 = vpack.c.bf16 %v5785_v10, %v5781_v37  ;;  %v5729_v54 = vadd.f32 %v5728_v2, %v10827_v36  ;;  %v5788_v9 = vmax.f32 %v5680_v21, 0.0 }
 0x8e1   :  { %v5789_v56 = vmax.f32 %v5729_v54, 0.0 }
 0x8e2   :  { %v5632_v28 = vpop.f32.mrf.mxu1 }
 0x8e3   :  { %v5633_v30 = vadd.f32 %v5632_v28, %v10823_v4 }
 0x8e4   :  { %v5681_v0 = vpop.f32.mrf.mxu2 }
 0x8e5   :  { %v5682_v43 = vadd.f32 %v5681_v0, %v10825_v42 }
 0x8e6   :  { %v5730_v32 = vpop.f32.mrf.mxu3 }
 0x8e7   :  { %v5731_v61 = vadd.f32 %v5730_v32, %v10827_v36 }
 0x8ec   :  { %6119 = vmatmul.bf16.gmra.mxu0 %v5818_v20  ;;  %6168 = vmatmul.bf16.gmra.mxu1 %v5819_v7  ;;  %v5790_v20 = vmax.f32 %v5584_v60, 0.0  ;;  %v5791_v7 = vmax.f32 %v5633_v30, 0.0 }
 0x8ed   :  { %6217 = vmatmul.bf16.gmra.mxu2 %v5820_v13  ;;  %6266 = vmatmul.bf16.gmra.mxu3 %v5821_v1  ;;  %v5792_v13 = vmax.f32 %v5682_v43, 0.0  ;;  %v5793_v1 = vmax.f32 %v5731_v61, 0.0 }
 0x8ee   :  { %v5826_v31 = vpack.c.bf16 %v5790_v20, %v5786_v40  ;;  %v5827_v18 = vpack.c.bf16 %v5791_v7, %v5787_v16 }
 0x8ef   :  { %v5828_v52 = vpack.c.bf16 %v5792_v13, %v5788_v9  ;;  %v5829_v63 = vpack.c.bf16 %v5793_v1, %v5789_v56 }
 0x8fc   :  { %6124 = vmatmul.bf16.gmra.mxu0 %v5822_v8  ;;  %6173 = vmatmul.bf16.gmra.mxu1 %v5823_v45 }
 0x8fd   :  { %6222 = vmatmul.bf16.gmra.mxu2 %v5824_v41  ;;  %6271 = vmatmul.bf16.gmra.mxu3 %v5825_v50  ;;  %v7616_v41 = vld [vmem:[%s10945_s8] sm:$0x3f]  ;;  %s7644_s8 = smov [#allocation2]  }
 0x8fe   :  { %v10898_v50 = vperm.slane %v7616_v41, 5  ;;  %s6323_s26 = sshll.u32 %s7644_s8, 4  ;;  %s6324_s26 = int_to_ptr.vmem [resolvable:$true] %s6323_s26 }
 0x90c   :  { %6129 = vmatmul.bf16.gmra.mxu0 %v5826_v31  ;;  %6178 = vmatmul.bf16.gmra.mxu1 %v5827_v18 }
 0x90d   :  { %6227 = vmatmul.bf16.gmra.mxu2 %v5828_v52  ;;  %6276 = vmatmul.bf16.gmra.mxu3 %v5829_v63 }
 0x919   :  { %v5586_v48 = vpop.f32.mrf.mxu0  ;;  %v5635_v19 = vpop.f32.mrf.mxu1 }
 0x91a   :  { %v5587_v3 = vadd.f32 %v5586_v48, %v10821_v57  ;;  %v5636_v11 = vadd.f32 %v5635_v19, %v10823_v4 }
 0x91c   :  { %v5794_v49 = vmax.f32 %v5587_v3, 0.0  ;;  %v5795_v10 = vmax.f32 %v5636_v11, 0.0 }
 0x920   :  { %v5684_v44 = vpop.f32.mrf.mxu2  ;;  %v5733_v53 = vpop.f32.mrf.mxu3 }
 0x921   :  { %v5588_v17 = vpop.f32.mrf.mxu0  ;;  %v5637_v59 = vpop.f32.mrf.mxu1  ;;  %v5685_v46 = vadd.f32 %v5684_v44, %v10825_v42  ;;  %v5734_v45 = vadd.f32 %v5733_v53, %v10827_v36 }
 0x922   :  { %v5589_v5 = vadd.f32 %v5588_v17, %v10821_v57  ;;  %v5638_v2 = vadd.f32 %v5637_v59, %v10823_v4 }
 0x923   :  { %v5796_v60 = vmax.f32 %v5685_v46, 0.0  ;;  %v5797_v30 = vmax.f32 %v5734_v45, 0.0 }
 0x924   :  { %v5798_v23 = vmax.f32 %v5589_v5, 0.0  ;;  %v5799_v24 = vmax.f32 %v5638_v2, 0.0 }
 0x926   :  { %v5830_v37 = vpack.c.bf16 %v5798_v23, %v5794_v49  ;;  %v5831_v8 = vpack.c.bf16 %v5799_v24, %v5795_v10 }
 0x928   :  { %v5686_v58 = vpop.f32.mrf.mxu2  ;;  %v5735_v57 = vpop.f32.mrf.mxu3  ;;  %6134 = vmatmul.bf16.gmra.mxu0 %v5830_v37  ;;  %6183 = vmatmul.bf16.gmra.mxu1 %v5831_v8 }
 0x929   :  { %v5687_v4 = vadd.f32 %v5686_v58, %v10825_v42  ;;  %v5736_v28 = vadd.f32 %v5735_v57, %v10827_v36  ;;  %v6100_v0 = vpop.f32.mrf.mxu0  ;;  %v6149_v32 = vpop.f32.mrf.mxu1 }
 0x92a   :  { %v6101_v25 = vadd.f32 %v6100_v0, %v10898_v50 }
 0x92b   :  { %v5800_v43 = vmax.f32 %v5687_v4, 0.0  ;;  %v5801_v61 = vmax.f32 %v5736_v28, 0.0 }
 0x92c   :  { %v6150_v54 = vadd.f32 %v6149_v32, %v6101_v25 }
 0x92d   :  { %v5832_v15 = vpack.c.bf16 %v5800_v43, %v5796_v60  ;;  %v5833_v21 = vpack.c.bf16 %v5801_v61, %v5797_v30 }
 0x92f   :  { %6232 = vmatmul.bf16.gmra.mxu2 %v5832_v15  ;;  %6281 = vmatmul.bf16.gmra.mxu3 %v5833_v21 }
 0x930   :  { %v6198_v20 = vpop.f32.mrf.mxu2  ;;  %v6247_v7 = vpop.f32.mrf.mxu3 }
 0x931   :  { %v6199_v13 = vadd.f32 %v6198_v20, %v6150_v54  ;;  %v6102_v1 = vpop.f32.mrf.mxu0  ;;  %v6151_v42 = vpop.f32.mrf.mxu1 }
 0x932   :  { %v6103_v36 = vadd.f32 %v6102_v1, %v10898_v50 }
 0x933   :  { %v6248_v40 = vadd.f32 %v6247_v7, %v6199_v13 }
 0x934   :  { %v6152_v9 = vadd.f32 %v6151_v42, %v6103_v36 }
 0x935   :  { %v6287_v16 = vadd.f32 %v6248_v40, %v10236_v29 }
 0x937   :  { %6303 = vst [vmem:[#allocation2] sm:$0xff] %v6287_v16 }
 0x938   :  { %v6200_v56 = vpop.f32.mrf.mxu2  ;;  %v6249_v31 = vpop.f32.mrf.mxu3 }
 0x939   :  { %v6201_v18 = vadd.f32 %v6200_v56, %v6152_v9  ;;  %v6105_v52 = vpop.f32.mrf.mxu0  ;;  %v6154_v63 = vpop.f32.mrf.mxu1 }
 0x93a   :  { %v6106_v19 = vadd.f32 %v6105_v52, %v10898_v50 }
 0x93b   :  { %v6250_v48 = vadd.f32 %v6249_v31, %v6201_v18 }
 0x93c   :  { %v6155_v11 = vadd.f32 %v6154_v63, %v6106_v19 }
 0x93d   :  { %v6288_v3 = vadd.f32 %v6250_v48, %v10243_v55 }
 0x93f   :  { %6304 = vst [vmem:[#allocation2 + $0x8] sm:$0xff] %v6288_v3 }
 0x940   :  { %v6203_v44 = vpop.f32.mrf.mxu2  ;;  %v6252_v53 = vpop.f32.mrf.mxu3 }
 0x941   :  { %v6204_v17 = vadd.f32 %v6203_v44, %v6155_v11  ;;  %v6107_v59 = vpop.f32.mrf.mxu0  ;;  %v6156_v5 = vpop.f32.mrf.mxu1 }
 0x942   :  { %v6108_v2 = vadd.f32 %v6107_v59, %v10898_v50 }
 0x943   :  { %v6253_v29 = vadd.f32 %v6252_v53, %v6204_v17 }
 0x944   :  { %v6157_v10 = vadd.f32 %v6156_v5, %v6108_v2 }
 0x945   :  { %v6289_v49 = vadd.f32 %v6253_v29, %v10250_v62 }
 0x947   :  { %6305 = vst [vmem:[#allocation2 + $0x10] sm:$0xff] %v6289_v49 }
 0x948   :  { %v6205_v23 = vpop.f32.mrf.mxu2  ;;  %v6254_v24 = vpop.f32.mrf.mxu3 }
 0x949   :  { %v6206_v46 = vadd.f32 %v6205_v23, %v6157_v10  ;;  %v6110_v37 = vpop.f32.mrf.mxu0  ;;  %v6159_v8 = vpop.f32.mrf.mxu1 }
 0x94a   :  { %v6111_v45 = vadd.f32 %v6110_v37, %v10898_v50 }
 0x94b   :  { %v6255_v55 = vadd.f32 %v6254_v24, %v6206_v46 }
 0x94c   :  { %v6160_v58 = vadd.f32 %v6159_v8, %v6111_v45 }
 0x94d   :  { %v6290_v41 = vadd.f32 %v6255_v55, %v10257_v6 }
 0x94f   :  { %6306 = vst [vmem:[#allocation2 + $0x18] sm:$0xff] %v6290_v41 }
 0x950   :  { %v6208_v57 = vpop.f32.mrf.mxu2  ;;  %v6257_v4 = vpop.f32.mrf.mxu3 }
 0x951   :  { %v6209_v28 = vadd.f32 %v6208_v57, %v6160_v58  ;;  %v6112_v0 = vpop.f32.mrf.mxu0  ;;  %v6161_v32 = vpop.f32.mrf.mxu1 }
 0x952   :  { %v6113_v60 = vadd.f32 %v6112_v0, %v10898_v50 }
 0x953   :  { %v6258_v62 = vadd.f32 %v6257_v4, %v6209_v28 }
 0x954   :  { %v6162_v43 = vadd.f32 %v6161_v32, %v6113_v60 }
 0x955   :  { %v6291_v30 = vadd.f32 %v6258_v62, %v10264_v39 }
 0x957   :  { %6307 = vst [vmem:[#allocation2 + $0x20] sm:$0xff] %v6291_v30 }
 0x958   :  { %v6210_v61 = vpop.f32.mrf.mxu2  ;;  %v6259_v25 = vpop.f32.mrf.mxu3 }
 0x959   :  { %v6211_v15 = vadd.f32 %v6210_v61, %v6162_v43  ;;  %v6115_v21 = vpop.f32.mrf.mxu0  ;;  %v6164_v54 = vpop.f32.mrf.mxu1 }
 0x95a   :  { %v6116_v20 = vadd.f32 %v6115_v21, %v10898_v50 }
 0x95b   :  { %v6260_v6 = vadd.f32 %v6259_v25, %v6211_v15 }
 0x95c   :  { %v6165_v13 = vadd.f32 %v6164_v54, %v6116_v20 }
 0x95d   :  { %v6292_v7 = vadd.f32 %v6260_v6, %v10271_v26 }
 0x95f   :  { %6308 = vst [vmem:[#allocation2 + $0x28] sm:$0xff] %v6292_v7 }
 0x960   :  { %v6213_v1 = vpop.f32.mrf.mxu2  ;;  %v6262_v42 = vpop.f32.mrf.mxu3 }
 0x961   :  { %v6214_v40 = vadd.f32 %v6213_v1, %v6165_v13  ;;  %v6117_v36 = vpop.f32.mrf.mxu0  ;;  %v6166_v16 = vpop.f32.mrf.mxu1 }
 0x962   :  { %v6118_v9 = vadd.f32 %v6117_v36, %v10898_v50 }
 0x963   :  { %v6263_v39 = vadd.f32 %v6262_v42, %v6214_v40 }
 0x964   :  { %v6167_v31 = vadd.f32 %v6166_v16, %v6118_v9 }
 0x965   :  { %v6293_v56 = vadd.f32 %v6263_v39, %v10278_v34 }
 0x967   :  { %6309 = vst [vmem:[#allocation2 + $0x30] sm:$0xff] %v6293_v56 }
 0x968   :  { %v6215_v18 = vpop.f32.mrf.mxu2  ;;  %v6264_v52 = vpop.f32.mrf.mxu3 }
 0x969   :  { %v6216_v63 = vadd.f32 %v6215_v18, %v6167_v31  ;;  %v6120_v48 = vpop.f32.mrf.mxu0  ;;  %v6169_v19 = vpop.f32.mrf.mxu1 }
 0x96a   :  { %v6121_v3 = vadd.f32 %v6120_v48, %v10898_v50 }
 0x96b   :  { %v6265_v26 = vadd.f32 %v6264_v52, %v6216_v63 }
 0x96c   :  { %v6170_v44 = vadd.f32 %v6169_v19, %v6121_v3 }
 0x96d   :  { %v6294_v11 = vadd.f32 %v6265_v26, %v10297_v27 }
 0x96f   :  { %6310 = vst [vmem:[#allocation2 + $0x38] sm:$0xff] %v6294_v11 }
 0x970   :  { %v6218_v53 = vpop.f32.mrf.mxu2  ;;  %v6267_v17 = vpop.f32.mrf.mxu3 }
 0x971   :  { %v6219_v59 = vadd.f32 %v6218_v53, %v6170_v44  ;;  %v6122_v5 = vpop.f32.mrf.mxu0  ;;  %v6171_v29 = vpop.f32.mrf.mxu1 }
 0x972   :  { %v6123_v2 = vadd.f32 %v6122_v5, %v10898_v50 }
 0x973   :  { %v6268_v34 = vadd.f32 %v6267_v17, %v6219_v59 }
 0x974   :  { %v6172_v10 = vadd.f32 %v6171_v29, %v6123_v2 }
 0x975   :  { %v6295_v49 = vadd.f32 %v6268_v34, %v10310_v12 }
 0x977   :  { %6311 = vst [vmem:[#allocation2 + $0x40] sm:$0xff] %v6295_v49 }
 0x978   :  { %v6220_v23 = vpop.f32.mrf.mxu2  ;;  %v6269_v24 = vpop.f32.mrf.mxu3 }
 0x979   :  { %v6221_v46 = vadd.f32 %v6220_v23, %v6172_v10  ;;  %v6125_v37 = vpop.f32.mrf.mxu0  ;;  %v6174_v8 = vpop.f32.mrf.mxu1 }
 0x97a   :  { %v6126_v55 = vadd.f32 %v6125_v37, %v10898_v50 }
 0x97b   :  { %v6270_v27 = vadd.f32 %v6269_v24, %v6221_v46 }
 0x97c   :  { %v6175_v41 = vadd.f32 %v6174_v8, %v6126_v55 }
 0x97d   :  { %v6296_v45 = vadd.f32 %v6270_v27, %v10323_v35 }
 0x97f   :  { %6312 = vst [vmem:[#allocation2 + $0x48] sm:$0xff] %v6296_v45 }
 0x980   :  { %v6223_v58 = vpop.f32.mrf.mxu2  ;;  %v6272_v57 = vpop.f32.mrf.mxu3 }
 0x981   :  { %v6224_v4 = vadd.f32 %v6223_v58, %v6175_v41  ;;  %v6127_v28 = vpop.f32.mrf.mxu0  ;;  %v6176_v0 = vpop.f32.mrf.mxu1 }
 0x982   :  { %v6128_v32 = vadd.f32 %v6127_v28, %v10898_v50 }
 0x983   :  { %v6273_v12 = vadd.f32 %v6272_v57, %v6224_v4 }
 0x984   :  { %v6177_v60 = vadd.f32 %v6176_v0, %v6128_v32 }
 0x985   :  { %v6297_v62 = vadd.f32 %v6273_v12, %v10336_v47 }
 0x987   :  { %6313 = vst [vmem:[#allocation2 + $0x50] sm:$0xff] %v6297_v62 }
 0x988   :  { %v6225_v30 = vpop.f32.mrf.mxu2  ;;  %v6274_v43 = vpop.f32.mrf.mxu3 }
 0x989   :  { %v6226_v61 = vadd.f32 %v6225_v30, %v6177_v60  ;;  %v6130_v25 = vpop.f32.mrf.mxu0  ;;  %v6179_v21 = vpop.f32.mrf.mxu1 }
 0x98a   :  { %v6131_v35 = vadd.f32 %v6130_v25, %v10898_v50 }
 0x98b   :  { %v6275_v15 = vadd.f32 %v6274_v43, %v6226_v61 }
 0x98c   :  { %v6180_v6 = vadd.f32 %v6179_v21, %v6131_v35 }
 0x98d   :  { %v6298_v54 = vadd.f32 %v6275_v15, %v10349_v14 }
 0x98f   :  { %6314 = vst [vmem:[#allocation2 + $0x58] sm:$0xff] %v6298_v54 }
 0x990   :  { %v6228_v20 = vpop.f32.mrf.mxu2  ;;  %v6277_v7 = vpop.f32.mrf.mxu3 }
 0x991   :  { %v6229_v13 = vadd.f32 %v6228_v20, %v6180_v6  ;;  %v6132_v1 = vpop.f32.mrf.mxu0  ;;  %v6181_v36 = vpop.f32.mrf.mxu1 }
 0x992   :  { %v6133_v47 = vadd.f32 %v6132_v1, %v10898_v50 }
 0x993   :  { %v6278_v42 = vadd.f32 %v6277_v7, %v6229_v13 }
 0x994   :  { %v6182_v16 = vadd.f32 %v6181_v36, %v6133_v47 }
 0x995   :  { %v6299_v40 = vadd.f32 %v6278_v42, %v10362_v51 }
 0x997   :  { %6315 = vst [vmem:[#allocation2 + $0x60] sm:$0xff] %v6299_v40 }
 0x998   :  { %v6230_v39 = vpop.f32.mrf.mxu2  ;;  %v6279_v56 = vpop.f32.mrf.mxu3 }
 0x999   :  { %v6231_v9 = vadd.f32 %v6230_v39, %v6182_v16 }
 0x99b   :  { %v6280_v31 = vadd.f32 %v6279_v56, %v6231_v9 }
 0x99d   :  { %v6300_v14 = vadd.f32 %v6280_v31, %v10369_v22 }
 0x99f   :  { %6316 = vst [vmem:[#allocation2 + $0x68] sm:$0xff] %v6300_v14 }
 0x9a5   :  { %v6135_v18 = vpop.f32.mrf.mxu0  ;;  %v6184_v63 = vpop.f32.mrf.mxu1 }
 0x9a6   :  { %v6136_v52 = vadd.f32 %v6135_v18, %v10898_v50 }
 0x9a8   :  { %v6185_v48 = vadd.f32 %v6184_v63, %v6136_v52 }
 0x9ad   :  { %v6137_v19 = vpop.f32.mrf.mxu0  ;;  %v6186_v17 = vpop.f32.mrf.mxu1 }
 0x9ae   :  { %v6138_v51 = vadd.f32 %v6137_v19, %v10898_v50 }
 0x9b0   :  { %v6187_v59 = vadd.f32 %v6186_v17, %v6138_v51 }
 0x9b2   :  { %v6233_v26 = vpop.f32.mrf.mxu2  ;;  %v6282_v3 = vpop.f32.mrf.mxu3 }
 0x9b3   :  { %v6234_v11 = vadd.f32 %v6233_v26, %v6185_v48 }
 0x9b5   :  { %v6283_v44 = vadd.f32 %v6282_v3, %v6234_v11 }
 0x9b7   :  { %v6301_v53 = vadd.f32 %v6283_v44, %v10376_v33 }
 0x9b9   :  { %6317 = vst [vmem:[#allocation2 + $0x70] sm:$0xff] %v6301_v53 }
 0x9ba   :  { %v6235_v5 = vpop.f32.mrf.mxu2  ;;  %v6284_v29 = vpop.f32.mrf.mxu3 }
 0x9bb   :  { %v6236_v22 = vadd.f32 %v6235_v5, %v6187_v59 }
 0x9bd   :  { %v6285_v34 = vadd.f32 %v6284_v29, %v6236_v22 }
 0x9bf   :  { %v6302_v50 = vadd.f32 %v6285_v34, %v10601_v38 }
 0x9c1   :  { %6318 = vst [vmem:[#allocation2 + $0x78] sm:$0xff] %v6302_v50 }
 0x9c2   :  { %6331 = dma.vmem_to_hbm [thread:$0]  %s6324_s26, 2048, %s6326_s4, [#allocation3], %s7645_s29, %s7645_s29, %s7646_s30  }
 0x9c3   :  { %7641 = dma.done.wait [#allocation3], 2048  }
 0x9c4   :  { %7642 = vsyncadd [#allocation3], 4294965248 }
 0x9c5   :  { %6336 = vsyncpa [#allocation3], 1 }

</bundles_post_ra>
